<compile_context>
chip_gen: v7x
topology: tpu7x:2x2x1
jax: 0.10.0
libtpu: 0.0.40
codegen_flags: <defaults>
</compile_context>

<pallas_src>
import functools
import math

import jax
import jax.numpy as jnp
from jax.experimental import pallas as pl
from jax.experimental.pallas import tpu as pltpu

# ----------------------------- configuration -------------------------------
N_VOCAB = 40        # synthetic phoneme vocabulary
HIDDEN = 32         # text-encoder hidden channels
INTER = 32          # inter_channels (z / m_p / logs_p channels)
DP_HIDDEN = 32      # duration-predictor hidden channels
DEC_HIDDEN = 32     # decoder hidden channels
T_DEC_MAX = 32      # static cap on decoder frames (VITS length is data-dependent)
UPSAMPLE = 4        # synthetic HiFi-GAN upsample factor (real model: 256x)
T_AUDIO = T_DEC_MAX * UPSAMPLE   # 128 -> lane-dense output row
CONV_K = 3          # conv kernel size used for the "conv" stages
MISC_W = 64         # padded lane width of the "misc" weight slab / bias slab


# --------------------------- in-kernel helpers ------------------------------
def _act(y, act):
    if act == "relu":
        return jnp.maximum(y, 0.0)
    if act == "leaky":
        return jnp.where(y > 0.0, y, 0.1 * y)
    if act == "tanh":
        return jnp.tanh(y)
    return y


def _layernorm(x, g_row, b_row, eps=1e-5):
    mean = jnp.mean(x, axis=-1, keepdims=True)
    var = jnp.mean((x - mean) * (x - mean), axis=-1, keepdims=True)
    return (x - mean) * jax.lax.rsqrt(var + eps) * g_row + b_row


# ------------------------------ fused kernel --------------------------------
def _vits_fused_kernel(xlen_s, tok_ref, noise_ref, up_ref, w32_ref, wm_ref,
                       b_ref, o_ref, *, off32, offm, bidx, bblk,
                       noise_scale, length_scale):
    f32 = jnp.float32
    bf16 = jnp.bfloat16
    Tx = tok_ref.shape[1]
    half = INTER // 2
    step = pl.program_id(0)

    def mxu(a, b):
        # bf16 operands, f32 accumulation (native MXU path on v6e/v7x)
        return jnp.dot(a.astype(bf16), b.astype(bf16),
                       preferred_element_type=f32)

    def taps32(name, cin):
        o = off32[name]
        return (w32_ref[o:o + cin, :],
                w32_ref[o + cin:o + 2 * cin, :],
                w32_ref[o + 2 * cin:o + 3 * cin, :])

    def wmis(name, rows, cols):
        o = offm[name]
        return wm_ref[o:o + rows, :cols]

    def taps_misc(name, cin, cols):
        o = offm[name]
        return (wm_ref[o:o + cin, :cols],
                wm_ref[o + cin:o + 2 * cin, :cols],
                wm_ref[o + 2 * cin:o + 3 * cin, :cols])

    def brow(name, cols):
        i = bidx[name]
        return b_ref[i:i + 1, :cols]

    def conv3(x, taps, b_row, nf, nl, act=None):
        """'same' K=3 conv, time-major [T, Cin]: XLU rolls for the halo plus
        three summed MXU matmuls (no shift-matrix matmuls, no im2col concat)."""
        T = x.shape[0]
        wp, wc, wn = taps
        xm1 = pltpu.roll(x, shift=1, axis=0) * nf        # x[t-1]; zero row 0
        xp1 = pltpu.roll(x, shift=T - 1, axis=0) * nl    # x[t+1]; zero last row
        y = mxu(x, wc) + mxu(xm1, wp) + mxu(xp1, wn) + b_row
        return _act(y, act)

    # ---- shape-only constants, hoisted out of the per-element loop ----
    def not_first_last(T):
        r = jax.lax.broadcasted_iota(jnp.int32, (T, 1), 0)
        return (r > 0).astype(f32), (r < T - 1).astype(f32)

    nf_x, nl_x = not_first_last(Tx)
    nf_d, nl_d = not_first_last(T_DEC_MAX)
    nf_a, nl_a = not_first_last(T_AUDIO)

    txc = jax.lax.broadcasted_iota(jnp.int32, (Tx, 1), 0)
    txr = jax.lax.broadcasted_iota(jnp.int32, (1, Tx), 1)
    ri = jax.lax.broadcasted_iota(jnp.int32, (Tx, Tx), 0)
    ci = jax.lax.broadcasted_iota(jnp.int32, (Tx, Tx), 1)
    ty = jax.lax.broadcasted_iota(jnp.int32, (T_DEC_MAX, Tx), 0).astype(f32)
    tdc = jax.lax.broadcasted_iota(jnp.int32, (T_DEC_MAX, 1), 0).astype(f32)
    voc = jax.lax.broadcasted_iota(jnp.int32, (Tx, N_VOCAB), 1)

    for b in range(bblk):                       # batch fold: bblk elems / step
        xl = xlen_s[step * bblk + b]            # scalar read from SMEM
        tok = tok_ref[b]                        # [Tx, 1] int32 token ids
        noise = noise_ref[b]                    # [T_DEC_MAX, INTER] f32

        # -------- masks (broadcasts hoisted once per element) --------
        xm_col = (txc < xl).astype(f32)
        xm_row = (txr < xl).astype(f32)
        xm32 = jnp.broadcast_to(xm_col, (Tx, HIDDEN))

        # -------- text encoder (enc_p) --------
        onehot = (voc == tok).astype(f32)
        emb = w32_ref[off32["emb"]:off32["emb"] + N_VOCAB, :]
        h = mxu(onehot, emb) * math.sqrt(HIDDEN) * xm32
        h = conv3(h, taps32("enc_w1", HIDDEN), brow("enc_b1", HIDDEN),
                  nf_x, nl_x, "relu") * xm32
        h = _layernorm(h, brow("enc_g", HIDDEN), brow("enc_bt", HIDDEN)) * xm32
        stats = (mxu(h, wmis("proj", HIDDEN, 2 * INTER))
                 + brow("proj_b", 2 * INTER)) * xm_col          # [Tx, 2*INTER]

        # -------- duration predictor --------
        d = conv3(h, taps32("dp_w1", HIDDEN), brow("dp_b1", DP_HIDDEN),
                  nf_x, nl_x, "relu") * xm32
        d = _layernorm(d, brow("dp_g1", DP_HIDDEN), brow("dp_bt1", DP_HIDDEN)) * xm32
        d = conv3(d, taps32("dp_w2", DP_HIDDEN), brow("dp_b2", DP_HIDDEN),
                  nf_x, nl_x, "relu") * xm32
        d = _layernorm(d, brow("dp_g2", DP_HIDDEN), brow("dp_bt2", DP_HIDDEN)) * xm32
        logw = mxu(d, wmis("dp_proj", DP_HIDDEN, 1)) + brow("dp_pb", 1)
        # mask inside the exp so padded positions cannot produce inf * 0 -> NaN
        w = jnp.exp(jnp.where(xm_col > 0.0, logw, 0.0)) * xm_col * length_scale
        w_ceil = jnp.ceil(w)                                    # [Tx, 1]

        # -------- monotonic alignment path (generate_path) --------
        cum_row = jnp.sum(jnp.where(ri <= ci, w_ceil, 0.0), axis=0, keepdims=True)
        cumprev_row = jnp.sum(jnp.where(ri < ci, w_ceil, 0.0), axis=0, keepdims=True)
        total = jnp.sum(w_ceil, axis=0, keepdims=True)
        # TODO(synk): output length is data-dependent in VITS; capped at static T_DEC_MAX.
        y_len = jnp.clip(total, 1.0, float(T_DEC_MAX))
        ym_col = (tdc < y_len).astype(f32)
        ym32 = jnp.broadcast_to(ym_col, (T_DEC_MAX, INTER))
        attn = ((ty < cum_row).astype(f32) - (ty < cumprev_row).astype(f32))
        attn = attn * ym_col * xm_row                           # [T_DEC, Tx]

        # -------- expand stats along time + scaled noise --------
        stats_exp = mxu(attn, stats)                            # [T_DEC, 2*INTER]
        m_exp = stats_exp[:, :INTER]
        s_exp = stats_exp[:, INTER:]
        z = (m_exp + noise * jnp.exp(s_exp) * noise_scale) * ym32

        # -------- flow (reverse): halves kept separate, flip == half swap ----
        z0 = z[:, :half]
        z1 = z[:, half:]
        for li in (1, 0):
            z0, z1 = z1, z0                                     # channel flip
            o_pre = off32[f"pre{li}"]
            hh = (mxu(z0, w32_ref[o_pre:o_pre + half, :])
                  + brow(f"pre_b{li}", HIDDEN)) * ym32
            hh = conv3(hh, taps32(f"wn{li}", HIDDEN), brow(f"wn_b{li}", HIDDEN),
                       nf_d, nl_d, "relu") * ym32
            m = (mxu(hh, wmis(f"post{li}", HIDDEN, half))
                 + brow(f"post_b{li}", half)) * ym_col
            z1 = (z1 - m) * ym_col                              # mean-only coupling, reverse
        z = jnp.concatenate([z0, z1], axis=1) * ym32
        # TODO(synk): max_len truncation of z is not applied in the fused kernel.

        # -------- decoder (simplified HiFi-GAN) --------
        hdec = conv3(z, taps32("dec_pre", INTER), brow("dec_pre_b", DEC_HIDDEN),
                     nf_d, nl_d)                                # [T_DEC, C]
        # nearest-neighbour x4 upsample via host-precomputed selection matrix
        # TODO(synk): real HiFi-GAN uses stacked ConvTranspose1d upsampling + MRF.
        up = mxu(up_ref[...], hdec)                             # [T_AUDIO, C]
        r = _act(up, "leaky")
        r = conv3(r, taps32("res1", DEC_HIDDEN), brow("res_b1", DEC_HIDDEN),
                  nf_a, nl_a, "leaky")
        r = conv3(r, taps32("res2", DEC_HIDDEN), brow("res_b2", DEC_HIDDEN),
                  nf_a, nl_a)
        hd = _act(up + r, "leaky")
        wav8 = conv3(hd, taps_misc("dec_post", DEC_HIDDEN, 8), brow("dec_post_b", 8),
                     nf_a, nl_a, "tanh")                        # [T_AUDIO, 8], col 0 real
        wav_row = jnp.transpose(wav8)[0:1, :]                   # lane-dense [1, T_AUDIO]
        o_ref[b] = wav_row.astype(o_ref.dtype)


# ------------------------------ parameters ----------------------------------
def init_params(key):
    def nrm(k, shape, scale=0.1):
        return scale * jax.random.normal(k, shape, dtype=jnp.float32)

    ks = iter(jax.random.split(key, 64))
    p = {}
    # text encoder
    p["emb"] = nrm(next(ks), (N_VOCAB, HIDDEN), 1.0)
    p["enc_w1"] = nrm(next(ks), (CONV_K, HIDDEN, HIDDEN))
    p["enc_b1"] = jnp.zeros((HIDDEN,), jnp.float32)
    p["enc_ln_g"] = jnp.ones((HIDDEN,), jnp.float32)
    p["enc_ln_b"] = jnp.zeros((HIDDEN,), jnp.float32)
    p["proj_w"] = nrm(next(ks), (1, HIDDEN, 2 * INTER))
    p["proj_b"] = jnp.zeros((2 * INTER,), jnp.float32)
    # duration predictor (deterministic DP; SDP flows not reproduced)
    p["dp_w1"] = nrm(next(ks), (CONV_K, HIDDEN, DP_HIDDEN))
    p["dp_b1"] = jnp.zeros((DP_HIDDEN,), jnp.float32)
    p["dp_ln1_g"] = jnp.ones((DP_HIDDEN,), jnp.float32)
    p["dp_ln1_b"] = jnp.zeros((DP_HIDDEN,), jnp.float32)
    p["dp_w2"] = nrm(next(ks), (CONV_K, DP_HIDDEN, DP_HIDDEN))
    p["dp_b2"] = jnp.zeros((DP_HIDDEN,), jnp.float32)
    p["dp_ln2_g"] = jnp.ones((DP_HIDDEN,), jnp.float32)
    p["dp_ln2_b"] = jnp.zeros((DP_HIDDEN,), jnp.float32)
    p["dp_proj_w"] = nrm(next(ks), (1, DP_HIDDEN, 1))
    p["dp_proj_b"] = jnp.zeros((1,), jnp.float32)
    # flow: 2 mean-only residual coupling layers (+ channel flip each)
    p["flow"] = []
    for _ in range(2):
        half = INTER // 2
        p["flow"].append({
            "pre_w": nrm(next(ks), (1, half, HIDDEN)),
            "pre_b": jnp.zeros((HIDDEN,), jnp.float32),
            "wn_w": nrm(next(ks), (CONV_K, HIDDEN, HIDDEN)),
            "wn_b": jnp.zeros((HIDDEN,), jnp.float32),
            "post_w": nrm(next(ks), (1, HIDDEN, half)),
            "post_b": jnp.zeros((half,), jnp.float32),
        })
    # decoder (simplified HiFi-GAN generator)
    p["dec_pre_w"] = nrm(next(ks), (CONV_K, INTER, DEC_HIDDEN))
    p["dec_pre_b"] = jnp.zeros((DEC_HIDDEN,), jnp.float32)
    p["res_w1"] = nrm(next(ks), (CONV_K, DEC_HIDDEN, DEC_HIDDEN))
    p["res_b1"] = jnp.zeros((DEC_HIDDEN,), jnp.float32)
    p["res_w2"] = nrm(next(ks), (CONV_K, DEC_HIDDEN, DEC_HIDDEN))
    p["res_b2"] = jnp.zeros((DEC_HIDDEN,), jnp.float32)
    p["dec_post_w"] = nrm(next(ks), (CONV_K, DEC_HIDDEN, 1))
    p["dec_post_b"] = jnp.zeros((1,), jnp.float32)
    return p


def pack_params(p):
    """Pack the ~37 weight/bias arrays into 3 slabs (fewer DMAs, bf16 MXU path).

    Returns (w32, wmisc, bias, off32, offm, bidx); all row offsets are
    multiples of 8 so in-kernel slices stay sublane-aligned.
    """
    def flat3(w):          # [K, Cin, Cout] -> [K*Cin, Cout]  (k-major)
        K, Cin, Cout = w.shape
        return w.reshape(K * Cin, Cout)

    # --- slab 1: every weight with Cout == 32, stacked along rows (bf16) ---
    segs, off32 = [], {}

    def add32(name, w2d):
        off32[name] = sum(int(s.shape[0]) for s in segs)
        segs.append(w2d)

    add32("emb", p["emb"])
    add32("enc_w1", flat3(p["enc_w1"]))
    add32("dp_w1", flat3(p["dp_w1"]))
    add32("dp_w2", flat3(p["dp_w2"]))
    for li, layer in enumerate(p["flow"]):
        add32(f"pre{li}", layer["pre_w"][0])
        add32(f"wn{li}", flat3(layer["wn_w"]))
    add32("dec_pre", flat3(p["dec_pre_w"]))
    add32("res1", flat3(p["res_w1"]))
    add32("res2", flat3(p["res_w2"]))
    w32 = jnp.concatenate(segs, axis=0).astype(jnp.bfloat16)

    # --- slab 2: remaining weights, columns zero-padded to MISC_W (bf16) ---
    msegs, offm = [], {}

    def addm(name, w2d):
        offm[name] = sum(int(s.shape[0]) for s in msegs)
        msegs.append(jnp.pad(w2d, ((0, 0), (0, MISC_W - w2d.shape[1]))))

    addm("proj", p["proj_w"][0])
    addm("dp_proj", p["dp_proj_w"][0])
    for li, layer in enumerate(p["flow"]):
        addm(f"post{li}", layer["post_w"][0])
    addm("dec_post", flat3(p["dec_post_w"]))
    wmisc = jnp.concatenate(msegs, axis=0).astype(jnp.bfloat16)

    # --- slab 3: bias / LayerNorm rows, zero-padded to MISC_W lanes (f32) ---
    brows, bidx = [], {}

    def addb(name, v):
        bidx[name] = len(brows)
        brows.append(jnp.pad(v, (0, MISC_W - v.shape[0])))

    addb("enc_b1", p["enc_b1"]); addb("enc_g", p["enc_ln_g"]); addb("enc_bt", p["enc_ln_b"])
    addb("proj_b", p["proj_b"])
    addb("dp_b1", p["dp_b1"]); addb("dp_g1", p["dp_ln1_g"]); addb("dp_bt1", p["dp_ln1_b"])
    addb("dp_b2", p["dp_b2"]); addb("dp_g2", p["dp_ln2_g"]); addb("dp_bt2", p["dp_ln2_b"])
    addb("dp_pb", p["dp_proj_b"])
    for li, layer in enumerate(p["flow"]):
        addb(f"pre_b{li}", layer["pre_b"])
        addb(f"wn_b{li}", layer["wn_b"])
        addb(f"post_b{li}", layer["post_b"])
    addb("dec_pre_b", p["dec_pre_b"]); addb("res_b1", p["res_b1"])
    addb("res_b2", p["res_b2"]); addb("dec_post_b", p["dec_post_b"])
    bias = jnp.stack(brows, axis=0).astype(jnp.float32)

    return w32, wmisc, bias, off32, offm, bidx


# ------------------------------ forward (infer) ------------------------------
def onnx_model_forward(params, x, x_lengths, noise_rng,
                       noise_scale=1.0, length_scale=1.0,
                       noise_scale_w=1.0, sid=0, max_len=None,
                       batch_block=2):
    # sid: single-speaker synthetic config -> no speaker embedding used.
    # TODO(synk): noise_scale_w drives the stochastic duration predictor flows,
    #             which are replaced here by a deterministic duration predictor.
    # TODO(synk): max_len truncation is not applied inside the fused kernel.
    del noise_scale_w, sid, max_len
    B, Tx = x.shape
    bblk = batch_block if (batch_block and B % batch_block == 0) else 1

    tok = x.reshape(B, Tx, 1).astype(jnp.int32)
    noise = jax.random.normal(noise_rng, (B, T_DEC_MAX, INTER), dtype=jnp.float32)

    # host-precomputed nearest-neighbour upsample selection matrix (constant)
    rows = jnp.arange(T_AUDIO)[:, None] // UPSAMPLE
    cols = jnp.arange(T_DEC_MAX)[None, :]
    up_mat = (rows == cols).astype(jnp.bfloat16)            # [T_AUDIO, T_DEC_MAX]

    w32, wmisc, bias, off32, offm, bidx = pack_params(params)

    kern = functools.partial(_vits_fused_kernel,
                             off32=off32, offm=offm, bidx=bidx, bblk=bblk,
                             noise_scale=float(noise_scale),
                             length_scale=float(length_scale))

    grid_spec = pltpu.PrefetchScalarGridSpec(
        num_scalar_prefetch=1,                               # x_lengths -> SMEM
        grid=(B // bblk,),
        in_specs=[
            pl.BlockSpec((bblk, Tx, 1), lambda i, xl: (i, 0, 0)),             # tokens
            pl.BlockSpec((bblk, T_DEC_MAX, INTER), lambda i, xl: (i, 0, 0)),  # noise
            pl.BlockSpec(up_mat.shape, lambda i, xl: (0, 0)),                 # upsample sel
            pl.BlockSpec(w32.shape, lambda i, xl: (0, 0)),                    # weight slab
            pl.BlockSpec(wmisc.shape, lambda i, xl: (0, 0)),                  # misc weights
            pl.BlockSpec(bias.shape, lambda i, xl: (0, 0)),                   # bias slab
        ],
        out_specs=pl.BlockSpec((bblk, 1, T_AUDIO), lambda i, xl: (i, 0, 0)),
    )

    out = pl.pallas_call(
        kern,
        out_shape=jax.ShapeDtypeStruct((B, 1, T_AUDIO), jnp.float32),
        grid_spec=grid_spec,
        compiler_params=pltpu.CompilerParams(
            dimension_semantics=("parallel",)),   # v7x megacore: batch-parallel
    )(x_lengths.astype(jnp.int32).reshape(B), tok, noise, up_mat, w32, wmisc, bias)
    return out                                    # [B, 1, T_audio]


# ------------------------------ driver ---------------------------------------
if __name__ == "__main__":
    key = jax.random.PRNGKey(0)
    k_param, k_tok, k_noise = jax.random.split(key, 3)

    params = init_params(k_param)

    B, T_TEXT = 4, 8
    x = jax.random.randint(k_tok, (B, T_TEXT), 0, N_VOCAB, dtype=jnp.int32)
    x_lengths = jnp.array([8, 6, 8, 5], dtype=jnp.int32)

    wav = onnx_model_forward(params, x, x_lengths, k_noise,
                             noise_scale=1.0, length_scale=1.0,
                             noise_scale_w=1.0, sid=0, max_len=None,
                             batch_block=2)
    wav = jax.block_until_ready(wav)
    assert wav.shape == (B, 1, T_DEC_MAX * UPSAMPLE), wav.shape
    assert bool(jnp.all(jnp.isfinite(wav)))
    print("KERNEL_OK")
</pallas_src>

<mosaic_0001>
module attributes {stable_mosaic.version = 11 : i64} {
  func.func @_vits_fused_kernel(%arg0: i32, %arg1: memref<4xi32, #tpu.memory_space<smem>>, %arg2: memref<2x8x1xi32, #tpu.memory_space<vmem>>, %arg3: memref<2x32x32xf32, #tpu.memory_space<vmem>>, %arg4: memref<128x32xbf16, #tpu.memory_space<vmem>>, %arg5: memref<840x32xbf16, #tpu.memory_space<vmem>>, %arg6: memref<224x64xbf16, #tpu.memory_space<vmem>>, %arg7: memref<21x64xf32, #tpu.memory_space<vmem>>, %arg8: memref<2x1x128xf32, #tpu.memory_space<vmem>>) attributes {dimension_semantics = [#tpu.dimension_semantics<parallel>], iteration_bounds = array<i64: 2>, scalar_prefetch = 1 : i64, scratch_operands = 0 : i64, tpu.core_type = #tpu.core_type<tc>, window_params = [{transform_indices = @transform_0, window_bounds = array<i64: 2, 8, 1>}, {transform_indices = @transform_1, window_bounds = array<i64: 2, 32, 32>}, {pipeline_mode = #tpu.pipeline_mode<synchronous>, transform_indices = @transform_2, window_bounds = array<i64: 128, 32>}, {pipeline_mode = #tpu.pipeline_mode<synchronous>, transform_indices = @transform_3, window_bounds = array<i64: 840, 32>}, {pipeline_mode = #tpu.pipeline_mode<synchronous>, transform_indices = @transform_4, window_bounds = array<i64: 224, 64>}, {pipeline_mode = #tpu.pipeline_mode<synchronous>, transform_indices = @transform_5, window_bounds = array<i64: 21, 64>}, {transform_indices = @transform_6, window_bounds = array<i64: 2, 1, 128>}]} {
    %0 = tpu.iota {dimensions = array<i32: 0>} : vector<8x1xi32>
    %c0_i32 = arith.constant 0 : i32
    %1 = vector.broadcast %c0_i32 : i32 to vector<8x1xi32>
    %2 = arith.cmpi sgt, %0, %1 : vector<8x1xi32>
    %3 = arith.extui %2 : vector<8x1xi1> to vector<8x1xi32>
    %4 = arith.sitofp %3 : vector<8x1xi32> to vector<8x1xf32>
    %c7_i32 = arith.constant 7 : i32
    %5 = vector.broadcast %c7_i32 : i32 to vector<8x1xi32>
    %6 = arith.cmpi slt, %0, %5 : vector<8x1xi32>
    %7 = arith.extui %6 : vector<8x1xi1> to vector<8x1xi32>
    %8 = arith.sitofp %7 : vector<8x1xi32> to vector<8x1xf32>
    %9 = tpu.iota {dimensions = array<i32: 0>} : vector<32x1xi32>
    %c0_i32_0 = arith.constant 0 : i32
    %10 = vector.broadcast %c0_i32_0 : i32 to vector<32x1xi32>
    %11 = arith.cmpi sgt, %9, %10 : vector<32x1xi32>
    %12 = arith.extui %11 : vector<32x1xi1> to vector<32x1xi32>
    %13 = arith.sitofp %12 : vector<32x1xi32> to vector<32x1xf32>
    %c31_i32 = arith.constant 31 : i32
    %14 = vector.broadcast %c31_i32 : i32 to vector<32x1xi32>
    %15 = arith.cmpi slt, %9, %14 : vector<32x1xi32>
    %16 = arith.extui %15 : vector<32x1xi1> to vector<32x1xi32>
    %17 = arith.sitofp %16 : vector<32x1xi32> to vector<32x1xf32>
    %18 = tpu.iota {dimensions = array<i32: 0>} : vector<128x1xi32>
    %c0_i32_1 = arith.constant 0 : i32
    %19 = vector.broadcast %c0_i32_1 : i32 to vector<128x1xi32>
    %20 = arith.cmpi sgt, %18, %19 : vector<128x1xi32>
    %21 = arith.extui %20 : vector<128x1xi1> to vector<128x1xi32>
    %22 = arith.sitofp %21 : vector<128x1xi32> to vector<128x1xf32>
    %c127_i32 = arith.constant 127 : i32
    %23 = vector.broadcast %c127_i32 : i32 to vector<128x1xi32>
    %24 = arith.cmpi slt, %18, %23 : vector<128x1xi32>
    %25 = arith.extui %24 : vector<128x1xi1> to vector<128x1xi32>
    %26 = arith.sitofp %25 : vector<128x1xi32> to vector<128x1xf32>
    %27 = tpu.iota {dimensions = array<i32: 0>} : vector<8x1xi32>
    %28 = tpu.iota {dimensions = array<i32: 1>} : vector<1x8xi32>
    %29 = tpu.iota {dimensions = array<i32: 0>} : vector<8x8xi32>
    %30 = tpu.iota {dimensions = array<i32: 1>} : vector<8x8xi32>
    %31 = tpu.iota {dimensions = array<i32: 0>} : vector<32x8xi32>
    %32 = arith.sitofp %31 : vector<32x8xi32> to vector<32x8xf32>
    %33 = tpu.iota {dimensions = array<i32: 0>} : vector<32x1xi32>
    %34 = arith.sitofp %33 : vector<32x1xi32> to vector<32x1xf32>
    %35 = tpu.iota {dimensions = array<i32: 1>} : vector<8x40xi32>
    %c2_i32 = arith.constant 2 : i32
    %36 = arith.muli %arg0, %c2_i32 : i32
    %c0_i32_2 = arith.constant 0 : i32
    %37 = arith.addi %36, %c0_i32_2 : i32
    %38 = arith.index_cast %37 : i32 to index
    %39 = memref.load %arg1[%38] : memref<4xi32, #tpu.memory_space<smem>>
    %c0 = arith.constant 0 : index
    %c0_3 = arith.constant 0 : index
    %c0_4 = arith.constant 0 : index
    %40 = vector.load %arg2[%c0, %c0_3, %c0_4] : memref<2x8x1xi32, #tpu.memory_space<vmem>>, vector<1x8x1xi32>
    %41 = vector.shape_cast %40 : vector<1x8x1xi32> to vector<8x1xi32>
    %c0_5 = arith.constant 0 : index
    %c0_6 = arith.constant 0 : index
    %c0_7 = arith.constant 0 : index
    %42 = vector.load %arg3[%c0_5, %c0_6, %c0_7] : memref<2x32x32xf32, #tpu.memory_space<vmem>>, vector<1x32x32xf32>
    %43 = vector.shape_cast %42 : vector<1x32x32xf32> to vector<32x32xf32>
    %44 = vector.broadcast %39 : i32 to vector<8x1xi32>
    %45 = arith.cmpi slt, %27, %44 : vector<8x1xi32>
    %46 = arith.extui %45 : vector<8x1xi1> to vector<8x1xi32>
    %47 = arith.sitofp %46 : vector<8x1xi32> to vector<8x1xf32>
    %48 = vector.broadcast %39 : i32 to vector<1x8xi32>
    %49 = arith.cmpi slt, %28, %48 : vector<1x8xi32>
    %50 = arith.extui %49 : vector<1x8xi1> to vector<1x8xi32>
    %51 = arith.sitofp %50 : vector<1x8xi32> to vector<1x8xf32>
    %52 = vector.shape_cast %47 : vector<8x1xf32> to vector<8x1xf32>
    %53 = vector.broadcast %52 : vector<8x1xf32> to vector<8x32xf32>
    %54 = vector.broadcast %41 : vector<8x1xi32> to vector<8x40xi32>
    %55 = arith.cmpi eq, %35, %54 : vector<8x40xi32>
    %56 = arith.extui %55 : vector<8x40xi1> to vector<8x40xi32>
    %57 = arith.sitofp %56 : vector<8x40xi32> to vector<8x40xf32>
    %c0_8 = arith.constant 0 : index
    %c0_9 = arith.constant 0 : index
    %58 = vector.load %arg5[%c0_8, %c0_9] : memref<840x32xbf16, #tpu.memory_space<vmem>>, vector<40x32xbf16>
    %59 = arith.truncf %57 : vector<8x40xf32> to vector<8x40xbf16>
    %cst = arith.constant dense<0.000000e+00> : vector<8x32xf32>
    %60 = tpu.matmul %59, %58, %cst {dimension_numbers = #tpu.dot_dimension_numbers<[1], [0], [0], [1], [0, 0, 1, 1], [], []>} : vector<8x40xbf16>, vector<40x32xbf16>, vector<8x32xf32> -> vector<8x32xf32>
    %cst_10 = arith.constant 5.65685415 : f32
    %61 = vector.broadcast %cst_10 : f32 to vector<8x32xf32>
    %62 = arith.mulf %60, %61 : vector<8x32xf32>
    %63 = arith.mulf %62, %53 : vector<8x32xf32>
    %c40 = arith.constant 40 : index
    %c0_11 = arith.constant 0 : index
    %64 = vector.load %arg5[%c40, %c0_11] : memref<840x32xbf16, #tpu.memory_space<vmem>>, vector<32x32xbf16>
    %c72 = arith.constant 72 : index
    %c0_12 = arith.constant 0 : index
    %65 = vector.load %arg5[%c72, %c0_12] : memref<840x32xbf16, #tpu.memory_space<vmem>>, vector<32x32xbf16>
    %c104 = arith.constant 104 : index
    %c0_13 = arith.constant 0 : index
    %66 = vector.load %arg5[%c104, %c0_13] : memref<840x32xbf16, #tpu.memory_space<vmem>>, vector<32x32xbf16>
    %c0_14 = arith.constant 0 : index
    %c0_15 = arith.constant 0 : index
    %67 = vector.load %arg7[%c0_14, %c0_15] : memref<21x64xf32, #tpu.memory_space<vmem>>, vector<1x32xf32>
    %c1_i32 = arith.constant 1 : i32
    %68 = tpu.dynamic_rotate %63 by %c1_i32 dim 0 : vector<8x32xf32>, i32 -> vector<8x32xf32>
    %69 = vector.broadcast %4 : vector<8x1xf32> to vector<8x32xf32>
    %70 = arith.mulf %68, %69 : vector<8x32xf32>
    %c7_i32_16 = arith.constant 7 : i32
    %71 = tpu.dynamic_rotate %63 by %c7_i32_16 dim 0 : vector<8x32xf32>, i32 -> vector<8x32xf32>
    %72 = vector.broadcast %8 : vector<8x1xf32> to vector<8x32xf32>
    %73 = arith.mulf %71, %72 : vector<8x32xf32>
    %74 = arith.truncf %63 : vector<8x32xf32> to vector<8x32xbf16>
    %cst_17 = arith.constant dense<0.000000e+00> : vector<8x32xf32>
    %75 = tpu.matmul %74, %65, %cst_17 {dimension_numbers = #tpu.dot_dimension_numbers<[1], [0], [0], [1], [0, 0, 1, 1], [], []>} : vector<8x32xbf16>, vector<32x32xbf16>, vector<8x32xf32> -> vector<8x32xf32>
    %76 = arith.truncf %70 : vector<8x32xf32> to vector<8x32xbf16>
    %cst_18 = arith.constant dense<0.000000e+00> : vector<8x32xf32>
    %77 = tpu.matmul %76, %64, %cst_18 {dimension_numbers = #tpu.dot_dimension_numbers<[1], [0], [0], [1], [0, 0, 1, 1], [], []>} : vector<8x32xbf16>, vector<32x32xbf16>, vector<8x32xf32> -> vector<8x32xf32>
    %78 = arith.addf %75, %77 : vector<8x32xf32>
    %79 = arith.truncf %73 : vector<8x32xf32> to vector<8x32xbf16>
    %cst_19 = arith.constant dense<0.000000e+00> : vector<8x32xf32>
    %80 = tpu.matmul %79, %66, %cst_19 {dimension_numbers = #tpu.dot_dimension_numbers<[1], [0], [0], [1], [0, 0, 1, 1], [], []>} : vector<8x32xbf16>, vector<32x32xbf16>, vector<8x32xf32> -> vector<8x32xf32>
    %81 = arith.addf %78, %80 : vector<8x32xf32>
    %82 = vector.broadcast %67 : vector<1x32xf32> to vector<8x32xf32>
    %83 = arith.addf %81, %82 : vector<8x32xf32>
    %cst_20 = arith.constant 0.000000e+00 : f32
    %84 = vector.broadcast %cst_20 : f32 to vector<8x32xf32>
    %85 = arith.maximumf %83, %84 : vector<8x32xf32>
    %86 = arith.mulf %85, %53 : vector<8x32xf32>
    %c1 = arith.constant 1 : index
    %c0_21 = arith.constant 0 : index
    %87 = vector.load %arg7[%c1, %c0_21] : memref<21x64xf32, #tpu.memory_space<vmem>>, vector<1x32xf32>
    %c2 = arith.constant 2 : index
    %c0_22 = arith.constant 0 : index
    %88 = vector.load %arg7[%c2, %c0_22] : memref<21x64xf32, #tpu.memory_space<vmem>>, vector<1x32xf32>
    %cst_23 = arith.constant dense<0.000000e+00> : vector<8xf32>
    %89 = vector.multi_reduction <add>, %86, %cst_23 [1] : vector<8x32xf32> to vector<8xf32>
    %90 = vector.shape_cast %89 : vector<8xf32> to vector<8x1xf32>
    %cst_24 = arith.constant 3.200000e+01 : f32
    %91 = vector.broadcast %cst_24 : f32 to vector<8x1xf32>
    %92 = arith.divf %90, %91 : vector<8x1xf32>
    %93 = vector.broadcast %92 : vector<8x1xf32> to vector<8x32xf32>
    %94 = arith.subf %86, %93 : vector<8x32xf32>
    %95 = vector.broadcast %92 : vector<8x1xf32> to vector<8x32xf32>
    %96 = arith.subf %86, %95 : vector<8x32xf32>
    %97 = arith.mulf %94, %96 : vector<8x32xf32>
    %cst_25 = arith.constant dense<0.000000e+00> : vector<8xf32>
    %98 = vector.multi_reduction <add>, %97, %cst_25 [1] : vector<8x32xf32> to vector<8xf32>
    %99 = vector.shape_cast %98 : vector<8xf32> to vector<8x1xf32>
    %cst_26 = arith.constant 3.200000e+01 : f32
    %100 = vector.broadcast %cst_26 : f32 to vector<8x1xf32>
    %101 = arith.divf %99, %100 : vector<8x1xf32>
    %102 = vector.broadcast %92 : vector<8x1xf32> to vector<8x32xf32>
    %103 = arith.subf %86, %102 : vector<8x32xf32>
    %cst_27 = arith.constant 9.99999974E-6 : f32
    %104 = vector.broadcast %cst_27 : f32 to vector<8x1xf32>
    %105 = arith.addf %101, %104 : vector<8x1xf32>
    %106 = math.rsqrt %105 : vector<8x1xf32>
    %107 = vector.broadcast %106 : vector<8x1xf32> to vector<8x32xf32>
    %108 = arith.mulf %103, %107 : vector<8x32xf32>
    %109 = vector.broadcast %87 : vector<1x32xf32> to vector<8x32xf32>
    %110 = arith.mulf %108, %109 : vector<8x32xf32>
    %111 = vector.broadcast %88 : vector<1x32xf32> to vector<8x32xf32>
    %112 = arith.addf %110, %111 : vector<8x32xf32>
    %113 = arith.mulf %112, %53 : vector<8x32xf32>
    %c0_28 = arith.constant 0 : index
    %c0_29 = arith.constant 0 : index
    %114 = vector.load %arg6[%c0_28, %c0_29] : memref<224x64xbf16, #tpu.memory_space<vmem>>, vector<32x64xbf16>
    %115 = arith.truncf %113 : vector<8x32xf32> to vector<8x32xbf16>
    %cst_30 = arith.constant dense<0.000000e+00> : vector<8x64xf32>
    %116 = tpu.matmul %115, %114, %cst_30 {dimension_numbers = #tpu.dot_dimension_numbers<[1], [0], [0], [1], [0, 0, 1, 1], [], []>} : vector<8x32xbf16>, vector<32x64xbf16>, vector<8x64xf32> -> vector<8x64xf32>
    %c3 = arith.constant 3 : index
    %c0_31 = arith.constant 0 : index
    %117 = vector.load %arg7[%c3, %c0_31] : memref<21x64xf32, #tpu.memory_space<vmem>>, vector<1x64xf32>
    %118 = vector.broadcast %117 : vector<1x64xf32> to vector<8x64xf32>
    %119 = arith.addf %116, %118 : vector<8x64xf32>
    %120 = vector.broadcast %47 : vector<8x1xf32> to vector<8x64xf32>
    %121 = arith.mulf %119, %120 : vector<8x64xf32>
    %c136 = arith.constant 136 : index
    %c0_32 = arith.constant 0 : index
    %122 = vector.load %arg5[%c136, %c0_32] : memref<840x32xbf16, #tpu.memory_space<vmem>>, vector<32x32xbf16>
    %c168 = arith.constant 168 : index
    %c0_33 = arith.constant 0 : index
    %123 = vector.load %arg5[%c168, %c0_33] : memref<840x32xbf16, #tpu.memory_space<vmem>>, vector<32x32xbf16>
    %c200 = arith.constant 200 : index
    %c0_34 = arith.constant 0 : index
    %124 = vector.load %arg5[%c200, %c0_34] : memref<840x32xbf16, #tpu.memory_space<vmem>>, vector<32x32xbf16>
    %c4 = arith.constant 4 : index
    %c0_35 = arith.constant 0 : index
    %125 = vector.load %arg7[%c4, %c0_35] : memref<21x64xf32, #tpu.memory_space<vmem>>, vector<1x32xf32>
    %c1_i32_36 = arith.constant 1 : i32
    %126 = tpu.dynamic_rotate %113 by %c1_i32_36 dim 0 : vector<8x32xf32>, i32 -> vector<8x32xf32>
    %127 = vector.broadcast %4 : vector<8x1xf32> to vector<8x32xf32>
    %128 = arith.mulf %126, %127 : vector<8x32xf32>
    %c7_i32_37 = arith.constant 7 : i32
    %129 = tpu.dynamic_rotate %113 by %c7_i32_37 dim 0 : vector<8x32xf32>, i32 -> vector<8x32xf32>
    %130 = vector.broadcast %8 : vector<8x1xf32> to vector<8x32xf32>
    %131 = arith.mulf %129, %130 : vector<8x32xf32>
    %132 = arith.truncf %113 : vector<8x32xf32> to vector<8x32xbf16>
    %cst_38 = arith.constant dense<0.000000e+00> : vector<8x32xf32>
    %133 = tpu.matmul %132, %123, %cst_38 {dimension_numbers = #tpu.dot_dimension_numbers<[1], [0], [0], [1], [0, 0, 1, 1], [], []>} : vector<8x32xbf16>, vector<32x32xbf16>, vector<8x32xf32> -> vector<8x32xf32>
    %134 = arith.truncf %128 : vector<8x32xf32> to vector<8x32xbf16>
    %cst_39 = arith.constant dense<0.000000e+00> : vector<8x32xf32>
    %135 = tpu.matmul %134, %122, %cst_39 {dimension_numbers = #tpu.dot_dimension_numbers<[1], [0], [0], [1], [0, 0, 1, 1], [], []>} : vector<8x32xbf16>, vector<32x32xbf16>, vector<8x32xf32> -> vector<8x32xf32>
    %136 = arith.addf %133, %135 : vector<8x32xf32>
    %137 = arith.truncf %131 : vector<8x32xf32> to vector<8x32xbf16>
    %cst_40 = arith.constant dense<0.000000e+00> : vector<8x32xf32>
    %138 = tpu.matmul %137, %124, %cst_40 {dimension_numbers = #tpu.dot_dimension_numbers<[1], [0], [0], [1], [0, 0, 1, 1], [], []>} : vector<8x32xbf16>, vector<32x32xbf16>, vector<8x32xf32> -> vector<8x32xf32>
    %139 = arith.addf %136, %138 : vector<8x32xf32>
    %140 = vector.broadcast %125 : vector<1x32xf32> to vector<8x32xf32>
    %141 = arith.addf %139, %140 : vector<8x32xf32>
    %cst_41 = arith.constant 0.000000e+00 : f32
    %142 = vector.broadcast %cst_41 : f32 to vector<8x32xf32>
    %143 = arith.maximumf %141, %142 : vector<8x32xf32>
    %144 = arith.mulf %143, %53 : vector<8x32xf32>
    %c5 = arith.constant 5 : index
    %c0_42 = arith.constant 0 : index
    %145 = vector.load %arg7[%c5, %c0_42] : memref<21x64xf32, #tpu.memory_space<vmem>>, vector<1x32xf32>
    %c6 = arith.constant 6 : index
    %c0_43 = arith.constant 0 : index
    %146 = vector.load %arg7[%c6, %c0_43] : memref<21x64xf32, #tpu.memory_space<vmem>>, vector<1x32xf32>
    %cst_44 = arith.constant dense<0.000000e+00> : vector<8xf32>
    %147 = vector.multi_reduction <add>, %144, %cst_44 [1] : vector<8x32xf32> to vector<8xf32>
    %148 = vector.shape_cast %147 : vector<8xf32> to vector<8x1xf32>
    %cst_45 = arith.constant 3.200000e+01 : f32
    %149 = vector.broadcast %cst_45 : f32 to vector<8x1xf32>
    %150 = arith.divf %148, %149 : vector<8x1xf32>
    %151 = vector.broadcast %150 : vector<8x1xf32> to vector<8x32xf32>
    %152 = arith.subf %144, %151 : vector<8x32xf32>
    %153 = vector.broadcast %150 : vector<8x1xf32> to vector<8x32xf32>
    %154 = arith.subf %144, %153 : vector<8x32xf32>
    %155 = arith.mulf %152, %154 : vector<8x32xf32>
    %cst_46 = arith.constant dense<0.000000e+00> : vector<8xf32>
    %156 = vector.multi_reduction <add>, %155, %cst_46 [1] : vector<8x32xf32> to vector<8xf32>
    %157 = vector.shape_cast %156 : vector<8xf32> to vector<8x1xf32>
    %cst_47 = arith.constant 3.200000e+01 : f32
    %158 = vector.broadcast %cst_47 : f32 to vector<8x1xf32>
    %159 = arith.divf %157, %158 : vector<8x1xf32>
    %160 = vector.broadcast %150 : vector<8x1xf32> to vector<8x32xf32>
    %161 = arith.subf %144, %160 : vector<8x32xf32>
    %cst_48 = arith.constant 9.99999974E-6 : f32
    %162 = vector.broadcast %cst_48 : f32 to vector<8x1xf32>
    %163 = arith.addf %159, %162 : vector<8x1xf32>
    %164 = math.rsqrt %163 : vector<8x1xf32>
    %165 = vector.broadcast %164 : vector<8x1xf32> to vector<8x32xf32>
    %166 = arith.mulf %161, %165 : vector<8x32xf32>
    %167 = vector.broadcast %145 : vector<1x32xf32> to vector<8x32xf32>
    %168 = arith.mulf %166, %167 : vector<8x32xf32>
    %169 = vector.broadcast %146 : vector<1x32xf32> to vector<8x32xf32>
    %170 = arith.addf %168, %169 : vector<8x32xf32>
    %171 = arith.mulf %170, %53 : vector<8x32xf32>
    %c232 = arith.constant 232 : index
    %c0_49 = arith.constant 0 : index
    %172 = vector.load %arg5[%c232, %c0_49] : memref<840x32xbf16, #tpu.memory_space<vmem>>, vector<32x32xbf16>
    %c264 = arith.constant 264 : index
    %c0_50 = arith.constant 0 : index
    %173 = vector.load %arg5[%c264, %c0_50] : memref<840x32xbf16, #tpu.memory_space<vmem>>, vector<32x32xbf16>
    %c296 = arith.constant 296 : index
    %c0_51 = arith.constant 0 : index
    %174 = vector.load %arg5[%c296, %c0_51] : memref<840x32xbf16, #tpu.memory_space<vmem>>, vector<32x32xbf16>
    %c7 = arith.constant 7 : index
    %c0_52 = arith.constant 0 : index
    %175 = vector.load %arg7[%c7, %c0_52] : memref<21x64xf32, #tpu.memory_space<vmem>>, vector<1x32xf32>
    %c1_i32_53 = arith.constant 1 : i32
    %176 = tpu.dynamic_rotate %171 by %c1_i32_53 dim 0 : vector<8x32xf32>, i32 -> vector<8x32xf32>
    %177 = vector.broadcast %4 : vector<8x1xf32> to vector<8x32xf32>
    %178 = arith.mulf %176, %177 : vector<8x32xf32>
    %c7_i32_54 = arith.constant 7 : i32
    %179 = tpu.dynamic_rotate %171 by %c7_i32_54 dim 0 : vector<8x32xf32>, i32 -> vector<8x32xf32>
    %180 = vector.broadcast %8 : vector<8x1xf32> to vector<8x32xf32>
    %181 = arith.mulf %179, %180 : vector<8x32xf32>
    %182 = arith.truncf %171 : vector<8x32xf32> to vector<8x32xbf16>
    %cst_55 = arith.constant dense<0.000000e+00> : vector<8x32xf32>
    %183 = tpu.matmul %182, %173, %cst_55 {dimension_numbers = #tpu.dot_dimension_numbers<[1], [0], [0], [1], [0, 0, 1, 1], [], []>} : vector<8x32xbf16>, vector<32x32xbf16>, vector<8x32xf32> -> vector<8x32xf32>
    %184 = arith.truncf %178 : vector<8x32xf32> to vector<8x32xbf16>
    %cst_56 = arith.constant dense<0.000000e+00> : vector<8x32xf32>
    %185 = tpu.matmul %184, %172, %cst_56 {dimension_numbers = #tpu.dot_dimension_numbers<[1], [0], [0], [1], [0, 0, 1, 1], [], []>} : vector<8x32xbf16>, vector<32x32xbf16>, vector<8x32xf32> -> vector<8x32xf32>
    %186 = arith.addf %183, %185 : vector<8x32xf32>
    %187 = arith.truncf %181 : vector<8x32xf32> to vector<8x32xbf16>
    %cst_57 = arith.constant dense<0.000000e+00> : vector<8x32xf32>
    %188 = tpu.matmul %187, %174, %cst_57 {dimension_numbers = #tpu.dot_dimension_numbers<[1], [0], [0], [1], [0, 0, 1, 1], [], []>} : vector<8x32xbf16>, vector<32x32xbf16>, vector<8x32xf32> -> vector<8x32xf32>
    %189 = arith.addf %186, %188 : vector<8x32xf32>
    %190 = vector.broadcast %175 : vector<1x32xf32> to vector<8x32xf32>
    %191 = arith.addf %189, %190 : vector<8x32xf32>
    %cst_58 = arith.constant 0.000000e+00 : f32
    %192 = vector.broadcast %cst_58 : f32 to vector<8x32xf32>
    %193 = arith.maximumf %191, %192 : vector<8x32xf32>
    %194 = arith.mulf %193, %53 : vector<8x32xf32>
    %c8 = arith.constant 8 : index
    %c0_59 = arith.constant 0 : index
    %195 = vector.load %arg7[%c8, %c0_59] : memref<21x64xf32, #tpu.memory_space<vmem>>, vector<1x32xf32>
    %c9 = arith.constant 9 : index
    %c0_60 = arith.constant 0 : index
    %196 = vector.load %arg7[%c9, %c0_60] : memref<21x64xf32, #tpu.memory_space<vmem>>, vector<1x32xf32>
    %cst_61 = arith.constant dense<0.000000e+00> : vector<8xf32>
    %197 = vector.multi_reduction <add>, %194, %cst_61 [1] : vector<8x32xf32> to vector<8xf32>
    %198 = vector.shape_cast %197 : vector<8xf32> to vector<8x1xf32>
    %cst_62 = arith.constant 3.200000e+01 : f32
    %199 = vector.broadcast %cst_62 : f32 to vector<8x1xf32>
    %200 = arith.divf %198, %199 : vector<8x1xf32>
    %201 = vector.broadcast %200 : vector<8x1xf32> to vector<8x32xf32>
    %202 = arith.subf %194, %201 : vector<8x32xf32>
    %203 = vector.broadcast %200 : vector<8x1xf32> to vector<8x32xf32>
    %204 = arith.subf %194, %203 : vector<8x32xf32>
    %205 = arith.mulf %202, %204 : vector<8x32xf32>
    %cst_63 = arith.constant dense<0.000000e+00> : vector<8xf32>
    %206 = vector.multi_reduction <add>, %205, %cst_63 [1] : vector<8x32xf32> to vector<8xf32>
    %207 = vector.shape_cast %206 : vector<8xf32> to vector<8x1xf32>
    %cst_64 = arith.constant 3.200000e+01 : f32
    %208 = vector.broadcast %cst_64 : f32 to vector<8x1xf32>
    %209 = arith.divf %207, %208 : vector<8x1xf32>
    %210 = vector.broadcast %200 : vector<8x1xf32> to vector<8x32xf32>
    %211 = arith.subf %194, %210 : vector<8x32xf32>
    %cst_65 = arith.constant 9.99999974E-6 : f32
    %212 = vector.broadcast %cst_65 : f32 to vector<8x1xf32>
    %213 = arith.addf %209, %212 : vector<8x1xf32>
    %214 = math.rsqrt %213 : vector<8x1xf32>
    %215 = vector.broadcast %214 : vector<8x1xf32> to vector<8x32xf32>
    %216 = arith.mulf %211, %215 : vector<8x32xf32>
    %217 = vector.broadcast %195 : vector<1x32xf32> to vector<8x32xf32>
    %218 = arith.mulf %216, %217 : vector<8x32xf32>
    %219 = vector.broadcast %196 : vector<1x32xf32> to vector<8x32xf32>
    %220 = arith.addf %218, %219 : vector<8x32xf32>
    %221 = arith.mulf %220, %53 : vector<8x32xf32>
    %c32 = arith.constant 32 : index
    %c0_66 = arith.constant 0 : index
    %222 = vector.load %arg6[%c32, %c0_66] : memref<224x64xbf16, #tpu.memory_space<vmem>>, vector<32x1xbf16>
    %223 = arith.truncf %221 : vector<8x32xf32> to vector<8x32xbf16>
    %cst_67 = arith.constant dense<0.000000e+00> : vector<8x1xf32>
    %224 = tpu.matmul %223, %222, %cst_67 {dimension_numbers = #tpu.dot_dimension_numbers<[1], [0], [0], [1], [0, 0, 1, 1], [], []>} : vector<8x32xbf16>, vector<32x1xbf16>, vector<8x1xf32> -> vector<8x1xf32>
    %c10 = arith.constant 10 : index
    %c0_68 = arith.constant 0 : index
    %225 = vector.load %arg7[%c10, %c0_68] : memref<21x64xf32, #tpu.memory_space<vmem>>, vector<1x1xf32>
    %226 = vector.broadcast %225 : vector<1x1xf32> to vector<8x1xf32>
    %227 = arith.addf %224, %226 : vector<8x1xf32>
    %cst_69 = arith.constant 0.000000e+00 : f32
    %228 = vector.broadcast %cst_69 : f32 to vector<8x1xf32>
    %229 = arith.cmpf ogt, %47, %228 : vector<8x1xf32>
    %cst_70 = arith.constant 0.000000e+00 : f32
    %230 = vector.broadcast %cst_70 : f32 to vector<8x1xf32>
    %231 = arith.select %229, %227, %230 : vector<8x1xi1>, vector<8x1xf32>
    %232 = math.exp %231 : vector<8x1xf32>
    %233 = arith.mulf %232, %47 : vector<8x1xf32>
    %cst_71 = arith.constant 1.000000e+00 : f32
    %234 = vector.broadcast %cst_71 : f32 to vector<8x1xf32>
    %235 = arith.mulf %233, %234 : vector<8x1xf32>
    %236 = math.ceil %235 : vector<8x1xf32>
    %237 = arith.cmpi sle, %29, %30 : vector<8x8xi32>
    %cst_72 = arith.constant 0.000000e+00 : f32
    %238 = vector.shape_cast %236 : vector<8x1xf32> to vector<8x1xf32>
    %239 = vector.broadcast %238 : vector<8x1xf32> to vector<8x8xf32>
    %240 = vector.broadcast %cst_72 : f32 to vector<8x8xf32>
    %241 = arith.select %237, %239, %240 : vector<8x8xi1>, vector<8x8xf32>
    %cst_73 = arith.constant dense<0.000000e+00> : vector<8xf32>
    %242 = vector.multi_reduction <add>, %241, %cst_73 [0] : vector<8x8xf32> to vector<8xf32>
    %243 = vector.shape_cast %242 : vector<8xf32> to vector<1x8xf32>
    %244 = arith.cmpi slt, %29, %30 : vector<8x8xi32>
    %cst_74 = arith.constant 0.000000e+00 : f32
    %245 = vector.shape_cast %236 : vector<8x1xf32> to vector<8x1xf32>
    %246 = vector.broadcast %245 : vector<8x1xf32> to vector<8x8xf32>
    %247 = vector.broadcast %cst_74 : f32 to vector<8x8xf32>
    %248 = arith.select %244, %246, %247 : vector<8x8xi1>, vector<8x8xf32>
    %cst_75 = arith.constant dense<0.000000e+00> : vector<8xf32>
    %249 = vector.multi_reduction <add>, %248, %cst_75 [0] : vector<8x8xf32> to vector<8xf32>
    %250 = vector.shape_cast %249 : vector<8xf32> to vector<1x8xf32>
    %cst_76 = arith.constant dense<0.000000e+00> : vector<1xf32>
    %251 = vector.multi_reduction <add>, %236, %cst_76 [0] : vector<8x1xf32> to vector<1xf32>
    %252 = vector.shape_cast %251 : vector<1xf32> to vector<1x1xf32>
    %cst_77 = arith.constant 1.000000e+00 : f32
    %cst_78 = arith.constant 3.200000e+01 : f32
    %253 = vector.broadcast %cst_77 : f32 to vector<1x1xf32>
    %254 = arith.maximumf %253, %252 : vector<1x1xf32>
    %255 = vector.broadcast %cst_78 : f32 to vector<1x1xf32>
    %256 = arith.minimumf %255, %254 : vector<1x1xf32>
    %257 = vector.broadcast %256 : vector<1x1xf32> to vector<32x1xf32>
    %258 = arith.cmpf olt, %34, %257 : vector<32x1xf32>
    %259 = arith.extui %258 : vector<32x1xi1> to vector<32x1xi32>
    %260 = arith.sitofp %259 : vector<32x1xi32> to vector<32x1xf32>
    %261 = vector.shape_cast %260 : vector<32x1xf32> to vector<32x1xf32>
    %262 = vector.broadcast %261 : vector<32x1xf32> to vector<32x32xf32>
    %263 = vector.broadcast %243 : vector<1x8xf32> to vector<32x8xf32>
    %264 = arith.cmpf olt, %32, %263 : vector<32x8xf32>
    %265 = arith.extui %264 : vector<32x8xi1> to vector<32x8xi32>
    %266 = arith.sitofp %265 : vector<32x8xi32> to vector<32x8xf32>
    %267 = vector.broadcast %250 : vector<1x8xf32> to vector<32x8xf32>
    %268 = arith.cmpf olt, %32, %267 : vector<32x8xf32>
    %269 = arith.extui %268 : vector<32x8xi1> to vector<32x8xi32>
    %270 = arith.sitofp %269 : vector<32x8xi32> to vector<32x8xf32>
    %271 = arith.subf %266, %270 : vector<32x8xf32>
    %272 = vector.broadcast %260 : vector<32x1xf32> to vector<32x8xf32>
    %273 = arith.mulf %271, %272 : vector<32x8xf32>
    %274 = vector.broadcast %51 : vector<1x8xf32> to vector<32x8xf32>
    %275 = arith.mulf %273, %274 : vector<32x8xf32>
    %276 = arith.truncf %275 : vector<32x8xf32> to vector<32x8xbf16>
    %277 = arith.truncf %121 : vector<8x64xf32> to vector<8x64xbf16>
    %cst_79 = arith.constant dense<0.000000e+00> : vector<32x64xf32>
    %278 = tpu.matmul %276, %277, %cst_79 {dimension_numbers = #tpu.dot_dimension_numbers<[1], [0], [0], [1], [0, 0, 1, 1], [], []>} : vector<32x8xbf16>, vector<8x64xbf16>, vector<32x64xf32> -> vector<32x64xf32>
    %279 = vector.extract_strided_slice %278 {offsets = [0, 0], sizes = [32, 32], strides = [1, 1]} : vector<32x64xf32> to vector<32x32xf32>
    %280 = vector.extract_strided_slice %278 {offsets = [0, 32], sizes = [32, 32], strides = [1, 1]} : vector<32x64xf32> to vector<32x32xf32>
    %281 = math.exp %280 : vector<32x32xf32>
    %282 = arith.mulf %43, %281 : vector<32x32xf32>
    %cst_80 = arith.constant 1.000000e+00 : f32
    %283 = vector.broadcast %cst_80 : f32 to vector<32x32xf32>
    %284 = arith.mulf %282, %283 : vector<32x32xf32>
    %285 = arith.addf %279, %284 : vector<32x32xf32>
    %286 = arith.mulf %285, %262 : vector<32x32xf32>
    %287 = vector.extract_strided_slice %286 {offsets = [0, 0], sizes = [32, 16], strides = [1, 1]} : vector<32x32xf32> to vector<32x16xf32>
    %288 = vector.extract_strided_slice %286 {offsets = [0, 16], sizes = [32, 16], strides = [1, 1]} : vector<32x32xf32> to vector<32x16xf32>
    %c440 = arith.constant 440 : index
    %c0_81 = arith.constant 0 : index
    %289 = vector.load %arg5[%c440, %c0_81] : memref<840x32xbf16, #tpu.memory_space<vmem>>, vector<16x32xbf16>
    %290 = arith.truncf %288 : vector<32x16xf32> to vector<32x16xbf16>
    %cst_82 = arith.constant dense<0.000000e+00> : vector<32x32xf32>
    %291 = tpu.matmul %290, %289, %cst_82 {dimension_numbers = #tpu.dot_dimension_numbers<[1], [0], [0], [1], [0, 0, 1, 1], [], []>} : vector<32x16xbf16>, vector<16x32xbf16>, vector<32x32xf32> -> vector<32x32xf32>
    %c14 = arith.constant 14 : index
    %c0_83 = arith.constant 0 : index
    %292 = vector.load %arg7[%c14, %c0_83] : memref<21x64xf32, #tpu.memory_space<vmem>>, vector<1x32xf32>
    %293 = vector.broadcast %292 : vector<1x32xf32> to vector<32x32xf32>
    %294 = arith.addf %291, %293 : vector<32x32xf32>
    %295 = arith.mulf %294, %262 : vector<32x32xf32>
    %c456 = arith.constant 456 : index
    %c0_84 = arith.constant 0 : index
    %296 = vector.load %arg5[%c456, %c0_84] : memref<840x32xbf16, #tpu.memory_space<vmem>>, vector<32x32xbf16>
    %c488 = arith.constant 488 : index
    %c0_85 = arith.constant 0 : index
    %297 = vector.load %arg5[%c488, %c0_85] : memref<840x32xbf16, #tpu.memory_space<vmem>>, vector<32x32xbf16>
    %c520 = arith.constant 520 : index
    %c0_86 = arith.constant 0 : index
    %298 = vector.load %arg5[%c520, %c0_86] : memref<840x32xbf16, #tpu.memory_space<vmem>>, vector<32x32xbf16>
    %c15 = arith.constant 15 : index
    %c0_87 = arith.constant 0 : index
    %299 = vector.load %arg7[%c15, %c0_87] : memref<21x64xf32, #tpu.memory_space<vmem>>, vector<1x32xf32>
    %c1_i32_88 = arith.constant 1 : i32
    %300 = tpu.dynamic_rotate %295 by %c1_i32_88 dim 0 : vector<32x32xf32>, i32 -> vector<32x32xf32>
    %301 = vector.broadcast %13 : vector<32x1xf32> to vector<32x32xf32>
    %302 = arith.mulf %300, %301 : vector<32x32xf32>
    %c31_i32_89 = arith.constant 31 : i32
    %303 = tpu.dynamic_rotate %295 by %c31_i32_89 dim 0 : vector<32x32xf32>, i32 -> vector<32x32xf32>
    %304 = vector.broadcast %17 : vector<32x1xf32> to vector<32x32xf32>
    %305 = arith.mulf %303, %304 : vector<32x32xf32>
    %306 = arith.truncf %295 : vector<32x32xf32> to vector<32x32xbf16>
    %cst_90 = arith.constant dense<0.000000e+00> : vector<32x32xf32>
    %307 = tpu.matmul %306, %297, %cst_90 {dimension_numbers = #tpu.dot_dimension_numbers<[1], [0], [0], [1], [0, 0, 1, 1], [], []>} : vector<32x32xbf16>, vector<32x32xbf16>, vector<32x32xf32> -> vector<32x32xf32>
    %308 = arith.truncf %302 : vector<32x32xf32> to vector<32x32xbf16>
    %cst_91 = arith.constant dense<0.000000e+00> : vector<32x32xf32>
    %309 = tpu.matmul %308, %296, %cst_91 {dimension_numbers = #tpu.dot_dimension_numbers<[1], [0], [0], [1], [0, 0, 1, 1], [], []>} : vector<32x32xbf16>, vector<32x32xbf16>, vector<32x32xf32> -> vector<32x32xf32>
    %310 = arith.addf %307, %309 : vector<32x32xf32>
    %311 = arith.truncf %305 : vector<32x32xf32> to vector<32x32xbf16>
    %cst_92 = arith.constant dense<0.000000e+00> : vector<32x32xf32>
    %312 = tpu.matmul %311, %298, %cst_92 {dimension_numbers = #tpu.dot_dimension_numbers<[1], [0], [0], [1], [0, 0, 1, 1], [], []>} : vector<32x32xbf16>, vector<32x32xbf16>, vector<32x32xf32> -> vector<32x32xf32>
    %313 = arith.addf %310, %312 : vector<32x32xf32>
    %314 = vector.broadcast %299 : vector<1x32xf32> to vector<32x32xf32>
    %315 = arith.addf %313, %314 : vector<32x32xf32>
    %cst_93 = arith.constant 0.000000e+00 : f32
    %316 = vector.broadcast %cst_93 : f32 to vector<32x32xf32>
    %317 = arith.maximumf %315, %316 : vector<32x32xf32>
    %318 = arith.mulf %317, %262 : vector<32x32xf32>
    %c96 = arith.constant 96 : index
    %c0_94 = arith.constant 0 : index
    %319 = vector.load %arg6[%c96, %c0_94] : memref<224x64xbf16, #tpu.memory_space<vmem>>, vector<32x16xbf16>
    %320 = arith.truncf %318 : vector<32x32xf32> to vector<32x32xbf16>
    %cst_95 = arith.constant dense<0.000000e+00> : vector<32x16xf32>
    %321 = tpu.matmul %320, %319, %cst_95 {dimension_numbers = #tpu.dot_dimension_numbers<[1], [0], [0], [1], [0, 0, 1, 1], [], []>} : vector<32x32xbf16>, vector<32x16xbf16>, vector<32x16xf32> -> vector<32x16xf32>
    %c16 = arith.constant 16 : index
    %c0_96 = arith.constant 0 : index
    %322 = vector.load %arg7[%c16, %c0_96] : memref<21x64xf32, #tpu.memory_space<vmem>>, vector<1x16xf32>
    %323 = vector.broadcast %322 : vector<1x16xf32> to vector<32x16xf32>
    %324 = arith.addf %321, %323 : vector<32x16xf32>
    %325 = vector.broadcast %260 : vector<32x1xf32> to vector<32x16xf32>
    %326 = arith.mulf %324, %325 : vector<32x16xf32>
    %327 = arith.subf %287, %326 : vector<32x16xf32>
    %328 = vector.broadcast %260 : vector<32x1xf32> to vector<32x16xf32>
    %329 = arith.mulf %327, %328 : vector<32x16xf32>
    %c328 = arith.constant 328 : index
    %c0_97 = arith.constant 0 : index
    %330 = vector.load %arg5[%c328, %c0_97] : memref<840x32xbf16, #tpu.memory_space<vmem>>, vector<16x32xbf16>
    %331 = arith.truncf %329 : vector<32x16xf32> to vector<32x16xbf16>
    %cst_98 = arith.constant dense<0.000000e+00> : vector<32x32xf32>
    %332 = tpu.matmul %331, %330, %cst_98 {dimension_numbers = #tpu.dot_dimension_numbers<[1], [0], [0], [1], [0, 0, 1, 1], [], []>} : vector<32x16xbf16>, vector<16x32xbf16>, vector<32x32xf32> -> vector<32x32xf32>
    %c11 = arith.constant 11 : index
    %c0_99 = arith.constant 0 : index
    %333 = vector.load %arg7[%c11, %c0_99] : memref<21x64xf32, #tpu.memory_space<vmem>>, vector<1x32xf32>
    %334 = vector.broadcast %333 : vector<1x32xf32> to vector<32x32xf32>
    %335 = arith.addf %332, %334 : vector<32x32xf32>
    %336 = arith.mulf %335, %262 : vector<32x32xf32>
    %c344 = arith.constant 344 : index
    %c0_100 = arith.constant 0 : index
    %337 = vector.load %arg5[%c344, %c0_100] : memref<840x32xbf16, #tpu.memory_space<vmem>>, vector<32x32xbf16>
    %c376 = arith.constant 376 : index
    %c0_101 = arith.constant 0 : index
    %338 = vector.load %arg5[%c376, %c0_101] : memref<840x32xbf16, #tpu.memory_space<vmem>>, vector<32x32xbf16>
    %c408 = arith.constant 408 : index
    %c0_102 = arith.constant 0 : index
    %339 = vector.load %arg5[%c408, %c0_102] : memref<840x32xbf16, #tpu.memory_space<vmem>>, vector<32x32xbf16>
    %c12 = arith.constant 12 : index
    %c0_103 = arith.constant 0 : index
    %340 = vector.load %arg7[%c12, %c0_103] : memref<21x64xf32, #tpu.memory_space<vmem>>, vector<1x32xf32>
    %c1_i32_104 = arith.constant 1 : i32
    %341 = tpu.dynamic_rotate %336 by %c1_i32_104 dim 0 : vector<32x32xf32>, i32 -> vector<32x32xf32>
    %342 = vector.broadcast %13 : vector<32x1xf32> to vector<32x32xf32>
    %343 = arith.mulf %341, %342 : vector<32x32xf32>
    %c31_i32_105 = arith.constant 31 : i32
    %344 = tpu.dynamic_rotate %336 by %c31_i32_105 dim 0 : vector<32x32xf32>, i32 -> vector<32x32xf32>
    %345 = vector.broadcast %17 : vector<32x1xf32> to vector<32x32xf32>
    %346 = arith.mulf %344, %345 : vector<32x32xf32>
    %347 = arith.truncf %336 : vector<32x32xf32> to vector<32x32xbf16>
    %cst_106 = arith.constant dense<0.000000e+00> : vector<32x32xf32>
    %348 = tpu.matmul %347, %338, %cst_106 {dimension_numbers = #tpu.dot_dimension_numbers<[1], [0], [0], [1], [0, 0, 1, 1], [], []>} : vector<32x32xbf16>, vector<32x32xbf16>, vector<32x32xf32> -> vector<32x32xf32>
    %349 = arith.truncf %343 : vector<32x32xf32> to vector<32x32xbf16>
    %cst_107 = arith.constant dense<0.000000e+00> : vector<32x32xf32>
    %350 = tpu.matmul %349, %337, %cst_107 {dimension_numbers = #tpu.dot_dimension_numbers<[1], [0], [0], [1], [0, 0, 1, 1], [], []>} : vector<32x32xbf16>, vector<32x32xbf16>, vector<32x32xf32> -> vector<32x32xf32>
    %351 = arith.addf %348, %350 : vector<32x32xf32>
    %352 = arith.truncf %346 : vector<32x32xf32> to vector<32x32xbf16>
    %cst_108 = arith.constant dense<0.000000e+00> : vector<32x32xf32>
    %353 = tpu.matmul %352, %339, %cst_108 {dimension_numbers = #tpu.dot_dimension_numbers<[1], [0], [0], [1], [0, 0, 1, 1], [], []>} : vector<32x32xbf16>, vector<32x32xbf16>, vector<32x32xf32> -> vector<32x32xf32>
    %354 = arith.addf %351, %353 : vector<32x32xf32>
    %355 = vector.broadcast %340 : vector<1x32xf32> to vector<32x32xf32>
    %356 = arith.addf %354, %355 : vector<32x32xf32>
    %cst_109 = arith.constant 0.000000e+00 : f32
    %357 = vector.broadcast %cst_109 : f32 to vector<32x32xf32>
    %358 = arith.maximumf %356, %357 : vector<32x32xf32>
    %359 = arith.mulf %358, %262 : vector<32x32xf32>
    %c64 = arith.constant 64 : index
    %c0_110 = arith.constant 0 : index
    %360 = vector.load %arg6[%c64, %c0_110] : memref<224x64xbf16, #tpu.memory_space<vmem>>, vector<32x16xbf16>
    %361 = arith.truncf %359 : vector<32x32xf32> to vector<32x32xbf16>
    %cst_111 = arith.constant dense<0.000000e+00> : vector<32x16xf32>
    %362 = tpu.matmul %361, %360, %cst_111 {dimension_numbers = #tpu.dot_dimension_numbers<[1], [0], [0], [1], [0, 0, 1, 1], [], []>} : vector<32x32xbf16>, vector<32x16xbf16>, vector<32x16xf32> -> vector<32x16xf32>
    %c13 = arith.constant 13 : index
    %c0_112 = arith.constant 0 : index
    %363 = vector.load %arg7[%c13, %c0_112] : memref<21x64xf32, #tpu.memory_space<vmem>>, vector<1x16xf32>
    %364 = vector.broadcast %363 : vector<1x16xf32> to vector<32x16xf32>
    %365 = arith.addf %362, %364 : vector<32x16xf32>
    %366 = vector.broadcast %260 : vector<32x1xf32> to vector<32x16xf32>
    %367 = arith.mulf %365, %366 : vector<32x16xf32>
    %368 = arith.subf %288, %367 : vector<32x16xf32>
    %369 = vector.broadcast %260 : vector<32x1xf32> to vector<32x16xf32>
    %370 = arith.mulf %368, %369 : vector<32x16xf32>
    %371 = tpu.concatenate %329, %370 in 1 : vector<32x16xf32>, vector<32x16xf32> -> vector<32x32xf32>
    %372 = arith.mulf %371, %262 : vector<32x32xf32>
    %c552 = arith.constant 552 : index
    %c0_113 = arith.constant 0 : index
    %373 = vector.load %arg5[%c552, %c0_113] : memref<840x32xbf16, #tpu.memory_space<vmem>>, vector<32x32xbf16>
    %c584 = arith.constant 584 : index
    %c0_114 = arith.constant 0 : index
    %374 = vector.load %arg5[%c584, %c0_114] : memref<840x32xbf16, #tpu.memory_space<vmem>>, vector<32x32xbf16>
    %c616 = arith.constant 616 : index
    %c0_115 = arith.constant 0 : index
    %375 = vector.load %arg5[%c616, %c0_115] : memref<840x32xbf16, #tpu.memory_space<vmem>>, vector<32x32xbf16>
    %c17 = arith.constant 17 : index
    %c0_116 = arith.constant 0 : index
    %376 = vector.load %arg7[%c17, %c0_116] : memref<21x64xf32, #tpu.memory_space<vmem>>, vector<1x32xf32>
    %c1_i32_117 = arith.constant 1 : i32
    %377 = tpu.dynamic_rotate %372 by %c1_i32_117 dim 0 : vector<32x32xf32>, i32 -> vector<32x32xf32>
    %378 = vector.broadcast %13 : vector<32x1xf32> to vector<32x32xf32>
    %379 = arith.mulf %377, %378 : vector<32x32xf32>
    %c31_i32_118 = arith.constant 31 : i32
    %380 = tpu.dynamic_rotate %372 by %c31_i32_118 dim 0 : vector<32x32xf32>, i32 -> vector<32x32xf32>
    %381 = vector.broadcast %17 : vector<32x1xf32> to vector<32x32xf32>
    %382 = arith.mulf %380, %381 : vector<32x32xf32>
    %383 = arith.truncf %372 : vector<32x32xf32> to vector<32x32xbf16>
    %cst_119 = arith.constant dense<0.000000e+00> : vector<32x32xf32>
    %384 = tpu.matmul %383, %374, %cst_119 {dimension_numbers = #tpu.dot_dimension_numbers<[1], [0], [0], [1], [0, 0, 1, 1], [], []>} : vector<32x32xbf16>, vector<32x32xbf16>, vector<32x32xf32> -> vector<32x32xf32>
    %385 = arith.truncf %379 : vector<32x32xf32> to vector<32x32xbf16>
    %cst_120 = arith.constant dense<0.000000e+00> : vector<32x32xf32>
    %386 = tpu.matmul %385, %373, %cst_120 {dimension_numbers = #tpu.dot_dimension_numbers<[1], [0], [0], [1], [0, 0, 1, 1], [], []>} : vector<32x32xbf16>, vector<32x32xbf16>, vector<32x32xf32> -> vector<32x32xf32>
    %387 = arith.addf %384, %386 : vector<32x32xf32>
    %388 = arith.truncf %382 : vector<32x32xf32> to vector<32x32xbf16>
    %cst_121 = arith.constant dense<0.000000e+00> : vector<32x32xf32>
    %389 = tpu.matmul %388, %375, %cst_121 {dimension_numbers = #tpu.dot_dimension_numbers<[1], [0], [0], [1], [0, 0, 1, 1], [], []>} : vector<32x32xbf16>, vector<32x32xbf16>, vector<32x32xf32> -> vector<32x32xf32>
    %390 = arith.addf %387, %389 : vector<32x32xf32>
    %391 = vector.broadcast %376 : vector<1x32xf32> to vector<32x32xf32>
    %392 = arith.addf %390, %391 : vector<32x32xf32>
    %c0_122 = arith.constant 0 : index
    %c0_123 = arith.constant 0 : index
    %393 = vector.load %arg4[%c0_122, %c0_123] : memref<128x32xbf16, #tpu.memory_space<vmem>>, vector<128x32xbf16>
    %394 = arith.truncf %392 : vector<32x32xf32> to vector<32x32xbf16>
    %cst_124 = arith.constant dense<0.000000e+00> : vector<128x32xf32>
    %395 = tpu.matmul %393, %394, %cst_124 {dimension_numbers = #tpu.dot_dimension_numbers<[1], [0], [0], [1], [0, 0, 1, 1], [], []>} : vector<128x32xbf16>, vector<32x32xbf16>, vector<128x32xf32> -> vector<128x32xf32>
    %cst_125 = arith.constant 0.000000e+00 : f32
    %396 = vector.broadcast %cst_125 : f32 to vector<128x32xf32>
    %397 = arith.cmpf ogt, %395, %396 : vector<128x32xf32>
    %cst_126 = arith.constant 1.000000e-01 : f32
    %398 = vector.broadcast %cst_126 : f32 to vector<128x32xf32>
    %399 = arith.mulf %398, %395 : vector<128x32xf32>
    %400 = arith.select %397, %395, %399 : vector<128x32xi1>, vector<128x32xf32>
    %c648 = arith.constant 648 : index
    %c0_127 = arith.constant 0 : index
    %401 = vector.load %arg5[%c648, %c0_127] : memref<840x32xbf16, #tpu.memory_space<vmem>>, vector<32x32xbf16>
    %c680 = arith.constant 680 : index
    %c0_128 = arith.constant 0 : index
    %402 = vector.load %arg5[%c680, %c0_128] : memref<840x32xbf16, #tpu.memory_space<vmem>>, vector<32x32xbf16>
    %c712 = arith.constant 712 : index
    %c0_129 = arith.constant 0 : index
    %403 = vector.load %arg5[%c712, %c0_129] : memref<840x32xbf16, #tpu.memory_space<vmem>>, vector<32x32xbf16>
    %c18 = arith.constant 18 : index
    %c0_130 = arith.constant 0 : index
    %404 = vector.load %arg7[%c18, %c0_130] : memref<21x64xf32, #tpu.memory_space<vmem>>, vector<1x32xf32>
    %c1_i32_131 = arith.constant 1 : i32
    %405 = tpu.dynamic_rotate %400 by %c1_i32_131 dim 0 : vector<128x32xf32>, i32 -> vector<128x32xf32>
    %406 = vector.broadcast %22 : vector<128x1xf32> to vector<128x32xf32>
    %407 = arith.mulf %405, %406 : vector<128x32xf32>
    %c127_i32_132 = arith.constant 127 : i32
    %408 = tpu.dynamic_rotate %400 by %c127_i32_132 dim 0 : vector<128x32xf32>, i32 -> vector<128x32xf32>
    %409 = vector.broadcast %26 : vector<128x1xf32> to vector<128x32xf32>
    %410 = arith.mulf %408, %409 : vector<128x32xf32>
    %411 = arith.truncf %400 : vector<128x32xf32> to vector<128x32xbf16>
    %cst_133 = arith.constant dense<0.000000e+00> : vector<128x32xf32>
    %412 = tpu.matmul %411, %402, %cst_133 {dimension_numbers = #tpu.dot_dimension_numbers<[1], [0], [0], [1], [0, 0, 1, 1], [], []>} : vector<128x32xbf16>, vector<32x32xbf16>, vector<128x32xf32> -> vector<128x32xf32>
    %413 = arith.truncf %407 : vector<128x32xf32> to vector<128x32xbf16>
    %cst_134 = arith.constant dense<0.000000e+00> : vector<128x32xf32>
    %414 = tpu.matmul %413, %401, %cst_134 {dimension_numbers = #tpu.dot_dimension_numbers<[1], [0], [0], [1], [0, 0, 1, 1], [], []>} : vector<128x32xbf16>, vector<32x32xbf16>, vector<128x32xf32> -> vector<128x32xf32>
    %415 = arith.addf %412, %414 : vector<128x32xf32>
    %416 = arith.truncf %410 : vector<128x32xf32> to vector<128x32xbf16>
    %cst_135 = arith.constant dense<0.000000e+00> : vector<128x32xf32>
    %417 = tpu.matmul %416, %403, %cst_135 {dimension_numbers = #tpu.dot_dimension_numbers<[1], [0], [0], [1], [0, 0, 1, 1], [], []>} : vector<128x32xbf16>, vector<32x32xbf16>, vector<128x32xf32> -> vector<128x32xf32>
    %418 = arith.addf %415, %417 : vector<128x32xf32>
    %419 = vector.broadcast %404 : vector<1x32xf32> to vector<128x32xf32>
    %420 = arith.addf %418, %419 : vector<128x32xf32>
    %cst_136 = arith.constant 0.000000e+00 : f32
    %421 = vector.broadcast %cst_136 : f32 to vector<128x32xf32>
    %422 = arith.cmpf ogt, %420, %421 : vector<128x32xf32>
    %cst_137 = arith.constant 1.000000e-01 : f32
    %423 = vector.broadcast %cst_137 : f32 to vector<128x32xf32>
    %424 = arith.mulf %423, %420 : vector<128x32xf32>
    %425 = arith.select %422, %420, %424 : vector<128x32xi1>, vector<128x32xf32>
    %c744 = arith.constant 744 : index
    %c0_138 = arith.constant 0 : index
    %426 = vector.load %arg5[%c744, %c0_138] : memref<840x32xbf16, #tpu.memory_space<vmem>>, vector<32x32xbf16>
    %c776 = arith.constant 776 : index
    %c0_139 = arith.constant 0 : index
    %427 = vector.load %arg5[%c776, %c0_139] : memref<840x32xbf16, #tpu.memory_space<vmem>>, vector<32x32xbf16>
    %c808 = arith.constant 808 : index
    %c0_140 = arith.constant 0 : index
    %428 = vector.load %arg5[%c808, %c0_140] : memref<840x32xbf16, #tpu.memory_space<vmem>>, vector<32x32xbf16>
    %c19 = arith.constant 19 : index
    %c0_141 = arith.constant 0 : index
    %429 = vector.load %arg7[%c19, %c0_141] : memref<21x64xf32, #tpu.memory_space<vmem>>, vector<1x32xf32>
    %c1_i32_142 = arith.constant 1 : i32
    %430 = tpu.dynamic_rotate %425 by %c1_i32_142 dim 0 : vector<128x32xf32>, i32 -> vector<128x32xf32>
    %431 = vector.broadcast %22 : vector<128x1xf32> to vector<128x32xf32>
    %432 = arith.mulf %430, %431 : vector<128x32xf32>
    %c127_i32_143 = arith.constant 127 : i32
    %433 = tpu.dynamic_rotate %425 by %c127_i32_143 dim 0 : vector<128x32xf32>, i32 -> vector<128x32xf32>
    %434 = vector.broadcast %26 : vector<128x1xf32> to vector<128x32xf32>
    %435 = arith.mulf %433, %434 : vector<128x32xf32>
    %436 = arith.truncf %425 : vector<128x32xf32> to vector<128x32xbf16>
    %cst_144 = arith.constant dense<0.000000e+00> : vector<128x32xf32>
    %437 = tpu.matmul %436, %427, %cst_144 {dimension_numbers = #tpu.dot_dimension_numbers<[1], [0], [0], [1], [0, 0, 1, 1], [], []>} : vector<128x32xbf16>, vector<32x32xbf16>, vector<128x32xf32> -> vector<128x32xf32>
    %438 = arith.truncf %432 : vector<128x32xf32> to vector<128x32xbf16>
    %cst_145 = arith.constant dense<0.000000e+00> : vector<128x32xf32>
    %439 = tpu.matmul %438, %426, %cst_145 {dimension_numbers = #tpu.dot_dimension_numbers<[1], [0], [0], [1], [0, 0, 1, 1], [], []>} : vector<128x32xbf16>, vector<32x32xbf16>, vector<128x32xf32> -> vector<128x32xf32>
    %440 = arith.addf %437, %439 : vector<128x32xf32>
    %441 = arith.truncf %435 : vector<128x32xf32> to vector<128x32xbf16>
    %cst_146 = arith.constant dense<0.000000e+00> : vector<128x32xf32>
    %442 = tpu.matmul %441, %428, %cst_146 {dimension_numbers = #tpu.dot_dimension_numbers<[1], [0], [0], [1], [0, 0, 1, 1], [], []>} : vector<128x32xbf16>, vector<32x32xbf16>, vector<128x32xf32> -> vector<128x32xf32>
    %443 = arith.addf %440, %442 : vector<128x32xf32>
    %444 = vector.broadcast %429 : vector<1x32xf32> to vector<128x32xf32>
    %445 = arith.addf %443, %444 : vector<128x32xf32>
    %446 = arith.addf %395, %445 : vector<128x32xf32>
    %cst_147 = arith.constant 0.000000e+00 : f32
    %447 = vector.broadcast %cst_147 : f32 to vector<128x32xf32>
    %448 = arith.cmpf ogt, %446, %447 : vector<128x32xf32>
    %cst_148 = arith.constant 1.000000e-01 : f32
    %449 = vector.broadcast %cst_148 : f32 to vector<128x32xf32>
    %450 = arith.mulf %449, %446 : vector<128x32xf32>
    %451 = arith.select %448, %446, %450 : vector<128x32xi1>, vector<128x32xf32>
    %c128 = arith.constant 128 : index
    %c0_149 = arith.constant 0 : index
    %452 = vector.load %arg6[%c128, %c0_149] : memref<224x64xbf16, #tpu.memory_space<vmem>>, vector<32x8xbf16>
    %c160 = arith.constant 160 : index
    %c0_150 = arith.constant 0 : index
    %453 = vector.load %arg6[%c160, %c0_150] : memref<224x64xbf16, #tpu.memory_space<vmem>>, vector<32x8xbf16>
    %c192 = arith.constant 192 : index
    %c0_151 = arith.constant 0 : index
    %454 = vector.load %arg6[%c192, %c0_151] : memref<224x64xbf16, #tpu.memory_space<vmem>>, vector<32x8xbf16>
    %c20 = arith.constant 20 : index
    %c0_152 = arith.constant 0 : index
    %455 = vector.load %arg7[%c20, %c0_152] : memref<21x64xf32, #tpu.memory_space<vmem>>, vector<1x8xf32>
    %c1_i32_153 = arith.constant 1 : i32
    %456 = tpu.dynamic_rotate %451 by %c1_i32_153 dim 0 : vector<128x32xf32>, i32 -> vector<128x32xf32>
    %457 = vector.broadcast %22 : vector<128x1xf32> to vector<128x32xf32>
    %458 = arith.mulf %456, %457 : vector<128x32xf32>
    %c127_i32_154 = arith.constant 127 : i32
    %459 = tpu.dynamic_rotate %451 by %c127_i32_154 dim 0 : vector<128x32xf32>, i32 -> vector<128x32xf32>
    %460 = vector.broadcast %26 : vector<128x1xf32> to vector<128x32xf32>
    %461 = arith.mulf %459, %460 : vector<128x32xf32>
    %462 = arith.truncf %451 : vector<128x32xf32> to vector<128x32xbf16>
    %cst_155 = arith.constant dense<0.000000e+00> : vector<128x8xf32>
    %463 = tpu.matmul %462, %453, %cst_155 {dimension_numbers = #tpu.dot_dimension_numbers<[1], [0], [0], [1], [0, 0, 1, 1], [], []>} : vector<128x32xbf16>, vector<32x8xbf16>, vector<128x8xf32> -> vector<128x8xf32>
    %464 = arith.truncf %458 : vector<128x32xf32> to vector<128x32xbf16>
    %cst_156 = arith.constant dense<0.000000e+00> : vector<128x8xf32>
    %465 = tpu.matmul %464, %452, %cst_156 {dimension_numbers = #tpu.dot_dimension_numbers<[1], [0], [0], [1], [0, 0, 1, 1], [], []>} : vector<128x32xbf16>, vector<32x8xbf16>, vector<128x8xf32> -> vector<128x8xf32>
    %466 = arith.addf %463, %465 : vector<128x8xf32>
    %467 = arith.truncf %461 : vector<128x32xf32> to vector<128x32xbf16>
    %cst_157 = arith.constant dense<0.000000e+00> : vector<128x8xf32>
    %468 = tpu.matmul %467, %454, %cst_157 {dimension_numbers = #tpu.dot_dimension_numbers<[1], [0], [0], [1], [0, 0, 1, 1], [], []>} : vector<128x32xbf16>, vector<32x8xbf16>, vector<128x8xf32> -> vector<128x8xf32>
    %469 = arith.addf %466, %468 : vector<128x8xf32>
    %470 = vector.broadcast %455 : vector<1x8xf32> to vector<128x8xf32>
    %471 = arith.addf %469, %470 : vector<128x8xf32>
    %472 = math.tanh %471 : vector<128x8xf32>
    %473 = tpu.transpose %472, [1, 0] : vector<128x8xf32> -> vector<8x128xf32>
    %474 = vector.extract_strided_slice %473 {offsets = [0, 0], sizes = [1, 128], strides = [1, 1]} : vector<8x128xf32> to vector<1x128xf32>
    %c0_158 = arith.constant 0 : index
    %c0_159 = arith.constant 0 : index
    %c0_160 = arith.constant 0 : index
    %475 = vector.load %arg8[%c0_158, %c0_159, %c0_160] : memref<2x1x128xf32, #tpu.memory_space<vmem>>, vector<1x1x128xf32>
    %476 = vector.shape_cast %475 : vector<1x1x128xf32> to vector<1x128xf32>
    %477 = vector.shape_cast %474 : vector<1x128xf32> to vector<1x1x128xf32>
    tpu.vector_store %arg8[%c0_158, %c0_159, %c0_160], %477 {strides = array<i32>} : memref<2x1x128xf32, #tpu.memory_space<vmem>>, vector<1x1x128xf32>,
    %c2_i32_161 = arith.constant 2 : i32
    %478 = arith.muli %arg0, %c2_i32_161 : i32
    %c1_i32_162 = arith.constant 1 : i32
    %479 = arith.addi %478, %c1_i32_162 : i32
    %480 = arith.index_cast %479 : i32 to index
    %481 = memref.load %arg1[%480] : memref<4xi32, #tpu.memory_space<smem>>
    %c1_163 = arith.constant 1 : index
    %c0_164 = arith.constant 0 : index
    %c0_165 = arith.constant 0 : index
    %482 = vector.load %arg2[%c1_163, %c0_164, %c0_165] : memref<2x8x1xi32, #tpu.memory_space<vmem>>, vector<1x8x1xi32>
    %483 = vector.shape_cast %482 : vector<1x8x1xi32> to vector<8x1xi32>
    %c1_166 = arith.constant 1 : index
    %c0_167 = arith.constant 0 : index
    %c0_168 = arith.constant 0 : index
    %484 = vector.load %arg3[%c1_166, %c0_167, %c0_168] : memref<2x32x32xf32, #tpu.memory_space<vmem>>, vector<1x32x32xf32>
    %485 = vector.shape_cast %484 : vector<1x32x32xf32> to vector<32x32xf32>
    %486 = vector.broadcast %481 : i32 to vector<8x1xi32>
    %487 = arith.cmpi slt, %27, %486 : vector<8x1xi32>
    %488 = arith.extui %487 : vector<8x1xi1> to vector<8x1xi32>
    %489 = arith.sitofp %488 : vector<8x1xi32> to vector<8x1xf32>
    %490 = vector.broadcast %481 : i32 to vector<1x8xi32>
    %491 = arith.cmpi slt, %28, %490 : vector<1x8xi32>
    %492 = arith.extui %491 : vector<1x8xi1> to vector<1x8xi32>
    %493 = arith.sitofp %492 : vector<1x8xi32> to vector<1x8xf32>
    %494 = vector.shape_cast %489 : vector<8x1xf32> to vector<8x1xf32>
    %495 = vector.broadcast %494 : vector<8x1xf32> to vector<8x32xf32>
    %496 = vector.broadcast %483 : vector<8x1xi32> to vector<8x40xi32>
    %497 = arith.cmpi eq, %35, %496 : vector<8x40xi32>
    %498 = arith.extui %497 : vector<8x40xi1> to vector<8x40xi32>
    %499 = arith.sitofp %498 : vector<8x40xi32> to vector<8x40xf32>
    %c0_169 = arith.constant 0 : index
    %c0_170 = arith.constant 0 : index
    %500 = vector.load %arg5[%c0_169, %c0_170] : memref<840x32xbf16, #tpu.memory_space<vmem>>, vector<40x32xbf16>
    %501 = arith.truncf %499 : vector<8x40xf32> to vector<8x40xbf16>
    %cst_171 = arith.constant dense<0.000000e+00> : vector<8x32xf32>
    %502 = tpu.matmul %501, %500, %cst_171 {dimension_numbers = #tpu.dot_dimension_numbers<[1], [0], [0], [1], [0, 0, 1, 1], [], []>} : vector<8x40xbf16>, vector<40x32xbf16>, vector<8x32xf32> -> vector<8x32xf32>
    %cst_172 = arith.constant 5.65685415 : f32
    %503 = vector.broadcast %cst_172 : f32 to vector<8x32xf32>
    %504 = arith.mulf %502, %503 : vector<8x32xf32>
    %505 = arith.mulf %504, %495 : vector<8x32xf32>
    %c40_173 = arith.constant 40 : index
    %c0_174 = arith.constant 0 : index
    %506 = vector.load %arg5[%c40_173, %c0_174] : memref<840x32xbf16, #tpu.memory_space<vmem>>, vector<32x32xbf16>
    %c72_175 = arith.constant 72 : index
    %c0_176 = arith.constant 0 : index
    %507 = vector.load %arg5[%c72_175, %c0_176] : memref<840x32xbf16, #tpu.memory_space<vmem>>, vector<32x32xbf16>
    %c104_177 = arith.constant 104 : index
    %c0_178 = arith.constant 0 : index
    %508 = vector.load %arg5[%c104_177, %c0_178] : memref<840x32xbf16, #tpu.memory_space<vmem>>, vector<32x32xbf16>
    %c0_179 = arith.constant 0 : index
    %c0_180 = arith.constant 0 : index
    %509 = vector.load %arg7[%c0_179, %c0_180] : memref<21x64xf32, #tpu.memory_space<vmem>>, vector<1x32xf32>
    %c1_i32_181 = arith.constant 1 : i32
    %510 = tpu.dynamic_rotate %505 by %c1_i32_181 dim 0 : vector<8x32xf32>, i32 -> vector<8x32xf32>
    %511 = vector.broadcast %4 : vector<8x1xf32> to vector<8x32xf32>
    %512 = arith.mulf %510, %511 : vector<8x32xf32>
    %c7_i32_182 = arith.constant 7 : i32
    %513 = tpu.dynamic_rotate %505 by %c7_i32_182 dim 0 : vector<8x32xf32>, i32 -> vector<8x32xf32>
    %514 = vector.broadcast %8 : vector<8x1xf32> to vector<8x32xf32>
    %515 = arith.mulf %513, %514 : vector<8x32xf32>
    %516 = arith.truncf %505 : vector<8x32xf32> to vector<8x32xbf16>
    %cst_183 = arith.constant dense<0.000000e+00> : vector<8x32xf32>
    %517 = tpu.matmul %516, %507, %cst_183 {dimension_numbers = #tpu.dot_dimension_numbers<[1], [0], [0], [1], [0, 0, 1, 1], [], []>} : vector<8x32xbf16>, vector<32x32xbf16>, vector<8x32xf32> -> vector<8x32xf32>
    %518 = arith.truncf %512 : vector<8x32xf32> to vector<8x32xbf16>
    %cst_184 = arith.constant dense<0.000000e+00> : vector<8x32xf32>
    %519 = tpu.matmul %518, %506, %cst_184 {dimension_numbers = #tpu.dot_dimension_numbers<[1], [0], [0], [1], [0, 0, 1, 1], [], []>} : vector<8x32xbf16>, vector<32x32xbf16>, vector<8x32xf32> -> vector<8x32xf32>
    %520 = arith.addf %517, %519 : vector<8x32xf32>
    %521 = arith.truncf %515 : vector<8x32xf32> to vector<8x32xbf16>
    %cst_185 = arith.constant dense<0.000000e+00> : vector<8x32xf32>
    %522 = tpu.matmul %521, %508, %cst_185 {dimension_numbers = #tpu.dot_dimension_numbers<[1], [0], [0], [1], [0, 0, 1, 1], [], []>} : vector<8x32xbf16>, vector<32x32xbf16>, vector<8x32xf32> -> vector<8x32xf32>
    %523 = arith.addf %520, %522 : vector<8x32xf32>
    %524 = vector.broadcast %509 : vector<1x32xf32> to vector<8x32xf32>
    %525 = arith.addf %523, %524 : vector<8x32xf32>
    %cst_186 = arith.constant 0.000000e+00 : f32
    %526 = vector.broadcast %cst_186 : f32 to vector<8x32xf32>
    %527 = arith.maximumf %525, %526 : vector<8x32xf32>
    %528 = arith.mulf %527, %495 : vector<8x32xf32>
    %c1_187 = arith.constant 1 : index
    %c0_188 = arith.constant 0 : index
    %529 = vector.load %arg7[%c1_187, %c0_188] : memref<21x64xf32, #tpu.memory_space<vmem>>, vector<1x32xf32>
    %c2_189 = arith.constant 2 : index
    %c0_190 = arith.constant 0 : index
    %530 = vector.load %arg7[%c2_189, %c0_190] : memref<21x64xf32, #tpu.memory_space<vmem>>, vector<1x32xf32>
    %cst_191 = arith.constant dense<0.000000e+00> : vector<8xf32>
    %531 = vector.multi_reduction <add>, %528, %cst_191 [1] : vector<8x32xf32> to vector<8xf32>
    %532 = vector.shape_cast %531 : vector<8xf32> to vector<8x1xf32>
    %cst_192 = arith.constant 3.200000e+01 : f32
    %533 = vector.broadcast %cst_192 : f32 to vector<8x1xf32>
    %534 = arith.divf %532, %533 : vector<8x1xf32>
    %535 = vector.broadcast %534 : vector<8x1xf32> to vector<8x32xf32>
    %536 = arith.subf %528, %535 : vector<8x32xf32>
    %537 = vector.broadcast %534 : vector<8x1xf32> to vector<8x32xf32>
    %538 = arith.subf %528, %537 : vector<8x32xf32>
    %539 = arith.mulf %536, %538 : vector<8x32xf32>
    %cst_193 = arith.constant dense<0.000000e+00> : vector<8xf32>
    %540 = vector.multi_reduction <add>, %539, %cst_193 [1] : vector<8x32xf32> to vector<8xf32>
    %541 = vector.shape_cast %540 : vector<8xf32> to vector<8x1xf32>
    %cst_194 = arith.constant 3.200000e+01 : f32
    %542 = vector.broadcast %cst_194 : f32 to vector<8x1xf32>
    %543 = arith.divf %541, %542 : vector<8x1xf32>
    %544 = vector.broadcast %534 : vector<8x1xf32> to vector<8x32xf32>
    %545 = arith.subf %528, %544 : vector<8x32xf32>
    %cst_195 = arith.constant 9.99999974E-6 : f32
    %546 = vector.broadcast %cst_195 : f32 to vector<8x1xf32>
    %547 = arith.addf %543, %546 : vector<8x1xf32>
    %548 = math.rsqrt %547 : vector<8x1xf32>
    %549 = vector.broadcast %548 : vector<8x1xf32> to vector<8x32xf32>
    %550 = arith.mulf %545, %549 : vector<8x32xf32>
    %551 = vector.broadcast %529 : vector<1x32xf32> to vector<8x32xf32>
    %552 = arith.mulf %550, %551 : vector<8x32xf32>
    %553 = vector.broadcast %530 : vector<1x32xf32> to vector<8x32xf32>
    %554 = arith.addf %552, %553 : vector<8x32xf32>
    %555 = arith.mulf %554, %495 : vector<8x32xf32>
    %c0_196 = arith.constant 0 : index
    %c0_197 = arith.constant 0 : index
    %556 = vector.load %arg6[%c0_196, %c0_197] : memref<224x64xbf16, #tpu.memory_space<vmem>>, vector<32x64xbf16>
    %557 = arith.truncf %555 : vector<8x32xf32> to vector<8x32xbf16>
    %cst_198 = arith.constant dense<0.000000e+00> : vector<8x64xf32>
    %558 = tpu.matmul %557, %556, %cst_198 {dimension_numbers = #tpu.dot_dimension_numbers<[1], [0], [0], [1], [0, 0, 1, 1], [], []>} : vector<8x32xbf16>, vector<32x64xbf16>, vector<8x64xf32> -> vector<8x64xf32>
    %c3_199 = arith.constant 3 : index
    %c0_200 = arith.constant 0 : index
    %559 = vector.load %arg7[%c3_199, %c0_200] : memref<21x64xf32, #tpu.memory_space<vmem>>, vector<1x64xf32>
    %560 = vector.broadcast %559 : vector<1x64xf32> to vector<8x64xf32>
    %561 = arith.addf %558, %560 : vector<8x64xf32>
    %562 = vector.broadcast %489 : vector<8x1xf32> to vector<8x64xf32>
    %563 = arith.mulf %561, %562 : vector<8x64xf32>
    %c136_201 = arith.constant 136 : index
    %c0_202 = arith.constant 0 : index
    %564 = vector.load %arg5[%c136_201, %c0_202] : memref<840x32xbf16, #tpu.memory_space<vmem>>, vector<32x32xbf16>
    %c168_203 = arith.constant 168 : index
    %c0_204 = arith.constant 0 : index
    %565 = vector.load %arg5[%c168_203, %c0_204] : memref<840x32xbf16, #tpu.memory_space<vmem>>, vector<32x32xbf16>
    %c200_205 = arith.constant 200 : index
    %c0_206 = arith.constant 0 : index
    %566 = vector.load %arg5[%c200_205, %c0_206] : memref<840x32xbf16, #tpu.memory_space<vmem>>, vector<32x32xbf16>
    %c4_207 = arith.constant 4 : index
    %c0_208 = arith.constant 0 : index
    %567 = vector.load %arg7[%c4_207, %c0_208] : memref<21x64xf32, #tpu.memory_space<vmem>>, vector<1x32xf32>
    %c1_i32_209 = arith.constant 1 : i32
    %568 = tpu.dynamic_rotate %555 by %c1_i32_209 dim 0 : vector<8x32xf32>, i32 -> vector<8x32xf32>
    %569 = vector.broadcast %4 : vector<8x1xf32> to vector<8x32xf32>
    %570 = arith.mulf %568, %569 : vector<8x32xf32>
    %c7_i32_210 = arith.constant 7 : i32
    %571 = tpu.dynamic_rotate %555 by %c7_i32_210 dim 0 : vector<8x32xf32>, i32 -> vector<8x32xf32>
    %572 = vector.broadcast %8 : vector<8x1xf32> to vector<8x32xf32>
    %573 = arith.mulf %571, %572 : vector<8x32xf32>
    %574 = arith.truncf %555 : vector<8x32xf32> to vector<8x32xbf16>
    %cst_211 = arith.constant dense<0.000000e+00> : vector<8x32xf32>
    %575 = tpu.matmul %574, %565, %cst_211 {dimension_numbers = #tpu.dot_dimension_numbers<[1], [0], [0], [1], [0, 0, 1, 1], [], []>} : vector<8x32xbf16>, vector<32x32xbf16>, vector<8x32xf32> -> vector<8x32xf32>
    %576 = arith.truncf %570 : vector<8x32xf32> to vector<8x32xbf16>
    %cst_212 = arith.constant dense<0.000000e+00> : vector<8x32xf32>
    %577 = tpu.matmul %576, %564, %cst_212 {dimension_numbers = #tpu.dot_dimension_numbers<[1], [0], [0], [1], [0, 0, 1, 1], [], []>} : vector<8x32xbf16>, vector<32x32xbf16>, vector<8x32xf32> -> vector<8x32xf32>
    %578 = arith.addf %575, %577 : vector<8x32xf32>
    %579 = arith.truncf %573 : vector<8x32xf32> to vector<8x32xbf16>
    %cst_213 = arith.constant dense<0.000000e+00> : vector<8x32xf32>
    %580 = tpu.matmul %579, %566, %cst_213 {dimension_numbers = #tpu.dot_dimension_numbers<[1], [0], [0], [1], [0, 0, 1, 1], [], []>} : vector<8x32xbf16>, vector<32x32xbf16>, vector<8x32xf32> -> vector<8x32xf32>
    %581 = arith.addf %578, %580 : vector<8x32xf32>
    %582 = vector.broadcast %567 : vector<1x32xf32> to vector<8x32xf32>
    %583 = arith.addf %581, %582 : vector<8x32xf32>
    %cst_214 = arith.constant 0.000000e+00 : f32
    %584 = vector.broadcast %cst_214 : f32 to vector<8x32xf32>
    %585 = arith.maximumf %583, %584 : vector<8x32xf32>
    %586 = arith.mulf %585, %495 : vector<8x32xf32>
    %c5_215 = arith.constant 5 : index
    %c0_216 = arith.constant 0 : index
    %587 = vector.load %arg7[%c5_215, %c0_216] : memref<21x64xf32, #tpu.memory_space<vmem>>, vector<1x32xf32>
    %c6_217 = arith.constant 6 : index
    %c0_218 = arith.constant 0 : index
    %588 = vector.load %arg7[%c6_217, %c0_218] : memref<21x64xf32, #tpu.memory_space<vmem>>, vector<1x32xf32>
    %cst_219 = arith.constant dense<0.000000e+00> : vector<8xf32>
    %589 = vector.multi_reduction <add>, %586, %cst_219 [1] : vector<8x32xf32> to vector<8xf32>
    %590 = vector.shape_cast %589 : vector<8xf32> to vector<8x1xf32>
    %cst_220 = arith.constant 3.200000e+01 : f32
    %591 = vector.broadcast %cst_220 : f32 to vector<8x1xf32>
    %592 = arith.divf %590, %591 : vector<8x1xf32>
    %593 = vector.broadcast %592 : vector<8x1xf32> to vector<8x32xf32>
    %594 = arith.subf %586, %593 : vector<8x32xf32>
    %595 = vector.broadcast %592 : vector<8x1xf32> to vector<8x32xf32>
    %596 = arith.subf %586, %595 : vector<8x32xf32>
    %597 = arith.mulf %594, %596 : vector<8x32xf32>
    %cst_221 = arith.constant dense<0.000000e+00> : vector<8xf32>
    %598 = vector.multi_reduction <add>, %597, %cst_221 [1] : vector<8x32xf32> to vector<8xf32>
    %599 = vector.shape_cast %598 : vector<8xf32> to vector<8x1xf32>
    %cst_222 = arith.constant 3.200000e+01 : f32
    %600 = vector.broadcast %cst_222 : f32 to vector<8x1xf32>
    %601 = arith.divf %599, %600 : vector<8x1xf32>
    %602 = vector.broadcast %592 : vector<8x1xf32> to vector<8x32xf32>
    %603 = arith.subf %586, %602 : vector<8x32xf32>
    %cst_223 = arith.constant 9.99999974E-6 : f32
    %604 = vector.broadcast %cst_223 : f32 to vector<8x1xf32>
    %605 = arith.addf %601, %604 : vector<8x1xf32>
    %606 = math.rsqrt %605 : vector<8x1xf32>
    %607 = vector.broadcast %606 : vector<8x1xf32> to vector<8x32xf32>
    %608 = arith.mulf %603, %607 : vector<8x32xf32>
    %609 = vector.broadcast %587 : vector<1x32xf32> to vector<8x32xf32>
    %610 = arith.mulf %608, %609 : vector<8x32xf32>
    %611 = vector.broadcast %588 : vector<1x32xf32> to vector<8x32xf32>
    %612 = arith.addf %610, %611 : vector<8x32xf32>
    %613 = arith.mulf %612, %495 : vector<8x32xf32>
    %c232_224 = arith.constant 232 : index
    %c0_225 = arith.constant 0 : index
    %614 = vector.load %arg5[%c232_224, %c0_225] : memref<840x32xbf16, #tpu.memory_space<vmem>>, vector<32x32xbf16>
    %c264_226 = arith.constant 264 : index
    %c0_227 = arith.constant 0 : index
    %615 = vector.load %arg5[%c264_226, %c0_227] : memref<840x32xbf16, #tpu.memory_space<vmem>>, vector<32x32xbf16>
    %c296_228 = arith.constant 296 : index
    %c0_229 = arith.constant 0 : index
    %616 = vector.load %arg5[%c296_228, %c0_229] : memref<840x32xbf16, #tpu.memory_space<vmem>>, vector<32x32xbf16>
    %c7_230 = arith.constant 7 : index
    %c0_231 = arith.constant 0 : index
    %617 = vector.load %arg7[%c7_230, %c0_231] : memref<21x64xf32, #tpu.memory_space<vmem>>, vector<1x32xf32>
    %c1_i32_232 = arith.constant 1 : i32
    %618 = tpu.dynamic_rotate %613 by %c1_i32_232 dim 0 : vector<8x32xf32>, i32 -> vector<8x32xf32>
    %619 = vector.broadcast %4 : vector<8x1xf32> to vector<8x32xf32>
    %620 = arith.mulf %618, %619 : vector<8x32xf32>
    %c7_i32_233 = arith.constant 7 : i32
    %621 = tpu.dynamic_rotate %613 by %c7_i32_233 dim 0 : vector<8x32xf32>, i32 -> vector<8x32xf32>
    %622 = vector.broadcast %8 : vector<8x1xf32> to vector<8x32xf32>
    %623 = arith.mulf %621, %622 : vector<8x32xf32>
    %624 = arith.truncf %613 : vector<8x32xf32> to vector<8x32xbf16>
    %cst_234 = arith.constant dense<0.000000e+00> : vector<8x32xf32>
    %625 = tpu.matmul %624, %615, %cst_234 {dimension_numbers = #tpu.dot_dimension_numbers<[1], [0], [0], [1], [0, 0, 1, 1], [], []>} : vector<8x32xbf16>, vector<32x32xbf16>, vector<8x32xf32> -> vector<8x32xf32>
    %626 = arith.truncf %620 : vector<8x32xf32> to vector<8x32xbf16>
    %cst_235 = arith.constant dense<0.000000e+00> : vector<8x32xf32>
    %627 = tpu.matmul %626, %614, %cst_235 {dimension_numbers = #tpu.dot_dimension_numbers<[1], [0], [0], [1], [0, 0, 1, 1], [], []>} : vector<8x32xbf16>, vector<32x32xbf16>, vector<8x32xf32> -> vector<8x32xf32>
    %628 = arith.addf %625, %627 : vector<8x32xf32>
    %629 = arith.truncf %623 : vector<8x32xf32> to vector<8x32xbf16>
    %cst_236 = arith.constant dense<0.000000e+00> : vector<8x32xf32>
    %630 = tpu.matmul %629, %616, %cst_236 {dimension_numbers = #tpu.dot_dimension_numbers<[1], [0], [0], [1], [0, 0, 1, 1], [], []>} : vector<8x32xbf16>, vector<32x32xbf16>, vector<8x32xf32> -> vector<8x32xf32>
    %631 = arith.addf %628, %630 : vector<8x32xf32>
    %632 = vector.broadcast %617 : vector<1x32xf32> to vector<8x32xf32>
    %633 = arith.addf %631, %632 : vector<8x32xf32>
    %cst_237 = arith.constant 0.000000e+00 : f32
    %634 = vector.broadcast %cst_237 : f32 to vector<8x32xf32>
    %635 = arith.maximumf %633, %634 : vector<8x32xf32>
    %636 = arith.mulf %635, %495 : vector<8x32xf32>
    %c8_238 = arith.constant 8 : index
    %c0_239 = arith.constant 0 : index
    %637 = vector.load %arg7[%c8_238, %c0_239] : memref<21x64xf32, #tpu.memory_space<vmem>>, vector<1x32xf32>
    %c9_240 = arith.constant 9 : index
    %c0_241 = arith.constant 0 : index
    %638 = vector.load %arg7[%c9_240, %c0_241] : memref<21x64xf32, #tpu.memory_space<vmem>>, vector<1x32xf32>
    %cst_242 = arith.constant dense<0.000000e+00> : vector<8xf32>
    %639 = vector.multi_reduction <add>, %636, %cst_242 [1] : vector<8x32xf32> to vector<8xf32>
    %640 = vector.shape_cast %639 : vector<8xf32> to vector<8x1xf32>
    %cst_243 = arith.constant 3.200000e+01 : f32
    %641 = vector.broadcast %cst_243 : f32 to vector<8x1xf32>
    %642 = arith.divf %640, %641 : vector<8x1xf32>
    %643 = vector.broadcast %642 : vector<8x1xf32> to vector<8x32xf32>
    %644 = arith.subf %636, %643 : vector<8x32xf32>
    %645 = vector.broadcast %642 : vector<8x1xf32> to vector<8x32xf32>
    %646 = arith.subf %636, %645 : vector<8x32xf32>
    %647 = arith.mulf %644, %646 : vector<8x32xf32>
    %cst_244 = arith.constant dense<0.000000e+00> : vector<8xf32>
    %648 = vector.multi_reduction <add>, %647, %cst_244 [1] : vector<8x32xf32> to vector<8xf32>
    %649 = vector.shape_cast %648 : vector<8xf32> to vector<8x1xf32>
    %cst_245 = arith.constant 3.200000e+01 : f32
    %650 = vector.broadcast %cst_245 : f32 to vector<8x1xf32>
    %651 = arith.divf %649, %650 : vector<8x1xf32>
    %652 = vector.broadcast %642 : vector<8x1xf32> to vector<8x32xf32>
    %653 = arith.subf %636, %652 : vector<8x32xf32>
    %cst_246 = arith.constant 9.99999974E-6 : f32
    %654 = vector.broadcast %cst_246 : f32 to vector<8x1xf32>
    %655 = arith.addf %651, %654 : vector<8x1xf32>
    %656 = math.rsqrt %655 : vector<8x1xf32>
    %657 = vector.broadcast %656 : vector<8x1xf32> to vector<8x32xf32>
    %658 = arith.mulf %653, %657 : vector<8x32xf32>
    %659 = vector.broadcast %637 : vector<1x32xf32> to vector<8x32xf32>
    %660 = arith.mulf %658, %659 : vector<8x32xf32>
    %661 = vector.broadcast %638 : vector<1x32xf32> to vector<8x32xf32>
    %662 = arith.addf %660, %661 : vector<8x32xf32>
    %663 = arith.mulf %662, %495 : vector<8x32xf32>
    %c32_247 = arith.constant 32 : index
    %c0_248 = arith.constant 0 : index
    %664 = vector.load %arg6[%c32_247, %c0_248] : memref<224x64xbf16, #tpu.memory_space<vmem>>, vector<32x1xbf16>
    %665 = arith.truncf %663 : vector<8x32xf32> to vector<8x32xbf16>
    %cst_249 = arith.constant dense<0.000000e+00> : vector<8x1xf32>
    %666 = tpu.matmul %665, %664, %cst_249 {dimension_numbers = #tpu.dot_dimension_numbers<[1], [0], [0], [1], [0, 0, 1, 1], [], []>} : vector<8x32xbf16>, vector<32x1xbf16>, vector<8x1xf32> -> vector<8x1xf32>
    %c10_250 = arith.constant 10 : index
    %c0_251 = arith.constant 0 : index
    %667 = vector.load %arg7[%c10_250, %c0_251] : memref<21x64xf32, #tpu.memory_space<vmem>>, vector<1x1xf32>
    %668 = vector.broadcast %667 : vector<1x1xf32> to vector<8x1xf32>
    %669 = arith.addf %666, %668 : vector<8x1xf32>
    %cst_252 = arith.constant 0.000000e+00 : f32
    %670 = vector.broadcast %cst_252 : f32 to vector<8x1xf32>
    %671 = arith.cmpf ogt, %489, %670 : vector<8x1xf32>
    %cst_253 = arith.constant 0.000000e+00 : f32
    %672 = vector.broadcast %cst_253 : f32 to vector<8x1xf32>
    %673 = arith.select %671, %669, %672 : vector<8x1xi1>, vector<8x1xf32>
    %674 = math.exp %673 : vector<8x1xf32>
    %675 = arith.mulf %674, %489 : vector<8x1xf32>
    %cst_254 = arith.constant 1.000000e+00 : f32
    %676 = vector.broadcast %cst_254 : f32 to vector<8x1xf32>
    %677 = arith.mulf %675, %676 : vector<8x1xf32>
    %678 = math.ceil %677 : vector<8x1xf32>
    %679 = arith.cmpi sle, %29, %30 : vector<8x8xi32>
    %cst_255 = arith.constant 0.000000e+00 : f32
    %680 = vector.shape_cast %678 : vector<8x1xf32> to vector<8x1xf32>
    %681 = vector.broadcast %680 : vector<8x1xf32> to vector<8x8xf32>
    %682 = vector.broadcast %cst_255 : f32 to vector<8x8xf32>
    %683 = arith.select %679, %681, %682 : vector<8x8xi1>, vector<8x8xf32>
    %cst_256 = arith.constant dense<0.000000e+00> : vector<8xf32>
    %684 = vector.multi_reduction <add>, %683, %cst_256 [0] : vector<8x8xf32> to vector<8xf32>
    %685 = vector.shape_cast %684 : vector<8xf32> to vector<1x8xf32>
    %686 = arith.cmpi slt, %29, %30 : vector<8x8xi32>
    %cst_257 = arith.constant 0.000000e+00 : f32
    %687 = vector.shape_cast %678 : vector<8x1xf32> to vector<8x1xf32>
    %688 = vector.broadcast %687 : vector<8x1xf32> to vector<8x8xf32>
    %689 = vector.broadcast %cst_257 : f32 to vector<8x8xf32>
    %690 = arith.select %686, %688, %689 : vector<8x8xi1>, vector<8x8xf32>
    %cst_258 = arith.constant dense<0.000000e+00> : vector<8xf32>
    %691 = vector.multi_reduction <add>, %690, %cst_258 [0] : vector<8x8xf32> to vector<8xf32>
    %692 = vector.shape_cast %691 : vector<8xf32> to vector<1x8xf32>
    %cst_259 = arith.constant dense<0.000000e+00> : vector<1xf32>
    %693 = vector.multi_reduction <add>, %678, %cst_259 [0] : vector<8x1xf32> to vector<1xf32>
    %694 = vector.shape_cast %693 : vector<1xf32> to vector<1x1xf32>
    %cst_260 = arith.constant 1.000000e+00 : f32
    %cst_261 = arith.constant 3.200000e+01 : f32
    %695 = vector.broadcast %cst_260 : f32 to vector<1x1xf32>
    %696 = arith.maximumf %695, %694 : vector<1x1xf32>
    %697 = vector.broadcast %cst_261 : f32 to vector<1x1xf32>
    %698 = arith.minimumf %697, %696 : vector<1x1xf32>
    %699 = vector.broadcast %698 : vector<1x1xf32> to vector<32x1xf32>
    %700 = arith.cmpf olt, %34, %699 : vector<32x1xf32>
    %701 = arith.extui %700 : vector<32x1xi1> to vector<32x1xi32>
    %702 = arith.sitofp %701 : vector<32x1xi32> to vector<32x1xf32>
    %703 = vector.shape_cast %702 : vector<32x1xf32> to vector<32x1xf32>
    %704 = vector.broadcast %703 : vector<32x1xf32> to vector<32x32xf32>
    %705 = vector.broadcast %685 : vector<1x8xf32> to vector<32x8xf32>
    %706 = arith.cmpf olt, %32, %705 : vector<32x8xf32>
    %707 = arith.extui %706 : vector<32x8xi1> to vector<32x8xi32>
    %708 = arith.sitofp %707 : vector<32x8xi32> to vector<32x8xf32>
    %709 = vector.broadcast %692 : vector<1x8xf32> to vector<32x8xf32>
    %710 = arith.cmpf olt, %32, %709 : vector<32x8xf32>
    %711 = arith.extui %710 : vector<32x8xi1> to vector<32x8xi32>
    %712 = arith.sitofp %711 : vector<32x8xi32> to vector<32x8xf32>
    %713 = arith.subf %708, %712 : vector<32x8xf32>
    %714 = vector.broadcast %702 : vector<32x1xf32> to vector<32x8xf32>
    %715 = arith.mulf %713, %714 : vector<32x8xf32>
    %716 = vector.broadcast %493 : vector<1x8xf32> to vector<32x8xf32>
    %717 = arith.mulf %715, %716 : vector<32x8xf32>
    %718 = arith.truncf %717 : vector<32x8xf32> to vector<32x8xbf16>
    %719 = arith.truncf %563 : vector<8x64xf32> to vector<8x64xbf16>
    %cst_262 = arith.constant dense<0.000000e+00> : vector<32x64xf32>
    %720 = tpu.matmul %718, %719, %cst_262 {dimension_numbers = #tpu.dot_dimension_numbers<[1], [0], [0], [1], [0, 0, 1, 1], [], []>} : vector<32x8xbf16>, vector<8x64xbf16>, vector<32x64xf32> -> vector<32x64xf32>
    %721 = vector.extract_strided_slice %720 {offsets = [0, 0], sizes = [32, 32], strides = [1, 1]} : vector<32x64xf32> to vector<32x32xf32>
    %722 = vector.extract_strided_slice %720 {offsets = [0, 32], sizes = [32, 32], strides = [1, 1]} : vector<32x64xf32> to vector<32x32xf32>
    %723 = math.exp %722 : vector<32x32xf32>
    %724 = arith.mulf %485, %723 : vector<32x32xf32>
    %cst_263 = arith.constant 1.000000e+00 : f32
    %725 = vector.broadcast %cst_263 : f32 to vector<32x32xf32>
    %726 = arith.mulf %724, %725 : vector<32x32xf32>
    %727 = arith.addf %721, %726 : vector<32x32xf32>
    %728 = arith.mulf %727, %704 : vector<32x32xf32>
    %729 = vector.extract_strided_slice %728 {offsets = [0, 0], sizes = [32, 16], strides = [1, 1]} : vector<32x32xf32> to vector<32x16xf32>
    %730 = vector.extract_strided_slice %728 {offsets = [0, 16], sizes = [32, 16], strides = [1, 1]} : vector<32x32xf32> to vector<32x16xf32>
    %c440_264 = arith.constant 440 : index
    %c0_265 = arith.constant 0 : index
    %731 = vector.load %arg5[%c440_264, %c0_265] : memref<840x32xbf16, #tpu.memory_space<vmem>>, vector<16x32xbf16>
    %732 = arith.truncf %730 : vector<32x16xf32> to vector<32x16xbf16>
    %cst_266 = arith.constant dense<0.000000e+00> : vector<32x32xf32>
    %733 = tpu.matmul %732, %731, %cst_266 {dimension_numbers = #tpu.dot_dimension_numbers<[1], [0], [0], [1], [0, 0, 1, 1], [], []>} : vector<32x16xbf16>, vector<16x32xbf16>, vector<32x32xf32> -> vector<32x32xf32>
    %c14_267 = arith.constant 14 : index
    %c0_268 = arith.constant 0 : index
    %734 = vector.load %arg7[%c14_267, %c0_268] : memref<21x64xf32, #tpu.memory_space<vmem>>, vector<1x32xf32>
    %735 = vector.broadcast %734 : vector<1x32xf32> to vector<32x32xf32>
    %736 = arith.addf %733, %735 : vector<32x32xf32>
    %737 = arith.mulf %736, %704 : vector<32x32xf32>
    %c456_269 = arith.constant 456 : index
    %c0_270 = arith.constant 0 : index
    %738 = vector.load %arg5[%c456_269, %c0_270] : memref<840x32xbf16, #tpu.memory_space<vmem>>, vector<32x32xbf16>
    %c488_271 = arith.constant 488 : index
    %c0_272 = arith.constant 0 : index
    %739 = vector.load %arg5[%c488_271, %c0_272] : memref<840x32xbf16, #tpu.memory_space<vmem>>, vector<32x32xbf16>
    %c520_273 = arith.constant 520 : index
    %c0_274 = arith.constant 0 : index
    %740 = vector.load %arg5[%c520_273, %c0_274] : memref<840x32xbf16, #tpu.memory_space<vmem>>, vector<32x32xbf16>
    %c15_275 = arith.constant 15 : index
    %c0_276 = arith.constant 0 : index
    %741 = vector.load %arg7[%c15_275, %c0_276] : memref<21x64xf32, #tpu.memory_space<vmem>>, vector<1x32xf32>
    %c1_i32_277 = arith.constant 1 : i32
    %742 = tpu.dynamic_rotate %737 by %c1_i32_277 dim 0 : vector<32x32xf32>, i32 -> vector<32x32xf32>
    %743 = vector.broadcast %13 : vector<32x1xf32> to vector<32x32xf32>
    %744 = arith.mulf %742, %743 : vector<32x32xf32>
    %c31_i32_278 = arith.constant 31 : i32
    %745 = tpu.dynamic_rotate %737 by %c31_i32_278 dim 0 : vector<32x32xf32>, i32 -> vector<32x32xf32>
    %746 = vector.broadcast %17 : vector<32x1xf32> to vector<32x32xf32>
    %747 = arith.mulf %745, %746 : vector<32x32xf32>
    %748 = arith.truncf %737 : vector<32x32xf32> to vector<32x32xbf16>
    %cst_279 = arith.constant dense<0.000000e+00> : vector<32x32xf32>
    %749 = tpu.matmul %748, %739, %cst_279 {dimension_numbers = #tpu.dot_dimension_numbers<[1], [0], [0], [1], [0, 0, 1, 1], [], []>} : vector<32x32xbf16>, vector<32x32xbf16>, vector<32x32xf32> -> vector<32x32xf32>
    %750 = arith.truncf %744 : vector<32x32xf32> to vector<32x32xbf16>
    %cst_280 = arith.constant dense<0.000000e+00> : vector<32x32xf32>
    %751 = tpu.matmul %750, %738, %cst_280 {dimension_numbers = #tpu.dot_dimension_numbers<[1], [0], [0], [1], [0, 0, 1, 1], [], []>} : vector<32x32xbf16>, vector<32x32xbf16>, vector<32x32xf32> -> vector<32x32xf32>
    %752 = arith.addf %749, %751 : vector<32x32xf32>
    %753 = arith.truncf %747 : vector<32x32xf32> to vector<32x32xbf16>
    %cst_281 = arith.constant dense<0.000000e+00> : vector<32x32xf32>
    %754 = tpu.matmul %753, %740, %cst_281 {dimension_numbers = #tpu.dot_dimension_numbers<[1], [0], [0], [1], [0, 0, 1, 1], [], []>} : vector<32x32xbf16>, vector<32x32xbf16>, vector<32x32xf32> -> vector<32x32xf32>
    %755 = arith.addf %752, %754 : vector<32x32xf32>
    %756 = vector.broadcast %741 : vector<1x32xf32> to vector<32x32xf32>
    %757 = arith.addf %755, %756 : vector<32x32xf32>
    %cst_282 = arith.constant 0.000000e+00 : f32
    %758 = vector.broadcast %cst_282 : f32 to vector<32x32xf32>
    %759 = arith.maximumf %757, %758 : vector<32x32xf32>
    %760 = arith.mulf %759, %704 : vector<32x32xf32>
    %c96_283 = arith.constant 96 : index
    %c0_284 = arith.constant 0 : index
    %761 = vector.load %arg6[%c96_283, %c0_284] : memref<224x64xbf16, #tpu.memory_space<vmem>>, vector<32x16xbf16>
    %762 = arith.truncf %760 : vector<32x32xf32> to vector<32x32xbf16>
    %cst_285 = arith.constant dense<0.000000e+00> : vector<32x16xf32>
    %763 = tpu.matmul %762, %761, %cst_285 {dimension_numbers = #tpu.dot_dimension_numbers<[1], [0], [0], [1], [0, 0, 1, 1], [], []>} : vector<32x32xbf16>, vector<32x16xbf16>, vector<32x16xf32> -> vector<32x16xf32>
    %c16_286 = arith.constant 16 : index
    %c0_287 = arith.constant 0 : index
    %764 = vector.load %arg7[%c16_286, %c0_287] : memref<21x64xf32, #tpu.memory_space<vmem>>, vector<1x16xf32>
    %765 = vector.broadcast %764 : vector<1x16xf32> to vector<32x16xf32>
    %766 = arith.addf %763, %765 : vector<32x16xf32>
    %767 = vector.broadcast %702 : vector<32x1xf32> to vector<32x16xf32>
    %768 = arith.mulf %766, %767 : vector<32x16xf32>
    %769 = arith.subf %729, %768 : vector<32x16xf32>
    %770 = vector.broadcast %702 : vector<32x1xf32> to vector<32x16xf32>
    %771 = arith.mulf %769, %770 : vector<32x16xf32>
    %c328_288 = arith.constant 328 : index
    %c0_289 = arith.constant 0 : index
    %772 = vector.load %arg5[%c328_288, %c0_289] : memref<840x32xbf16, #tpu.memory_space<vmem>>, vector<16x32xbf16>
    %773 = arith.truncf %771 : vector<32x16xf32> to vector<32x16xbf16>
    %cst_290 = arith.constant dense<0.000000e+00> : vector<32x32xf32>
    %774 = tpu.matmul %773, %772, %cst_290 {dimension_numbers = #tpu.dot_dimension_numbers<[1], [0], [0], [1], [0, 0, 1, 1], [], []>} : vector<32x16xbf16>, vector<16x32xbf16>, vector<32x32xf32> -> vector<32x32xf32>
    %c11_291 = arith.constant 11 : index
    %c0_292 = arith.constant 0 : index
    %775 = vector.load %arg7[%c11_291, %c0_292] : memref<21x64xf32, #tpu.memory_space<vmem>>, vector<1x32xf32>
    %776 = vector.broadcast %775 : vector<1x32xf32> to vector<32x32xf32>
    %777 = arith.addf %774, %776 : vector<32x32xf32>
    %778 = arith.mulf %777, %704 : vector<32x32xf32>
    %c344_293 = arith.constant 344 : index
    %c0_294 = arith.constant 0 : index
    %779 = vector.load %arg5[%c344_293, %c0_294] : memref<840x32xbf16, #tpu.memory_space<vmem>>, vector<32x32xbf16>
    %c376_295 = arith.constant 376 : index
    %c0_296 = arith.constant 0 : index
    %780 = vector.load %arg5[%c376_295, %c0_296] : memref<840x32xbf16, #tpu.memory_space<vmem>>, vector<32x32xbf16>
    %c408_297 = arith.constant 408 : index
    %c0_298 = arith.constant 0 : index
    %781 = vector.load %arg5[%c408_297, %c0_298] : memref<840x32xbf16, #tpu.memory_space<vmem>>, vector<32x32xbf16>
    %c12_299 = arith.constant 12 : index
    %c0_300 = arith.constant 0 : index
    %782 = vector.load %arg7[%c12_299, %c0_300] : memref<21x64xf32, #tpu.memory_space<vmem>>, vector<1x32xf32>
    %c1_i32_301 = arith.constant 1 : i32
    %783 = tpu.dynamic_rotate %778 by %c1_i32_301 dim 0 : vector<32x32xf32>, i32 -> vector<32x32xf32>
    %784 = vector.broadcast %13 : vector<32x1xf32> to vector<32x32xf32>
    %785 = arith.mulf %783, %784 : vector<32x32xf32>
    %c31_i32_302 = arith.constant 31 : i32
    %786 = tpu.dynamic_rotate %778 by %c31_i32_302 dim 0 : vector<32x32xf32>, i32 -> vector<32x32xf32>
    %787 = vector.broadcast %17 : vector<32x1xf32> to vector<32x32xf32>
    %788 = arith.mulf %786, %787 : vector<32x32xf32>
    %789 = arith.truncf %778 : vector<32x32xf32> to vector<32x32xbf16>
    %cst_303 = arith.constant dense<0.000000e+00> : vector<32x32xf32>
    %790 = tpu.matmul %789, %780, %cst_303 {dimension_numbers = #tpu.dot_dimension_numbers<[1], [0], [0], [1], [0, 0, 1, 1], [], []>} : vector<32x32xbf16>, vector<32x32xbf16>, vector<32x32xf32> -> vector<32x32xf32>
    %791 = arith.truncf %785 : vector<32x32xf32> to vector<32x32xbf16>
    %cst_304 = arith.constant dense<0.000000e+00> : vector<32x32xf32>
    %792 = tpu.matmul %791, %779, %cst_304 {dimension_numbers = #tpu.dot_dimension_numbers<[1], [0], [0], [1], [0, 0, 1, 1], [], []>} : vector<32x32xbf16>, vector<32x32xbf16>, vector<32x32xf32> -> vector<32x32xf32>
    %793 = arith.addf %790, %792 : vector<32x32xf32>
    %794 = arith.truncf %788 : vector<32x32xf32> to vector<32x32xbf16>
    %cst_305 = arith.constant dense<0.000000e+00> : vector<32x32xf32>
    %795 = tpu.matmul %794, %781, %cst_305 {dimension_numbers = #tpu.dot_dimension_numbers<[1], [0], [0], [1], [0, 0, 1, 1], [], []>} : vector<32x32xbf16>, vector<32x32xbf16>, vector<32x32xf32> -> vector<32x32xf32>
    %796 = arith.addf %793, %795 : vector<32x32xf32>
    %797 = vector.broadcast %782 : vector<1x32xf32> to vector<32x32xf32>
    %798 = arith.addf %796, %797 : vector<32x32xf32>
    %cst_306 = arith.constant 0.000000e+00 : f32
    %799 = vector.broadcast %cst_306 : f32 to vector<32x32xf32>
    %800 = arith.maximumf %798, %799 : vector<32x32xf32>
    %801 = arith.mulf %800, %704 : vector<32x32xf32>
    %c64_307 = arith.constant 64 : index
    %c0_308 = arith.constant 0 : index
    %802 = vector.load %arg6[%c64_307, %c0_308] : memref<224x64xbf16, #tpu.memory_space<vmem>>, vector<32x16xbf16>
    %803 = arith.truncf %801 : vector<32x32xf32> to vector<32x32xbf16>
    %cst_309 = arith.constant dense<0.000000e+00> : vector<32x16xf32>
    %804 = tpu.matmul %803, %802, %cst_309 {dimension_numbers = #tpu.dot_dimension_numbers<[1], [0], [0], [1], [0, 0, 1, 1], [], []>} : vector<32x32xbf16>, vector<32x16xbf16>, vector<32x16xf32> -> vector<32x16xf32>
    %c13_310 = arith.constant 13 : index
    %c0_311 = arith.constant 0 : index
    %805 = vector.load %arg7[%c13_310, %c0_311] : memref<21x64xf32, #tpu.memory_space<vmem>>, vector<1x16xf32>
    %806 = vector.broadcast %805 : vector<1x16xf32> to vector<32x16xf32>
    %807 = arith.addf %804, %806 : vector<32x16xf32>
    %808 = vector.broadcast %702 : vector<32x1xf32> to vector<32x16xf32>
    %809 = arith.mulf %807, %808 : vector<32x16xf32>
    %810 = arith.subf %730, %809 : vector<32x16xf32>
    %811 = vector.broadcast %702 : vector<32x1xf32> to vector<32x16xf32>
    %812 = arith.mulf %810, %811 : vector<32x16xf32>
    %813 = tpu.concatenate %771, %812 in 1 : vector<32x16xf32>, vector<32x16xf32> -> vector<32x32xf32>
    %814 = arith.mulf %813, %704 : vector<32x32xf32>
    %c552_312 = arith.constant 552 : index
    %c0_313 = arith.constant 0 : index
    %815 = vector.load %arg5[%c552_312, %c0_313] : memref<840x32xbf16, #tpu.memory_space<vmem>>, vector<32x32xbf16>
    %c584_314 = arith.constant 584 : index
    %c0_315 = arith.constant 0 : index
    %816 = vector.load %arg5[%c584_314, %c0_315] : memref<840x32xbf16, #tpu.memory_space<vmem>>, vector<32x32xbf16>
    %c616_316 = arith.constant 616 : index
    %c0_317 = arith.constant 0 : index
    %817 = vector.load %arg5[%c616_316, %c0_317] : memref<840x32xbf16, #tpu.memory_space<vmem>>, vector<32x32xbf16>
    %c17_318 = arith.constant 17 : index
    %c0_319 = arith.constant 0 : index
    %818 = vector.load %arg7[%c17_318, %c0_319] : memref<21x64xf32, #tpu.memory_space<vmem>>, vector<1x32xf32>
    %c1_i32_320 = arith.constant 1 : i32
    %819 = tpu.dynamic_rotate %814 by %c1_i32_320 dim 0 : vector<32x32xf32>, i32 -> vector<32x32xf32>
    %820 = vector.broadcast %13 : vector<32x1xf32> to vector<32x32xf32>
    %821 = arith.mulf %819, %820 : vector<32x32xf32>
    %c31_i32_321 = arith.constant 31 : i32
    %822 = tpu.dynamic_rotate %814 by %c31_i32_321 dim 0 : vector<32x32xf32>, i32 -> vector<32x32xf32>
    %823 = vector.broadcast %17 : vector<32x1xf32> to vector<32x32xf32>
    %824 = arith.mulf %822, %823 : vector<32x32xf32>
    %825 = arith.truncf %814 : vector<32x32xf32> to vector<32x32xbf16>
    %cst_322 = arith.constant dense<0.000000e+00> : vector<32x32xf32>
    %826 = tpu.matmul %825, %816, %cst_322 {dimension_numbers = #tpu.dot_dimension_numbers<[1], [0], [0], [1], [0, 0, 1, 1], [], []>} : vector<32x32xbf16>, vector<32x32xbf16>, vector<32x32xf32> -> vector<32x32xf32>
    %827 = arith.truncf %821 : vector<32x32xf32> to vector<32x32xbf16>
    %cst_323 = arith.constant dense<0.000000e+00> : vector<32x32xf32>
    %828 = tpu.matmul %827, %815, %cst_323 {dimension_numbers = #tpu.dot_dimension_numbers<[1], [0], [0], [1], [0, 0, 1, 1], [], []>} : vector<32x32xbf16>, vector<32x32xbf16>, vector<32x32xf32> -> vector<32x32xf32>
    %829 = arith.addf %826, %828 : vector<32x32xf32>
    %830 = arith.truncf %824 : vector<32x32xf32> to vector<32x32xbf16>
    %cst_324 = arith.constant dense<0.000000e+00> : vector<32x32xf32>
    %831 = tpu.matmul %830, %817, %cst_324 {dimension_numbers = #tpu.dot_dimension_numbers<[1], [0], [0], [1], [0, 0, 1, 1], [], []>} : vector<32x32xbf16>, vector<32x32xbf16>, vector<32x32xf32> -> vector<32x32xf32>
    %832 = arith.addf %829, %831 : vector<32x32xf32>
    %833 = vector.broadcast %818 : vector<1x32xf32> to vector<32x32xf32>
    %834 = arith.addf %832, %833 : vector<32x32xf32>
    %c0_325 = arith.constant 0 : index
    %c0_326 = arith.constant 0 : index
    %835 = vector.load %arg4[%c0_325, %c0_326] : memref<128x32xbf16, #tpu.memory_space<vmem>>, vector<128x32xbf16>
    %836 = arith.truncf %834 : vector<32x32xf32> to vector<32x32xbf16>
    %cst_327 = arith.constant dense<0.000000e+00> : vector<128x32xf32>
    %837 = tpu.matmul %835, %836, %cst_327 {dimension_numbers = #tpu.dot_dimension_numbers<[1], [0], [0], [1], [0, 0, 1, 1], [], []>} : vector<128x32xbf16>, vector<32x32xbf16>, vector<128x32xf32> -> vector<128x32xf32>
    %cst_328 = arith.constant 0.000000e+00 : f32
    %838 = vector.broadcast %cst_328 : f32 to vector<128x32xf32>
    %839 = arith.cmpf ogt, %837, %838 : vector<128x32xf32>
    %cst_329 = arith.constant 1.000000e-01 : f32
    %840 = vector.broadcast %cst_329 : f32 to vector<128x32xf32>
    %841 = arith.mulf %840, %837 : vector<128x32xf32>
    %842 = arith.select %839, %837, %841 : vector<128x32xi1>, vector<128x32xf32>
    %c648_330 = arith.constant 648 : index
    %c0_331 = arith.constant 0 : index
    %843 = vector.load %arg5[%c648_330, %c0_331] : memref<840x32xbf16, #tpu.memory_space<vmem>>, vector<32x32xbf16>
    %c680_332 = arith.constant 680 : index
    %c0_333 = arith.constant 0 : index
    %844 = vector.load %arg5[%c680_332, %c0_333] : memref<840x32xbf16, #tpu.memory_space<vmem>>, vector<32x32xbf16>
    %c712_334 = arith.constant 712 : index
    %c0_335 = arith.constant 0 : index
    %845 = vector.load %arg5[%c712_334, %c0_335] : memref<840x32xbf16, #tpu.memory_space<vmem>>, vector<32x32xbf16>
    %c18_336 = arith.constant 18 : index
    %c0_337 = arith.constant 0 : index
    %846 = vector.load %arg7[%c18_336, %c0_337] : memref<21x64xf32, #tpu.memory_space<vmem>>, vector<1x32xf32>
    %c1_i32_338 = arith.constant 1 : i32
    %847 = tpu.dynamic_rotate %842 by %c1_i32_338 dim 0 : vector<128x32xf32>, i32 -> vector<128x32xf32>
    %848 = vector.broadcast %22 : vector<128x1xf32> to vector<128x32xf32>
    %849 = arith.mulf %847, %848 : vector<128x32xf32>
    %c127_i32_339 = arith.constant 127 : i32
    %850 = tpu.dynamic_rotate %842 by %c127_i32_339 dim 0 : vector<128x32xf32>, i32 -> vector<128x32xf32>
    %851 = vector.broadcast %26 : vector<128x1xf32> to vector<128x32xf32>
    %852 = arith.mulf %850, %851 : vector<128x32xf32>
    %853 = arith.truncf %842 : vector<128x32xf32> to vector<128x32xbf16>
    %cst_340 = arith.constant dense<0.000000e+00> : vector<128x32xf32>
    %854 = tpu.matmul %853, %844, %cst_340 {dimension_numbers = #tpu.dot_dimension_numbers<[1], [0], [0], [1], [0, 0, 1, 1], [], []>} : vector<128x32xbf16>, vector<32x32xbf16>, vector<128x32xf32> -> vector<128x32xf32>
    %855 = arith.truncf %849 : vector<128x32xf32> to vector<128x32xbf16>
    %cst_341 = arith.constant dense<0.000000e+00> : vector<128x32xf32>
    %856 = tpu.matmul %855, %843, %cst_341 {dimension_numbers = #tpu.dot_dimension_numbers<[1], [0], [0], [1], [0, 0, 1, 1], [], []>} : vector<128x32xbf16>, vector<32x32xbf16>, vector<128x32xf32> -> vector<128x32xf32>
    %857 = arith.addf %854, %856 : vector<128x32xf32>
    %858 = arith.truncf %852 : vector<128x32xf32> to vector<128x32xbf16>
    %cst_342 = arith.constant dense<0.000000e+00> : vector<128x32xf32>
    %859 = tpu.matmul %858, %845, %cst_342 {dimension_numbers = #tpu.dot_dimension_numbers<[1], [0], [0], [1], [0, 0, 1, 1], [], []>} : vector<128x32xbf16>, vector<32x32xbf16>, vector<128x32xf32> -> vector<128x32xf32>
    %860 = arith.addf %857, %859 : vector<128x32xf32>
    %861 = vector.broadcast %846 : vector<1x32xf32> to vector<128x32xf32>
    %862 = arith.addf %860, %861 : vector<128x32xf32>
    %cst_343 = arith.constant 0.000000e+00 : f32
    %863 = vector.broadcast %cst_343 : f32 to vector<128x32xf32>
    %864 = arith.cmpf ogt, %862, %863 : vector<128x32xf32>
    %cst_344 = arith.constant 1.000000e-01 : f32
    %865 = vector.broadcast %cst_344 : f32 to vector<128x32xf32>
    %866 = arith.mulf %865, %862 : vector<128x32xf32>
    %867 = arith.select %864, %862, %866 : vector<128x32xi1>, vector<128x32xf32>
    %c744_345 = arith.constant 744 : index
    %c0_346 = arith.constant 0 : index
    %868 = vector.load %arg5[%c744_345, %c0_346] : memref<840x32xbf16, #tpu.memory_space<vmem>>, vector<32x32xbf16>
    %c776_347 = arith.constant 776 : index
    %c0_348 = arith.constant 0 : index
    %869 = vector.load %arg5[%c776_347, %c0_348] : memref<840x32xbf16, #tpu.memory_space<vmem>>, vector<32x32xbf16>
    %c808_349 = arith.constant 808 : index
    %c0_350 = arith.constant 0 : index
    %870 = vector.load %arg5[%c808_349, %c0_350] : memref<840x32xbf16, #tpu.memory_space<vmem>>, vector<32x32xbf16>
    %c19_351 = arith.constant 19 : index
    %c0_352 = arith.constant 0 : index
    %871 = vector.load %arg7[%c19_351, %c0_352] : memref<21x64xf32, #tpu.memory_space<vmem>>, vector<1x32xf32>
    %c1_i32_353 = arith.constant 1 : i32
    %872 = tpu.dynamic_rotate %867 by %c1_i32_353 dim 0 : vector<128x32xf32>, i32 -> vector<128x32xf32>
    %873 = vector.broadcast %22 : vector<128x1xf32> to vector<128x32xf32>
    %874 = arith.mulf %872, %873 : vector<128x32xf32>
    %c127_i32_354 = arith.constant 127 : i32
    %875 = tpu.dynamic_rotate %867 by %c127_i32_354 dim 0 : vector<128x32xf32>, i32 -> vector<128x32xf32>
    %876 = vector.broadcast %26 : vector<128x1xf32> to vector<128x32xf32>
    %877 = arith.mulf %875, %876 : vector<128x32xf32>
    %878 = arith.truncf %867 : vector<128x32xf32> to vector<128x32xbf16>
    %cst_355 = arith.constant dense<0.000000e+00> : vector<128x32xf32>
    %879 = tpu.matmul %878, %869, %cst_355 {dimension_numbers = #tpu.dot_dimension_numbers<[1], [0], [0], [1], [0, 0, 1, 1], [], []>} : vector<128x32xbf16>, vector<32x32xbf16>, vector<128x32xf32> -> vector<128x32xf32>
    %880 = arith.truncf %874 : vector<128x32xf32> to vector<128x32xbf16>
    %cst_356 = arith.constant dense<0.000000e+00> : vector<128x32xf32>
    %881 = tpu.matmul %880, %868, %cst_356 {dimension_numbers = #tpu.dot_dimension_numbers<[1], [0], [0], [1], [0, 0, 1, 1], [], []>} : vector<128x32xbf16>, vector<32x32xbf16>, vector<128x32xf32> -> vector<128x32xf32>
    %882 = arith.addf %879, %881 : vector<128x32xf32>
    %883 = arith.truncf %877 : vector<128x32xf32> to vector<128x32xbf16>
    %cst_357 = arith.constant dense<0.000000e+00> : vector<128x32xf32>
    %884 = tpu.matmul %883, %870, %cst_357 {dimension_numbers = #tpu.dot_dimension_numbers<[1], [0], [0], [1], [0, 0, 1, 1], [], []>} : vector<128x32xbf16>, vector<32x32xbf16>, vector<128x32xf32> -> vector<128x32xf32>
    %885 = arith.addf %882, %884 : vector<128x32xf32>
    %886 = vector.broadcast %871 : vector<1x32xf32> to vector<128x32xf32>
    %887 = arith.addf %885, %886 : vector<128x32xf32>
    %888 = arith.addf %837, %887 : vector<128x32xf32>
    %cst_358 = arith.constant 0.000000e+00 : f32
    %889 = vector.broadcast %cst_358 : f32 to vector<128x32xf32>
    %890 = arith.cmpf ogt, %888, %889 : vector<128x32xf32>
    %cst_359 = arith.constant 1.000000e-01 : f32
    %891 = vector.broadcast %cst_359 : f32 to vector<128x32xf32>
    %892 = arith.mulf %891, %888 : vector<128x32xf32>
    %893 = arith.select %890, %888, %892 : vector<128x32xi1>, vector<128x32xf32>
    %c128_360 = arith.constant 128 : index
    %c0_361 = arith.constant 0 : index
    %894 = vector.load %arg6[%c128_360, %c0_361] : memref<224x64xbf16, #tpu.memory_space<vmem>>, vector<32x8xbf16>
    %c160_362 = arith.constant 160 : index
    %c0_363 = arith.constant 0 : index
    %895 = vector.load %arg6[%c160_362, %c0_363] : memref<224x64xbf16, #tpu.memory_space<vmem>>, vector<32x8xbf16>
    %c192_364 = arith.constant 192 : index
    %c0_365 = arith.constant 0 : index
    %896 = vector.load %arg6[%c192_364, %c0_365] : memref<224x64xbf16, #tpu.memory_space<vmem>>, vector<32x8xbf16>
    %c20_366 = arith.constant 20 : index
    %c0_367 = arith.constant 0 : index
    %897 = vector.load %arg7[%c20_366, %c0_367] : memref<21x64xf32, #tpu.memory_space<vmem>>, vector<1x8xf32>
    %c1_i32_368 = arith.constant 1 : i32
    %898 = tpu.dynamic_rotate %893 by %c1_i32_368 dim 0 : vector<128x32xf32>, i32 -> vector<128x32xf32>
    %899 = vector.broadcast %22 : vector<128x1xf32> to vector<128x32xf32>
    %900 = arith.mulf %898, %899 : vector<128x32xf32>
    %c127_i32_369 = arith.constant 127 : i32
    %901 = tpu.dynamic_rotate %893 by %c127_i32_369 dim 0 : vector<128x32xf32>, i32 -> vector<128x32xf32>
    %902 = vector.broadcast %26 : vector<128x1xf32> to vector<128x32xf32>
    %903 = arith.mulf %901, %902 : vector<128x32xf32>
    %904 = arith.truncf %893 : vector<128x32xf32> to vector<128x32xbf16>
    %cst_370 = arith.constant dense<0.000000e+00> : vector<128x8xf32>
    %905 = tpu.matmul %904, %895, %cst_370 {dimension_numbers = #tpu.dot_dimension_numbers<[1], [0], [0], [1], [0, 0, 1, 1], [], []>} : vector<128x32xbf16>, vector<32x8xbf16>, vector<128x8xf32> -> vector<128x8xf32>
    %906 = arith.truncf %900 : vector<128x32xf32> to vector<128x32xbf16>
    %cst_371 = arith.constant dense<0.000000e+00> : vector<128x8xf32>
    %907 = tpu.matmul %906, %894, %cst_371 {dimension_numbers = #tpu.dot_dimension_numbers<[1], [0], [0], [1], [0, 0, 1, 1], [], []>} : vector<128x32xbf16>, vector<32x8xbf16>, vector<128x8xf32> -> vector<128x8xf32>
    %908 = arith.addf %905, %907 : vector<128x8xf32>
    %909 = arith.truncf %903 : vector<128x32xf32> to vector<128x32xbf16>
    %cst_372 = arith.constant dense<0.000000e+00> : vector<128x8xf32>
    %910 = tpu.matmul %909, %896, %cst_372 {dimension_numbers = #tpu.dot_dimension_numbers<[1], [0], [0], [1], [0, 0, 1, 1], [], []>} : vector<128x32xbf16>, vector<32x8xbf16>, vector<128x8xf32> -> vector<128x8xf32>
    %911 = arith.addf %908, %910 : vector<128x8xf32>
    %912 = vector.broadcast %897 : vector<1x8xf32> to vector<128x8xf32>
    %913 = arith.addf %911, %912 : vector<128x8xf32>
    %914 = math.tanh %913 : vector<128x8xf32>
    %915 = tpu.transpose %914, [1, 0] : vector<128x8xf32> -> vector<8x128xf32>
    %916 = vector.extract_strided_slice %915 {offsets = [0, 0], sizes = [1, 128], strides = [1, 1]} : vector<8x128xf32> to vector<1x128xf32>
    %c1_373 = arith.constant 1 : index
    %c0_374 = arith.constant 0 : index
    %c0_375 = arith.constant 0 : index
    %917 = vector.load %arg8[%c1_373, %c0_374, %c0_375] : memref<2x1x128xf32, #tpu.memory_space<vmem>>, vector<1x1x128xf32>
    %918 = vector.shape_cast %917 : vector<1x1x128xf32> to vector<1x128xf32>
    %919 = vector.shape_cast %916 : vector<1x128xf32> to vector<1x1x128xf32>
    tpu.vector_store %arg8[%c1_373, %c0_374, %c0_375], %919 {strides = array<i32>} : memref<2x1x128xf32, #tpu.memory_space<vmem>>, vector<1x1x128xf32>,
    return
  }
  func.func @transform_0(%arg0: i32, %arg1: memref<4xi32, #tpu.memory_space<smem>>) -> (i32, i32, i32) {
    %c0_i32 = arith.constant 0 : i32
    %c0_i32_0 = arith.constant 0 : i32
    %c0_i32_1 = arith.constant 0 : i32
    return %arg0, %c0_i32, %c0_i32_0 : i32, i32, i32
  }
  func.func @transform_1(%arg0: i32, %arg1: memref<4xi32, #tpu.memory_space<smem>>) -> (i32, i32, i32) {
    %c0_i32 = arith.constant 0 : i32
    %c0_i32_0 = arith.constant 0 : i32
    %c0_i32_1 = arith.constant 0 : i32
    return %arg0, %c0_i32, %c0_i32_0 : i32, i32, i32
  }
  func.func @transform_2(%arg0: i32, %arg1: memref<4xi32, #tpu.memory_space<smem>>) -> (i32, i32) {
    %c0_i32 = arith.constant 0 : i32
    %c0_i32_0 = arith.constant 0 : i32
    %c0_i32_1 = arith.constant 0 : i32
    return %c0_i32, %c0_i32_0 : i32, i32
  }
  func.func @transform_3(%arg0: i32, %arg1: memref<4xi32, #tpu.memory_space<smem>>) -> (i32, i32) {
    %c0_i32 = arith.constant 0 : i32
    %c0_i32_0 = arith.constant 0 : i32
    %c0_i32_1 = arith.constant 0 : i32
    return %c0_i32, %c0_i32_0 : i32, i32
  }
  func.func @transform_4(%arg0: i32, %arg1: memref<4xi32, #tpu.memory_space<smem>>) -> (i32, i32) {
    %c0_i32 = arith.constant 0 : i32
    %c0_i32_0 = arith.constant 0 : i32
    %c0_i32_1 = arith.constant 0 : i32
    return %c0_i32, %c0_i32_0 : i32, i32
  }
  func.func @transform_5(%arg0: i32, %arg1: memref<4xi32, #tpu.memory_space<smem>>) -> (i32, i32) {
    %c0_i32 = arith.constant 0 : i32
    %c0_i32_0 = arith.constant 0 : i32
    %c0_i32_1 = arith.constant 0 : i32
    return %c0_i32, %c0_i32_0 : i32, i32
  }
  func.func @transform_6(%arg0: i32, %arg1: memref<4xi32, #tpu.memory_space<smem>>) -> (i32, i32, i32) {
    %c0_i32 = arith.constant 0 : i32
    %c0_i32_0 = arith.constant 0 : i32
    %c0_i32_1 = arith.constant 0 : i32
    return %arg0, %c0_i32, %c0_i32_0 : i32, i32, i32
  }
}

</mosaic_0001>

<bundles_post_ra>
// kernel: tpu_custom_call.1
= control target key start
LH: loop header
LB: loop body
LE: loop exit
PB: predicated region body
PF: predicated region fallthrough
CT: control target
= control target key end

     0   :  { %s14849_s0 = inlined_call_operand.vmem [shape: s32[4], index: 0, kind: input, shape index: {}]   ;;  %s14850_s1 = inlined_call_operand.vmem [shape: s32[4,8,1], index: 1, kind: input, shape index: {}]   ;;  %s14851_s2 = inlined_call_operand.vmem [shape: f32[4,32,32], index: 2, kind: input, shape index: {}]   ;;  %s14852_s3 = inlined_call_operand.vmem [shape: bf16[128,32], index: 3, kind: input, shape index: {}]   ;;  %s14853_s4 = inlined_call_operand.vmem [shape: bf16[840,32], index: 4, kind: input, shape index: {}]   ;;  %s14854_s5 = inlined_call_operand.vmem [shape: bf16[224,64], index: 5, kind: input, shape index: {}]   ;;  %s14855_s6 = inlined_call_operand.vmem [shape: f32[21,64], index: 6, kind: input, shape index: {}]   ;;  %s14856_s7 = inlined_call_operand.hbm [shape: f32[4,1,128], index: 7, kind: output, shape index: {}]  }
   0x1   :  { %s12_s26 = sshll.u32 %s14849_s0, 4  ;;  %s13_s26 = int_to_ptr.vmem [resolvable:$true] %s12_s26 }
   0x2   :  { %s11372_s27 = scalar_lea.vmem %s13_s26, 16  ;;  %p11377_p1 = scmp.lt.s32.totalorder %s13_s26, %s13_s26 }
   0x3   :  { %p11373_p0 = scmp.ne.s32.totalorder %s13_s26, %s11372_s27  ;;  %p11378_p2 = scmp.lt.s32.totalorder %s11372_s27, %s11372_s27 }
   0x5   :  { %p11379_p3 = por %p11378_p2, %p11377_p1 }
   0x7   :  { %p11380_p4 = pnand %p11379_p3, %p11373_p0 }
   0x9   :  { %11383 = shalt.err (!%p11380_p4)  }
   0xa   :  { %s11450_s28 = smov [#allocation3]  }
   0xb   :  { %15 = dma.vmem_to_smem %s13_s26, 16, %s11450_s28, [#allocation2] }
   0xc   :  { %11428 = dma.done.wait [#allocation2], 16 }
   0xd   :  { %11429 = vsyncadd [#allocation2], 4294967280 }
   0xe   :  { %17 = sfence }
   0xf   :  { %18 = vsyncpa [#allocation5], 0 }
  0x10   :  { %20 = vsyncpa [#allocation5 + $0x1], 0  ;;  %s11502_s29 = smov 0   ;;  %s11504_s30 = smov 0  }
  0x11   :  { %s11506_s0 = smov 0   ;;  %s11508_s8 = smov 0  }
  0x12 LB: > { %s11523_s9 = sadd.s32 4294967295, %s11448_s8   ;;  %s9137_s10 = sadd.s32 4294967294, %s11448_s8   ;;  %s11448_s8 = sphi %s11508_s8, %s15056_s8   ;;  %s11444_s0 = sphi %s11506_s0, %s15055_s0   ;;  %s11440_s30 = sphi %s11504_s30, %s15054_s30   ;;  %s11436_s29 = sphi %s11502_s29, %s15053_s29  }
  0x13   : > { %s11527_s11 = sadd.s32 1, %s11448_s8   ;;  %s169_s12 = sadd.s32 1, %s11444_s0 }
  0x14   : > { %s166_s13 = ssub.s32 %s11448_s8, %s11527_s11  ;;  %p179_p5 = scmp.ne.s32.totalorder %s11444_s0, %s11440_s30 }
  0x15   : > { %p167_p6 = scmp.eq.s32.totalorder %s166_s13, 0  ;;  %p180_p7 = scmp.eq.s32.totalorder %s11523_s9, 1 }
  0x16   : > { %p185_p8 = scmp.ne.s32.totalorder %s11440_s30, %s11436_s29  ;;  %p186_p9 = scmp.eq.s32.totalorder %s9137_s10, 1 }
  0x17   : > { %s11538_s14 = scalar_select %p167_p6, %s11444_s0, %s169_s12  }
  0x18   : > { %p11540_p10 = por %p180_p7, %p179_p5  ;;  %p11544_p11 = por %p186_p9, %p185_p8 }
  0x19   : > { %p9140_p12 = scmp.ge.s32.totalorder %s11448_s8, 1  ;;  %p235_p13 = scmp.lt.s32.totalorder %s11448_s8, 3 }
  0x1b   : > { %p236_p0 = pnand %p9140_p12, %p235_p13 }
  0x1d   : > { %239 = sbr.rel (%p236_p0) target bundleno = 11137 (0x2b81), region = 44 }
  0x24   : > { %s11551_s17 = sshll.u32 %s11523_s9, 1  ;;  %v11126_v0 = vld [vmem:[%s14853_s4] sm:$0xff]   ;;  %v11451_v1 = vmov 0   ;;  %v14858_v2 = vmov 0.0   ;;  %v11127_v3 = vld [vmem:[%s14853_s4 + $0x8] sm:$0xff]   ;;  %vm465_vm0 = vcmask 1043456   ;;  %v286_v7 = vlaneseq }
  0x25   : > { %11104 = vset.pattern.permute.xlu0 %v11451_v1  ;;  %p272_p1 = scmp.lt.s32.totalorder %s11551_s17, 3  ;;  %10007 = vmatprep.subr.bf16.mxu0 %v14858_v2  ;;  %v11128_v4 = vld [vmem:[%s14853_s4 + $0x10] ss:$0 sps:$4 sm:$0xff]   ;;  %vm11453_vm1 = vmmov 0   ;;  %vm461_vm3 = vcmask 326656   ;;  %v11129_v12 = vld [vmem:[%s14853_s4 + $0x24] sm:$0xff]  }
  0x26   : > { %10008 = vmatpush3.bf16.msra.mxu0 %v11126_v0  ;;  %10025 = vmatprep.subr.bf16.mxu1 %v14858_v2  ;;  %v467_v6 = vsel %vm465_vm0, %v11128_v4, 0  ;;  %v11583_v8 = vand.u32 127, %v286_v7  ;;  %v11130_v13 = vld [vmem:[%s14853_s4 + $0x14] sm:$0xff]   ;;  %v11131_v14 = vld [vmem:[%s14853_s4 + $0x2c] sm:$0xff]   ;;  %v11132_v15 = vld [vmem:[%s14853_s4 + $0x1c] sm:$0xff]   ;;  %s11607_s24 = sld [smem:[#allocation3 + %s11551_s17]] }
  0x27   : > { %s11563_s22 = scalar_select %p272_p1, %s11551_s17, 3  ;;  %10009 = vmatprep.subr.bf16.mxu0 %v14858_v2  ;;  %11105 = vset.pattern.permute.xlu1 %v11451_v1  ;;  %v11609_v16 = vshrl.u32 %v286_v7, 7  ;;  %vm542_vm6 = vcmask 261120   ;;  %v11133_v29 = vld [vmem:[%s14853_s4 + $0x34] sm:$0xff]   ;;  %v11134_v33 = vld [vmem:[%s14853_s4 + $0x3c] sm:$0xff]   ;;  %v11136_v61 = vld [vmem:[%s14854_s5 + $0x8] sm:$0xff]  }
  0x28   : > { %10013 = vmatprep.mubr.msk.bf16.mxu0 %vm11453_vm1, %v14858_v2  ;;  %10029 = vmatprep.mubr.msk.bf16.mxu1 %vm11453_vm1, %v14858_v2  ;;  %v9168_v45 = vld [vmem:[%s14855_s6] ss:$0 sm:$0xff]  ;;  %v11137_v62 = vld [vmem:[%s14853_s4 + $0x44] sm:$0xff]   ;;  %v11138_v63 = vld [vmem:[%s14853_s4 + $0x4c] sm:$0xff]   ;;  %vm1327_vm9 = vcmask 7168   ;;  %s11456_s21 = smov 16  }
  0x29   : > { %s9143_s23 = sshll.u32 %s11563_s22, 3  ;;  %10026 = vmatpush3.bf16.msra.mxu1 %v11129_v12  ;;  %vm288_vm5 = vcmp.gt.s32.totalorder %v11609_v16, 0  ;;  %vm291_vm7 = vcmp.lt.s32.totalorder %v11609_v16, 7  ;;  %v11135_v60 = vld [vmem:[%s14854_s5] sm:$0xff]   ;;  %v11139_v12 = vld [vmem:[%s14853_s4 + $0x54] sm:$0xff]   ;;  %vm1303_vm14 = vcmp.le.s32.totalorder %v11609_v16, %v11583_v8  ;;  %vm14857_vm15 = vcmp.lt.s32.totalorder %v11609_v16, %v11583_v8  ;;  %s9625_s13 = sshll.u32 %s11563_s22, 5 }
  0x2a   : > { %s11570_s26 = scalar_lea.vmem %s14850_s1, %s9143_s23  ;;  %10010 = vmatpush3.bf16.msra.mxu0 %v11127_v3  ;;  %10027 = vmatprep.subr.bf16.mxu1 %v14858_v2  ;;  %v11621_v25 = vsel %vm288_vm5, 1.0, %v14858_v2  ;;  %v11634_v32 = vsel %vm291_vm7, 1.0, %v14858_v2  ;;  %v9170_v7 = vld [vmem:[%s14855_s6 + $0x2] ss:$0 sm:$0xff]  ;;  %s11865_s20 = scalar_lea.vmem %s14851_s2, %s9625_s13 }
  0x2b   : > { %v422_v5 = vld [vmem:[%s11570_s26] sm:$0xff]  ;;  %10011 = vmatprep.subr.bf16.mxu0 %v14858_v2  ;;  %14909 = vst [vmem:[#allocation8_spill] sm:$0xff] %v11634_v32  ;;  %s11455_s22 = smov 112   ;;  %s4738_s18 = sadd.s32 1, %s11551_s17 }
  0x2c   : > { %435 = vperm.xlu0 %11104, %v422_v5   ;;  %v427_v17 = vstv %s11607_s24  ;;  %v9169_v5 = vld [vmem:[%s14855_s6 + $0x1] ss:$0 sm:$0xff]  ;;  %s11454_s24 = smov 96   ;;  %s12819_s25 = sld [smem:[#allocation3 + %s4738_s18]] }
  0x2d   : > { %10028 = vmatpush3.bf16.msra.mxu1 %v11131_v14  ;;  %vm428_vm4 = vcmp.lt.s32.totalorder %v11609_v16, %v427_v17  ;;  %s268_s10 = sand.u32 1, %s11440_s30   ;;  %s9626_s18 = sshll.u32 %s11523_s9, 5 }
  0x2e   : > { %10012 = vmatpush3.bf16.msra.mxu0 %v467_v6  ;;  %10041 = vmatprep.subr.bf16.mxu1 %v14858_v2  ;;  %v11616_v18 = vsel %vm428_vm4, 1.0, %v14858_v2  ;;  %s9141_s12 = sshll.u32 %s268_s10, 1  ;;  %s14806_s23 = scalar_lea.sflag [#allocation5], %s268_s10 }
  0x2f   : > { %10017 = vmatprep.subr.bf16.mxu0 %v14858_v2  ;;  %vm1297_vm8 = vcmp.gt.f32.partialorder %v11616_v18, 0.0  ;;  %s14780_s13 = scalar_lea.vmem [#allocation4], %s9141_s12  ;;  %s11457_s9 = smov [#allocation4]  }
  0xab   : > { %v436_v9 = vpop.permute.xlu0 %435 }
  0xac   : > { %vm437_vm2 = vcmp.eq.s32.totalorder %v11583_v8, %v436_v9 }
  0xad   : > { %v9154_v10 = vsel %vm437_vm2, 1.0, %v14858_v2  ;;  %vm1310_vm2 = vcmask 64512  }
  0xae   : > { %v445_v11 = vpack.c.bf16 %v9154_v10, %v9154_v10 }
  0xb0   : > { %10014 = vmatmul.mubr.msk.bf16.vlgmr.msra.gmra.mrb[0].mxu0 %vm461_vm3, %v445_v11 }
  0xb1   : > { %10021 = vmatprep.mubr.msk.bf16.mxu0 %vm11453_vm1, %v14858_v2  ;;  %10018 = vmatpush3.bf16.msra.mxu0 %v11130_v13 }
  0xb2   : > { %10019 = vmatprep.subr.bf16.mxu0 %v14858_v2 }
  0xb5   : > { %10020 = vmatpush3.bf16.msra.mxu0 %v11132_v15 }
  0xb6   : > { %10033 = vmatprep.subr.bf16.mxu0 %v14858_v2 }
 0x183   : > { %v503_v19 = vpop.f32.mrb[0].mxu0 }
 0x184   : > { %v509_v20 = vmul.f32 5.656854, %v503_v19  ;;  %v10015_v21 = vpop.f32.mrb[1].mxu0  ;;  %v11140_v19 = vld [vmem:[%s14853_s4 + $0x5c] sm:$0xff]  }
 0x185   : > { %v506_v22 = vpop.f32.mrb[2].mxu0 }
 0x186   : > { %v510_v23 = vmul.f32 %v11616_v18, %v509_v20  ;;  %v10016_v24 = vpop.f32.mrb[3].mxu0  ;;  %v11141_v20 = vld [vmem:[%s14853_s4 + $0x64] sm:$0xff]  }
 0x188   : > { %v524_v26 = vrot.slane %v510_v23, 7  ;;  %v528_v27 = vpack.c.bf16 %v510_v23, %v510_v23  ;;  %v526_v30 = vrot.slane %v510_v23, 1  ;;  %v11142_v23 = vld [vmem:[%s14853_s4 + $0x6c] sm:$0xff]  }
 0x18a   : > { %v525_v28 = vmul.f32 %v11621_v25, %v524_v26  ;;  %10030 = vmatmul.mubr.msk.bf16.vlgmr.msra.gmra.mrb[0].mxu1 %vm542_vm6, %v528_v27  ;;  %v527_v34 = vmul.f32 %v11634_v32, %v526_v30 }
 0x18b   : > { %10045 = vmatprep.mubr.msk.bf16.mxu1 %vm11453_vm1, %v14858_v2  ;;  %10042 = vmatpush3.bf16.msra.mxu1 %v11135_v60 }
 0x18c   : > { %v529_v31 = vpack.c.bf16 %v525_v28, %v525_v28  ;;  %v641_v35 = vpack.c.bf16 %v527_v34, %v527_v34  ;;  %10043 = vmatprep.subr.bf16.mxu1 %v14858_v2 }
 0x18e   : > { %10022 = vmatmul.mubr.msk.bf16.vlgmr.msra.gmra.mrb[4].mxu0 %vm542_vm6, %v529_v31 }
 0x18f   : > { %10034 = vmatpush3.bf16.msra.mxu0 %v11133_v29  ;;  %10037 = vmatprep.mubr.msk.bf16.mxu0 %vm11453_vm1, %v14858_v2 }
 0x190   : > { %10035 = vmatprep.subr.bf16.mxu0 %v14858_v2  ;;  %10044 = vmatpush3.bf16.msra.mxu1 %v11136_v61 }
 0x191   : > { %10057 = vmatprep.subr.bf16.mxu1 %v14858_v2 }
 0x193   : > { %10036 = vmatpush3.bf16.msra.mxu0 %v11134_v33 }
 0x194   : > { %10049 = vmatprep.subr.bf16.mxu0 %v14858_v2 }
 0x196   : > { %10038 = vmatmul.mubr.msk.bf16.vlgmr.msra.gmra.mrb[8].mxu0 %vm542_vm6, %v641_v35 }
 0x197   : > { %10053 = vmatprep.mubr.msk.bf16.mxu0 %vm11453_vm1, %v14858_v2  ;;  %10050 = vmatpush3.bf16.msra.mxu0 %v11137_v62 }
 0x198   : > { %10051 = vmatprep.subr.bf16.mxu0 %v14858_v2 }
 0x19b   : > { %10052 = vmatpush3.bf16.msra.mxu0 %v11138_v63 }
 0x19c   : > { %10065 = vmatprep.subr.bf16.mxu0 %v14858_v2 }
 0x25d   : > { %v635_v36 = vpop.f32.mrb[0].mxu1 }
 0x25e   : > { %v10031_v37 = vpop.f32.mrb[1].mxu1 }
 0x25f   : > { %v638_v38 = vpop.f32.mrb[2].mxu1 }
 0x260   : > { %v10032_v39 = vpop.f32.mrb[3].mxu1 }
 0x261   : > { %v580_v40 = vpop.f32.mrb[4].mxu0 }
 0x262   : > { %v636_v41 = vadd.f32 %v635_v36, %v580_v40  ;;  %v10023_v42 = vpop.f32.mrb[5].mxu0 }
 0x263   : > { %v583_v43 = vpop.f32.mrb[6].mxu0 }
 0x264   : > { %v10024_v44 = vpop.f32.mrb[7].mxu0 }
 0x269   : > { %v691_v46 = vpop.f32.mrb[8].mxu0 }
 0x26a   : > { %v697_v47 = vadd.f32 %v691_v46, %v636_v41  ;;  %v10039_v48 = vpop.f32.mrb[9].mxu0  ;;  %v9184_v41 = vld [vmem:[%s14855_s6 + $0x4] ss:$0 sm:$0xff] }
 0x26b   : > { %v694_v49 = vpop.f32.mrb[10].mxu0 }
 0x26c   : > { %v702_v50 = vadd.f32 %v9168_v45, %v697_v47  ;;  %v10040_v51 = vpop.f32.mrb[11].mxu0 }
 0x26e   : > { %v703_v52 = vmax.f32 %v702_v50, 0.0 }
 0x270   : > { %v704_v53 = vmul.f32 %v11616_v18, %v703_v52 }
 0x272   : > { %v707_v54 = vsel %vm542_vm6, %v704_v53, 0.0 }
 0x273   : > { %708 = vadd.xlane.f32.xlu0 %v707_v54 }
 0x300   : > { %v709_v55 = vpop.xlane.xlu0 %708 }
 0x301   : > { %v711_v56 = vmul.f32 0.03125, %v709_v55 }
 0x303   : > { %v712_v57 = vsub.f32 %v704_v53, %v711_v56  ;;  %v11143_v56 = vld [vmem:[%s14853_s4 + $0x84] sm:$0xff]  }
 0x305   : > { %v713_v58 = vmul.f32 %v712_v57, %v712_v57 }
 0x307   : > { %v714_v59 = vsel %vm542_vm6, %v713_v58, 0.0  ;;  %v11145_v58 = vld [vmem:[%s14853_s4 + $0x8c] sm:$0xff]  }
 0x308   : > { %715 = vadd.xlane.f32.xlu1 %v714_v59  ;;  %v11146_v59 = vld [vmem:[%s14853_s4 + $0x7c] sm:$0xff]  }
 0x395   : > { %v716_v0 = vpop.xlane.xlu1 %715 }
 0x396   : > { %v717_v1 = vmul.f32 0.03125, %v716_v0  ;;  %v9185_v0 = vld [vmem:[%s14855_s6 + $0x5] ss:$0 sm:$0xff] }
 0x398   : > { %v718_v3 = vadd.f32 1e-05, %v717_v1 }
 0x39a   : > { %11276 = vrsqrt.f32 %v718_v3  ;;  %v9186_v3 = vld [vmem:[%s14855_s6 + $0x6] ss:$0 sm:$0xff] }
 0x3a4   : > { %v11277_v4 = vpop.eup %11276 }
 0x3a5   : > { %v720_v6 = vmul.f32 %v11277_v4, %v712_v57  ;;  %v11144_v57 = vld [vmem:[%s14853_s4 + $0x74] sm:$0xff]  }
 0x3a7   : > { %v725_v9 = vmul.f32 %v9169_v5, %v720_v6 }
 0x3a9   : > { %v730_v10 = vadd.f32 %v9170_v7, %v725_v9  ;;  %v9171_v7 = vld [vmem:[%s14855_s6 + $0x3] ss:$0 sm:$0xff] }
 0x3ab   : > { %v731_v11 = vmul.f32 %v11616_v18, %v730_v10 }
 0x3ad   : > { %v736_v13 = vpack.c.bf16 %v731_v11, %v731_v11  ;;  %v811_v14 = vrot.slane %v731_v11, 7  ;;  %v813_v22 = vrot.slane %v731_v11, 1 }
 0x3af   : > { %10046 = vmatmul.mubr.msk.bf16.vlgmr.msra.gmra.mrb[4].mxu1 %vm542_vm6, %v736_v13  ;;  %v812_v15 = vmul.f32 %v11621_v25, %v811_v14  ;;  %v814_v24 = vmul.f32 %v11634_v32, %v813_v22 }
 0x3b0   : > { %10058 = vmatpush3.bf16.msra.mxu1 %v11139_v12  ;;  %10061 = vmatprep.mubr.msk.bf16.mxu1 %vm11453_vm1, %v14858_v2 }
 0x3b1   : > { %v815_v21 = vpack.c.bf16 %v812_v15, %v812_v15  ;;  %10059 = vmatprep.subr.bf16.mxu1 %v14858_v2  ;;  %v923_v26 = vpack.c.bf16 %v814_v24, %v814_v24 }
 0x3b3   : > { %10054 = vmatmul.mubr.msk.bf16.vlgmr.msra.gmra.mrb[12].mxu0 %vm542_vm6, %v815_v21 }
 0x3b4   : > { %10060 = vmatpush3.bf16.msra.mxu1 %v11140_v19  ;;  %10066 = vmatpush3.bf16.msra.mxu0 %v11141_v20  ;;  %v11148_v20 = vld [vmem:[%s14853_s4 + $0x9c] sm:$0xff]  }
 0x3b5   : > { %10067 = vmatprep.subr.bf16.mxu0 %v14858_v2  ;;  %10069 = vmatprep.mubr.msk.bf16.mxu0 %vm11453_vm1, %v14858_v2 }
 0x3b6   : > { %10073 = vmatprep.subr.bf16.mxu1 %v14858_v2 }
 0x3b7   : > { %10062 = vmatmul.mubr.msk.bf16.vlgmr.msra.gmra.mrb[8].mxu1 %vm542_vm6, %v736_v13  ;;  %v11147_v13 = vld [vmem:[%s14853_s4 + $0x94] sm:$0xff]  }
 0x3b8   : > { %10068 = vmatpush3.bf16.msra.mxu0 %v11142_v23  ;;  %10077 = vmatprep.mubr.msk.bf16.mxu1 %vm11453_vm1, %v14858_v2 }
 0x3b9   : > { %10081 = vmatprep.subr.bf16.mxu0 %v14858_v2  ;;  %10074 = vmatpush3.bf16.msra.mxu1 %v11144_v57  ;;  %v9197_v57 = vld [vmem:[%s14855_s6 + $0x8] ss:$0 sm:$0xff] }
 0x3ba   : > { %10075 = vmatprep.subr.bf16.mxu1 %v14858_v2 }
 0x3bb   : > { %10070 = vmatmul.mubr.msk.bf16.vlgmr.msra.gmra.mrb[16].mxu0 %vm542_vm6, %v923_v26 }
 0x3bc   : > { %10085 = vmatprep.mubr.msk.bf16.mxu0 %vm11453_vm1, %v14858_v2  ;;  %10082 = vmatpush3.bf16.msra.mxu0 %v11143_v56 }
 0x3bd   : > { %10083 = vmatprep.subr.bf16.mxu0 %v14858_v2  ;;  %10076 = vmatpush3.bf16.msra.mxu1 %v11146_v59  ;;  %v9198_v59 = vld [vmem:[%s14855_s6 + $0x9] ss:$0 sm:$0xff] }
 0x3be   : > { %10089 = vmatprep.subr.bf16.mxu1 %v14858_v2 }
 0x3c0   : > { %10084 = vmatpush3.bf16.msra.mxu0 %v11145_v58 }
 0x3c1   : > { %10097 = vmatprep.subr.bf16.mxu0 %v14858_v2 }
 0x482   : > { %v791_v27 = vpop.f32.mrb[4].mxu1 }
 0x483   : > { %v10047_v28 = vpop.f32.mrb[5].mxu1  ;;  %v792_v11 = vadd.f32 %v9171_v7, %v791_v27 }
 0x484   : > { %v794_v29 = vpop.f32.mrb[6].mxu1 }
 0x485   : > { %v10048_v30 = vpop.f32.mrb[7].mxu1  ;;  %v797_v19 = vmul.f32 %v11616_v18, %v792_v11 }
 0x486   : > { %v865_v31 = vpop.f32.mrb[12].mxu0 }
 0x487   : > { %v10055_v33 = vpop.f32.mrb[13].mxu0  ;;  %v1407_v22 = vpack.c.bf16 %v797_v19, %v797_v19 }
 0x488   : > { %v868_v34 = vpop.f32.mrb[14].mxu0 }
 0x489   : > { %v10056_v35 = vpop.f32.mrb[15].mxu0  ;;  %v1415_v24 = vsel %vm465_vm0, %v1407_v22, 0 }
 0x48a   : > { %v917_v36 = vpop.f32.mrb[8].mxu1 }
 0x48b   : > { %v918_v37 = vadd.f32 %v917_v36, %v865_v31  ;;  %v10063_v38 = vpop.f32.mrb[9].mxu1  ;;  %v9196_v36 = vld [vmem:[%s14855_s6 + $0x7] ss:$0 sm:$0xff] }
 0x48c   : > { %v920_v39 = vpop.f32.mrb[10].mxu1 }
 0x48d   : > { %v10064_v40 = vpop.f32.mrb[11].mxu1 }
 0x48e   : > { %v973_v42 = vpop.f32.mrb[16].mxu0 }
 0x48f   : > { %v979_v43 = vadd.f32 %v973_v42, %v918_v37  ;;  %v10071_v44 = vpop.f32.mrb[17].mxu0 }
 0x490   : > { %v976_v45 = vpop.f32.mrb[18].mxu0 }
 0x491   : > { %v984_v46 = vadd.f32 %v9184_v41, %v979_v43  ;;  %v10072_v47 = vpop.f32.mrb[19].mxu0 }
 0x493   : > { %v985_v48 = vmax.f32 %v984_v46, 0.0 }
 0x495   : > { %v986_v49 = vmul.f32 %v11616_v18, %v985_v48 }
 0x497   : > { %v989_v50 = vsel %vm542_vm6, %v986_v49, 0.0 }
 0x498   : > { %990 = vadd.xlane.f32.xlu1 %v989_v50 }
 0x525   : > { %v991_v51 = vpop.xlane.xlu1 %990 }
 0x526   : > { %v992_v52 = vmul.f32 0.03125, %v991_v51  ;;  %v11149_v51 = vld [vmem:[%s14854_s5 + $0x10] sm:$0xff]  }
 0x528   : > { %v993_v53 = vsub.f32 %v986_v49, %v992_v52  ;;  %v11150_v52 = vld [vmem:[%s14854_s5 + $0x18] sm:$0xff]  }
 0x52a   : > { %v994_v54 = vmul.f32 %v993_v53, %v993_v53 }
 0x52c   : > { %v995_v55 = vsel %vm542_vm6, %v994_v54, 0.0 }
 0x52d   : > { %996 = vadd.xlane.f32.xlu1 %v995_v55 }
 0x5ba   : > { %v997_v60 = vpop.xlane.xlu1 %996 }
 0x5bb   : > { %v998_v61 = vmul.f32 0.03125, %v997_v60 }
 0x5bd   : > { %v999_v62 = vadd.f32 1e-05, %v998_v61 }
 0x5bf   : > { %11278 = vrsqrt.f32 %v999_v62 }
 0x5c9   : > { %v11279_v63 = vpop.eup %11278 }
 0x5ca   : > { %v1001_v1 = vmul.f32 %v11279_v63, %v993_v53 }
 0x5cc   : > { %v1006_v4 = vmul.f32 %v9185_v0, %v1001_v1  ;;  %v9199_v0 = vld [vmem:[%s14855_s6 + $0xa] ss:$0 sm:$0xff] }
 0x5ce   : > { %v1011_v5 = vadd.f32 %v9186_v3, %v1006_v4 }
 0x5d0   : > { %v1012_v6 = vmul.f32 %v11616_v18, %v1011_v5 }
 0x5d2   : > { %v1030_v9 = vpack.c.bf16 %v1012_v6, %v1012_v6  ;;  %v1026_v10 = vrot.slane %v1012_v6, 7  ;;  %v1028_v15 = vrot.slane %v1012_v6, 1 }
 0x5d4   : > { %10086 = vmatmul.mubr.msk.bf16.vlgmr.msra.gmra.mrb[20].mxu0 %vm542_vm6, %v1030_v9  ;;  %v1027_v12 = vmul.f32 %v11621_v25, %v1026_v10  ;;  %v1029_v21 = vmul.f32 %v11634_v32, %v1028_v15 }
 0x5d5   : > { %10101 = vmatprep.mubr.msk.bf16.mxu0 %vm11453_vm1, %v14858_v2  ;;  %10098 = vmatpush3.bf16.msra.mxu0 %v11149_v51 }
 0x5d6   : > { %v1031_v14 = vpack.c.bf16 %v1027_v12, %v1027_v12  ;;  %v1142_v23 = vpack.c.bf16 %v1029_v21, %v1029_v21  ;;  %10099 = vmatprep.subr.bf16.mxu0 %v14858_v2  ;;  %v295_v21 = vadd.s32 16, %v11609_v16 }
 0x5d8   : > { %10078 = vmatmul.mubr.msk.bf16.vlgmr.msra.gmra.mrb[12].mxu1 %vm542_vm6, %v1031_v14 }
 0x5d9   : > { %10090 = vmatpush3.bf16.msra.mxu1 %v11147_v13  ;;  %10093 = vmatprep.mubr.msk.bf16.mxu1 %vm11453_vm1, %v14858_v2 }
 0x5da   : > { %10091 = vmatprep.subr.bf16.mxu1 %v14858_v2  ;;  %10100 = vmatpush3.bf16.msra.mxu0 %v11150_v52 }
 0x5dd   : > { %10092 = vmatpush3.bf16.msra.mxu1 %v11148_v20 }
 0x5de   : > { %11055 = vmatprep.subr.msk.bf16.mxu1 %vm465_vm0, %v1407_v22 }
 0x5e0   : > { %10094 = vmatmul.mubr.msk.bf16.vlgmr.msra.gmra.mrb[16].mxu1 %vm542_vm6, %v1142_v23  ;;  %v11787_v23 = vadd.s32 24, %v11609_v16 }
 0x5e1   : > { %10106 = vmatpush3.bf16.msra.mxu1 %v1415_v24  ;;  %v294_v24 = vadd.s32 8, %v11609_v16 }
 0x6a7   : > { %v1136_v26 = vpop.f32.mrb[20].mxu0 }
 0x6a8   : > { %v10087_v27 = vpop.f32.mrb[21].mxu0 }
 0x6a9   : > { %v1139_v28 = vpop.f32.mrb[22].mxu0  ;;  %v11790_v27 = vcvt.s32.f32 %v295_v21 }
 0x6aa   : > { %v10088_v29 = vpop.f32.mrb[23].mxu0  ;;  %v11793_v28 = vcvt.s32.f32 %v11787_v23 }
 0x6ab   : > { %v1081_v30 = vpop.f32.mrb[12].mxu1  ;;  %14910 = vst [vmem:[#allocation9_spill] sm:$0xff] %v11790_v27  ;;  %v11796_v29 = vcvt.s32.f32 %v11609_v16 }
 0x6ac   : > { %v1137_v31 = vadd.f32 %v1136_v26, %v1081_v30  ;;  %v10079_v33 = vpop.f32.mrb[13].mxu1  ;;  %14911 = vst [vmem:[#allocation10_spill] sm:$0xff] %v11793_v28  ;;  %v11798_v30 = vcvt.s32.f32 %v294_v24 }
 0x6ad   : > { %v1084_v34 = vpop.f32.mrb[14].mxu1  ;;  %14912 = vst [vmem:[#allocation11_spill] sm:$0xff] %v11796_v29 }
 0x6ae   : > { %v10080_v35 = vpop.f32.mrb[15].mxu1  ;;  %14913 = vst [vmem:[#allocation12_spill] sm:$0xff] %v11798_v30 }
 0x6b3   : > { %v1192_v37 = vpop.f32.mrb[16].mxu1 }
 0x6b4   : > { %v1198_v38 = vadd.f32 %v1192_v37, %v1137_v31  ;;  %v10095_v39 = vpop.f32.mrb[17].mxu1 }
 0x6b5   : > { %v1195_v40 = vpop.f32.mrb[18].mxu1 }
 0x6b6   : > { %v1203_v41 = vadd.f32 %v9196_v36, %v1198_v38  ;;  %v10096_v42 = vpop.f32.mrb[19].mxu1 }
 0x6b8   : > { %v1204_v43 = vmax.f32 %v1203_v41, 0.0 }
 0x6ba   : > { %v1205_v44 = vmul.f32 %v11616_v18, %v1204_v43 }
 0x6bc   : > { %v1208_v45 = vsel %vm542_vm6, %v1205_v44, 0.0 }
 0x6bd   : > { %1209 = vadd.xlane.f32.xlu1 %v1208_v45 }
 0x74a   : > { %v1210_v46 = vpop.xlane.xlu1 %1209 }
 0x74b   : > { %v1211_v47 = vmul.f32 0.03125, %v1210_v46 }
 0x74d   : > { %v1212_v48 = vsub.f32 %v1205_v44, %v1211_v47 }
 0x74f   : > { %v1213_v49 = vmul.f32 %v1212_v48, %v1212_v48 }
 0x751   : > { %v1214_v50 = vsel %vm542_vm6, %v1213_v49, 0.0 }
 0x752   : > { %1215 = vadd.xlane.f32.xlu1 %v1214_v50 }
 0x7df   : > { %v1216_v53 = vpop.xlane.xlu1 %1215 }
 0x7e0   : > { %v1217_v54 = vmul.f32 0.03125, %v1216_v53 }
 0x7e2   : > { %v1218_v55 = vadd.f32 1e-05, %v1217_v54 }
 0x7e4   : > { %11280 = vrsqrt.f32 %v1218_v55 }
 0x7ee   : > { %v11281_v56 = vpop.eup %11280 }
 0x7ef   : > { %v1220_v58 = vmul.f32 %v11281_v56, %v1212_v48 }
 0x7f1   : > { %v1225_v60 = vmul.f32 %v9197_v57, %v1220_v58 }
 0x7f3   : > { %v1230_v61 = vadd.f32 %v9198_v59, %v1225_v60 }
 0x7f5   : > { %v1231_v62 = vmul.f32 %v11616_v18, %v1230_v61 }
 0x7f7   : > { %v1236_v63 = vpack.c.bf16 %v1231_v62, %v1231_v62 }
 0x7f9   : > { %10102 = vmatmul.mubr.msk.bf16.vlgmr.msra.gmra.mrb[24].mxu0 %vm542_vm6, %v1236_v63 }
 0x8cc   : > { %v1291_v1 = vpop.f32.mrb[24].mxu0 }
 0x8cd   : > { %v1292_v3 = vadd.f32 %v9199_v0, %v1291_v1  ;;  %v10103_v4 = vpop.f32.mrb[25].mxu0 }
 0x8ce   : > { %v1294_v5 = vpop.f32.mrb[26].mxu0 }
 0x8cf   : > { %v1298_v6 = vsel %vm1297_vm8, %v1292_v3, 0.0  ;;  %v10104_v7 = vpop.f32.mrb[27].mxu0 }
 0x8d0   : > { %v1299_v9 = vmul.f32 1.442695, %v1298_v6 }
 0x8d2   : > { %11282 = vpow2.f32 %v1299_v9 }
 0x8dc   : > { %v11283_v10 = vpop.eup %11282 }
 0x8dd   : > { %v1301_v11 = vmul.f32 %v11283_v10, %v11616_v18 }
 0x8df   : > { %v1302_v12 = vceil.f32 %v1301_v11 }
 0x8e1   : > { %1306 = vperm.xlu1 %11105, %v1302_v12   ;;  %v1328_v13 = vsel %vm1327_vm9, %v1302_v12, 0.0 }
 0x8e2   : > { %v1329_v14 = vrot.slane %v1328_v13, 4 }
 0x8e4   : > { %v1330_v15 = vadd.f32 %v1329_v14, %v1328_v13 }
 0x8e6   : > { %v1331_v19 = vrot.slane %v1330_v15, 2 }
 0x8e8   : > { %v1332_v20 = vadd.f32 %v1331_v19, %v1330_v15 }
 0x8ea   : > { %v1333_v22 = vrot.slane %v1332_v20, 1 }
 0x8ec   : > { %v1334_v26 = vadd.f32 %v1333_v22, %v1332_v20 }
 0x8ee   : > { %v1335_v18 = vmax.f32 %v1334_v26, 1.0 }
 0x8f0   : > { %v1336_v31 = vmin.f32 %v1335_v18, 32.0 }
 0x8f2   : > { %vm1339_vm10 = vcmp.lt.f32.partialorder %v11790_v27, %v1336_v31  ;;  %vm1340_vm11 = vcmp.lt.f32.partialorder %v11793_v28, %v1336_v31  ;;  %vm1337_vm12 = vcmp.lt.f32.partialorder %v11796_v29, %v1336_v31  ;;  %vm1338_vm13 = vcmp.lt.f32.partialorder %v11798_v30, %v1336_v31 }
 0x8f3   : > { %v9205_v33 = vsel %vm1339_vm10, 1.0, %v14858_v2  ;;  %v9206_v34 = vsel %vm1340_vm11, 1.0, %v14858_v2  ;;  %v9203_v35 = vsel %vm1337_vm12, 1.0, %v14858_v2  ;;  %v9204_v36 = vsel %vm1338_vm13, 1.0, %v14858_v2 }
 0x8f4   : > { %v11111_v37 = vpack.i.bf16 %v9206_v34, %v9205_v33  ;;  %v11106_v38 = vpack.i.bf16 %v9204_v36, %v9203_v35 }
 0x8f6   : > { %11112 = vperm.xlu1 %11105, %v11111_v37   ;;  %11107 = vperm.xlu0 %11104, %v11106_v38  }
 0x960   : > { %v1307_v39 = vpop.permute.xlu1 %1306 }
 0x961   : > { %v1309_v40 = vsel %vm1303_vm14, %v1307_v39, 0.0  ;;  %v1319_v41 = vsel %vm14857_vm15, %v1307_v39, 0.0 }
 0x962   : > { %v1311_v42 = vsel %vm1310_vm2, %v1309_v40, 0.0  ;;  %v1320_v43 = vsel %vm1310_vm2, %v1319_v41, 0.0 }
 0x963   : > { %v1312_v44 = vrot.slane %v1311_v42, 4  ;;  %v1321_v45 = vrot.slane %v1320_v43, 4 }
 0x965   : > { %v1313_v46 = vadd.f32 %v1312_v44, %v1311_v42  ;;  %v1322_v47 = vadd.f32 %v1321_v45, %v1320_v43  ;;  %v11151_v42 = vld [vmem:[%s14853_s4 + $0xdc] sm:$0xff]  }
 0x966   : > { %10111 = vmatprep.subr.bf16.mxu0 %v11151_v42  ;;  %v423_v45 = vld [vmem:[%s11865_s20] sm:$0xff] }
 0x967   : > { %v1314_v48 = vrot.slane %v1313_v46, 2  ;;  %v1323_v49 = vrot.slane %v1322_v47, 2  ;;  %10112 = vmatpush3.bf16.msra.mxu0 %v11151_v42 }
 0x969   : > { %v1315_v50 = vadd.f32 %v1314_v48, %v1313_v46  ;;  %v1324_v51 = vadd.f32 %v1323_v49, %v1322_v47  ;;  %v425_v48 = vld [vmem:[%s11865_s20 + $0x10] sm:$0xff]  ;;  %v424_v49 = vld [vmem:[%s11865_s20 + $0x8] sm:$0xff] }
 0x96b   : > { %v1316_v52 = vrot.slane %v1315_v50, 1  ;;  %v1325_v53 = vrot.slane %v1324_v51, 1 }
 0x96d   : > { %v1317_v54 = vadd.f32 %v1316_v52, %v1315_v50  ;;  %v1326_v55 = vadd.f32 %v1325_v53, %v1324_v51 }
 0x96f   : > { %vm1371_vm4 = vcmp.lt.f32.partialorder %v11790_v27, %v1317_v54  ;;  %vm1372_vm5 = vcmp.lt.f32.partialorder %v11793_v28, %v1317_v54  ;;  %vm1383_vm8 = vcmp.lt.f32.partialorder %v11790_v27, %v1326_v55  ;;  %vm1384_vm10 = vcmp.lt.f32.partialorder %v11793_v28, %v1326_v55 }
 0x970   : > { %v9209_v56 = vsel %vm1371_vm4, 1.0, %v14858_v2  ;;  %v9210_v57 = vsel %vm1372_vm5, 1.0, %v14858_v2  ;;  %v9213_v58 = vsel %vm1383_vm8, 1.0, %v14858_v2  ;;  %v9214_v59 = vsel %vm1384_vm10, 1.0, %v14858_v2 }
 0x971   : > { %vm1369_vm11 = vcmp.lt.f32.partialorder %v11796_v29, %v1317_v54  ;;  %vm1370_vm12 = vcmp.lt.f32.partialorder %v11798_v30, %v1317_v54  ;;  %vm1381_vm13 = vcmp.lt.f32.partialorder %v11796_v29, %v1326_v55  ;;  %vm1382_vm15 = vcmp.lt.f32.partialorder %v11798_v30, %v1326_v55  ;;  %v426_v54 = vld [vmem:[%s11865_s20 + $0x18] sm:$0xff] }
 0x972   : > { %v9207_v60 = vsel %vm1369_vm11, 1.0, %v14858_v2  ;;  %v9208_v61 = vsel %vm1370_vm12, 1.0, %v14858_v2  ;;  %v9211_v62 = vsel %vm1381_vm13, 1.0, %v14858_v2  ;;  %v9212_v63 = vsel %vm1382_vm15, 1.0, %v14858_v2 }
 0x973   : > { %vm431_vm4 = vcmp.lt.s32.totalorder %v11583_v8, %v427_v17  ;;  %v1395_v0 = vsub.f32 %v9209_v56, %v9213_v58  ;;  %v1396_v1 = vsub.f32 %v9210_v57, %v9214_v59  ;;  %v1393_v5 = vsub.f32 %v9207_v60, %v9211_v62 }
 0x974   : > { %v1394_v6 = vsub.f32 %v9208_v61, %v9212_v63  ;;  %v9153_v12 = vsel %vm431_vm4, 1.0, %v14858_v2  ;;  %vm1523_vm15 = vcmask 130048   ;;  %vm309_vm5 = vcmp.lt.s32.totalorder %v11787_v23, 31 }
 0x975   : > { %v11113_v3 = vpop.permute.xlu1 %11112  ;;  %v11108_v4 = vpop.permute.xlu0 %11107  ;;  %vm1600_vm8 = vcmp.lt.s32.totalorder %v11609_v16, 1 }
 0x976   : > { %v11839_v7 = vunpack.i.h.bf16 %v11113_v3  ;;  %v11841_v9 = vunpack.i.l.bf16 %v11113_v3  ;;  %v11843_v10 = vunpack.i.h.bf16 %v11108_v4  ;;  %v11845_v11 = vunpack.i.l.bf16 %v11108_v4 }
 0x978   : > { %v1397_v13 = vmul.f32 %v11845_v11, %v1393_v5  ;;  %v1398_v17 = vmul.f32 %v11843_v10, %v1394_v6  ;;  %v1399_v14 = vmul.f32 %v11841_v9, %v1395_v0  ;;  %v1400_v15 = vmul.f32 %v11839_v7, %v1396_v1  ;;  %v11152_v5 = vld [vmem:[%s14853_s4 + $0xe4] sm:$0xff]   ;;  %v11153_v6 = vld [vmem:[%s14853_s4 + $0xec] sm:$0xff]  }
 0x979   : > { %10117 = vmatprep.subr.bf16.mxu1 %v11152_v5 }
 0x97a   : > { %v1401_v19 = vmul.f32 %v9153_v12, %v1397_v13  ;;  %v1402_v20 = vmul.f32 %v9153_v12, %v1398_v17  ;;  %v1403_v21 = vmul.f32 %v9153_v12, %v1399_v14  ;;  %v1404_v22 = vmul.f32 %v9153_v12, %v1400_v15  ;;  %v11154_v12 = vld [vmem:[%s14853_s4 + $0xf4] sm:$0xff]   ;;  %v9217_v13 = vld [vmem:[%s14855_s6 + $0xe] ss:$0 sm:$0xff] }
 0x97c   : > { %v1405_v24 = vpack.c.bf16 %v1402_v20, %v1401_v19  ;;  %v1406_v26 = vpack.c.bf16 %v1404_v22, %v1403_v21 }
 0x97e   : > { %10107 = vmatprep.mubr.msk.bf16.mxu1 %vm1310_vm2, %v1405_v24 }
 0x97f   : > { %10108 = vmatmul.mubr.msk.bf16.vlgmr.msra.gmra.mrb[20].mxu1 %vm1310_vm2, %v1406_v26 }
 0x980   : > { %10118 = vmatpush3.bf16.msra.mxu1 %v11152_v5 }
 0x981   : > { %10119 = vmatprep.subr.bf16.mxu1 %v11153_v6 }
 0x984   : > { %10120 = vmatpush3.bf16.msra.mxu1 %v11153_v6 }
 0x985   : > { %10125 = vmatprep.subr.bf16.mxu1 %v11154_v12 }
 0xa52   : > { %v10109_v18 = vpop.f32.mrb[20].mxu1 }
 0xa53   : > { %v1470_v31 = vmul.f32 1.442695, %v10109_v18  ;;  %v1451_v33 = vpop.f32.mrb[21].mxu1 }
 0xa54   : > { %v10110_v34 = vpop.f32.mrb[22].mxu1  ;;  %v1466_v35 = vmul.f32 1.442695, %v1451_v33 }
 0xa55   : > { %11284 = vpow2.f32 %v1470_v31  ;;  %v1454_v36 = vpop.f32.mrb[23].mxu1  ;;  %v1472_v38 = vmul.f32 1.442695, %v10110_v34  ;;  %v11908_v31 = vsel %vm309_vm5, 1.0, %v14858_v2 }
 0xa56   : > { %11286 = vpow2.f32 %v1466_v35  ;;  %v1468_v37 = vmul.f32 1.442695, %v1454_v36  ;;  %14914 = vst [vmem:[#allocation13_spill] sm:$0xff] %v11908_v31 }
 0xa58   : > { %11288 = vpow2.f32 %v1468_v37 }
 0xa59   : > { %11290 = vpow2.f32 %v1472_v38 }
 0xa5f   : > { %v11285_v39 = vpop.eup %11284 }
 0xa60   : > { %1482 = vrot.lane.b32.xlu1 %v11285_v39, %s11454_s24  ;;  %v11287_v40 = vpop.eup %11286 }
 0xa62   : > { %v11289_v41 = vpop.eup %11288 }
 0xa63   : > { %v11291_v43 = vpop.eup %11290 }
 0xa64   : > { %1478 = vrot.lane.b32.xlu1 %v11287_v40, %s11454_s24 }
 0xa68   : > { %1480 = vrot.lane.b32.xlu1 %v11289_v41, %s11454_s24 }
 0xa6c   : > { %1484 = vrot.lane.b32.xlu1 %v11291_v43, %s11454_s24 }
 0xad2   : > { %v1483_v44 = vpop.permute.xlu1 %1482 }
 0xad3   : > { %v1492_v51 = vmul.f32 %v1483_v44, %v425_v48 }
 0xad5   : > { %v1496_v57 = vadd.f32 %v10109_v18, %v1492_v51 }
 0xad6   : > { %v1479_v46 = vpop.permute.xlu1 %1478 }
 0xad7   : > { %v1490_v47 = vmul.f32 %v1479_v46, %v423_v45  ;;  %v11880_v63 = vmul.f32 %v11841_v9, %v1496_v57 }
 0xad9   : > { %v1494_v52 = vadd.f32 %v1490_v47, %v1451_v33 }
 0xada   : > { %v1481_v50 = vpop.permute.xlu1 %1480 }
 0xadb   : > { %v1491_v53 = vmul.f32 %v1481_v50, %v424_v49  ;;  %v11872_v58 = vmul.f32 %v11845_v11, %v1494_v52 }
 0xadd   : > { %v1495_v55 = vadd.f32 %v1491_v53, %v1454_v36 }
 0xade   : > { %v1485_v56 = vpop.permute.xlu1 %1484 }
 0xadf   : > { %v11875_v59 = vmul.f32 %v11843_v10, %v1495_v55  ;;  %v1493_v60 = vmul.f32 %v1485_v56, %v426_v54 }
 0xae1   : > { %v1497_v61 = vadd.f32 %v10110_v34, %v1493_v60  ;;  %v1504_v62 = vpack.c.bf16 %v11875_v59, %v11872_v58  ;;  %v11155_v60 = vld [vmem:[%s14853_s4 + $0xfc] sm:$0xff]  }
 0xae3   : > { %v11883_v0 = vmul.f32 %v11839_v7, %v1497_v61  ;;  %1513 = vrot.lane.b32.xlu0 %v1504_v62, %s11455_s22  ;;  %v11156_v61 = vld [vmem:[%s14853_s4 + $0x104] sm:$0xff]   ;;  %v11157_v62 = vld [vmem:[%s14853_s4 + $0x10c] sm:$0xff]  }
 0xae5   : > { %v1505_v1 = vpack.c.bf16 %v11883_v0, %v11880_v63 }
 0xae7   : > { %1515 = vrot.lane.b32.xlu1 %v1505_v1, %s11455_s22  ;;  %v11158_v1 = vld [vmem:[%s14854_s5 + $0x30] sm:$0xff]  }
 0xae8   : > { %10141 = vmatprep.subr.bf16.mxu0 %v11158_v1 }
 0xb55   : > { %v1514_v3 = vpop.permute.xlu0 %1513 }
 0xb56   : > { %10113 = vmatprep.mubr.msk.bf16.mxu0 %vm1523_vm15, %v1514_v3  ;;  %v11159_v3 = vld [vmem:[%s14854_s5 + $0x38] sm:$0xff]  }
 0xb59   : > { %v1516_v4 = vpop.permute.xlu1 %1515 }
 0xb5a   : > { %10114 = vmatmul.mubr.msk.bf16.vlgmr.msra.gmra.mrb[28].mxu0 %vm1523_vm15, %v1516_v4  ;;  %v9233_v4 = vld [vmem:[%s14855_s6 + $0xf] ss:$0 sm:$0xff] }
 0xb5b   : > { %10142 = vmatpush3.bf16.msra.mxu0 %v11158_v1  ;;  %v11162_v1 = vld [vmem:[%s14853_s4 + $0xb4] sm:$0xff]  }
 0xb5c   : > { %10143 = vmatprep.subr.bf16.mxu0 %v11159_v3 }
 0xb5f   : > { %10144 = vmatpush3.bf16.msra.mxu0 %v11159_v3  ;;  %v11163_v3 = vld [vmem:[%s14853_s4 + $0xbc] sm:$0xff]  }
 0xc2d   : > { %v10115_v17 = vpop.f32.mrb[28].mxu0 }
 0xc2e   : > { %v1573_v14 = vadd.f32 %v10115_v17, %v9217_v13  ;;  %v1564_v15 = vpop.f32.mrb[29].mxu0 }
 0xc2f   : > { %v1565_v19 = vadd.f32 %v9217_v13, %v1564_v15  ;;  %v10116_v20 = vpop.f32.mrb[30].mxu0 }
 0xc30   : > { %v1581_v21 = vmul.f32 %v11841_v9, %v1573_v14  ;;  %v1576_v22 = vadd.f32 %v10116_v20, %v9217_v13  ;;  %v1567_v24 = vpop.f32.mrb[31].mxu0 }
 0xc31   : > { %v1579_v26 = vmul.f32 %v11845_v11, %v1565_v19  ;;  %v1568_v18 = vadd.f32 %v9217_v13, %v1567_v24 }
 0xc32   : > { %v1582_v33 = vmul.f32 %v11839_v7, %v1576_v22  ;;  %v1598_v34 = vrot.slane %v1581_v21, 7  ;;  %v1611_v37 = vrot.slane %v1581_v21, 1 }
 0xc33   : > { %v1596_v35 = vrot.slane %v1579_v26, 7  ;;  %v1609_v36 = vrot.slane %v1579_v26, 1  ;;  %v1580_v23 = vmul.f32 %v11843_v10, %v1568_v18 }
 0xc34   : > { %v1599_v38 = vrot.slane %v1582_v33, 7  ;;  %v1612_v39 = vrot.slane %v1582_v33, 1  ;;  %v1622_v40 = vpack.c.bf16 %v1582_v33, %v1581_v21 }
 0xc35   : > { %v1597_v41 = vrot.slane %v1580_v23, 7  ;;  %v1610_v42 = vrot.slane %v1580_v23, 1  ;;  %v1621_v43 = vpack.c.bf16 %v1580_v23, %v1579_v26  ;;  %v11160_v23 = vld [vmem:[%s14853_s4 + $0xa4] sm:$0xff]  }
 0xc36   : > { %v1601_v44 = vsel %vm1600_vm8, %v1598_v34, %v1599_v38  ;;  %v1613_v45 = vsel %vm291_vm7, %v1611_v37, %v1612_v39  ;;  %v1616_v46 = vsel %vm291_vm7, %v1612_v39, %v1609_v36  ;;  %v1604_v47 = vsel %vm1600_vm8, %v1599_v38, %v1596_v35  ;;  %10149 = vmatprep.subr.bf16.mxu0 %v11160_v23 }
 0xc37   : > { %v1620_v48 = vmul.f32 %v11908_v31, %v1616_v46  ;;  %v1602_v49 = vsel %vm1600_vm8, %v1597_v41, %v1598_v34  ;;  %v1603_v50 = vsel %vm1600_vm8, %v1596_v35, %v1597_v41  ;;  %v1605_v51 = vmul.f32 %v11621_v25, %v1604_v47 }
 0xc38   : > { %v1624_v52 = vpack.c.bf16 %v1601_v44, %v1602_v49  ;;  %v1614_v53 = vsel %vm291_vm7, %v1610_v42, %v1611_v37  ;;  %v1615_v54 = vsel %vm291_vm7, %v1609_v36, %v1610_v42  ;;  %v9234_v37 = vld [vmem:[%s14855_s6 + $0x10] ss:$0 sm:$0xff] }
 0xc39   : > { %v1623_v55 = vpack.c.bf16 %v1603_v50, %v1605_v51  ;;  %v1759_v56 = vpack.c.bf16 %v1614_v53, %v1615_v54  ;;  %v1760_v57 = vpack.c.bf16 %v1620_v48, %v1613_v45 }
 0xc3b   : > { %10121 = vmatprep.mubr.msk.bf16.mxu1 %vm542_vm6, %v1623_v55 }
 0xc3c   : > { %10122 = vmatmul.mubr.msk.bf16.vlgmr.msra.gmra.mrb[24].mxu1 %vm542_vm6, %v1624_v52 }
 0xc3d   : > { %10126 = vmatpush3.bf16.msra.mxu1 %v11154_v12  ;;  %10129 = vmatprep.mubr.msk.bf16.mxu1 %vm542_vm6, %v1621_v43 }
 0xc3e   : > { %10127 = vmatprep.subr.bf16.mxu1 %v11155_v60 }
 0xc41   : > { %10128 = vmatpush3.bf16.msra.mxu1 %v11155_v60 }
 0xc42   : > { %10133 = vmatprep.subr.bf16.mxu1 %v11156_v61 }
 0xc48   : > { %10130 = vmatmul.mubr.msk.bf16.vlgmr.msra.gmra.mrb[24].mxu1 %vm542_vm6, %v1622_v40 }
 0xc49   : > { %10134 = vmatpush3.bf16.msra.mxu1 %v11156_v61  ;;  %10137 = vmatprep.mubr.msk.bf16.mxu1 %vm542_vm6, %v1759_v56 }
 0xc4a   : > { %10135 = vmatprep.subr.bf16.mxu1 %v11157_v62 }
 0xc4d   : > { %10136 = vmatpush3.bf16.msra.mxu1 %v11157_v62  ;;  %v11161_v62 = vld [vmem:[%s14853_s4 + $0xac] sm:$0xff]  }
 0xc54   : > { %10138 = vmatmul.mubr.msk.bf16.vlgmr.msra.gmra.mrb[24].mxu1 %vm542_vm6, %v1760_v57 }
 0xd27   : > { %v10139_v5 = vpop.f32.mrb[24].mxu1 }
 0xd28   : > { %v1838_v6 = vadd.f32 %v10139_v5, %v9233_v4  ;;  %v1813_v12 = vpop.f32.mrb[25].mxu1 }
 0xd29   : > { %v1836_v13 = vadd.f32 %v9233_v4, %v1813_v12  ;;  %v10140_v17 = vpop.f32.mrb[26].mxu1 }
 0xd2a   : > { %v1842_v14 = vmax.f32 %v1838_v6, 0.0  ;;  %v1839_v15 = vadd.f32 %v10140_v17, %v9233_v4  ;;  %v1816_v19 = vpop.f32.mrb[27].mxu1 }
 0xd2b   : > { %v1840_v20 = vmax.f32 %v1836_v13, 0.0  ;;  %v1837_v21 = vadd.f32 %v9233_v4, %v1816_v19  ;;  %v9239_v4 = vld [vmem:[%s14855_s6 + $0xb] ss:$0 sm:$0xff] }
 0xd2c   : > { %v1843_v22 = vmax.f32 %v1839_v15, 0.0  ;;  %v1846_v26 = vmul.f32 %v11841_v9, %v1842_v14 }
 0xd2d   : > { %v1841_v24 = vmax.f32 %v1837_v21, 0.0  ;;  %v1844_v33 = vmul.f32 %v11845_v11, %v1840_v20 }
 0xd2e   : > { %v1847_v18 = vmul.f32 %v11839_v7, %v1843_v22 }
 0xd2f   : > { %v1845_v34 = vmul.f32 %v11843_v10, %v1841_v24 }
 0xd30   : > { %v1853_v35 = vpack.c.bf16 %v1847_v18, %v1846_v26 }
 0xd31   : > { %v1852_v36 = vpack.c.bf16 %v1845_v34, %v1844_v33 }
 0xd33   : > { %10145 = vmatprep.mubr.msk.bf16.mxu0 %vm542_vm6, %v1852_v36 }
 0xd34   : > { %10146 = vmatmul.mubr.msk.bf16.vlgmr.msra.gmra.mrb[32].mxu0 %vm542_vm6, %v1853_v35 }
 0xd35   : > { %10150 = vmatpush3.bf16.msra.mxu0 %v11160_v23 }
 0xd36   : > { %10155 = vmatprep.subr.bf16.mxu0 %v11161_v62 }
 0xe07   : > { %v10147_v38 = vpop.f32.mrb[32].mxu0 }
 0xe08   : > { %v1920_v39 = vadd.f32 %v10147_v38, %v9234_v37  ;;  %v1911_v40 = vpop.f32.mrb[33].mxu0 }
 0xe09   : > { %v1912_v41 = vadd.f32 %v9234_v37, %v1911_v40  ;;  %v10148_v42 = vpop.f32.mrb[34].mxu0 }
 0xe0a   : > { %v1928_v43 = vmul.f32 %v11841_v9, %v1920_v39  ;;  %v1923_v44 = vadd.f32 %v10148_v42, %v9234_v37  ;;  %v1914_v45 = vpop.f32.mrb[35].mxu0 }
 0xe0b   : > { %v1926_v46 = vmul.f32 %v11845_v11, %v1912_v41  ;;  %v1915_v47 = vadd.f32 %v9234_v37, %v1914_v45 }
 0xe0c   : > { %v1929_v48 = vmul.f32 %v11839_v7, %v1923_v44  ;;  %v1932_v51 = vsub.f32 %v11880_v63, %v1928_v43 }
 0xe0d   : > { %v1930_v49 = vsub.f32 %v11872_v58, %v1926_v46  ;;  %v1927_v50 = vmul.f32 %v11843_v10, %v1915_v47 }
 0xe0e   : > { %v1933_v52 = vsub.f32 %v11883_v0, %v1929_v48  ;;  %v11984_v57 = vmul.f32 %v11841_v9, %v1932_v51 }
 0xe0f   : > { %v1931_v53 = vsub.f32 %v11875_v59, %v1927_v50  ;;  %v11978_v55 = vmul.f32 %v11845_v11, %v1930_v49 }
 0xe10   : > { %v11975_v54 = vmul.f32 %v11839_v7, %v1933_v52 }
 0xe11   : > { %v11981_v56 = vmul.f32 %v11843_v10, %v1931_v53 }
 0xe12   : > { %v1941_v61 = vpack.c.bf16 %v11975_v54, %v11984_v57 }
 0xe13   : > { %v1940_v60 = vpack.c.bf16 %v11981_v56, %v11978_v55 }
 0xe15   : > { %10151 = vmatprep.mubr.msk.bf16.mxu0 %vm1523_vm15, %v1940_v60  ;;  %v11164_v60 = vld [vmem:[%s14853_s4 + $0xc4] sm:$0xff]  }
 0xe16   : > { %10152 = vmatmul.mubr.msk.bf16.vlgmr.msra.gmra.mrb[36].mxu0 %vm1523_vm15, %v1941_v61  ;;  %v11165_v61 = vld [vmem:[%s14853_s4 + $0xcc] sm:$0xff]  }
 0xe17   : > { %10156 = vmatpush3.bf16.msra.mxu0 %v11161_v62  ;;  %v11166_v62 = vld [vmem:[%s14853_s4 + $0xd4] sm:$0xff]  }
 0xe18   : > { %10157 = vmatprep.subr.bf16.mxu0 %v11162_v1 }
 0xe1b   : > { %10158 = vmatpush3.bf16.msra.mxu0 %v11162_v1  ;;  %v11167_v1 = vld [vmem:[%s14854_s5 + $0x20] sm:$0xff]  }
 0xe1c   : > { %10163 = vmatprep.subr.bf16.mxu0 %v11163_v3  ;;  %10179 = vmatprep.subr.bf16.mxu1 %v11167_v1 }
 0xe1d   : > { %10180 = vmatpush3.bf16.msra.mxu1 %v11167_v1 }
 0xee9   : > { %v10153_v5 = vpop.f32.mrb[36].mxu0 }
 0xeea   : > { %v2002_v6 = vadd.f32 %v10153_v5, %v9239_v4  ;;  %v1993_v12 = vpop.f32.mrb[37].mxu0 }
 0xeeb   : > { %v1994_v13 = vadd.f32 %v9239_v4, %v1993_v12  ;;  %v10154_v17 = vpop.f32.mrb[38].mxu0 }
 0xeec   : > { %v2010_v14 = vmul.f32 %v11841_v9, %v2002_v6  ;;  %v2005_v15 = vadd.f32 %v10154_v17, %v9239_v4  ;;  %v1996_v19 = vpop.f32.mrb[39].mxu0 }
 0xeed   : > { %v2008_v20 = vmul.f32 %v11845_v11, %v1994_v13  ;;  %v1997_v21 = vadd.f32 %v9239_v4, %v1996_v19  ;;  %v9255_v4 = vld [vmem:[%s14855_s6 + $0xc] ss:$0 sm:$0xff] }
 0xeee   : > { %v2011_v22 = vmul.f32 %v11839_v7, %v2005_v15  ;;  %v2027_v24 = vrot.slane %v2010_v14, 7  ;;  %v2039_v34 = vrot.slane %v2010_v14, 1 }
 0xeef   : > { %v2025_v26 = vrot.slane %v2008_v20, 7  ;;  %v2037_v18 = vrot.slane %v2008_v20, 1  ;;  %v2009_v33 = vmul.f32 %v11843_v10, %v1997_v21 }
 0xef0   : > { %v2028_v35 = vrot.slane %v2011_v22, 7  ;;  %v2040_v36 = vrot.slane %v2011_v22, 1  ;;  %v2050_v23 = vpack.c.bf16 %v2011_v22, %v2010_v14 }
 0xef1   : > { %v2026_v37 = vrot.slane %v2009_v33, 7  ;;  %v2038_v38 = vrot.slane %v2009_v33, 1  ;;  %v2049_v39 = vpack.c.bf16 %v2009_v33, %v2008_v20 }
 0xef2   : > { %v2029_v40 = vsel %vm1600_vm8, %v2027_v24, %v2028_v35  ;;  %v2041_v41 = vsel %vm291_vm7, %v2039_v34, %v2040_v36  ;;  %v2044_v42 = vsel %vm291_vm7, %v2040_v36, %v2037_v18  ;;  %v2032_v43 = vsel %vm1600_vm8, %v2028_v35, %v2025_v26 }
 0xef3   : > { %v2048_v44 = vmul.f32 %v11908_v31, %v2044_v42  ;;  %v2030_v45 = vsel %vm1600_vm8, %v2026_v37, %v2027_v24  ;;  %v2031_v46 = vsel %vm1600_vm8, %v2025_v26, %v2026_v37  ;;  %v2033_v47 = vmul.f32 %v11621_v25, %v2032_v43  ;;  %v11169_v43 = vld [vmem:[%s14853_s4 + $0x114] sm:$0xff]  }
 0xef4   : > { %v2052_v48 = vpack.c.bf16 %v2029_v40, %v2030_v45  ;;  %v2042_v49 = vsel %vm291_vm7, %v2038_v38, %v2039_v34  ;;  %v2043_v50 = vsel %vm291_vm7, %v2037_v18, %v2038_v38 }
 0xef5   : > { %v2051_v51 = vpack.c.bf16 %v2031_v46, %v2033_v47  ;;  %v2187_v52 = vpack.c.bf16 %v2042_v49, %v2043_v50  ;;  %v2188_v53 = vpack.c.bf16 %v2048_v44, %v2041_v41 }
 0xef7   : > { %10159 = vmatprep.mubr.msk.bf16.mxu0 %vm542_vm6, %v2051_v51  ;;  %v11171_v51 = vld [vmem:[%s14853_s4 + $0x124] sm:$0xff]  }
 0xef8   : > { %10160 = vmatmul.mubr.msk.bf16.vlgmr.msra.gmra.mrb[40].mxu0 %vm542_vm6, %v2052_v48  ;;  %v11170_v48 = vld [vmem:[%s14853_s4 + $0x11c] sm:$0xff]  }
 0xef9   : > { %10164 = vmatpush3.bf16.msra.mxu0 %v11163_v3  ;;  %10167 = vmatprep.mubr.msk.bf16.mxu0 %vm542_vm6, %v2049_v39  ;;  %v11168_v3 = vld [vmem:[%s14854_s5 + $0x28] sm:$0xff]  }
 0xefa   : > { %10165 = vmatprep.subr.bf16.mxu0 %v11164_v60  ;;  %10181 = vmatprep.subr.bf16.mxu1 %v11168_v3 }
 0xefb   : > { %10182 = vmatpush3.bf16.msra.mxu1 %v11168_v3 }
 0xefc   : > { %10187 = vmatprep.subr.bf16.mxu1 %v11169_v43 }
 0xefd   : > { %10166 = vmatpush3.bf16.msra.mxu0 %v11164_v60 }
 0xefe   : > { %10171 = vmatprep.subr.bf16.mxu0 %v11165_v61 }
 0xf04   : > { %10168 = vmatmul.mubr.msk.bf16.vlgmr.msra.gmra.mrb[40].mxu0 %vm542_vm6, %v2050_v23  ;;  %v9256_v23 = vld [vmem:[%s14855_s6 + $0xd] ss:$0 sm:$0xff] }
 0xf05   : > { %10172 = vmatpush3.bf16.msra.mxu0 %v11165_v61  ;;  %10175 = vmatprep.mubr.msk.bf16.mxu0 %vm542_vm6, %v2187_v52  ;;  %v9383_v52 = vld [vmem:[%s11570_s26 + $0x8] sm:$0xff]  ;;  %s11388_s26 = sshll.u32 %s11457_s9, 4  ;;  %s11389_s26 = int_to_ptr.vmem [resolvable:$false] %s11388_s26 }
 0xf06   : > { %10173 = vmatprep.subr.bf16.mxu0 %v11166_v62  ;;  %s11390_s27 = scalar_lea.vmem %s11389_s26, 64 }
 0xf09   : > { %10174 = vmatpush3.bf16.msra.mxu0 %v11166_v62 }
 0xf10   : > { %10176 = vmatmul.mubr.msk.bf16.vlgmr.msra.gmra.mrb[40].mxu0 %vm542_vm6, %v2188_v53 }
 0xfe3   : > { %v10177_v5 = vpop.f32.mrb[40].mxu0 }
 0xfe4   : > { %v2266_v6 = vadd.f32 %v10177_v5, %v9255_v4  ;;  %v2241_v12 = vpop.f32.mrb[41].mxu0 }
 0xfe5   : > { %v2264_v13 = vadd.f32 %v9255_v4, %v2241_v12  ;;  %v10178_v17 = vpop.f32.mrb[42].mxu0 }
 0xfe6   : > { %v2270_v14 = vmax.f32 %v2266_v6, 0.0  ;;  %v2267_v15 = vadd.f32 %v10178_v17, %v9255_v4  ;;  %v2244_v19 = vpop.f32.mrb[43].mxu0 }
 0xfe7   : > { %v2268_v20 = vmax.f32 %v2264_v13, 0.0  ;;  %v2265_v21 = vadd.f32 %v9255_v4, %v2244_v19 }
 0xfe8   : > { %v2271_v22 = vmax.f32 %v2267_v15, 0.0  ;;  %v2274_v26 = vmul.f32 %v11841_v9, %v2270_v14 }
 0xfe9   : > { %v2269_v24 = vmax.f32 %v2265_v21, 0.0  ;;  %v2272_v33 = vmul.f32 %v11845_v11, %v2268_v20 }
 0xfea   : > { %v2275_v18 = vmul.f32 %v11839_v7, %v2271_v22 }
 0xfeb   : > { %v2273_v34 = vmul.f32 %v11843_v10, %v2269_v24 }
 0xfec   : > { %v2281_v35 = vpack.c.bf16 %v2275_v18, %v2274_v26 }
 0xfed   : > { %v2280_v36 = vpack.c.bf16 %v2273_v34, %v2272_v33  ;;  %v11173_v33 = vld [vmem:[%s14853_s4 + $0x134] sm:$0xff]  }
 0xfef   : > { %10183 = vmatprep.mubr.msk.bf16.mxu1 %vm542_vm6, %v2280_v36 }
 0xff0   : > { %10184 = vmatmul.mubr.msk.bf16.vlgmr.msra.gmra.mrb[28].mxu1 %vm542_vm6, %v2281_v35 }
 0xff1   : > { %10188 = vmatpush3.bf16.msra.mxu1 %v11169_v43 }
 0xff2   : > { %10189 = vmatprep.subr.bf16.mxu1 %v11170_v48 }
 0xff5   : > { %10190 = vmatpush3.bf16.msra.mxu1 %v11170_v48 }
 0xff6   : > { %10195 = vmatprep.subr.bf16.mxu1 %v11171_v51 }
0x10c3   : > { %v10185_v37 = vpop.f32.mrb[28].mxu1 }
0x10c4   : > { %v2339_v38 = vpop.f32.mrb[29].mxu1  ;;  %v2348_v46 = vadd.f32 %v10185_v37, %v9256_v23 }
0x10c5   : > { %v2340_v39 = vadd.f32 %v9256_v23, %v2339_v38  ;;  %v10186_v40 = vpop.f32.mrb[30].mxu1 }
0x10c6   : > { %v2351_v41 = vadd.f32 %v10186_v40, %v9256_v23  ;;  %v2342_v42 = vpop.f32.mrb[31].mxu1  ;;  %v2356_v50 = vmul.f32 %v11841_v9, %v2348_v46  ;;  %v11175_v46 = vld [vmem:[%s14852_s3] sm:$0xff]  }
0x10c7   : > { %v2354_v44 = vmul.f32 %v11845_v11, %v2340_v39  ;;  %v2343_v45 = vadd.f32 %v9256_v23, %v2342_v42  ;;  %v11174_v39 = vld [vmem:[%s14853_s4 + $0x13c] sm:$0xff]   ;;  %10215 = vmatprep.mubr.msk.bf16.mxu0 %vm542_vm6, %v11175_v46 }
0x10c8   : > { %v2357_v47 = vmul.f32 %v11839_v7, %v2351_v41 }
0x10c9   : > { %2362 = vrot.lane.b32.xlu0 %v2354_v44, %s11456_s21  ;;  %v2355_v49 = vmul.f32 %v11843_v10, %v2343_v45 }
0x10ca   : > { %2368 = vrot.lane.b32.xlu1 %v2357_v47, %s11456_s21  ;;  %v9273_v47 = vld [vmem:[%s14855_s6 + $0x11] ss:$0 sm:$0xff] }
0x10cd   : > { %2364 = vrot.lane.b32.xlu0 %v2355_v49, %s11456_s21 }
0x10ce   : > { %2366 = vrot.lane.b32.xlu1 %v2356_v50, %s11456_s21 }
0x10d1   : > { %4755 = vperm.xlu0 %11104, %v9383_v52  }
0x113b   : > { %v2363_v53 = vpop.permute.xlu0 %2362 }
0x113c   : > { %v2374_v60 = vsub.f32 %v11872_v58, %v2363_v53  ;;  %v2369_v61 = vpop.permute.xlu1 %2368 }
0x113d   : > { %v2377_v62 = vsub.f32 %v11883_v0, %v2369_v61 }
0x113e   : > { %v2378_v1 = vmul.f32 %v11845_v11, %v2374_v60 }
0x113f   : > { %v2381_v3 = vmul.f32 %v11839_v7, %v2377_v62  ;;  %v2365_v4 = vpop.permute.xlu0 %2364 }
0x1140   : > { %v2382_v5 = vsel %vm1523_vm15, %v11978_v55, %v2378_v1  ;;  %v2375_v6 = vsub.f32 %v11875_v59, %v2365_v4  ;;  %v2367_v12 = vpop.permute.xlu1 %2366  ;;  %v11177_v4 = vld [vmem:[%s14852_s3 + $0x10] sm:$0xff]  }
0x1141   : > { %v2386_v13 = vmul.f32 %v11845_v11, %v2382_v5  ;;  %v2385_v17 = vsel %vm1523_vm15, %v11975_v54, %v2381_v3  ;;  %v2376_v58 = vsub.f32 %v11880_v63, %v2367_v12  ;;  %v11176_v3 = vld [vmem:[%s14852_s3 + $0x8] sm:$0xff]   ;;  %v11178_v5 = vld [vmem:[%s14852_s3 + $0x18] sm:$0xff]  }
0x1142   : > { %v2389_v0 = vmul.f32 %v11839_v7, %v2385_v17  ;;  %v2379_v14 = vmul.f32 %v11843_v10, %v2375_v6  ;;  %v11179_v6 = vld [vmem:[%s14852_s3 + $0x20] sm:$0xff]   ;;  %v11180_v12 = vld [vmem:[%s14852_s3 + $0x28] sm:$0xff]   ;;  %v11182_v17 = vld [vmem:[%s14852_s3 + $0x38] sm:$0xff]  }
0x1143   : > { %v2403_v15 = vrot.slane %v2386_v13, 7  ;;  %v2380_v19 = vmul.f32 %v11841_v9, %v2376_v58  ;;  %v2415_v36 = vrot.slane %v2386_v13, 1  ;;  %v11183_v58 = vld [vmem:[%s14853_s4 + $0x154] sm:$0xff]  }
0x1144   : > { %v2406_v20 = vrot.slane %v2389_v0, 7  ;;  %v2383_v55 = vsel %vm1523_vm15, %v11981_v56, %v2379_v14  ;;  %v2418_v41 = vrot.slane %v2389_v0, 1  ;;  %v11185_v14 = vld [vmem:[%s14853_s4 + $0x144] sm:$0xff]  }
0x1145   : > { %v2387_v59 = vmul.f32 %v11843_v10, %v2383_v55  ;;  %v2384_v11 = vsel %vm1523_vm15, %v11984_v57, %v2380_v19  ;;  %v11187_v19 = vld [vmem:[%s14853_s4 + $0x14c] sm:$0xff]   ;;  %v329_v55 = vadd.s32 120, %v11609_v16 }
0x1146   : > { %v2388_v54 = vmul.f32 %v11841_v9, %v2384_v11  ;;  %v2410_v63 = vsel %vm1600_vm8, %v2406_v20, %v2403_v15  ;;  %v11172_v9 = vld [vmem:[%s14853_s4 + $0x12c] sm:$0xff]   ;;  %v2422_v42 = vsel %vm291_vm7, %v2418_v41, %v2415_v36 }
0x1147   : > { %v2404_v7 = vrot.slane %v2387_v59, 7  ;;  %v2411_v21 = vmul.f32 %v11621_v25, %v2410_v63  ;;  %v2427_v18 = vpack.c.bf16 %v2387_v59, %v2386_v13  ;;  %v2416_v34 = vrot.slane %v2387_v59, 1  ;;  %v11181_v13 = vld [vmem:[%s14852_s3 + $0x30] sm:$0xff]  }
0x1148   : > { %v2405_v22 = vrot.slane %v2388_v54, 7  ;;  %v2417_v35 = vrot.slane %v2388_v54, 1  ;;  %v2428_v38 = vpack.c.bf16 %v2389_v0, %v2388_v54  ;;  %v2426_v44 = vmul.f32 %v11908_v31, %v2422_v42  ;;  %v11184_v0 = vld [vmem:[%s14853_s4 + $0x15c] sm:$0xff]  }
0x1149   : > { %v2409_v24 = vsel %vm1600_vm8, %v2403_v15, %v2404_v7  ;;  %v2421_v37 = vsel %vm291_vm7, %v2415_v36, %v2416_v34  ;;  %v12177_v15 = vld [vmem:[%s14853_s4 + $0x164] sm:$0xff]   ;;  %vm381_vm4 = vcmp.lt.s32.totalorder %v329_v55, 127 }
0x114a   : > { %v2429_v26 = vpack.c.bf16 %v2409_v24, %v2411_v21  ;;  %v2407_v56 = vsel %vm1600_vm8, %v2405_v22, %v2406_v20  ;;  %v2408_v10 = vsel %vm1600_vm8, %v2404_v7, %v2405_v22  ;;  %v2420_v23 = vsel %vm291_vm7, %v2416_v34, %v2417_v35 }
0x114b   : > { %v2430_v57 = vpack.c.bf16 %v2407_v56, %v2408_v10  ;;  %v2565_v40 = vpack.c.bf16 %v2420_v23, %v2421_v37  ;;  %v2419_v43 = vsel %vm291_vm7, %v2417_v35, %v2418_v41  ;;  %v12208_v36 = vsel %vm381_vm4, 1.0, %v14858_v2 }
0x114c   : > { %10191 = vmatprep.mubr.msk.bf16.mxu1 %vm542_vm6, %v2429_v26  ;;  %v2566_v45 = vpack.c.bf16 %v2426_v44, %v2419_v43 }
0x114d   : > { %10192 = vmatmul.mubr.msk.bf16.vlgmr.msra.gmra.mrb[32].mxu1 %vm542_vm6, %v2430_v57 }
0x114e   : > { %10196 = vmatpush3.bf16.msra.mxu1 %v11171_v51  ;;  %10199 = vmatprep.mubr.msk.bf16.mxu1 %vm542_vm6, %v2427_v18 }
0x114f   : > { %10197 = vmatprep.subr.bf16.mxu1 %v11172_v9 }
0x1152   : > { %10198 = vmatpush3.bf16.msra.mxu1 %v11172_v9 }
0x1153   : > { %10203 = vmatprep.subr.bf16.mxu1 %v11173_v33 }
0x1159   : > { %10200 = vmatmul.mubr.msk.bf16.vlgmr.msra.gmra.mrb[32].mxu1 %vm542_vm6, %v2428_v38 }
0x115a   : > { %10204 = vmatpush3.bf16.msra.mxu1 %v11173_v33  ;;  %10207 = vmatprep.mubr.msk.bf16.mxu1 %vm542_vm6, %v2565_v40 }
0x115b   : > { %10205 = vmatprep.subr.bf16.mxu1 %v11174_v39 }
0x115e   : > { %10206 = vmatpush3.bf16.msra.mxu1 %v11174_v39 }
0x115f   : > { %10251 = vmatprep.subr.bf16.mxu1 %v11183_v58 }
0x1165   : > { %10208 = vmatmul.mubr.msk.bf16.vlgmr.msra.gmra.mrb[32].mxu1 %vm542_vm6, %v2566_v45 }
0x1166   : > { %10252 = vmatpush3.bf16.msra.mxu1 %v11183_v58 }
0x1167   : > { %10253 = vmatprep.subr.bf16.mxu1 %v11184_v0 }
0x116a   : > { %10254 = vmatpush3.bf16.msra.mxu1 %v11184_v0 }
0x116b   : > { %10271 = vmatprep.subr.bf16.mxu1 %v12177_v15 }
0x1238   : > { %v10209_v48 = vpop.f32.mrb[32].mxu1 }
0x1239   : > { %v2619_v49 = vpop.f32.mrb[33].mxu1  ;;  %v2644_v51 = vadd.f32 %v10209_v48, %v9273_v47  ;;  %v11188_v48 = vld [vmem:[%s14853_s4 + $0x16c] sm:$0xff]  }
0x123a   : > { %v10210_v50 = vpop.f32.mrb[34].mxu1  ;;  %v2642_v60 = vadd.f32 %v9273_v47, %v2619_v49 }
0x123b   : > { %v2645_v52 = vadd.f32 %v10210_v50, %v9273_v47  ;;  %v2622_v53 = vpop.f32.mrb[35].mxu1 }
0x123c   : > { %v2643_v61 = vadd.f32 %v9273_v47, %v2622_v53 }
0x123d   : > { %v2663_v62 = vpack.c.bf16 %v2645_v52, %v2644_v51 }
0x123e   : > { %v2662_v1 = vpack.c.bf16 %v2643_v61, %v2642_v60 }
0x1240   : > { %10211 = vmatprep.subr.bf16.mxu0 %v2662_v1 }
0x1241   : > { %10212 = vmatpush3.bf16.msra.mxu0 %v2662_v1 }
0x1242   : > { %10213 = vmatprep.subr.bf16.mxu0 %v2663_v62 }
0x1245   : > { %10214 = vmatpush3.bf16.msra.mxu0 %v2663_v62 }
0x1246   : > { %10231 = vmatprep.subr.bf16.mxu0 %v11185_v14 }
0x1248   : > { %10216 = vmatmul.mubr.msk.bf16.vlgmr.msra.gmra.mrb[44].mxu0 %vm542_vm6, %v11176_v3 }
0x1249   : > { %10219 = vmatprep.mubr.msk.bf16.mxu0 %vm542_vm6, %v11177_v4  ;;  %10232 = vmatpush3.bf16.msra.mxu0 %v11185_v14 }
0x124a   : > { %10233 = vmatprep.subr.bf16.mxu0 %v11187_v19 }
0x124d   : > { %10234 = vmatpush3.bf16.msra.mxu0 %v11187_v19 }
0x1250   : > { %10220 = vmatmul.mubr.msk.bf16.gmra.mrb[48].mxu0 %vm542_vm6, %v11178_v5 }
0x1251   : > { %10223 = vmatprep.mubr.msk.bf16.mxu0 %vm542_vm6, %v11179_v6 }
0x1258   : > { %10224 = vmatmul.mubr.msk.bf16.gmra.mrb[52].mxu0 %vm542_vm6, %v11180_v12 }
0x1259   : > { %10227 = vmatprep.mubr.msk.bf16.mxu0 %vm542_vm6, %v11181_v13 }
0x1260   : > { %10228 = vmatmul.mubr.msk.bf16.gmra.mrb[56].mxu0 %vm542_vm6, %v11182_v17 }
0x131b   : > { %v12183_v20 = vpop.f32.mrb[44].mxu0 }
0x131c   : > { %vm2827_vm10 = vcmp.gt.f32.partialorder %v12183_v20, 0.0  ;;  %v2843_v59 = vmul.f32 0.1, %v12183_v20  ;;  %v12188_v11 = vpop.f32.mrb[45].mxu0 }
0x131d   : > { %vm2825_vm11 = vcmp.gt.f32.partialorder %v12188_v11, 0.0  ;;  %v2841_v54 = vmul.f32 0.1, %v12188_v11  ;;  %v12192_v63 = vpop.f32.mrb[46].mxu0 }
0x131e   : > { %v2859_v7 = vsel %vm2827_vm10, %v12183_v20, %v2843_v59  ;;  %vm2828_vm12 = vcmp.gt.f32.partialorder %v12192_v63, 0.0  ;;  %v2844_v21 = vmul.f32 0.1, %v12192_v63  ;;  %v12197_v22 = vpop.f32.mrb[47].mxu0 }
0x131f   : > { %v12200_v24 = vsel %vm2825_vm11, %v12188_v11, %v2841_v54  ;;  %vm2826_vm13 = vcmp.gt.f32.partialorder %v12197_v22, 0.0  ;;  %v2888_v26 = vrot.slane %v2859_v7, 7  ;;  %v2842_v10 = vmul.f32 0.1, %v12197_v22 }
0x1320   : > { %v2860_v56 = vsel %vm2828_vm12, %v12192_v63, %v2844_v21  ;;  %v2936_v57 = vrot.slane %v2859_v7, 1  ;;  %v14861_v34 = vrot.slane %v12200_v24, 7  ;;  %v14860_v41 = vrot.slane %v12200_v24, 1 }
0x1321   : > { %v2889_v9 = vrot.slane %v2860_v56, 7  ;;  %v2937_v18 = vrot.slane %v2860_v56, 1  ;;  %v2983_v33 = vpack.c.bf16 %v2860_v56, %v2859_v7  ;;  %v2858_v35 = vsel %vm2826_vm13, %v12197_v22, %v2842_v10 }
0x1322   : > { %v2887_v38 = vrot.slane %v2858_v35, 7  ;;  %v2935_v39 = vrot.slane %v2858_v35, 1  ;;  %v2982_v44 = vpack.c.bf16 %v2858_v35, %v12200_v24 }
0x1323   : > { %v12212_v23 = vsel %vm1600_vm8, %v2888_v26, %v2889_v9  ;;  %v12216_v37 = vsel %vm291_vm7, %v2936_v57, %v2937_v18  ;;  %v12218_v40 = vpop.f32.mrb[48].mxu0 }
0x1324   : > { %vm2831_vm5 = vcmp.gt.f32.partialorder %v12218_v40, 0.0  ;;  %v2847_v42 = vmul.f32 0.1, %v12218_v40  ;;  %v12223_v43 = vpop.f32.mrb[49].mxu0  ;;  %v12228_v45 = vsel %vm1600_vm8, %v2887_v38, %v2888_v26  ;;  %v12239_v49 = vsel %vm291_vm7, %v2935_v39, %v2936_v57  ;;  %10255 = vmatprep.mubr.msk.bf16.mxu1 %vm542_vm6, %v2982_v44 }
0x1325   : > { %vm2829_vm10 = vcmp.gt.f32.partialorder %v12223_v43, 0.0  ;;  %v2845_v46 = vmul.f32 0.1, %v12223_v43  ;;  %v12232_v47 = vpop.f32.mrb[50].mxu0  ;;  %10256 = vmatmul.mubr.msk.bf16.vlgmr.msra.gmra.mrb[36].mxu1 %vm542_vm6, %v2983_v33  ;;  %v12264_v17 = vsel %vm291_vm7, %v14860_v41, %v2935_v39 }
0x1326   : > { %14915 = vst [vmem:[#allocation14_spill] sm:$0xff] %v12232_v47  ;;  %v12244_v51 = vsel %vm2831_vm5, %v12218_v40, %v2847_v42  ;;  %vm2832_vm11 = vcmp.gt.f32.partialorder %v12232_v47, 0.0  ;;  %v2848_v52 = vmul.f32 0.1, %v12232_v47  ;;  %v12249_v53 = vpop.f32.mrb[51].mxu0  ;;  %10272 = vmatpush3.bf16.msra.mxu1 %v12177_v15  ;;  %v12277_v15 = vsel %vm1600_vm8, %v14861_v34, %v2887_v38 }
0x1327   : > { %14916 = vst [vmem:[#allocation15_spill] sm:$0xff] %v12249_v53  ;;  %v2892_v60 = vrot.slane %v12244_v51, 7  ;;  %v2940_v61 = vrot.slane %v12244_v51, 1  ;;  %v2861_v62 = vsel %vm2829_vm10, %v12223_v43, %v2845_v46  ;;  %vm2830_vm12 = vcmp.gt.f32.partialorder %v12249_v53, 0.0  ;;  %10273 = vmatprep.subr.bf16.mxu1 %v11188_v48 }
0x1328   : > { %v2890_v1 = vrot.slane %v2861_v62, 7  ;;  %v2938_v3 = vrot.slane %v2861_v62, 1  ;;  %v2864_v4 = vsel %vm2832_vm11, %v12232_v47, %v2848_v52  ;;  %v2846_v5 = vmul.f32 0.1, %v12249_v53 }
0x1329   : > { %v2893_v6 = vrot.slane %v2864_v4, 7  ;;  %v2941_v12 = vrot.slane %v2864_v4, 1  ;;  %v2985_v13 = vpack.c.bf16 %v2864_v4, %v12244_v51 }
0x132a   : > { %v12268_v58 = vsel %vm291_vm7, %v2937_v18, %v2938_v3  ;;  %v2862_v0 = vsel %vm2830_vm12, %v12249_v53, %v2846_v5  ;;  %10274 = vmatpush3.bf16.msra.mxu1 %v11188_v48  ;;  %v12289_v56 = vsel %vm1600_vm8, %v2889_v9, %v2890_v1 }
0x132b   : > { %v2891_v55 = vrot.slane %v2862_v0, 7  ;;  %v2939_v59 = vrot.slane %v2862_v0, 1  ;;  %v12281_v54 = vpop.f32.mrb[52].mxu0  ;;  %v2984_v7 = vpack.c.bf16 %v2862_v0, %v2861_v62  ;;  %v12293_v10 = vsel %vm1600_vm8, %v2892_v60, %v2893_v6 }
0x132c   : > { %14917 = vst [vmem:[#allocation16_spill] sm:$0xff] %v12281_v54  ;;  %vm2835_vm13 = vcmp.gt.f32.partialorder %v12281_v54, 0.0  ;;  %v2851_v21 = vmul.f32 0.1, %v12281_v54  ;;  %v12285_v26 = vpop.f32.mrb[53].mxu0 }
0x132d   : > { %14918 = vst [vmem:[#allocation17_spill] sm:$0xff] %v12285_v26  ;;  %vm2833_vm4 = vcmp.gt.f32.partialorder %v12285_v26, 0.0  ;;  %v2849_v57 = vmul.f32 0.1, %v12285_v26  ;;  %10259 = vmatprep.mubr.msk.bf16.mxu1 %vm542_vm6, %v2984_v7  ;;  %v12298_v18 = vpop.f32.mrb[54].mxu0  ;;  %v12302_v33 = vsel %vm1600_vm8, %v2890_v1, %v2891_v55  ;;  %v12308_v9 = vsel %vm291_vm7, %v2939_v59, %v2940_v61 }
0x132e   : > { %14919 = vst [vmem:[#allocation18_spill] sm:$0xff] %v12298_v18  ;;  %v12311_v35 = vsel %vm2835_vm13, %v12281_v54, %v2851_v21  ;;  %vm2836_vm5 = vcmp.gt.f32.partialorder %v12298_v18, 0.0  ;;  %v2852_v38 = vmul.f32 0.1, %v12298_v18  ;;  %v12315_v39 = vpop.f32.mrb[55].mxu0  ;;  %10260 = vmatmul.mubr.msk.bf16.gmra.mrb[40].mxu1 %vm542_vm6, %v2985_v13  ;;  %v12329_v21 = vsel %vm291_vm7, %v2938_v3, %v2939_v59 }
0x132f   : > { %14920 = vst [vmem:[#allocation19_spill] sm:$0xff] %v12315_v39  ;;  %v2896_v44 = vrot.slane %v12311_v35, 7  ;;  %v2865_v48 = vsel %vm2833_vm4, %v12285_v26, %v2849_v57  ;;  %vm2834_vm10 = vcmp.gt.f32.partialorder %v12315_v39, 0.0  ;;  %v2850_v4 = vmul.f32 0.1, %v12315_v39 }
0x1330   : > { %v2894_v52 = vrot.slane %v2865_v48, 7  ;;  %v2942_v62 = vrot.slane %v2865_v48, 1  ;;  %v2868_v1 = vsel %vm2836_vm5, %v12298_v18, %v2852_v38  ;;  %v12336_v2 = vsel %vm1600_vm8, %v2891_v55, %v2892_v60 }
0x1331   : > { %v2897_v5 = vrot.slane %v2868_v1, 7  ;;  %v2945_v0 = vrot.slane %v2868_v1, 1  ;;  %v2987_v7 = vpack.c.bf16 %v2868_v1, %v12311_v35  ;;  %v2866_v57 = vsel %vm2834_vm10, %v12315_v39, %v2850_v4 }
0x1332   : > { %v12340_v38 = vsel %vm1600_vm8, %v2893_v6, %v2894_v52  ;;  %v2895_v19 = vrot.slane %v2866_v57, 7  ;;  %v2943_v42 = vrot.slane %v2866_v57, 1  ;;  %v2986_v50 = vpack.c.bf16 %v2866_v57, %v2865_v48 }
0x1333   : > { %v12342_v1 = vpop.f32.mrb[56].mxu0  ;;  %v12352_v60 = vsel %vm291_vm7, %v2941_v12, %v2942_v62  ;;  %v12358_v6 = vsel %vm291_vm7, %v2940_v61, %v2941_v12  ;;  %v14925_v28 = vrot.slane %v12311_v35, 1 }
0x1334   : > { %14921 = vst [vmem:[#allocation20_spill] sm:$0xff] %v12342_v1  ;;  %vm2839_vm11 = vcmp.gt.f32.partialorder %v12342_v1, 0.0  ;;  %v2855_v59 = vmul.f32 0.1, %v12342_v1  ;;  %v12348_v4 = vpop.f32.mrb[57].mxu0  ;;  %10263 = vmatprep.mubr.msk.bf16.mxu1 %vm542_vm6, %v2986_v50  ;;  %v2908_v57 = vsel %vm1600_vm8, %v2894_v52, %v2895_v19  ;;  %v3267_v3 = vpack.c.bf16 %v12352_v60, %v12358_v6 }
0x1335   : > { %14922 = vst [vmem:[#allocation21_spill] sm:$0xff] %v12348_v4  ;;  %vm2837_vm12 = vcmp.gt.f32.partialorder %v12348_v4, 0.0  ;;  %v2853_v55 = vmul.f32 0.1, %v12348_v4  ;;  %v12363_v48 = vpop.f32.mrb[58].mxu0  ;;  %v2994_v13 = vpack.c.bf16 %v2908_v57, %v12340_v38  ;;  %v2955_v38 = vsel %vm291_vm7, %v2943_v42, %v14925_v28 }
0x1336   : > { %14923 = vst [vmem:[#allocation22_spill] sm:$0xff] %v12363_v48  ;;  %v2871_v51 = vsel %vm2839_vm11, %v12342_v1, %v2855_v59  ;;  %vm2840_vm13 = vcmp.gt.f32.partialorder %v12363_v48, 0.0  ;;  %v2856_v61 = vmul.f32 0.1, %v12363_v48  ;;  %v12372_v12 = vpop.f32.mrb[59].mxu0  ;;  %10264 = vmatmul.mubr.msk.bf16.gmra.mrb[44].mxu1 %vm542_vm6, %v2987_v7  ;;  %v2956_v7 = vsel %vm291_vm7, %v2942_v62, %v2943_v42 }
0x1337   : > { %14924 = vst [vmem:[#allocation23_spill] sm:$0xff] %v12372_v12  ;;  %v2900_v41 = vrot.slane %v2871_v51, 7  ;;  %v2948_v50 = vrot.slane %v2871_v51, 1  ;;  %v2869_v14 = vsel %vm2837_vm12, %v12348_v4, %v2853_v55  ;;  %vm2838_vm4 = vcmp.gt.f32.partialorder %v12372_v12, 0.0 }
0x1338   : > { %v2898_v52 = vrot.slane %v2869_v14, 7  ;;  %v2946_v60 = vrot.slane %v2869_v14, 1  ;;  %v2872_v59 = vsel %vm2840_vm13, %v12363_v48, %v2856_v61  ;;  %v2854_v6 = vmul.f32 0.1, %v12372_v12 }
0x1339   : > { %v2901_v34 = vrot.slane %v2872_v59, 7  ;;  %v2949_v46 = vrot.slane %v2872_v59, 1  ;;  %v2989_v31 = vpack.c.bf16 %v2872_v59, %v2871_v51  ;;  %v2906_v57 = vsel %vm1600_vm8, %v2896_v44, %v2897_v5 }
0x133a   : > { %v2870_v55 = vsel %vm2838_vm4, %v12372_v12, %v2854_v6  ;;  %v2907_v61 = vsel %vm1600_vm8, %v2895_v19, %v2896_v44  ;;  %v14926_v51 = vrot.slane %v12200_v24, 7  ;;  %v3268_v6 = vpack.c.bf16 %v2955_v38, %v2956_v7 }
0x133b   : > { %v2899_v27 = vrot.slane %v2870_v55, 7  ;;  %v2947_v30 = vrot.slane %v2870_v55, 1  ;;  %v2988_v29 = vpack.c.bf16 %v2870_v55, %v2869_v14  ;;  %v2995_v32 = vpack.c.bf16 %v2906_v57, %v2907_v61 }
0x133c   : > { %v2917_v59 = vsel %vm1600_vm8, %v2901_v34, %v14926_v51  ;;  %v2905_v42 = vsel %vm1600_vm8, %v2897_v5, %v2898_v52  ;;  %v2953_v14 = vsel %vm291_vm7, %v2945_v0, %v2946_v60  ;;  %v14927_v44 = vrot.slane %v12311_v35, 1 }
0x133d   : > { %v2918_v28 = vmul.f32 %v11621_v25, %v2917_v59  ;;  %10267 = vmatprep.mubr.msk.bf16.mxu1 %vm542_vm6, %v2988_v29  ;;  %v2904_v19 = vsel %vm1600_vm8, %v2898_v52, %v2899_v27  ;;  %v2951_v38 = vsel %vm291_vm7, %v2947_v30, %v2948_v50  ;;  %v2952_v29 = vsel %vm291_vm7, %v2946_v60, %v2947_v30 }
0x133e   : > { %v2954_v62 = vsel %vm291_vm7, %v14927_v44, %v2945_v0  ;;  %v2996_v7 = vpack.c.bf16 %v2904_v19, %v2905_v42  ;;  %10268 = vmatmul.mubr.msk.bf16.gmra.mrb[48].mxu1 %vm542_vm6, %v2989_v31  ;;  %v3270_v52 = vpack.c.bf16 %v2951_v38, %v2952_v29  ;;  %v2902_v57 = vsel %vm1600_vm8, %v2900_v41, %v2901_v34 }
0x133f   : > { %v2990_v55 = vpack.c.bf16 %v12277_v15, %v2918_v28  ;;  %v3269_v5 = vpack.c.bf16 %v2953_v14, %v2954_v62  ;;  %v2903_v35 = vsel %vm1600_vm8, %v2899_v27, %v2900_v41  ;;  %v2950_v0 = vsel %vm291_vm7, %v2948_v50, %v2949_v46 }
0x1340   : > { %v14928_v15 = vpack.c.bf16 %v12239_v49, %v12264_v17  ;;  %v2997_v30 = vpack.c.bf16 %v2902_v57, %v2903_v35  ;;  %v14929_v31 = vrot.slane %v12200_v24, 1  ;;  %v14930_v34 = vpack.c.bf16 %v12212_v23, %v12228_v45 }
0x1341   : > { %10235 = vmatprep.mubr.msk.bf16.mxu0 %vm542_vm6, %v2990_v55  ;;  %v14931_v41 = vpack.c.bf16 %v12302_v33, %v12289_v56  ;;  %v14932_v17 = vpack.c.bf16 %v12268_v58, %v12216_v37  ;;  %v14933_v24 = vpack.c.bf16 %v12308_v9, %v12329_v21  ;;  %v14934_v23 = vpack.c.bf16 %v12293_v10, %v12336_v2  ;;  %v11189_v2 = vld [vmem:[%s14853_s4 + $0x174] sm:$0xff]   ;;  %v12467_v37 = vld [vmem:[%s14853_s4 + $0x184] sm:$0xff]   ;;  %v12473_v33 = vld [vmem:[%s14855_s6 + $0x12] ss:$0 sm:$0xff] }
0x1342   : > { %10275 = vmatprep.mubr.msk.bf16.mxu1 %vm542_vm6, %v14928_v15  ;;  %v2965_v60 = vsel %vm291_vm7, %v2949_v46, %v14929_v31  ;;  %10236 = vmatmul.mubr.msk.bf16.vlgmr.msra.gmra.mrb[60].mxu0 %vm542_vm6, %v14930_v34 }
0x1343   : > { %v2981_v27 = vmul.f32 %v12208_v36, %v2965_v60  ;;  %10239 = vmatprep.mubr.msk.bf16.mxu0 %vm542_vm6, %v14931_v41  ;;  %10291 = vmatprep.subr.bf16.mxu0 %v11189_v2 }
0x1344   : > { %10292 = vmatpush3.bf16.msra.mxu0 %v11189_v2 }
0x1345   : > { %v3271_v49 = vpack.c.bf16 %v2981_v27, %v2950_v0 }
0x1346   : > { %10276 = vmatmul.mubr.msk.bf16.vlgmr.msra.gmra.mrb[36].mxu1 %vm542_vm6, %v14932_v17 }
0x1347   : > { %10279 = vmatprep.mubr.msk.bf16.mxu1 %vm542_vm6, %v14933_v24 }
0x134a   : > { %10240 = vmatmul.mubr.msk.bf16.gmra.mrb[64].mxu0 %vm542_vm6, %v14934_v23 }
0x134b   : > { %10243 = vmatprep.mubr.msk.bf16.mxu0 %vm542_vm6, %v2994_v13 }
0x134e   : > { %10280 = vmatmul.mubr.msk.bf16.gmra.mrb[40].mxu1 %vm542_vm6, %v3267_v3 }
0x134f   : > { %10283 = vmatprep.mubr.msk.bf16.mxu1 %vm542_vm6, %v3268_v6 }
0x1352   : > { %10244 = vmatmul.mubr.msk.bf16.gmra.mrb[68].mxu0 %vm542_vm6, %v2995_v32  ;;  %v11190_v32 = vld [vmem:[%s14853_s4 + $0x17c] sm:$0xff]  }
0x1353   : > { %10247 = vmatprep.mubr.msk.bf16.mxu0 %vm542_vm6, %v2996_v7  ;;  %10293 = vmatprep.subr.bf16.mxu0 %v11190_v32 }
0x1354   : > { %10294 = vmatpush3.bf16.msra.mxu0 %v11190_v32 }
0x1355   : > { %10311 = vmatprep.subr.bf16.mxu0 %v12467_v37 }
0x1356   : > { %10284 = vmatmul.mubr.msk.bf16.gmra.mrb[44].mxu1 %vm542_vm6, %v3269_v5 }
0x1357   : > { %10287 = vmatprep.mubr.msk.bf16.mxu1 %vm542_vm6, %v3270_v52 }
0x135a   : > { %10248 = vmatmul.mubr.msk.bf16.gmra.mrb[72].mxu0 %vm542_vm6, %v2997_v30 }
0x135e   : > { %10288 = vmatmul.mubr.msk.bf16.gmra.mrb[48].mxu1 %vm542_vm6, %v3271_v49 }
0x1415   : > { %v10237_v45 = vpop.f32.mrb[60].mxu0 }
0x1416   : > { %v3068_v58 = vpop.f32.mrb[61].mxu0 }
0x1417   : > { %v10238_v56 = vpop.f32.mrb[62].mxu0 }
0x1418   : > { %v3071_v10 = vpop.f32.mrb[63].mxu0 }
0x1419   : > { %v10277_v9 = vpop.f32.mrb[36].mxu1 }
0x141a   : > { %v10815_v46 = vadd.f32 %v10277_v9, %v10237_v45  ;;  %v3342_v21 = vpop.f32.mrb[37].mxu1 }
0x141b   : > { %v10816_v13 = vadd.f32 %v3342_v21, %v3068_v58  ;;  %v10278_v3 = vpop.f32.mrb[38].mxu1 }
0x141c   : > { %v3427_v61 = vadd.f32 %v10815_v46, %v12473_v33  ;;  %v10817_v51 = vadd.f32 %v10278_v3, %v10238_v56  ;;  %v3345_v59 = vpop.f32.mrb[39].mxu1 }
0x141d   : > { %v10241_v50 = vpop.f32.mrb[64].mxu0  ;;  %v3425_v6 = vadd.f32 %v10816_v13, %v12473_v33  ;;  %v10818_v42 = vadd.f32 %v3345_v59, %v3071_v10 }
0x141e   : > { %v3084_v28 = vpop.f32.mrb[65].mxu0  ;;  %vm3443_vm5 = vcmp.gt.f32.partialorder %v3427_v61, 0.0  ;;  %v3459_v14 = vmul.f32 0.1, %v3427_v61  ;;  %v3428_v44 = vadd.f32 %v10817_v51, %v12473_v33 }
0x141f   : > { %v10242_v19 = vpop.f32.mrb[66].mxu0  ;;  %vm3441_vm10 = vcmp.gt.f32.partialorder %v3425_v6, 0.0  ;;  %v3457_v38 = vmul.f32 0.1, %v3425_v6  ;;  %v3426_v55 = vadd.f32 %v10818_v42, %v12473_v33 }
0x1420   : > { %v3087_v62 = vpop.f32.mrb[67].mxu0  ;;  %v12479_v7 = vsel %vm3443_vm5, %v3427_v61, %v3459_v14  ;;  %vm3444_vm11 = vcmp.gt.f32.partialorder %v3428_v44, 0.0  ;;  %v3460_v5 = vmul.f32 0.1, %v3428_v44 }
0x1421   : > { %v3504_v29 = vrot.slane %v12479_v7, 7  ;;  %v12482_v52 = vsel %vm3441_vm10, %v3425_v6, %v3457_v38  ;;  %vm3442_vm12 = vcmp.gt.f32.partialorder %v3426_v55, 0.0  ;;  %v10281_v57 = vpop.f32.mrb[40].mxu1  ;;  %v3552_v35 = vrot.slane %v12479_v7, 1 }
0x1422   : > { %v14875_v0 = vrot.slane %v12482_v52, 7  ;;  %v12486_v15 = vsel %vm3444_vm11, %v3428_v44, %v3460_v5  ;;  %v3458_v30 = vmul.f32 0.1, %v3426_v55  ;;  %v3358_v31 = vpop.f32.mrb[41].mxu1  ;;  %v10819_v41 = vadd.f32 %v10281_v57, %v10241_v50 }
0x1423   : > { %v3505_v60 = vrot.slane %v12486_v15, 7  ;;  %v3553_v34 = vrot.slane %v12486_v15, 1  ;;  %v10282_v49 = vpop.f32.mrb[42].mxu1  ;;  %v14874_v24 = vrot.slane %v12482_v52, 1  ;;  %v10820_v2 = vadd.f32 %v3358_v31, %v3084_v28 }
0x1424   : > { %v12493_v23 = vsel %vm3442_vm12, %v3426_v55, %v3458_v30  ;;  %v10821_v32 = vadd.f32 %v10282_v49, %v10242_v19  ;;  %v3361_v45 = vpop.f32.mrb[43].mxu1  ;;  %v3431_v13 = vadd.f32 %v10819_v41, %v12473_v33  ;;  %v14940_v26 = vrot.slane %v12482_v52, 7 }
0x1425   : > { %v10245_v17 = vpop.f32.mrb[68].mxu0  ;;  %v12497_v56 = vsel %vm1600_vm8, %v3504_v29, %v3505_v60  ;;  %v12501_v10 = vsel %vm291_vm7, %v3552_v35, %v3553_v34  ;;  %v3503_v9 = vrot.slane %v12493_v23, 7  ;;  %v3551_v46 = vrot.slane %v12493_v23, 1 }
0x1426   : > { %v3100_v58 = vpop.f32.mrb[69].mxu0  ;;  %v3429_v3 = vadd.f32 %v10820_v2, %v12473_v33  ;;  %v3432_v50 = vadd.f32 %v10821_v32, %v12473_v33  ;;  %v10822_v61 = vadd.f32 %v3361_v45, %v3087_v62  ;;  %vm3447_vm13 = vcmp.gt.f32.partialorder %v3431_v13, 0.0 }
0x1427   : > { %v10246_v21 = vpop.f32.mrb[70].mxu0  ;;  %v12510_v59 = vsel %vm1600_vm8, %v3503_v9, %v3504_v29  ;;  %v12516_v28 = vsel %vm1600_vm8, %v14875_v0, %v3503_v9  ;;  %v12522_v42 = vsel %vm291_vm7, %v3551_v46, %v3552_v35  ;;  %v3463_v14 = vmul.f32 0.1, %v3431_v13 }
0x1428   : > { %v3103_v51 = vpop.f32.mrb[71].mxu0  ;;  %vm3445_vm4 = vcmp.gt.f32.partialorder %v3429_v3, 0.0  ;;  %v3461_v44 = vmul.f32 0.1, %v3429_v3  ;;  %vm3448_vm5 = vcmp.gt.f32.partialorder %v3432_v50, 0.0  ;;  %v3430_v38 = vadd.f32 %v10822_v61, %v12473_v33 }
0x1429   : > { %v3464_v62 = vmul.f32 0.1, %v3432_v50  ;;  %v10285_v55 = vpop.f32.mrb[44].mxu1  ;;  %v12527_v5 = vsel %vm3447_vm13, %v3431_v13, %v3463_v14  ;;  %v12533_v35 = vsel %vm291_vm7, %v14874_v24, %v3551_v46 }
0x142a   : > { %v10823_v29 = vadd.f32 %v10285_v55, %v10245_v17  ;;  %v3374_v57 = vpop.f32.mrb[45].mxu1  ;;  %v14877_v30 = vrot.slane %v12527_v5, 7  ;;  %v12537_v41 = vsel %vm3445_vm4, %v3429_v3, %v3461_v44  ;;  %vm3446_vm10 = vcmp.gt.f32.partialorder %v3430_v38, 0.0 }
0x142b   : > { %v12539_v49 = vsel %vm3448_vm5, %v3432_v50, %v3464_v62  ;;  %v10286_v2 = vpop.f32.mrb[46].mxu1  ;;  %v3506_v45 = vrot.slane %v12537_v41, 7  ;;  %v14876_v17 = vrot.slane %v12537_v41, 1  ;;  %v3462_v14 = vmul.f32 0.1, %v3430_v38 }
0x142c   : > { %v3509_v9 = vrot.slane %v12539_v49, 7  ;;  %v3377_v46 = vpop.f32.mrb[47].mxu1  ;;  %v3435_v55 = vadd.f32 %v10823_v29, %v12473_v33  ;;  %v10824_v3 = vadd.f32 %v3374_v57, %v3100_v58  ;;  %v10825_v62 = vadd.f32 %v10286_v2, %v10246_v21 }
0x142d   : > { %v10249_v32 = vpop.f32.mrb[72].mxu0  ;;  %v12550_v50 = vsel %vm291_vm7, %v3553_v34, %v14876_v17  ;;  %v10826_v27 = vadd.f32 %v3377_v46, %v3103_v51  ;;  %v12554_v19 = vsel %vm1600_vm8, %v3505_v60, %v3506_v45  ;;  %v12558_v13 = vsel %vm3446_vm10, %v3430_v38, %v3462_v14 }
0x142e   : > { %v3116_v61 = vpop.f32.mrb[73].mxu0  ;;  %vm3451_vm11 = vcmp.gt.f32.partialorder %v3435_v55, 0.0  ;;  %v3467_v58 = vmul.f32 0.1, %v3435_v55  ;;  %v3507_v29 = vrot.slane %v12558_v13, 7  ;;  %v3433_v34 = vadd.f32 %v10824_v3, %v12473_v33 }
0x142f   : > { %v10250_v44 = vpop.f32.mrb[74].mxu0  ;;  %v3436_v21 = vadd.f32 %v10825_v62, %v12473_v33  ;;  %v3434_v60 = vadd.f32 %v10826_v27, %v12473_v33  ;;  %v12571_v38 = vsel %vm1600_vm8, %v14877_v30, %v3509_v9  ;;  %v3880_v1 = vpack.c.bf16 %v12522_v42, %v12533_v35 }
0x1430   : > { %v3119_v6 = vpop.f32.mrb[75].mxu0  ;;  %v12564_v51 = vsel %vm3451_vm11, %v3435_v55, %v3467_v58  ;;  %vm3449_vm12 = vcmp.gt.f32.partialorder %v3433_v34, 0.0  ;;  %v3465_v62 = vmul.f32 0.1, %v3433_v34  ;;  %v12581_v31 = vsel %vm1600_vm8, %v3506_v45, %v3507_v29 }
0x1431   : > { %v10289_v2 = vpop.f32.mrb[48].mxu1  ;;  %v3512_v14 = vrot.slane %v12564_v51, 7  ;;  %vm3452_vm13 = vcmp.gt.f32.partialorder %v3436_v21, 0.0  ;;  %v3468_v58 = vmul.f32 0.1, %v3436_v21  ;;  %vm3450_vm4 = vcmp.gt.f32.partialorder %v3434_v60, 0.0 }
0x1432   : > { %v3390_v55 = vpop.f32.mrb[49].mxu1  ;;  %v3466_v27 = vmul.f32 0.1, %v3434_v60  ;;  %v12577_v24 = vsel %vm3449_vm12, %v3433_v34, %v3465_v62  ;;  %v10827_v0 = vadd.f32 %v10289_v2, %v10249_v32  ;;  %v14939_v35 = vrot.slane %v12537_v41, 1 }
0x1433   : > { %v10828_v17 = vadd.f32 %v3390_v55, %v3116_v61  ;;  %v10290_v57 = vpop.f32.mrb[50].mxu1  ;;  %v3510_v46 = vrot.slane %v12577_v24, 7  ;;  %v12585_v30 = vsel %vm3452_vm13, %v3436_v21, %v3468_v58  ;;  %v14944_v47 = vrot.slane %v12527_v5, 1 }
0x1434   : > { %v12587_v12 = vsel %vm3450_vm4, %v3434_v60, %v3466_v27  ;;  %v3393_v48 = vpop.f32.mrb[51].mxu1  ;;  %v3513_v4 = vrot.slane %v12585_v30, 7  ;;  %v3439_v45 = vadd.f32 %v10827_v0, %v12473_v33  ;;  %v10829_v62 = vadd.f32 %v10290_v57, %v10250_v44 }
0x1435   : > { %v3511_v32 = vrot.slane %v12587_v12, 7  ;;  %v3559_v61 = vrot.slane %v12587_v12, 1  ;;  %v3437_v2 = vadd.f32 %v10828_v17, %v12473_v33  ;;  %v10830_v55 = vadd.f32 %v3393_v48, %v3119_v6 }
0x1436   : > { %v14935_v60 = vrot.slane %v12527_v5, 7  ;;  %v12609_v0 = vsel %vm1600_vm8, %v3509_v9, %v3510_v46  ;;  %vm3455_vm5 = vcmp.gt.f32.partialorder %v3439_v45, 0.0  ;;  %v3471_v17 = vmul.f32 0.1, %v3439_v45 }
0x1437   : > { %v12605_v27 = vsel %vm1600_vm8, %v3510_v46, %v3511_v32  ;;  %vm3453_vm10 = vcmp.gt.f32.partialorder %v3437_v2, 0.0  ;;  %v3469_v48 = vmul.f32 0.1, %v3437_v2  ;;  %v3440_v6 = vadd.f32 %v10829_v62, %v12473_v33 }
0x1438   : > { %v12601_v58 = vsel %vm1600_vm8, %v3507_v29, %v14935_v60  ;;  %v3438_v44 = vadd.f32 %v10830_v55, %v12473_v33  ;;  %v12617_v60 = vsel %vm3455_vm5, %v3439_v45, %v3471_v17  ;;  %v12623_v9 = vsel %vm1600_vm8, %v3512_v14, %v3513_v4 }
0x1439   : > { %v12619_v21 = vsel %vm3453_vm10, %v3437_v2, %v3469_v48  ;;  %v3523_v46 = vsel %vm1600_vm8, %v3511_v32, %v3512_v14  ;;  %v3516_v62 = vrot.slane %v12617_v60, 7  ;;  %v3564_v33 = vrot.slane %v12617_v60, 1 }
0x143a   : > { %v3514_v55 = vrot.slane %v12619_v21, 7  ;;  %v3562_v29 = vrot.slane %v12619_v21, 1  ;;  %vm3456_vm11 = vcmp.gt.f32.partialorder %v3440_v6, 0.0  ;;  %v3472_v45 = vmul.f32 0.1, %v3440_v6 }
0x143b   : > { %vm3454_vm12 = vcmp.gt.f32.partialorder %v3438_v44, 0.0  ;;  %v3470_v2 = vmul.f32 0.1, %v3438_v44  ;;  %v3611_v17 = vpack.c.bf16 %v12623_v9, %v3523_v46  ;;  %v3601_v14 = vpack.c.bf16 %v12539_v49, %v12527_v5 }
0x143c   : > { %v3521_v48 = vsel %vm1600_vm8, %v3513_v4, %v3514_v55  ;;  %v3602_v32 = vpack.c.bf16 %v12587_v12, %v12577_v24  ;;  %v12638_v57 = vsel %vm3456_vm11, %v3440_v6, %v3472_v45  ;;  %v3603_v3 = vpack.c.bf16 %v12585_v30, %v12564_v51 }
0x143d   : > { %v3486_v34 = vsel %vm3454_vm12, %v3438_v44, %v3470_v2  ;;  %v3517_v9 = vrot.slane %v12638_v57, 7  ;;  %v3565_v46 = vrot.slane %v12638_v57, 1  ;;  %v3605_v12 = vpack.c.bf16 %v12638_v57, %v12617_v60 }
0x143e   : > { %v3515_v4 = vrot.slane %v3486_v34, 7  ;;  %v3563_v39 = vrot.slane %v3486_v34, 1  ;;  %v3604_v18 = vpack.c.bf16 %v3486_v34, %v12619_v21  ;;  %v14936_v6 = vrot.slane %v12527_v5, 1 }
0x143f   : > { %v14937_v44 = vrot.slane %v12558_v13, 1  ;;  %v3533_v34 = vsel %vm1600_vm8, %v3517_v9, %v14940_v26  ;;  %v3518_v57 = vsel %vm1600_vm8, %v3516_v62, %v3517_v9 }
0x1440   : > { %v3520_v21 = vsel %vm1600_vm8, %v3514_v55, %v3515_v4  ;;  %v3519_v60 = vsel %vm1600_vm8, %v3515_v4, %v3516_v62  ;;  %v14945_v62 = vrot.slane %v12564_v51, 1 }
0x1441   : > { %v3575_v45 = vsel %vm291_vm7, %v14937_v44, %v14936_v6  ;;  %v14938_v42 = vmov %v14937_v44  ;;  %v3534_v6 = vmul.f32 %v11621_v25, %v3533_v34  ;;  %v3612_v44 = vpack.c.bf16 %v3520_v21, %v3521_v48 }
0x1442   : > { %v3576_v2 = vsel %vm291_vm7, %v14939_v35, %v14938_v42  ;;  %v3613_v54 = vpack.c.bf16 %v3518_v57, %v3519_v60  ;;  %v14941_v42 = vrot.slane %v12577_v24, 1  ;;  %v14942_v35 = vrot.slane %v12539_v49, 1 }
0x1443   : > { %v3882_v53 = vpack.c.bf16 %v3575_v45, %v3576_v2  ;;  %v3571_v48 = vsel %vm291_vm7, %v3559_v61, %v14945_v62  ;;  %v3606_v2 = vpack.c.bf16 %v12516_v28, %v3534_v6  ;;  %v14947_v49 = vrot.slane %v12585_v30, 1 }
0x1444   : > { %v3573_v26 = vsel %vm291_vm7, %v14942_v35, %v14941_v42  ;;  %v14943_v55 = vmov %v14942_v35  ;;  %v14946_v4 = vmov %v14941_v42  ;;  %v14949_v24 = vmov %v14945_v62 }
0x1445   : > { %v3574_v9 = vsel %vm291_vm7, %v14944_v47, %v14943_v55  ;;  %v3572_v45 = vsel %vm291_vm7, %v14946_v4, %v3559_v61  ;;  %v3569_v5 = vsel %vm291_vm7, %v14947_v49, %v3562_v29  ;;  %v11192_v47 = vld [vmem:[%s14853_s4 + $0x18c] sm:$0xff]   ;;  %v14948_v57 = vmov %v14947_v49  ;;  %10295 = vmatprep.mubr.msk.bf16.mxu0 %vm542_vm6, %v3606_v2 }
0x1446   : > { %v3883_v34 = vpack.c.bf16 %v3573_v26, %v3574_v9  ;;  %v3884_v21 = vpack.c.bf16 %v3571_v48, %v3572_v45  ;;  %v3570_v61 = vsel %vm291_vm7, %v14949_v24, %v14948_v57  ;;  %v3567_v28 = vsel %vm291_vm7, %v3563_v39, %v3564_v33 }
0x1447   : > { %v3568_v60 = vsel %vm291_vm7, %v3562_v29, %v3563_v39  ;;  %v3566_v6 = vsel %vm291_vm7, %v3564_v33, %v3565_v46  ;;  %v3885_v42 = vpack.c.bf16 %v3569_v5, %v3570_v61  ;;  %v14950_v30 = vrot.slane %v12482_v52, 1  ;;  %v11193_v29 = vld [vmem:[%s14853_s4 + $0x194] sm:$0xff]  }
0x1448   : > { %v3886_v35 = vpack.c.bf16 %v3567_v28, %v3568_v60  ;;  %v14951_v26 = vpack.c.bf16 %v12497_v56, %v12510_v59  ;;  %v14952_v39 = vpack.c.bf16 %v12581_v31, %v12554_v19  ;;  %v14953_v56 = vpack.c.bf16 %v12571_v38, %v12601_v58  ;;  %v11194_v19 = vld [vmem:[%s14853_s4 + $0x19c] sm:$0xff]   ;;  %v12810_v58 = vld [vmem:[%s14854_s5 + $0x50] sm:$0xff]  }
0x1449   : > { %v3581_v51 = vsel %vm291_vm7, %v3565_v46, %v14950_v30  ;;  %v14954_v59 = vpack.c.bf16 %v12605_v27, %v12609_v0  ;;  %v14956_v31 = vpack.c.bf16 %v12486_v15, %v12479_v7  ;;  %v14957_v38 = vpack.c.bf16 %v12558_v13, %v12537_v41  ;;  %v11195_v7 = vld [vmem:[%s14853_s4] sm:$0xff]   ;;  %v11199_v13 = vld [vmem:[%s14853_s4 + $0x14] sm:$0xff]   ;;  %v12817_v27 = vld [vmem:[%s14855_s6 + $0x13] ss:$0 sm:$0xff] }
0x144a   : > { %10296 = vmatmul.mubr.msk.bf16.vlgmr.msra.gmra.mrb[76].mxu0 %vm542_vm6, %v14951_v26  ;;  %v3597_v55 = vmul.f32 %v12208_v36, %v3581_v51  ;;  %v11198_v41 = vld [vmem:[%s14854_s5 + $0x40] sm:$0xff]  }
0x144b   : > { %10299 = vmatprep.mubr.msk.bf16.mxu0 %vm542_vm6, %v14952_v39  ;;  %10312 = vmatpush3.bf16.msra.mxu0 %v12467_v37  ;;  %v14955_v37 = vpack.c.bf16 %v12493_v23, %v12482_v52  ;;  %v14959_v52 = vpack.c.bf16 %v12550_v50, %v12501_v10  ;;  %v11200_v50 = vld [vmem:[%s14854_s5 + $0x48] sm:$0xff]  }
0x144c   : > { %10313 = vmatprep.subr.bf16.mxu0 %v11192_v47  ;;  %v3887_v33 = vpack.c.bf16 %v3597_v55, %v3566_v6  ;;  %10351 = vmatprep.subr.bf16.mxu1 %v11198_v41 }
0x144d   : > { %10352 = vmatpush3.bf16.msra.mxu1 %v11198_v41 }
0x144e   : > { %10353 = vmatprep.subr.bf16.mxu1 %v11200_v50 }
0x144f   : > { %10314 = vmatpush3.bf16.msra.mxu0 %v11192_v47 }
0x1450   : > { %10331 = vmatprep.subr.bf16.mxu0 %v11193_v29 }
0x1451   : > { %10354 = vmatpush3.bf16.msra.mxu1 %v11200_v50 }
0x1452   : > { %10300 = vmatmul.mubr.msk.bf16.gmra.mrb[80].mxu0 %vm542_vm6, %v14953_v56  ;;  %10371 = vmatprep.subr.bf16.mxu1 %v12810_v58 }
0x1453   : > { %10303 = vmatprep.mubr.msk.bf16.mxu0 %vm542_vm6, %v14954_v59 }
0x145a   : > { %10304 = vmatmul.mubr.msk.bf16.gmra.mrb[84].mxu0 %vm542_vm6, %v3611_v17 }
0x145b   : > { %10307 = vmatprep.mubr.msk.bf16.mxu0 %vm542_vm6, %v3612_v44 }
0x1462   : > { %10308 = vmatmul.mubr.msk.bf16.gmra.mrb[88].mxu0 %vm542_vm6, %v3613_v54  ;;  %v14958_v54 = vmov 0.0  }
0x1463   : > { %10315 = vmatprep.mubr.msk.bf16.mxu0 %vm542_vm6, %v14955_v37 }
0x146a   : > { %10316 = vmatmul.mubr.msk.bf16.vlgmr.msra.gmra.mrb[76].mxu0 %vm542_vm6, %v14956_v31  ;;  %v14960_v31 = vld [vmem:[#allocation14_spill] sm:$0xff] }
0x146b   : > { %10319 = vmatprep.mubr.msk.bf16.mxu0 %vm542_vm6, %v14957_v38  ;;  %10332 = vmatpush3.bf16.msra.mxu0 %v11193_v29 }
0x146c   : > { %10333 = vmatprep.subr.bf16.mxu0 %v11194_v19 }
0x146f   : > { %10334 = vmatpush3.bf16.msra.mxu0 %v11194_v19 }
0x1470   : > { %10411 = vmatprep.subr.bf16.mxu0 %v14958_v54 }
0x1472   : > { %10320 = vmatmul.mubr.msk.bf16.gmra.mrb[80].mxu0 %vm542_vm6, %v3601_v14 }
0x1473   : > { %10323 = vmatprep.mubr.msk.bf16.mxu0 %vm542_vm6, %v3602_v32 }
0x147a   : > { %10324 = vmatmul.mubr.msk.bf16.gmra.mrb[84].mxu0 %vm542_vm6, %v3603_v3  ;;  %v11201_v3 = vld [vmem:[%s14853_s4 + $0x1c] sm:$0xff]  }
0x147b   : > { %10327 = vmatprep.mubr.msk.bf16.mxu0 %vm542_vm6, %v3604_v18  ;;  %v11196_v18 = vld [vmem:[%s14853_s4 + $0x8] sm:$0xff]  }
0x1482   : > { %10328 = vmatmul.mubr.msk.bf16.gmra.mrb[88].mxu0 %vm542_vm6, %v3605_v12 }
0x1483   : > { %10335 = vmatprep.mubr.msk.bf16.mxu0 %vm542_vm6, %v3880_v1  ;;  %v11197_v1 = vld [vmem:[%s14853_s4 + $0x10] ss:$0 sps:$4 sm:$0xff]  }
0x1484   : > { %v4785_v15 = vsel %vm465_vm0, %v11197_v1, 0 }
0x148a   : > { %10336 = vmatmul.mubr.msk.bf16.vlgmr.msra.gmra.mrb[76].mxu0 %vm542_vm6, %v14959_v52 }
0x148b   : > { %10339 = vmatprep.mubr.msk.bf16.mxu0 %vm542_vm6, %v3882_v53  ;;  %10412 = vmatpush3.bf16.msra.mxu0 %v11195_v7  ;;  %v4756_v53 = vpop.permute.xlu0 %4755 }
0x148c   : > { %10413 = vmatprep.subr.bf16.mxu0 %v14958_v54  ;;  %vm4757_vm13 = vcmp.eq.s32.totalorder %v11583_v8, %v4756_v53 }
0x148d   : > { %v9390_v23 = vsel %vm4757_vm13, 1.0, %v14958_v54 }
0x148e   : > { %v4765_v10 = vpack.c.bf16 %v9390_v23, %v9390_v23 }
0x148f   : > { %10414 = vmatpush3.bf16.msra.mxu0 %v11196_v18 }
0x1490   : > { %10415 = vmatprep.subr.bf16.mxu0 %v14958_v54 }
0x1492   : > { %10340 = vmatmul.mubr.msk.bf16.gmra.mrb[80].mxu0 %vm542_vm6, %v3883_v34 }
0x1493   : > { %10343 = vmatprep.mubr.msk.bf16.mxu0 %vm542_vm6, %v3884_v21  ;;  %10416 = vmatpush3.bf16.msra.mxu0 %v4785_v15 }
0x1494   : > { %10421 = vmatprep.subr.bf16.mxu0 %v14958_v54 }
0x149a   : > { %10344 = vmatmul.mubr.msk.bf16.gmra.mrb[84].mxu0 %vm542_vm6, %v3885_v42 }
0x149b   : > { %10347 = vmatprep.mubr.msk.bf16.mxu0 %vm542_vm6, %v3886_v35 }
0x14a2   : > { %10348 = vmatmul.mubr.msk.bf16.gmra.mrb[88].mxu0 %vm542_vm6, %v3887_v33 }
0x14a3   : > { %10417 = vmatprep.mubr.msk.bf16.mxu0 %vm11453_vm1, %v14958_v54 }
0x14aa   : > { %10418 = vmatmul.mubr.msk.bf16.vlgmr.msra.gmra.mrb[92].mxu0 %vm461_vm3, %v4765_v10  ;;  %v14961_v10 = vld [vmem:[#allocation15_spill] sm:$0xff] }
0x14ab   : > { %10425 = vmatprep.mubr.msk.bf16.mxu0 %vm11453_vm1, %v14958_v54  ;;  %10422 = vmatpush3.bf16.msra.mxu0 %v11199_v13 }
0x14ac   : > { %10423 = vmatprep.subr.bf16.mxu0 %v14958_v54 }
0x14af   : > { %10424 = vmatpush3.bf16.msra.mxu0 %v11201_v3 }
0x14b0   : > { %10429 = vmatprep.subr.bf16.mxu0 %v14958_v54 }
0x155d   : > { %v10337_v0 = vpop.f32.mrb[76].mxu0 }
0x155e   : > { %v4043_v17 = vadd.f32 %v10337_v0, %v12817_v27  ;;  %v3958_v14 = vpop.f32.mrb[77].mxu0 }
0x155f   : > { %v4041_v32 = vadd.f32 %v12817_v27, %v3958_v14  ;;  %v10338_v46 = vpop.f32.mrb[78].mxu0 }
0x1560   : > { %v4059_v12 = vadd.f32 %v12183_v20, %v4043_v17  ;;  %v4044_v44 = vadd.f32 %v10338_v46, %v12817_v27  ;;  %v3961_v9 = vpop.f32.mrb[79].mxu0  ;;  %v14888_v20 = vstv %s12819_s25 }
0x1561   : > { %v4057_v62 = vadd.f32 %v4041_v32, %v12188_v11  ;;  %v4042_v48 = vadd.f32 %v12817_v27, %v3961_v9 }
0x1562   : > { %vm4075_vm3 = vcmp.gt.f32.partialorder %v4059_v12, 0.0  ;;  %v4091_v4 = vmul.f32 0.1, %v4059_v12  ;;  %v4060_v45 = vadd.f32 %v12192_v63, %v4044_v44 }
0x1563   : > { %vm4073_vm4 = vcmp.gt.f32.partialorder %v4057_v62, 0.0  ;;  %v4089_v2 = vmul.f32 0.1, %v4057_v62  ;;  %v4058_v34 = vadd.f32 %v4042_v48, %v12197_v22 }
0x1564   : > { %v12829_v21 = vsel %vm4075_vm3, %v4059_v12, %v4091_v4  ;;  %vm4076_vm5 = vcmp.gt.f32.partialorder %v4060_v45, 0.0  ;;  %v4092_v49 = vmul.f32 0.1, %v4060_v45  ;;  %vm12894_vm3 = vcmp.lt.s32.totalorder %v11609_v16, %v14888_v20 }
0x1565   : > { %v4136_v5 = vrot.slane %v12829_v21, 7  ;;  %v12833_v47 = vsel %vm4073_vm4, %v4057_v62, %v4089_v2  ;;  %vm4074_vm10 = vcmp.gt.f32.partialorder %v4058_v34, 0.0  ;;  %v10341_v11 = vpop.f32.mrb[80].mxu0  ;;  %v4184_v57 = vrot.slane %v12829_v21, 1  ;;  %v14964_v2 = vld [vmem:[#allocation16_spill] sm:$0xff] }
0x1566   : > { %v4134_v24 = vrot.slane %v12833_v47, 7  ;;  %v12837_v63 = vsel %vm4076_vm5, %v4060_v45, %v4092_v49  ;;  %v4090_v61 = vmul.f32 0.1, %v4058_v34  ;;  %v3974_v28 = vpop.f32.mrb[81].mxu0  ;;  %v4047_v42 = vadd.f32 %v10341_v11, %v12817_v27 }
0x1567   : > { %v4137_v22 = vrot.slane %v12837_v63, 7  ;;  %v4185_v60 = vrot.slane %v12837_v63, 1  ;;  %v10342_v35 = vpop.f32.mrb[82].mxu0  ;;  %v14889_v30 = vrot.slane %v12833_v47, 1  ;;  %v4045_v26 = vadd.f32 %v12817_v27, %v3974_v28 }
0x1568   : > { %v12845_v51 = vsel %vm4074_vm10, %v4058_v34, %v4090_v61  ;;  %v4048_v55 = vadd.f32 %v10342_v35, %v12817_v27  ;;  %v3977_v39 = vpop.f32.mrb[83].mxu0  ;;  %v4063_v37 = vadd.f32 %v12218_v40, %v4047_v42 }
0x1569   : > { %v12851_v29 = vsel %vm1600_vm8, %v4136_v5, %v4137_v22  ;;  %v12855_v33 = vsel %vm291_vm7, %v4184_v57, %v4185_v60  ;;  %v4135_v56 = vrot.slane %v12845_v51, 7  ;;  %v4183_v59 = vrot.slane %v12845_v51, 1 }
0x156a   : > { %v4061_v19 = vadd.f32 %v4045_v26, %v12223_v43  ;;  %v4064_v38 = vadd.f32 %v14960_v31, %v4048_v55  ;;  %v4046_v7 = vadd.f32 %v12817_v27, %v3977_v39  ;;  %vm4079_vm11 = vcmp.gt.f32.partialorder %v4063_v37, 0.0  ;;  %v14965_v55 = vld [vmem:[#allocation17_spill] sm:$0xff]  ;;  %v14966_v39 = vld [vmem:[#allocation18_spill] sm:$0xff] }
0x156b   : > { %v12865_v52 = vsel %vm1600_vm8, %v4135_v56, %v4136_v5  ;;  %v12871_v18 = vsel %vm1600_vm8, %v4134_v24, %v4135_v56  ;;  %v12877_v43 = vsel %vm291_vm7, %v4183_v59, %v4184_v57  ;;  %v4095_v15 = vmul.f32 0.1, %v4063_v37 }
0x156c   : > { %v4239_v1 = vpack.c.bf16 %v12851_v29, %v12865_v52  ;;  %vm4077_vm12 = vcmp.gt.f32.partialorder %v4061_v19, 0.0  ;;  %v4093_v53 = vmul.f32 0.1, %v4061_v19  ;;  %vm4080_vm13 = vcmp.gt.f32.partialorder %v4064_v38, 0.0 }
0x156d   : > { %v4096_v23 = vmul.f32 0.1, %v4064_v38  ;;  %v4062_v41 = vadd.f32 %v4046_v7, %v14961_v10  ;;  %v10345_v13 = vpop.f32.mrb[84].mxu0  ;;  %v12882_v50 = vsel %vm4079_vm11, %v4063_v37, %v4095_v15  ;;  %v12889_v17 = vsel %vm291_vm7, %v14889_v30, %v4183_v59  ;;  %v14967_v59 = vld [vmem:[#allocation19_spill] sm:$0xff] }
0x156e   : > { %v4051_v3 = vadd.f32 %v10345_v13, %v12817_v27  ;;  %v3990_v0 = vpop.f32.mrb[85].mxu0  ;;  %v12898_v32 = vsel %vm4077_vm12, %v4061_v19, %v4093_v53  ;;  %v4140_v44 = vrot.slane %v12882_v50, 7 }
0x156f   : > { %v12900_v46 = vsel %vm4080_vm13, %v4064_v38, %v4096_v23  ;;  %v10346_v12 = vpop.f32.mrb[86].mxu0  ;;  %v4138_v9 = vrot.slane %v12898_v32, 7  ;;  %v4186_v62 = vrot.slane %v12898_v32, 1  ;;  %vm4078_vm4 = vcmp.gt.f32.partialorder %v4062_v41, 0.0 }
0x1570   : > { %v4141_v48 = vrot.slane %v12900_v46, 7  ;;  %v3993_v4 = vpop.f32.mrb[87].mxu0  ;;  %v4094_v45 = vmul.f32 0.1, %v4062_v41  ;;  %v4067_v34 = vadd.f32 %v14964_v2, %v4051_v3  ;;  %v4049_v49 = vadd.f32 %v12817_v27, %v3990_v0 }
0x1571   : > { %v12912_v5 = vsel %vm291_vm7, %v4185_v60, %v4186_v62  ;;  %v4052_v11 = vadd.f32 %v10346_v12, %v12817_v27  ;;  %v4050_v57 = vadd.f32 %v12817_v27, %v3993_v4  ;;  %v12918_v61 = vsel %vm1600_vm8, %v4137_v22, %v4138_v9 }
0x1572   : > { %v12922_v42 = vsel %vm4078_vm4, %v4062_v41, %v4094_v45  ;;  %vm4083_vm5 = vcmp.gt.f32.partialorder %v4067_v34, 0.0  ;;  %v4099_v35 = vmul.f32 0.1, %v4067_v34  ;;  %v4065_v60 = vadd.f32 %v4049_v49, %v14965_v55  ;;  %v14968_v55 = vld [vmem:[#allocation20_spill] sm:$0xff] }
0x1573   : > { %v4139_v26 = vrot.slane %v12922_v42, 7  ;;  %v4068_v56 = vadd.f32 %v14966_v39, %v4052_v11  ;;  %v4066_v37 = vadd.f32 %v4050_v57, %v14967_v59  ;;  %v12930_v22 = vsel %vm1600_vm8, %v4140_v44, %v4141_v48 }
0x1574   : > { %v12937_v38 = vsel %vm12894_vm3, 1.0, %v14958_v54  ;;  %v12939_v7 = vsel %vm4083_vm5, %v4067_v34, %v4099_v35  ;;  %vm4081_vm10 = vcmp.gt.f32.partialorder %v4065_v60, 0.0  ;;  %v4097_v15 = vmul.f32 0.1, %v4065_v60 }
0x1575   : > { %v10349_v19 = vpop.f32.mrb[88].mxu0  ;;  %vm4084_vm11 = vcmp.gt.f32.partialorder %v4068_v56, 0.0  ;;  %v4100_v23 = vmul.f32 0.1, %v4068_v56  ;;  %vm4082_vm12 = vcmp.gt.f32.partialorder %v4066_v37, 0.0  ;;  %v12947_v14 = vsel %vm1600_vm8, %v4138_v9, %v4139_v26 }
0x1576   : > { %v4006_v53 = vpop.f32.mrb[89].mxu0  ;;  %v4098_v10 = vmul.f32 0.1, %v4066_v37  ;;  %v12941_v41 = vsel %vm4081_vm10, %v4065_v60, %v4097_v15  ;;  %v4055_v13 = vadd.f32 %v10349_v19, %v12817_v27  ;;  %v4188_v12 = vrot.slane %v12882_v50, 1  ;;  %v14969_v60 = vld [vmem:[#allocation21_spill] sm:$0xff] }
0x1577   : > { %v4053_v3 = vadd.f32 %v12817_v27, %v4006_v53  ;;  %v10350_v0 = vpop.f32.mrb[90].mxu0  ;;  %v4142_v4 = vrot.slane %v12941_v41, 7  ;;  %v12951_v45 = vsel %vm4084_vm11, %v4068_v56, %v4100_v23  ;;  %v4189_v49 = vrot.slane %v12900_v46, 1 }
0x1578   : > { %v12953_v2 = vsel %vm4082_vm12, %v4066_v37, %v4098_v10  ;;  %v4009_v34 = vpop.f32.mrb[91].mxu0  ;;  %v4144_v11 = vrot.slane %v12939_v7, 7  ;;  %v4145_v57 = vrot.slane %v12951_v45, 7  ;;  %v4071_v9 = vadd.f32 %v14968_v55, %v4055_v13 }
0x1579   : > { %v4143_v35 = vrot.slane %v12953_v2, 7  ;;  %v4069_v39 = vadd.f32 %v4053_v3, %v14969_v60  ;;  %v4056_v59 = vadd.f32 %v10350_v0, %v12817_v27  ;;  %v4054_v56 = vadd.f32 %v12817_v27, %v4009_v34  ;;  %v14970_v27 = vld [vmem:[#allocation22_spill] sm:$0xff]  ;;  %v14971_v3 = vld [vmem:[#allocation23_spill] sm:$0xff] }
0x157a   : > { %v12967_v19 = vsel %vm1600_vm8, %v4139_v26, %v4140_v44  ;;  %v12975_v53 = vsel %vm1600_vm8, %v4141_v48, %v4142_v4  ;;  %vm4087_vm13 = vcmp.gt.f32.partialorder %v4071_v9, 0.0  ;;  %v4103_v23 = vmul.f32 0.1, %v4071_v9 }
0x157b   : > { %v12971_v15 = vsel %vm1600_vm8, %v4142_v4, %v4143_v35  ;;  %vm4085_vm3 = vcmp.gt.f32.partialorder %v4069_v39, 0.0  ;;  %v4101_v10 = vmul.f32 0.1, %v4069_v39  ;;  %v4072_v13 = vadd.f32 %v14970_v27, %v4056_v59 }
0x157c   : > { %v4070_v0 = vadd.f32 %v4054_v56, %v14971_v3  ;;  %v4187_v55 = vrot.slane %v12922_v42, 1  ;;  %v12988_v20 = vsel %vm1600_vm8, %v4144_v11, %v4145_v57  ;;  %v4192_v59 = vrot.slane %v12939_v7, 1 }
0x157d   : > { %v4821_v34 = vpop.f32.mrb[92].mxu0  ;;  %v12984_v60 = vsel %vm4085_vm3, %v4069_v39, %v4101_v10  ;;  %v4190_v56 = vrot.slane %v12941_v41, 1  ;;  %v12993_v27 = vsel %vm4087_vm13, %v4071_v9, %v4103_v23  ;;  %vm4088_vm4 = vcmp.gt.f32.partialorder %v4072_v13, 0.0 }
0x157e   : > { %v4827_v48 = vmul.f32 5.656854, %v4821_v34  ;;  %v10419_v4 = vpop.f32.mrb[93].mxu0  ;;  %v4146_v3 = vrot.slane %v12984_v60, 7  ;;  %v4104_v31 = vmul.f32 0.1, %v4072_v13 }
0x157f   : > { %v4824_v28 = vpop.f32.mrb[94].mxu0  ;;  %vm4086_vm5 = vcmp.gt.f32.partialorder %v4070_v0, 0.0  ;;  %v4102_v39 = vmul.f32 0.1, %v4070_v0  ;;  %v13001_v4 = vsel %vm1600_vm8, %v4143_v35, %v4144_v11  ;;  %v4193_v11 = vrot.slane %v12951_v45, 1 }
0x1580   : > { %v12997_v10 = vmul.f32 %v12937_v38, %v4827_v48  ;;  %v10420_v34 = vpop.f32.mrb[95].mxu0  ;;  %v13005_v6 = vsel %vm1600_vm8, %v4145_v57, %v4146_v3  ;;  %v13009_v28 = vsel %vm4088_vm4, %v4072_v13, %v4104_v31  ;;  %v4148_v35 = vrot.slane %v12993_v27, 7 }
0x1581   : > { %v13011_v23 = vsel %vm4086_vm5, %v4070_v0, %v4102_v39  ;;  %v4149_v57 = vrot.slane %v13009_v28, 7  ;;  %v4191_v9 = vrot.slane %v12953_v2, 1  ;;  %v4194_v31 = vrot.slane %v12984_v60, 1 }
0x1582   : > { %v4147_v40 = vrot.slane %v13011_v23, 7  ;;  %v4842_v13 = vrot.slane %v12997_v10, 7  ;;  %v4197_v44 = vrot.slane %v13009_v28, 1 }
0x1583   : > { %v4165_v39 = vsel %vm1600_vm8, %v4149_v57, %v4134_v24  ;;  %v13036_v48 = vsel %vm1600_vm8, %v4148_v35, %v4149_v57 }
0x1584   : > { %v13032_v34 = vsel %vm1600_vm8, %v4146_v3, %v4147_v40  ;;  %v13040_v26 = vsel %vm1600_vm8, %v4147_v40, %v4148_v35  ;;  %v4843_v0 = vmul.f32 %v11621_v25, %v4842_v13  ;;  %v4166_v30 = vmul.f32 %v11621_v25, %v4165_v39  ;;  %v11202_v3 = vld [vmem:[%s14853_s4 + $0x24] sm:$0xff]  }
0x1585   : > { %v4244_v24 = vpack.c.bf16 %v13032_v34, %v13005_v6  ;;  %v4245_v57 = vpack.c.bf16 %v13036_v48, %v13040_v26  ;;  %v4236_v40 = vpack.c.bf16 %v13011_v23, %v12984_v60  ;;  %v4237_v35 = vpack.c.bf16 %v13009_v28, %v12993_v27 }
0x1586   : > { %v4512_v13 = vpack.c.bf16 %v12877_v43, %v12889_v17  ;;  %v4195_v39 = vrot.slane %v13011_v23, 1  ;;  %v4847_v37 = vpack.c.bf16 %v4843_v0, %v4843_v0  ;;  %v4238_v6 = vpack.c.bf16 %v12871_v18, %v4166_v30 }
0x1587   : > { %v13064_v34 = vsel %vm291_vm7, %v4187_v55, %v4188_v12  ;;  %v13070_v26 = vsel %vm291_vm7, %v4186_v62, %v4187_v55  ;;  %v13076_v48 = vsel %vm291_vm7, %v4189_v49, %v4190_v56  ;;  %v13084_v30 = vsel %vm291_vm7, %v4188_v12, %v4189_v49  ;;  %v11207_v55 = vld [vmem:[%s14854_s5 + $0x58] sm:$0xff]  }
0x1588   : > { %v13088_v18 = vsel %vm291_vm7, %v4191_v9, %v4192_v59  ;;  %v4196_v62 = vrot.slane %v12993_v27, 1  ;;  %10355 = vmatprep.mubr.msk.bf16.mxu1 %vm542_vm6, %v4238_v6  ;;  %10426 = vmatmul.mubr.msk.bf16.vlgmr.msra.gmra.mrb[96].mxu0 %vm542_vm6, %v4847_v37  ;;  %v4514_v0 = vpack.c.bf16 %v13064_v34, %v13070_v26  ;;  %v4515_v12 = vpack.c.bf16 %v13076_v48, %v13084_v30  ;;  %v11203_v37 = vld [vmem:[%s14853_s4 + $0x2c] sm:$0xff]   ;;  %v11205_v30 = vld [vmem:[%s14853_s4 + $0x3c] sm:$0xff]  }
0x1589   : > { %v4204_v49 = vsel %vm291_vm7, %v4190_v56, %v4191_v9  ;;  %10356 = vmatmul.mubr.msk.bf16.vlgmr.msra.gmra.mrb[52].mxu1 %vm542_vm6, %v4239_v1  ;;  %10430 = vmatpush3.bf16.msra.mxu0 %v11202_v3  ;;  %v4201_v34 = vsel %vm291_vm7, %v4193_v11, %v4194_v31  ;;  %v4202_v26 = vsel %vm291_vm7, %v4192_v59, %v4193_v11  ;;  %v11208_v11 = vld [vmem:[%s14854_s5 + $0x60] sm:$0xff]   ;;  %v4844_v3 = vrot.slane %v12997_v10, 1 }
0x158a   : > { %v4516_v6 = vpack.c.bf16 %v13088_v18, %v4204_v49  ;;  %v14972_v56 = vpack.c.bf16 %v12947_v14, %v12918_v61  ;;  %10431 = vmatprep.subr.bf16.mxu0 %v14958_v54  ;;  %v4517_v29 = vpack.c.bf16 %v4201_v34, %v4202_v26  ;;  %v4199_v52 = vsel %vm291_vm7, %v4195_v39, %v4196_v62  ;;  %v14975_v18 = vld [vmem:[#allocation8_spill] sm:$0xff] }
0x158b   : > { %v4200_v1 = vsel %vm291_vm7, %v4194_v31, %v4195_v39  ;;  %10433 = vmatprep.mubr.msk.bf16.mxu0 %vm11453_vm1, %v14958_v54  ;;  %10372 = vmatpush3.bf16.msra.mxu1 %v12810_v58  ;;  %v4198_v61 = vsel %vm291_vm7, %v4196_v62, %v4197_v44  ;;  %v14973_v14 = vrot.slane %v12833_v47, 1  ;;  %v11204_v58 = vld [vmem:[%s14853_s4 + $0x34] sm:$0xff]   ;;  %v4846_v39 = vpack.c.bf16 %v12997_v10, %v12997_v10 }
0x158c   : > { %10359 = vmatprep.mubr.msk.bf16.mxu1 %vm542_vm6, %v14972_v56  ;;  %v4518_v59 = vpack.c.bf16 %v4199_v52, %v4200_v1  ;;  %10373 = vmatprep.subr.bf16.mxu1 %v11207_v55  ;;  %v14974_v48 = vpack.c.bf16 %v12930_v22, %v12967_v19  ;;  %v4845_v62 = vmul.f32 %v14975_v18, %v4844_v3  ;;  %v11210_v3 = vld [vmem:[%s14854_s5] sm:$0xff]  }
0x158d   : > { %v4213_v9 = vsel %vm291_vm7, %v4197_v44, %v14973_v14  ;;  %10432 = vmatpush3.bf16.msra.mxu0 %v11203_v37  ;;  %v14976_v10 = vpack.c.bf16 %v12971_v15, %v12975_v53  ;;  %v14977_v19 = vpack.c.bf16 %v12988_v20, %v13001_v4  ;;  %v14978_v15 = vpack.c.bf16 %v12845_v51, %v12833_v47  ;;  %v11209_v53 = vld [vmem:[%s14854_s5 + $0x68] sm:$0xff]  }
0x158e   : > { %v4229_v31 = vmul.f32 %v12208_v36, %v4213_v9  ;;  %10437 = vmatprep.subr.bf16.mxu0 %v14958_v54  ;;  %v4958_v22 = vpack.c.bf16 %v4845_v62, %v4845_v62  ;;  %v14979_v20 = vpack.c.bf16 %v12837_v63, %v12829_v21  ;;  %v14980_v4 = vpack.c.bf16 %v12922_v42, %v12898_v32 }
0x158f   : > { %10374 = vmatpush3.bf16.msra.mxu1 %v11207_v55  ;;  %v14981_v47 = vpack.c.bf16 %v12900_v46, %v12882_v50  ;;  %v14982_v21 = vpack.c.bf16 %v12953_v2, %v12941_v41  ;;  %v14983_v63 = vpack.c.bf16 %v12951_v45, %v12939_v7  ;;  %v14984_v51 = vpack.c.bf16 %v12912_v5, %v12855_v33  ;;  %v9404_v41 = vld [vmem:[%s14855_s6] ss:$0 sm:$0xff] }
0x1590   : > { %v4519_v44 = vpack.c.bf16 %v4229_v31, %v4198_v61  ;;  %10434 = vmatmul.mubr.msk.bf16.vlgmr.msra.gmra.mrb[100].mxu0 %vm542_vm6, %v4846_v39  ;;  %10391 = vmatprep.subr.bf16.mxu1 %v11208_v11  ;;  %v11211_v39 = vld [vmem:[%s14854_s5 + $0x8] sm:$0xff]  }
0x1591   : > { %10360 = vmatmul.mubr.msk.bf16.gmra.mrb[56].mxu1 %vm542_vm6, %v14974_v48  ;;  %10438 = vmatpush3.bf16.msra.mxu0 %v11204_v58 }
0x1592   : > { %10363 = vmatprep.mubr.msk.bf16.mxu1 %vm542_vm6, %v14976_v10  ;;  %10439 = vmatprep.subr.bf16.mxu0 %v14958_v54  ;;  %v9405_v10 = vld [vmem:[%s14855_s6 + $0x1] ss:$0 sm:$0xff] }
0x1593   : > { %10441 = vmatprep.mubr.msk.bf16.mxu0 %vm11453_vm1, %v14958_v54 }
0x1595   : > { %10440 = vmatpush3.bf16.msra.mxu0 %v11205_v30 }
0x1596   : > { %10445 = vmatprep.subr.bf16.mxu0 %v14958_v54 }
0x1598   : > { %10442 = vmatmul.mubr.msk.bf16.vlgmr.msra.gmra.mrb[104].mxu0 %vm542_vm6, %v4958_v22 }
0x1599   : > { %10364 = vmatmul.mubr.msk.bf16.gmra.mrb[60].mxu1 %vm542_vm6, %v14977_v19  ;;  %10449 = vmatprep.mubr.msk.bf16.mxu0 %vm11453_vm1, %v14958_v54  ;;  %v9406_v19 = vld [vmem:[%s14855_s6 + $0x2] ss:$0 sm:$0xff] }
0x159a   : > { %10367 = vmatprep.mubr.msk.bf16.mxu1 %vm542_vm6, %v4244_v24  ;;  %10446 = vmatpush3.bf16.msra.mxu0 %v11210_v3 }
0x159b   : > { %10447 = vmatprep.subr.bf16.mxu0 %v14958_v54 }
0x159e   : > { %10448 = vmatpush3.bf16.msra.mxu0 %v11211_v39 }
0x159f   : > { %10453 = vmatprep.subr.bf16.mxu0 %v14958_v54 }
0x15a1   : > { %10368 = vmatmul.mubr.msk.bf16.gmra.mrb[64].mxu1 %vm542_vm6, %v4245_v57 }
0x15a2   : > { %10375 = vmatprep.mubr.msk.bf16.mxu1 %vm542_vm6, %v14978_v15 }
0x15a9   : > { %10376 = vmatmul.mubr.msk.bf16.vlgmr.msra.gmra.mrb[52].mxu1 %vm542_vm6, %v14979_v20 }
0x15aa   : > { %10379 = vmatprep.mubr.msk.bf16.mxu1 %vm542_vm6, %v14980_v4  ;;  %10392 = vmatpush3.bf16.msra.mxu1 %v11208_v11  ;;  %v11212_v4 = vld [vmem:[%s14853_s4 + $0x44] sm:$0xff]  }
0x15ab   : > { %10393 = vmatprep.subr.bf16.mxu1 %v11209_v53 }
0x15ae   : > { %10394 = vmatpush3.bf16.msra.mxu1 %v11209_v53 }
0x15af   : > { %10493 = vmatprep.subr.bf16.mxu1 %v14958_v54 }
0x15b1   : > { %10380 = vmatmul.mubr.msk.bf16.gmra.mrb[56].mxu1 %vm542_vm6, %v14981_v47 }
0x15b2   : > { %10383 = vmatprep.mubr.msk.bf16.mxu1 %vm542_vm6, %v14982_v21 }
0x15b9   : > { %10384 = vmatmul.mubr.msk.bf16.gmra.mrb[60].mxu1 %vm542_vm6, %v14983_v63  ;;  %v11213_v63 = vld [vmem:[%s14853_s4 + $0x4c] sm:$0xff]  }
0x15ba   : > { %10387 = vmatprep.mubr.msk.bf16.mxu1 %vm542_vm6, %v4236_v40 }
0x15c1   : > { %10388 = vmatmul.mubr.msk.bf16.gmra.mrb[64].mxu1 %vm542_vm6, %v4237_v35 }
0x15c2   : > { %10395 = vmatprep.mubr.msk.bf16.mxu1 %vm542_vm6, %v4512_v13 }
0x15c9   : > { %10396 = vmatmul.mubr.msk.bf16.vlgmr.msra.gmra.mrb[52].mxu1 %vm542_vm6, %v14984_v51 }
0x15ca   : > { %10399 = vmatprep.mubr.msk.bf16.mxu1 %vm542_vm6, %v4514_v0 }
0x15d1   : > { %10400 = vmatmul.mubr.msk.bf16.gmra.mrb[56].mxu1 %vm542_vm6, %v4515_v12 }
0x15d2   : > { %10403 = vmatprep.mubr.msk.bf16.mxu1 %vm542_vm6, %v4516_v6 }
0x15d9   : > { %10404 = vmatmul.mubr.msk.bf16.gmra.mrb[60].mxu1 %vm542_vm6, %v4517_v29 }
0x15da   : > { %10407 = vmatprep.mubr.msk.bf16.mxu1 %vm542_vm6, %v4518_v59 }
0x15e1   : > { %10408 = vmatmul.mubr.msk.bf16.gmra.mrb[64].mxu1 %vm542_vm6, %v4519_v44 }
0x15e2   : > { %10497 = vmatprep.mubr.msk.bf16.mxu1 %vm11453_vm1, %v14958_v54 }
0x165b   : > { %v4897_v43 = vpop.f32.mrb[96].mxu0 }
0x165c   : > { %v10427_v50 = vpop.f32.mrb[97].mxu0 }
0x165d   : > { %v4900_v33 = vpop.f32.mrb[98].mxu0 }
0x165e   : > { %v10428_v17 = vpop.f32.mrb[99].mxu0  ;;  %v11215_v33 = vld [vmem:[%s14853_s4 + $0x5c] sm:$0xff]  }
0x165f   : > { %v11216_v17 = vld [vmem:[%s14853_s4 + $0x64] sm:$0xff]  }
0x1663   : > { %v4952_v32 = vpop.f32.mrb[100].mxu0 }
0x1664   : > { %v4953_v46 = vadd.f32 %v4952_v32, %v4897_v43  ;;  %v10435_v5 = vpop.f32.mrb[101].mxu0  ;;  %v11214_v43 = vld [vmem:[%s14853_s4 + $0x54] sm:$0xff]  }
0x1665   : > { %v4955_v42 = vpop.f32.mrb[102].mxu0 }
0x1666   : > { %v10436_v7 = vpop.f32.mrb[103].mxu0 }
0x1667   : > { %v11218_v7 = vld [vmem:[%s14853_s4 + $0x94] sm:$0xff]  }
0x1668   : > { %10494 = vmatpush3.bf16.msra.mxu1 %v11218_v7 }
0x1669   : > { %10495 = vmatprep.subr.bf16.mxu1 %v14958_v54 }
0x166b   : > { %v5008_v45 = vpop.f32.mrb[104].mxu0 }
0x166c   : > { %v5014_v2 = vadd.f32 %v5008_v45, %v4953_v46  ;;  %v10443_v60 = vpop.f32.mrb[105].mxu0  ;;  %v11217_v46 = vld [vmem:[%s14853_s4 + $0x6c] sm:$0xff]   ;;  %v9407_v45 = vld [vmem:[%s14855_s6 + $0x3] ss:$0 sm:$0xff] }
0x166d   : > { %v5011_v27 = vpop.f32.mrb[106].mxu0 }
0x166e   : > { %v5019_v28 = vadd.f32 %v9404_v41, %v5014_v2  ;;  %v10444_v23 = vpop.f32.mrb[107].mxu0  ;;  %v11219_v41 = vld [vmem:[%s14853_s4 + $0x9c] sm:$0xff]  }
0x166f   : > { %10496 = vmatpush3.bf16.msra.mxu1 %v11219_v41  ;;  %v9422_v41 = vld [vmem:[%s14855_s6 + $0x6] ss:$0 sm:$0xff] }
0x1670   : > { %v5020_v24 = vmax.f32 %v5019_v28, 0.0 }
0x1672   : > { %v5021_v57 = vmul.f32 %v12937_v38, %v5020_v24 }
0x1674   : > { %v5024_v40 = vsel %vm542_vm6, %v5021_v57, 0.0 }
0x1675   : > { %5025 = vadd.xlane.f32.xlu1 %v5024_v40 }
0x169c   : > { %v13226_v35 = vpop.f32.mrb[52].mxu1 }
0x169d   : > { %v13228_v13 = vpop.f32.mrb[53].mxu1 }
0x169e   : > { %v13230_v55 = vpop.f32.mrb[54].mxu1 }
0x169f   : > { %v13232_v0 = vpop.f32.mrb[55].mxu1 }
0x16a4   : > { %v13234_v12 = vpop.f32.mrb[56].mxu1 }
0x16a5   : > { %v13236_v49 = vpop.f32.mrb[57].mxu1 }
0x16a6   : > { %v13238_v37 = vpop.f32.mrb[58].mxu1 }
0x16a7   : > { %v13240_v6 = vpop.f32.mrb[59].mxu1 }
0x16ac   : > { %v13242_v34 = vpop.f32.mrb[60].mxu1 }
0x16ad   : > { %v13244_v26 = vpop.f32.mrb[61].mxu1 }
0x16ae   : > { %v13246_v56 = vpop.f32.mrb[62].mxu1 }
0x16af   : > { %v13248_v29 = vpop.f32.mrb[63].mxu1 }
0x16b4   : > { %v13250_v52 = vpop.f32.mrb[64].mxu1 }
0x16b5   : > { %v13252_v1 = vpop.f32.mrb[65].mxu1 }
0x16b6   : > { %v13254_v59 = vpop.f32.mrb[66].mxu1 }
0x16b7   : > { %v13256_v61 = vpop.f32.mrb[67].mxu1 }
0x1702   : > { %v5026_v14 = vpop.xlane.xlu1 %5025 }
0x1703   : > { %v5027_v9 = vmul.f32 0.03125, %v5026_v14 }
0x1705   : > { %v5028_v11 = vsub.f32 %v5021_v57, %v5027_v9 }
0x1707   : > { %v5029_v31 = vmul.f32 %v5028_v11, %v5028_v11 }
0x1709   : > { %v5030_v58 = vsel %vm542_vm6, %v5029_v31, 0.0 }
0x170a   : > { %5031 = vadd.xlane.f32.xlu0 %v5030_v58 }
0x1797   : > { %v5032_v44 = vpop.xlane.xlu0 %5031 }
0x1798   : > { %v5033_v48 = vmul.f32 0.03125, %v5032_v44 }
0x179a   : > { %v5034_v30 = vadd.f32 1e-05, %v5033_v48  ;;  %v9420_v48 = vld [vmem:[%s14855_s6 + $0x4] ss:$0 sm:$0xff] }
0x179c   : > { %11292 = vrsqrt.f32 %v5034_v30 }
0x17a6   : > { %v11293_v62 = vpop.eup %11292 }
0x17a7   : > { %v5036_v22 = vmul.f32 %v11293_v62, %v5028_v11 }
0x17a9   : > { %v5041_v15 = vmul.f32 %v9405_v10, %v5036_v22 }
0x17ab   : > { %v5046_v53 = vadd.f32 %v9406_v19, %v5041_v15 }
0x17ad   : > { %v5047_v20 = vmul.f32 %v12937_v38, %v5046_v53 }
0x17af   : > { %v5052_v47 = vpack.c.bf16 %v5047_v20, %v5047_v20  ;;  %v5127_v21 = vrot.slane %v5047_v20, 7  ;;  %v5129_v32 = vrot.slane %v5047_v20, 1 }
0x17b1   : > { %10450 = vmatmul.mubr.msk.bf16.vlgmr.msra.gmra.mrb[108].mxu0 %vm542_vm6, %v5052_v47  ;;  %v5128_v51 = vmul.f32 %v11621_v25, %v5127_v21  ;;  %v5130_v5 = vmul.f32 %v14975_v18, %v5129_v32 }
0x17b2   : > { %10454 = vmatpush3.bf16.msra.mxu0 %v11212_v4  ;;  %10457 = vmatprep.mubr.msk.bf16.mxu0 %vm11453_vm1, %v14958_v54 }
0x17b3   : > { %10455 = vmatprep.subr.bf16.mxu0 %v14958_v54  ;;  %v5131_v50 = vpack.c.bf16 %v5128_v51, %v5128_v51  ;;  %v5239_v42 = vpack.c.bf16 %v5130_v5, %v5130_v5 }
0x17b6   : > { %10456 = vmatpush3.bf16.msra.mxu0 %v11213_v63 }
0x17b7   : > { %10461 = vmatprep.subr.bf16.mxu0 %v14958_v54 }
0x17b9   : > { %10458 = vmatmul.mubr.msk.bf16.vlgmr.msra.gmra.mrb[112].mxu0 %vm542_vm6, %v5131_v50  ;;  %v11220_v50 = vld [vmem:[%s14853_s4 + $0x74] sm:$0xff]  }
0x17ba   : > { %10462 = vmatpush3.bf16.msra.mxu0 %v11214_v43  ;;  %10465 = vmatprep.mubr.msk.bf16.mxu0 %vm11453_vm1, %v14958_v54 }
0x17bb   : > { %10463 = vmatprep.subr.bf16.mxu0 %v14958_v54 }
0x17be   : > { %10464 = vmatpush3.bf16.msra.mxu0 %v11215_v33  ;;  %v11221_v33 = vld [vmem:[%s14853_s4 + $0x7c] sm:$0xff]  }
0x17bf   : > { %10469 = vmatprep.subr.bf16.mxu0 %v14958_v54 }
0x17c1   : > { %10466 = vmatmul.mubr.msk.bf16.vlgmr.msra.gmra.mrb[116].mxu0 %vm542_vm6, %v5052_v47 }
0x17c2   : > { %10470 = vmatpush3.bf16.msra.mxu0 %v11216_v17  ;;  %10473 = vmatprep.mubr.msk.bf16.mxu0 %vm11453_vm1, %v14958_v54 }
0x17c3   : > { %10471 = vmatprep.subr.bf16.mxu0 %v14958_v54 }
0x17c6   : > { %10472 = vmatpush3.bf16.msra.mxu0 %v11217_v46 }
0x17c7   : > { %10477 = vmatprep.subr.bf16.mxu0 %v14958_v54 }
0x17c9   : > { %10474 = vmatmul.mubr.msk.bf16.vlgmr.msra.gmra.mrb[120].mxu0 %vm542_vm6, %v5239_v42  ;;  %v9421_v42 = vld [vmem:[%s14855_s6 + $0x5] ss:$0 sm:$0xff] }
0x17ca   : > { %10481 = vmatprep.mubr.msk.bf16.mxu0 %vm11453_vm1, %v14958_v54  ;;  %10478 = vmatpush3.bf16.msra.mxu0 %v11220_v50 }
0x17cb   : > { %10479 = vmatprep.subr.bf16.mxu0 %v14958_v54 }
0x17ce   : > { %10480 = vmatpush3.bf16.msra.mxu0 %v11221_v33 }
0x17cf   : > { %10485 = vmatprep.subr.bf16.mxu0 %v14958_v54 }
0x1884   : > { %v5107_v2 = vpop.f32.mrb[108].mxu0 }
0x1885   : > { %v5108_v60 = vadd.f32 %v9407_v45, %v5107_v2  ;;  %v10451_v27 = vpop.f32.mrb[109].mxu0 }
0x1886   : > { %v5110_v28 = vpop.f32.mrb[110].mxu0 }
0x1887   : > { %v5113_v23 = vmul.f32 %v12937_v38, %v5108_v60  ;;  %v10452_v24 = vpop.f32.mrb[111].mxu0 }
0x1889   : > { %v5719_v57 = vpack.c.bf16 %v5113_v23, %v5113_v23 }
0x188b   : > { %11056 = vmatprep.subr.msk.bf16.mxu1 %vm465_vm0, %v5719_v57 }
0x188c   : > { %v5181_v40 = vpop.f32.mrb[112].mxu0 }
0x188d   : > { %v10459_v14 = vpop.f32.mrb[113].mxu0 }
0x188e   : > { %v5184_v9 = vpop.f32.mrb[114].mxu0 }
0x188f   : > { %v10460_v11 = vpop.f32.mrb[115].mxu0 }
0x1890   : > { %v5727_v11 = vsel %vm465_vm0, %v5719_v57, 0  ;;  %vm5613_vm0 = vcmp.gt.f32.partialorder %v12937_v38, 0.0 }
0x1894   : > { %v5233_v31 = vpop.f32.mrb[116].mxu0 }
0x1895   : > { %v5234_v58 = vadd.f32 %v5233_v31, %v5181_v40  ;;  %v10467_v3 = vpop.f32.mrb[117].mxu0  ;;  %v11222_v40 = vld [vmem:[%s14853_s4 + $0x84] sm:$0xff]   ;;  %v11223_v31 = vld [vmem:[%s14853_s4 + $0x8c] sm:$0xff]  }
0x1896   : > { %v5236_v39 = vpop.f32.mrb[118].mxu0 }
0x1897   : > { %v10468_v44 = vpop.f32.mrb[119].mxu0 }
0x189c   : > { %v5289_v30 = vpop.f32.mrb[120].mxu0 }
0x189d   : > { %v5295_v62 = vadd.f32 %v5289_v30, %v5234_v58  ;;  %v10475_v10 = vpop.f32.mrb[121].mxu0 }
0x189e   : > { %v5292_v22 = vpop.f32.mrb[122].mxu0 }
0x189f   : > { %v5300_v19 = vadd.f32 %v9420_v48, %v5295_v62  ;;  %v10476_v15 = vpop.f32.mrb[123].mxu0 }
0x18a0   : > { %v9432_v15 = vld [vmem:[%s14855_s6 + $0x7] ss:$0 sm:$0xff] }
0x18a1   : > { %v5301_v53 = vmax.f32 %v5300_v19, 0.0 }
0x18a3   : > { %v5302_v20 = vmul.f32 %v12937_v38, %v5301_v53 }
0x18a5   : > { %v5305_v4 = vsel %vm542_vm6, %v5302_v20, 0.0 }
0x18a6   : > { %5306 = vadd.xlane.f32.xlu0 %v5305_v4 }
0x1933   : > { %v5307_v47 = vpop.xlane.xlu0 %5306 }
0x1934   : > { %v5308_v21 = vmul.f32 0.03125, %v5307_v47 }
0x1936   : > { %v5309_v63 = vsub.f32 %v5302_v20, %v5308_v21 }
0x1938   : > { %v5310_v51 = vmul.f32 %v5309_v63, %v5309_v63 }
0x193a   : > { %v5311_v43 = vsel %vm542_vm6, %v5310_v51, 0.0 }
0x193b   : > { %5312 = vadd.xlane.f32.xlu1 %v5311_v43 }
0x19c8   : > { %v5313_v17 = vpop.xlane.xlu1 %5312 }
0x19c9   : > { %v5314_v32 = vmul.f32 0.03125, %v5313_v17 }
0x19cb   : > { %v5315_v46 = vadd.f32 1e-05, %v5314_v32 }
0x19cd   : > { %11294 = vrsqrt.f32 %v5315_v46  ;;  %v11224_v46 = vld [vmem:[%s14854_s5 + $0x10] sm:$0xff]  }
0x19d7   : > { %v11295_v5 = vpop.eup %11294 }
0x19d8   : > { %v5317_v7 = vmul.f32 %v11295_v5, %v5309_v63  ;;  %v11225_v5 = vld [vmem:[%s14854_s5 + $0x18] sm:$0xff]  }
0x19da   : > { %v5322_v45 = vmul.f32 %v9421_v42, %v5317_v7 }
0x19dc   : > { %v5327_v2 = vadd.f32 %v9422_v41, %v5322_v45 }
0x19de   : > { %v5328_v60 = vmul.f32 %v12937_v38, %v5327_v2  ;;  %v9433_v2 = vld [vmem:[%s14855_s6 + $0x8] ss:$0 sm:$0xff] }
0x19e0   : > { %v5342_v27 = vrot.slane %v5328_v60, 7  ;;  %v5344_v28 = vrot.slane %v5328_v60, 1 }
0x19e2   : > { %v5343_v23 = vmul.f32 %v11621_v25, %v5342_v27  ;;  %v5345_v24 = vmul.f32 %v14975_v18, %v5344_v28  ;;  %v5346_v18 = vpack.c.bf16 %v5328_v60, %v5328_v60  ;;  %v9434_v27 = vld [vmem:[%s14855_s6 + $0x9] ss:$0 sm:$0xff] }
0x19e4   : > { %v5347_v14 = vpack.c.bf16 %v5343_v23, %v5343_v23  ;;  %v5458_v9 = vpack.c.bf16 %v5345_v24, %v5345_v24 }
0x19e6   : > { %10482 = vmatmul.mubr.msk.bf16.vlgmr.msra.gmra.mrb[124].mxu0 %vm542_vm6, %v5347_v14  ;;  %10498 = vmatmul.mubr.msk.bf16.vlgmr.msra.gmra.mrb[68].mxu1 %vm542_vm6, %v5458_v9  ;;  %v9435_v14 = vld [vmem:[%s14855_s6 + $0xa] ss:$0 sm:$0xff] }
0x19e7   : > { %10510 = vmatpush3.bf16.msra.mxu1 %v5727_v11  ;;  %10486 = vmatpush3.bf16.msra.mxu0 %v11222_v40 }
0x19e8   : > { %10487 = vmatprep.subr.bf16.mxu0 %v14958_v54  ;;  %10489 = vmatprep.mubr.msk.bf16.mxu0 %vm11453_vm1, %v14958_v54 }
0x19eb   : > { %10488 = vmatpush3.bf16.msra.mxu0 %v11223_v31 }
0x19ec   : > { %10501 = vmatprep.subr.bf16.mxu0 %v14958_v54 }
0x19ee   : > { %10490 = vmatmul.mubr.msk.bf16.vlgmr.msra.gmra.mrb[128].mxu0 %vm542_vm6, %v5346_v18 }
0x19ef   : > { %10505 = vmatprep.mubr.msk.bf16.mxu0 %vm11453_vm1, %v14958_v54  ;;  %10502 = vmatpush3.bf16.msra.mxu0 %v11224_v46 }
0x19f0   : > { %10503 = vmatprep.subr.bf16.mxu0 %v14958_v54 }
0x19f3   : > { %10504 = vmatpush3.bf16.msra.mxu0 %v11225_v5 }
0x1ab9   : > { %v5397_v57 = vpop.f32.mrb[124].mxu0  ;;  %v5508_v58 = vpop.f32.mrb[68].mxu1 }
0x1aba   : > { %v10483_v3 = vpop.f32.mrb[125].mxu0  ;;  %v10499_v39 = vpop.f32.mrb[69].mxu1 }
0x1abb   : > { %v5400_v44 = vpop.f32.mrb[126].mxu0  ;;  %v5511_v48 = vpop.f32.mrb[70].mxu1 }
0x1abc   : > { %v10484_v30 = vpop.f32.mrb[127].mxu0  ;;  %v10500_v62 = vpop.f32.mrb[71].mxu1 }
0x1ac1   : > { %v5452_v10 = vpop.f32.mrb[128].mxu0 }
0x1ac2   : > { %v5453_v22 = vadd.f32 %v5452_v10, %v5397_v57  ;;  %v10491_v19 = vpop.f32.mrb[129].mxu0 }
0x1ac3   : > { %v5455_v53 = vpop.f32.mrb[130].mxu0 }
0x1ac4   : > { %v5514_v20 = vadd.f32 %v5508_v58, %v5453_v22  ;;  %v10492_v4 = vpop.f32.mrb[131].mxu0 }
0x1ac6   : > { %v5519_v47 = vadd.f32 %v9432_v15, %v5514_v20 }
0x1ac8   : > { %v5520_v21 = vmax.f32 %v5519_v47, 0.0  ;;  %v14985_v47 = vld [vmem:[#allocation11_spill] sm:$0xff] }
0x1aca   : > { %v5521_v63 = vmul.f32 %v12937_v38, %v5520_v21  ;;  %v14986_v21 = vld [vmem:[#allocation12_spill] sm:$0xff] }
0x1acc   : > { %v5524_v51 = vsel %vm542_vm6, %v5521_v63, 0.0 }
0x1acd   : > { %5525 = vadd.xlane.f32.xlu0 %v5524_v51  ;;  %v14988_v51 = vld [vmem:[#allocation10_spill] sm:$0xff] }
0x1b5a   : > { %v5526_v43 = vpop.xlane.xlu0 %5525 }
0x1b5b   : > { %v5527_v50 = vmul.f32 0.03125, %v5526_v43 }
0x1b5d   : > { %v5528_v33 = vsub.f32 %v5521_v63, %v5527_v50  ;;  %v14987_v63 = vld [vmem:[#allocation9_spill] sm:$0xff] }
0x1b5f   : > { %v5529_v17 = vmul.f32 %v5528_v33, %v5528_v33 }
0x1b61   : > { %v5530_v32 = vsel %vm542_vm6, %v5529_v17, 0.0 }
0x1b62   : > { %5531 = vadd.xlane.f32.xlu1 %v5530_v32 }
0x1bef   : > { %v5532_v42 = vpop.xlane.xlu1 %5531 }
0x1bf0   : > { %v5533_v7 = vmul.f32 0.03125, %v5532_v42 }
0x1bf2   : > { %v5534_v41 = vadd.f32 1e-05, %v5533_v7 }
0x1bf4   : > { %11296 = vrsqrt.f32 %v5534_v41 }
0x1bfe   : > { %v11297_v45 = vpop.eup %11296 }
0x1bff   : > { %v5536_v60 = vmul.f32 %v11297_v45, %v5528_v33 }
0x1c01   : > { %v5541_v28 = vmul.f32 %v9433_v2, %v5536_v60 }
0x1c03   : > { %v5546_v23 = vadd.f32 %v9434_v27, %v5541_v28 }
0x1c05   : > { %v5547_v24 = vmul.f32 %v12937_v38, %v5546_v23 }
0x1c07   : > { %v5552_v40 = vpack.c.bf16 %v5547_v24, %v5547_v24 }
0x1c09   : > { %10506 = vmatmul.mubr.msk.bf16.vlgmr.msra.gmra.mrb[132].mxu0 %vm542_vm6, %v5552_v40 }
0x1cdc   : > { %v5607_v9 = vpop.f32.mrb[132].mxu0 }
0x1cdd   : > { %v5608_v11 = vadd.f32 %v9435_v14, %v5607_v9  ;;  %v10507_v31 = vpop.f32.mrb[133].mxu0 }
0x1cde   : > { %v5610_v18 = vpop.f32.mrb[134].mxu0 }
0x1cdf   : > { %v5614_v57 = vsel %vm5613_vm0, %v5608_v11, 0.0  ;;  %v10508_v58 = vpop.f32.mrb[135].mxu0 }
0x1ce0   : > { %v5615_v3 = vmul.f32 1.442695, %v5614_v57 }
0x1ce2   : > { %11298 = vpow2.f32 %v5615_v3 }
0x1cec   : > { %v11299_v39 = vpop.eup %11298 }
0x1ced   : > { %v5617_v44 = vmul.f32 %v11299_v39, %v12937_v38  ;;  %v14990_v39 = vstv %s12819_s25  ;;  %s9063_s25 = sshll.u32 %s14780_s13, 4  ;;  %s14801_s25 = int_to_ptr.vmem [resolvable:$true] %s9063_s25 }
0x1cee   : > { %s11384_s17 = scalar_lea.vmem %s14801_s25, 32  ;;  %p11391_p5 = scmp.lt.s32.totalorder %s14801_s25, %s11389_s26 }
0x1cef   : > { %v5618_v48 = vceil.f32 %v5617_v44  ;;  %p11385_p2 = scmp.ne.s32.totalorder %s14801_s25, %s11384_s17  ;;  %p11392_p6 = scmp.lt.s32.totalorder %s11390_s27, %s11384_s17 }
0x1cf1   : > { %5621 = vperm.xlu0 %11104, %v5618_v48   ;;  %v5640_v30 = vsel %vm1327_vm9, %v5618_v48, 0.0  ;;  %vm14989_vm9 = vcmp.lt.s32.totalorder %v11609_v16, %v11583_v8  ;;  %v11274_v16 = vld [vmem:[%s14854_s5 + $0x60] sm:$0xff]   ;;  %p11386_p3 = pnand %p11385_p2, %p11540_p10  ;;  %p11393_p7 = por %p11392_p6, %p11391_p5 }
0x1cf2   : > { %v5641_v62 = vrot.slane %v5640_v30, 4 }
0x1cf3   : > { %p11387_p4 = pneg %p11386_p3 }
0x1cf4   : > { %v5642_v10 = vadd.f32 %v5641_v62, %v5640_v30 }
0x1cf5   : > { %p11394_p8 = pnand %p11393_p7, %p11387_p4 }
0x1cf6   : > { %v5643_v22 = vrot.slane %v5642_v10, 2 }
0x1cf8   : > { %v5644_v19 = vadd.f32 %v5643_v22, %v5642_v10 }
0x1cfa   : > { %v5645_v15 = vrot.slane %v5644_v19, 1 }
0x1cfc   : > { %v5646_v53 = vadd.f32 %v5645_v15, %v5644_v19 }
0x1cfe   : > { %v5647_v20 = vmax.f32 %v5646_v53, 1.0 }
0x1d00   : > { %v5648_v4 = vmin.f32 %v5647_v20, 32.0 }
0x1d02   : > { %vm5649_vm1 = vcmp.lt.f32.partialorder %v14985_v47, %v5648_v4  ;;  %vm5650_vm10 = vcmp.lt.f32.partialorder %v14986_v21, %v5648_v4  ;;  %vm5651_vm11 = vcmp.lt.f32.partialorder %v14987_v63, %v5648_v4  ;;  %vm5652_vm12 = vcmp.lt.f32.partialorder %v14988_v51, %v5648_v4 }
0x1d03   : > { %v9439_v38 = vsel %vm5649_vm1, 1.0, %v14958_v54  ;;  %v9440_v43 = vsel %vm5650_vm10, 1.0, %v14958_v54  ;;  %v9441_v33 = vsel %vm5651_vm11, 1.0, %v14958_v54  ;;  %v9442_v17 = vsel %vm5652_vm12, 1.0, %v14958_v54 }
0x1d04   : > { %v11116_v50 = vpack.i.bf16 %v9440_v43, %v9439_v38  ;;  %v11121_v32 = vpack.i.bf16 %v9442_v17, %v9441_v33  ;;  %vm4751_vm11 = vcmp.lt.s32.totalorder %v11583_v8, %v14990_v39 }
0x1d05   : > { %v9389_v20 = vsel %vm4751_vm11, 1.0, %v14958_v54 }
0x1d06   : > { %11117 = vperm.xlu1 %11105, %v11116_v50  }
0x1d0a   : > { %11122 = vperm.xlu1 %11105, %v11121_v32  }
0x1d70   : > { %v5622_v46 = vpop.permute.xlu0 %5621 }
0x1d71   : > { %v5624_v5 = vsel %vm1303_vm14, %v5622_v46, 0.0  ;;  %v5632_v42 = vsel %vm14989_vm9, %v5622_v46, 0.0 }
0x1d72   : > { %v5625_v7 = vsel %vm1310_vm2, %v5624_v5, 0.0  ;;  %v5633_v41 = vsel %vm1310_vm2, %v5632_v42, 0.0 }
0x1d73   : > { %v5626_v45 = vrot.slane %v5625_v7, 4  ;;  %v5634_v2 = vrot.slane %v5633_v41, 4 }
0x1d75   : > { %v5627_v60 = vadd.f32 %v5626_v45, %v5625_v7  ;;  %v5635_v27 = vadd.f32 %v5634_v2, %v5633_v41 }
0x1d77   : > { %v5628_v28 = vrot.slane %v5627_v60, 2  ;;  %v5636_v23 = vrot.slane %v5635_v27, 2 }
0x1d79   : > { %v5629_v24 = vadd.f32 %v5628_v28, %v5627_v60  ;;  %v5637_v40 = vadd.f32 %v5636_v23, %v5635_v27 }
0x1d7b   : > { %v5630_v14 = vrot.slane %v5629_v24, 1  ;;  %v5638_v9 = vrot.slane %v5637_v40, 1 }
0x1d7d   : > { %v5631_v11 = vadd.f32 %v5630_v14, %v5629_v24  ;;  %v5639_v31 = vadd.f32 %v5638_v9, %v5637_v40  ;;  %v11226_v40 = vld [vmem:[%s14853_s4 + $0xdc] sm:$0xff]  }
0x1d7e   : > { %10515 = vmatprep.subr.bf16.mxu0 %v11226_v40 }
0x1d7f   : > { %vm5683_vm14 = vcmp.lt.f32.partialorder %v14987_v63, %v5631_v11  ;;  %vm5684_vm13 = vcmp.lt.f32.partialorder %v14988_v51, %v5631_v11  ;;  %vm5681_vm3 = vcmp.lt.f32.partialorder %v14985_v47, %v5631_v11  ;;  %vm5682_vm4 = vcmp.lt.f32.partialorder %v14986_v21, %v5631_v11  ;;  %10516 = vmatpush3.bf16.msra.mxu0 %v11226_v40  ;;  %v9384_v11 = vld [vmem:[%s11865_s20 + $0x20] sm:$0xff] }
0x1d80   : > { %vm5695_vm5 = vcmp.lt.f32.partialorder %v14987_v63, %v5639_v31  ;;  %vm5696_vm0 = vcmp.lt.f32.partialorder %v14988_v51, %v5639_v31  ;;  %vm5693_vm1 = vcmp.lt.f32.partialorder %v14985_v47, %v5639_v31  ;;  %vm5694_vm10 = vcmp.lt.f32.partialorder %v14986_v21, %v5639_v31 }
0x1d81   : > { %v9443_v18 = vsel %vm5681_vm3, 1.0, %v14958_v54  ;;  %v9444_v57 = vsel %vm5682_vm4, 1.0, %v14958_v54  ;;  %v9447_v58 = vsel %vm5693_vm1, 1.0, %v14958_v54  ;;  %v9448_v3 = vsel %vm5694_vm10, 1.0, %v14958_v54 }
0x1d82   : > { %v9445_v44 = vsel %vm5683_vm14, 1.0, %v14958_v54  ;;  %v9446_v48 = vsel %vm5684_vm13, 1.0, %v14958_v54  ;;  %v9449_v30 = vsel %vm5695_vm5, 1.0, %v14958_v54  ;;  %v9450_v62 = vsel %vm5696_vm0, 1.0, %v14958_v54 }
0x1d83   : > { %v5705_v15 = vsub.f32 %v9443_v18, %v9447_v58  ;;  %v5706_v53 = vsub.f32 %v9444_v57, %v9448_v3  ;;  %v5707_v47 = vsub.f32 %v9445_v44, %v9449_v30  ;;  %v5708_v21 = vsub.f32 %v9446_v48, %v9450_v62  ;;  %v9385_v18 = vld [vmem:[%s11865_s20 + $0x28] sm:$0xff]  ;;  %v9386_v3 = vld [vmem:[%s11865_s20 + $0x30] sm:$0xff]  ;;  %v9387_v30 = vld [vmem:[%s11865_s20 + $0x38] sm:$0xff]  ;;  %s14799_s20 = scalar_lea.hbm %s14856_s7, %s9626_s18 }
0x1d85   : > { %v11118_v10 = vpop.permute.xlu1 %11117 }
0x1d86   : > { %v13425_v22 = vunpack.i.h.bf16 %v11118_v10  ;;  %v13427_v19 = vunpack.i.l.bf16 %v11118_v10 }
0x1d88   : > { %v5709_v4 = vmul.f32 %v13427_v19, %v5705_v15  ;;  %v5710_v8 = vmul.f32 %v13425_v22, %v5706_v53 }
0x1d89   : > { %v11123_v63 = vpop.permute.xlu1 %11122 }
0x1d8a   : > { %v13432_v51 = vunpack.i.h.bf16 %v11123_v63  ;;  %v13434_v38 = vunpack.i.l.bf16 %v11123_v63  ;;  %v5713_v43 = vmul.f32 %v9389_v20, %v5709_v4  ;;  %v5714_v50 = vmul.f32 %v9389_v20, %v5710_v8 }
0x1d8c   : > { %v5717_v33 = vpack.c.bf16 %v5714_v50, %v5713_v43  ;;  %v5711_v17 = vmul.f32 %v13434_v38, %v5707_v47  ;;  %v5712_v32 = vmul.f32 %v13432_v51, %v5708_v21 }
0x1d8e   : > { %10511 = vmatprep.mubr.msk.bf16.mxu1 %vm1310_vm2, %v5717_v33  ;;  %v5715_v54 = vmul.f32 %v9389_v20, %v5711_v17  ;;  %v5716_v46 = vmul.f32 %v9389_v20, %v5712_v32  ;;  %v11227_v32 = vld [vmem:[%s14853_s4 + $0xe4] sm:$0xff]  }
0x1d8f   : > { %10521 = vmatprep.subr.bf16.mxu1 %v11227_v32 }
0x1d90   : > { %v5718_v5 = vpack.c.bf16 %v5716_v46, %v5715_v54  ;;  %v11228_v54 = vld [vmem:[%s14853_s4 + $0xec] sm:$0xff]   ;;  %v11229_v46 = vld [vmem:[%s14853_s4 + $0xf4] sm:$0xff]  }
0x1d92   : > { %10512 = vmatmul.mubr.msk.bf16.vlgmr.msra.gmra.mrb[72].mxu1 %vm1310_vm2, %v5718_v5  ;;  %v9453_v5 = vld [vmem:[%s14855_s6 + $0xe] ss:$0 sm:$0xff] }
0x1d93   : > { %10522 = vmatpush3.bf16.msra.mxu1 %v11227_v32 }
0x1d94   : > { %10523 = vmatprep.subr.bf16.mxu1 %v11228_v54 }
0x1d97   : > { %10524 = vmatpush3.bf16.msra.mxu1 %v11228_v54 }
0x1d98   : > { %10529 = vmatprep.subr.bf16.mxu1 %v11229_v46 }
0x1e65   : > { %v10513_v42 = vpop.f32.mrb[72].mxu1 }
0x1e66   : > { %v5763_v7 = vpop.f32.mrb[73].mxu1  ;;  %v5782_v60 = vmul.f32 1.442695, %v10513_v42 }
0x1e67   : > { %v5778_v41 = vmul.f32 1.442695, %v5763_v7  ;;  %v10514_v45 = vpop.f32.mrb[74].mxu1 }
0x1e68   : > { %v5766_v2 = vpop.f32.mrb[75].mxu1  ;;  %v5784_v28 = vmul.f32 1.442695, %v10514_v45 }
0x1e69   : > { %11300 = vpow2.f32 %v5778_v41  ;;  %v5780_v27 = vmul.f32 1.442695, %v5766_v2 }
0x1e6b   : > { %11302 = vpow2.f32 %v5780_v27 }
0x1e6c   : > { %11304 = vpow2.f32 %v5782_v60 }
0x1e6d   : > { %11306 = vpow2.f32 %v5784_v28 }
0x1e73   : > { %v11301_v23 = vpop.eup %11300 }
0x1e74   : > { %5790 = vrot.lane.b32.xlu0 %v11301_v23, %s11454_s24 }
0x1e75   : > { %v11303_v24 = vpop.eup %11302 }
0x1e76   : > { %5792 = vrot.lane.b32.xlu1 %v11303_v24, %s11454_s24  ;;  %v11305_v14 = vpop.eup %11304 }
0x1e77   : > { %v11307_v9 = vpop.eup %11306 }
0x1e78   : > { %5794 = vrot.lane.b32.xlu0 %v11305_v14, %s11454_s24 }
0x1e7a   : > { %5796 = vrot.lane.b32.xlu1 %v11307_v9, %s11454_s24 }
0x1ee6   : > { %v5791_v31 = vpop.permute.xlu0 %5790 }
0x1ee7   : > { %v5802_v57 = vmul.f32 %v9384_v11, %v5791_v31 }
0x1ee8   : > { %v5793_v58 = vpop.permute.xlu1 %5792 }
0x1ee9   : > { %v5806_v39 = vadd.f32 %v5802_v57, %v5763_v7  ;;  %v5803_v44 = vmul.f32 %v9385_v18, %v5793_v58 }
0x1eea   : > { %v5795_v48 = vpop.permute.xlu0 %5794 }
0x1eeb   : > { %v5807_v62 = vadd.f32 %v5803_v44, %v5766_v2  ;;  %v5804_v10 = vmul.f32 %v9386_v3, %v5795_v48  ;;  %v13452_v53 = vmul.f32 %v13427_v19, %v5806_v39 }
0x1eec   : > { %v5797_v15 = vpop.permute.xlu1 %5796 }
0x1eed   : > { %v13455_v20 = vmul.f32 %v13425_v22, %v5807_v62  ;;  %v5808_v4 = vadd.f32 %v10513_v42, %v5804_v10  ;;  %v5805_v8 = vmul.f32 %v9387_v30, %v5797_v15 }
0x1eef   : > { %v5809_v47 = vadd.f32 %v10514_v45, %v5805_v8  ;;  %v5816_v21 = vpack.c.bf16 %v13455_v20, %v13452_v53  ;;  %v13460_v63 = vmul.f32 %v13434_v38, %v5808_v4  ;;  %v14991_v4 = vld [vmem:[#allocation13_spill] sm:$0xff] }
0x1ef1   : > { %v13463_v43 = vmul.f32 %v13432_v51, %v5809_v47  ;;  %5825 = vrot.lane.b32.xlu0 %v5816_v21, %s11455_s22 }
0x1ef3   : > { %v5817_v50 = vpack.c.bf16 %v13463_v43, %v13460_v63 }
0x1ef5   : > { %5827 = vrot.lane.b32.xlu1 %v5817_v50, %s11455_s22 }
0x1f63   : > { %v5826_v33 = vpop.permute.xlu0 %5825 }
0x1f64   : > { %10517 = vmatprep.mubr.msk.bf16.mxu0 %vm1523_vm15, %v5826_v33 }
0x1f67   : > { %v5828_v17 = vpop.permute.xlu1 %5827 }
0x1f68   : > { %10518 = vmatmul.mubr.msk.bf16.vlgmr.msra.gmra.mrb[136].mxu0 %vm1523_vm15, %v5828_v17 }
0x203b   : > { %v10519_v42 = vpop.f32.mrb[136].mxu0 }
0x203c   : > { %v5884_v7 = vadd.f32 %v10519_v42, %v9453_v5  ;;  %v5875_v41 = vpop.f32.mrb[137].mxu0 }
0x203d   : > { %v5876_v45 = vadd.f32 %v9453_v5, %v5875_v41  ;;  %v10520_v2 = vpop.f32.mrb[138].mxu0  ;;  %v11231_v41 = vld [vmem:[%s14853_s4 + $0x104] sm:$0xff]  }
0x203e   : > { %v5892_v60 = vmul.f32 %v13434_v38, %v5884_v7  ;;  %v5887_v27 = vadd.f32 %v10520_v2, %v9453_v5  ;;  %v5878_v28 = vpop.f32.mrb[139].mxu0  ;;  %v11230_v7 = vld [vmem:[%s14853_s4 + $0xfc] sm:$0xff]  }
0x203f   : > { %v5890_v23 = vmul.f32 %v13427_v19, %v5876_v45  ;;  %v5879_v24 = vadd.f32 %v9453_v5, %v5878_v28  ;;  %v11232_v45 = vld [vmem:[%s14853_s4 + $0x10c] sm:$0xff]   ;;  %v11234_v2 = vld [vmem:[%s14854_s5 + $0x38] sm:$0xff]  }
0x2040   : > { %v5893_v40 = vmul.f32 %v13432_v51, %v5887_v27  ;;  %v5909_v14 = vrot.slane %v5892_v60, 7  ;;  %v5921_v18 = vrot.slane %v5892_v60, 1 }
0x2041   : > { %v5907_v9 = vrot.slane %v5890_v23, 7  ;;  %v5919_v11 = vrot.slane %v5890_v23, 1  ;;  %v5891_v31 = vmul.f32 %v13425_v22, %v5879_v24 }
0x2042   : > { %v5910_v57 = vrot.slane %v5893_v40, 7  ;;  %v5922_v58 = vrot.slane %v5893_v40, 1  ;;  %v5932_v3 = vpack.c.bf16 %v5893_v40, %v5892_v60  ;;  %v9469_v60 = vld [vmem:[%s14855_s6 + $0xf] ss:$0 sm:$0xff] }
0x2043   : > { %v5908_v39 = vrot.slane %v5891_v31, 7  ;;  %v5920_v44 = vrot.slane %v5891_v31, 1  ;;  %v5931_v48 = vpack.c.bf16 %v5891_v31, %v5890_v23 }
0x2044   : > { %v5911_v30 = vsel %vm1600_vm8, %v5909_v14, %v5910_v57  ;;  %v5923_v62 = vsel %vm291_vm7, %v5921_v18, %v5922_v58  ;;  %v5926_v10 = vsel %vm291_vm7, %v5922_v58, %v5919_v11  ;;  %v5914_v15 = vsel %vm1600_vm8, %v5910_v57, %v5907_v9 }
0x2045   : > { %v5930_v8 = vmul.f32 %v14991_v4, %v5926_v10  ;;  %v5912_v47 = vsel %vm1600_vm8, %v5908_v39, %v5909_v14  ;;  %v5913_v21 = vsel %vm1600_vm8, %v5907_v9, %v5908_v39  ;;  %v5915_v50 = vmul.f32 %v11621_v25, %v5914_v15  ;;  %v11235_v10 = vld [vmem:[%s14853_s4 + $0xa4] sm:$0xff]   ;;  %v9470_v15 = vld [vmem:[%s14855_s6 + $0x10] ss:$0 sm:$0xff] }
0x2046   : > { %v5934_v33 = vpack.c.bf16 %v5911_v30, %v5912_v47  ;;  %v5924_v17 = vsel %vm291_vm7, %v5920_v44, %v5921_v18  ;;  %v5925_v32 = vsel %vm291_vm7, %v5919_v11, %v5920_v44 }
0x2047   : > { %v5933_v54 = vpack.c.bf16 %v5913_v21, %v5915_v50  ;;  %v6069_v5 = vpack.c.bf16 %v5924_v17, %v5925_v32  ;;  %v6070_v42 = vpack.c.bf16 %v5930_v8, %v5923_v62 }
0x2049   : > { %10525 = vmatprep.mubr.msk.bf16.mxu1 %vm542_vm6, %v5933_v54 }
0x204a   : > { %10526 = vmatmul.mubr.msk.bf16.vlgmr.msra.gmra.mrb[76].mxu1 %vm542_vm6, %v5934_v33 }
0x204b   : > { %10530 = vmatpush3.bf16.msra.mxu1 %v11229_v46  ;;  %10533 = vmatprep.mubr.msk.bf16.mxu1 %vm542_vm6, %v5931_v48  ;;  %v11233_v46 = vld [vmem:[%s14854_s5 + $0x30] sm:$0xff]  }
0x204c   : > { %10531 = vmatprep.subr.bf16.mxu1 %v11230_v7  ;;  %10545 = vmatprep.subr.bf16.mxu0 %v11233_v46 }
0x204d   : > { %10546 = vmatpush3.bf16.msra.mxu0 %v11233_v46 }
0x204e   : > { %10547 = vmatprep.subr.bf16.mxu0 %v11234_v2 }
0x204f   : > { %10532 = vmatpush3.bf16.msra.mxu1 %v11230_v7 }
0x2050   : > { %10537 = vmatprep.subr.bf16.mxu1 %v11231_v41 }
0x2051   : > { %10548 = vmatpush3.bf16.msra.mxu0 %v11234_v2 }
0x2052   : > { %10553 = vmatprep.subr.bf16.mxu0 %v11235_v10 }
0x2056   : > { %10534 = vmatmul.mubr.msk.bf16.vlgmr.msra.gmra.mrb[76].mxu1 %vm542_vm6, %v5932_v3 }
0x2057   : > { %10538 = vmatpush3.bf16.msra.mxu1 %v11231_v41  ;;  %10541 = vmatprep.mubr.msk.bf16.mxu1 %vm542_vm6, %v6069_v5 }
0x2058   : > { %10539 = vmatprep.subr.bf16.mxu1 %v11232_v45 }
0x205b   : > { %10540 = vmatpush3.bf16.msra.mxu1 %v11232_v45 }
0x2062   : > { %10542 = vmatmul.mubr.msk.bf16.vlgmr.msra.gmra.mrb[76].mxu1 %vm542_vm6, %v6070_v42 }
0x2135   : > { %v10543_v27 = vpop.f32.mrb[76].mxu1 }
0x2136   : > { %v6148_v28 = vadd.f32 %v10543_v27, %v9469_v60  ;;  %v6123_v23 = vpop.f32.mrb[77].mxu1 }
0x2137   : > { %v6146_v24 = vadd.f32 %v9469_v60, %v6123_v23  ;;  %v10544_v40 = vpop.f32.mrb[78].mxu1 }
0x2138   : > { %v6152_v14 = vmax.f32 %v6148_v28, 0.0  ;;  %v6149_v9 = vadd.f32 %v10544_v40, %v9469_v60  ;;  %v6126_v11 = vpop.f32.mrb[79].mxu1 }
0x2139   : > { %v6150_v31 = vmax.f32 %v6146_v24, 0.0  ;;  %v6147_v18 = vadd.f32 %v9469_v60, %v6126_v11  ;;  %v11237_v11 = vld [vmem:[%s14853_s4 + $0xb4] sm:$0xff]  }
0x213a   : > { %v6153_v57 = vmax.f32 %v6149_v9, 0.0  ;;  %v6156_v3 = vmul.f32 %v13434_v38, %v6152_v14  ;;  %v11236_v9 = vld [vmem:[%s14853_s4 + $0xac] sm:$0xff]  }
0x213b   : > { %v6151_v58 = vmax.f32 %v6147_v18, 0.0  ;;  %v6154_v44 = vmul.f32 %v13427_v19, %v6150_v31  ;;  %v11238_v31 = vld [vmem:[%s14853_s4 + $0xbc] sm:$0xff]   ;;  %v9475_v18 = vld [vmem:[%s14855_s6 + $0xb] ss:$0 sm:$0xff] }
0x213c   : > { %v6157_v39 = vmul.f32 %v13432_v51, %v6153_v57 }
0x213d   : > { %v6155_v48 = vmul.f32 %v13425_v22, %v6151_v58 }
0x213e   : > { %v6163_v30 = vpack.c.bf16 %v6157_v39, %v6156_v3 }
0x213f   : > { %v6162_v62 = vpack.c.bf16 %v6155_v48, %v6154_v44 }
0x2141   : > { %10549 = vmatprep.mubr.msk.bf16.mxu0 %vm542_vm6, %v6162_v62 }
0x2142   : > { %10550 = vmatmul.mubr.msk.bf16.vlgmr.msra.gmra.mrb[140].mxu0 %vm542_vm6, %v6163_v30 }
0x2143   : > { %10554 = vmatpush3.bf16.msra.mxu0 %v11235_v10 }
0x2144   : > { %10559 = vmatprep.subr.bf16.mxu0 %v11236_v9 }
0x2215   : > { %v10551_v8 = vpop.f32.mrb[140].mxu0 }
0x2216   : > { %v6230_v47 = vadd.f32 %v10551_v8, %v9470_v15  ;;  %v6221_v21 = vpop.f32.mrb[141].mxu0 }
0x2217   : > { %v6222_v50 = vadd.f32 %v9470_v15, %v6221_v21  ;;  %v10552_v33 = vpop.f32.mrb[142].mxu0 }
0x2218   : > { %v6238_v17 = vmul.f32 %v13434_v38, %v6230_v47  ;;  %v6233_v32 = vadd.f32 %v10552_v33, %v9470_v15  ;;  %v6224_v54 = vpop.f32.mrb[143].mxu0 }
0x2219   : > { %v6236_v5 = vmul.f32 %v13427_v19, %v6222_v50  ;;  %v6225_v42 = vadd.f32 %v9470_v15, %v6224_v54 }
0x221a   : > { %v6239_v7 = vmul.f32 %v13432_v51, %v6233_v32  ;;  %v6242_v46 = vsub.f32 %v13460_v63, %v6238_v17 }
0x221b   : > { %v6240_v41 = vsub.f32 %v13452_v53, %v6236_v5  ;;  %v6237_v45 = vmul.f32 %v13425_v22, %v6225_v42 }
0x221c   : > { %v6243_v2 = vsub.f32 %v13463_v43, %v6239_v7  ;;  %v13559_v24 = vmul.f32 %v13434_v38, %v6242_v46 }
0x221d   : > { %v6241_v60 = vsub.f32 %v13455_v20, %v6237_v45  ;;  %v13553_v28 = vmul.f32 %v13427_v19, %v6240_v41 }
0x221e   : > { %v13550_v27 = vmul.f32 %v13432_v51, %v6243_v2 }
0x221f   : > { %v13556_v23 = vmul.f32 %v13425_v22, %v6241_v60 }
0x2220   : > { %v6251_v14 = vpack.c.bf16 %v13550_v27, %v13559_v24 }
0x2221   : > { %v6250_v40 = vpack.c.bf16 %v13556_v23, %v13553_v28 }
0x2223   : > { %10555 = vmatprep.mubr.msk.bf16.mxu0 %vm1523_vm15, %v6250_v40 }
0x2224   : > { %10556 = vmatmul.mubr.msk.bf16.vlgmr.msra.gmra.mrb[144].mxu0 %vm1523_vm15, %v6251_v14 }
0x2225   : > { %10560 = vmatpush3.bf16.msra.mxu0 %v11236_v9 }
0x2226   : > { %10561 = vmatprep.subr.bf16.mxu0 %v11237_v11 }
0x2229   : > { %10562 = vmatpush3.bf16.msra.mxu0 %v11237_v11 }
0x222a   : > { %10567 = vmatprep.subr.bf16.mxu0 %v11238_v31 }
0x22f7   : > { %v10557_v57 = vpop.f32.mrb[144].mxu0 }
0x22f8   : > { %v6312_v58 = vadd.f32 %v10557_v57, %v9475_v18  ;;  %v6303_v3 = vpop.f32.mrb[145].mxu0 }
0x22f9   : > { %v6304_v39 = vadd.f32 %v9475_v18, %v6303_v3  ;;  %v10558_v44 = vpop.f32.mrb[146].mxu0 }
0x22fa   : > { %v6320_v48 = vmul.f32 %v13434_v38, %v6312_v58  ;;  %v6315_v30 = vadd.f32 %v10558_v44, %v9475_v18  ;;  %v6306_v62 = vpop.f32.mrb[147].mxu0 }
0x22fb   : > { %v6318_v10 = vmul.f32 %v13427_v19, %v6304_v39  ;;  %v6307_v15 = vadd.f32 %v9475_v18, %v6306_v62  ;;  %v11241_v62 = vld [vmem:[%s14853_s4 + $0xd4] sm:$0xff]  }
0x22fc   : > { %v6321_v8 = vmul.f32 %v13432_v51, %v6315_v30  ;;  %v6337_v47 = vrot.slane %v6320_v48, 7  ;;  %v6349_v17 = vrot.slane %v6320_v48, 1  ;;  %v11240_v30 = vld [vmem:[%s14853_s4 + $0xcc] sm:$0xff]  }
0x22fd   : > { %v6335_v21 = vrot.slane %v6318_v10, 7  ;;  %v6347_v50 = vrot.slane %v6318_v10, 1  ;;  %v6319_v33 = vmul.f32 %v13425_v22, %v6307_v15  ;;  %v9491_v15 = vld [vmem:[%s14855_s6 + $0xc] ss:$0 sm:$0xff] }
0x22fe   : > { %v6338_v32 = vrot.slane %v6321_v8, 7  ;;  %v6350_v54 = vrot.slane %v6321_v8, 1  ;;  %v6360_v5 = vpack.c.bf16 %v6321_v8, %v6320_v48  ;;  %v11239_v48 = vld [vmem:[%s14853_s4 + $0xc4] sm:$0xff]  }
0x22ff   : > { %v6336_v42 = vrot.slane %v6319_v33, 7  ;;  %v6348_v7 = vrot.slane %v6319_v33, 1  ;;  %v6359_v41 = vpack.c.bf16 %v6319_v33, %v6318_v10  ;;  %v11243_v10 = vld [vmem:[%s14854_s5 + $0x28] sm:$0xff]  }
0x2300   : > { %v6339_v45 = vsel %vm1600_vm8, %v6337_v47, %v6338_v32  ;;  %v6351_v46 = vsel %vm291_vm7, %v6349_v17, %v6350_v54  ;;  %v6354_v2 = vsel %vm291_vm7, %v6350_v54, %v6347_v50  ;;  %v6342_v60 = vsel %vm1600_vm8, %v6338_v32, %v6335_v21 }
0x2301   : > { %v6358_v40 = vmul.f32 %v14991_v4, %v6354_v2  ;;  %v6340_v14 = vsel %vm1600_vm8, %v6336_v42, %v6337_v47  ;;  %v6341_v9 = vsel %vm1600_vm8, %v6335_v21, %v6336_v42  ;;  %v6343_v11 = vmul.f32 %v11621_v25, %v6342_v60 }
0x2302   : > { %v6362_v18 = vpack.c.bf16 %v6339_v45, %v6340_v14  ;;  %v6352_v57 = vsel %vm291_vm7, %v6348_v7, %v6349_v17  ;;  %v6353_v58 = vsel %vm291_vm7, %v6347_v50, %v6348_v7 }
0x2303   : > { %v6361_v3 = vpack.c.bf16 %v6341_v9, %v6343_v11  ;;  %v6497_v39 = vpack.c.bf16 %v6352_v57, %v6353_v58  ;;  %v6498_v44 = vpack.c.bf16 %v6358_v40, %v6351_v46  ;;  %v9492_v9 = vld [vmem:[%s14855_s6 + $0xd] ss:$0 sm:$0xff] }
0x2305   : > { %10563 = vmatprep.mubr.msk.bf16.mxu0 %vm542_vm6, %v6361_v3 }
0x2306   : > { %10564 = vmatmul.mubr.msk.bf16.vlgmr.msra.gmra.mrb[148].mxu0 %vm542_vm6, %v6362_v18 }
0x2307   : > { %10568 = vmatpush3.bf16.msra.mxu0 %v11238_v31  ;;  %10571 = vmatprep.mubr.msk.bf16.mxu0 %vm542_vm6, %v6359_v41  ;;  %v11242_v31 = vld [vmem:[%s14854_s5 + $0x20] sm:$0xff]  }
0x2308   : > { %10569 = vmatprep.subr.bf16.mxu0 %v11239_v48  ;;  %10583 = vmatprep.subr.bf16.mxu1 %v11242_v31 }
0x2309   : > { %10584 = vmatpush3.bf16.msra.mxu1 %v11242_v31  ;;  %v11244_v31 = vld [vmem:[%s14853_s4 + $0x114] sm:$0xff]  }
0x230a   : > { %10585 = vmatprep.subr.bf16.mxu1 %v11243_v10 }
0x230b   : > { %10570 = vmatpush3.bf16.msra.mxu0 %v11239_v48 }
0x230c   : > { %10575 = vmatprep.subr.bf16.mxu0 %v11240_v30 }
0x230d   : > { %10586 = vmatpush3.bf16.msra.mxu1 %v11243_v10  ;;  %v11245_v10 = vld [vmem:[%s14853_s4 + $0x11c] sm:$0xff]  }
0x230e   : > { %10591 = vmatprep.subr.bf16.mxu1 %v11244_v31 }
0x2312   : > { %10572 = vmatmul.mubr.msk.bf16.vlgmr.msra.gmra.mrb[148].mxu0 %vm542_vm6, %v6360_v5 }
0x2313   : > { %10576 = vmatpush3.bf16.msra.mxu0 %v11240_v30  ;;  %10579 = vmatprep.mubr.msk.bf16.mxu0 %vm542_vm6, %v6497_v39 }
0x2314   : > { %10577 = vmatprep.subr.bf16.mxu0 %v11241_v62 }
0x2317   : > { %10578 = vmatpush3.bf16.msra.mxu0 %v11241_v62 }
0x231e   : > { %10580 = vmatmul.mubr.msk.bf16.vlgmr.msra.gmra.mrb[148].mxu0 %vm542_vm6, %v6498_v44 }
0x23f1   : > { %v10581_v8 = vpop.f32.mrb[148].mxu0 }
0x23f2   : > { %v6576_v47 = vadd.f32 %v10581_v8, %v9491_v15  ;;  %v6551_v21 = vpop.f32.mrb[149].mxu0 }
0x23f3   : > { %v6574_v50 = vadd.f32 %v9491_v15, %v6551_v21  ;;  %v10582_v33 = vpop.f32.mrb[150].mxu0  ;;  %v9382_v21 = vld [vmem:[%s14855_s6 + $0x14] ss:$0 sm:$0xff] }
0x23f4   : > { %v6580_v17 = vmax.f32 %v6576_v47, 0.0  ;;  %v6577_v32 = vadd.f32 %v10582_v33, %v9491_v15  ;;  %v6554_v54 = vpop.f32.mrb[151].mxu0  ;;  %v13650_v47 = vld [vmem:[%s14853_s4 + $0x124] sm:$0xff]   ;;  %v4674_v33 = vadd.f32 %v9382_v21, %v13232_v0  ;;  %v4679_v0 = vadd.f32 %v13234_v12, %v9382_v21 }
0x23f5   : > { %v6578_v5 = vmax.f32 %v6574_v50, 0.0  ;;  %v6575_v42 = vadd.f32 %v9491_v15, %v6554_v54  ;;  %v4673_v50 = vadd.f32 %v9382_v21, %v13228_v13  ;;  %v4683_v12 = vadd.f32 %v13242_v34, %v9382_v21 }
0x23f6   : > { %v6581_v7 = vmax.f32 %v6577_v32, 0.0  ;;  %v6584_v45 = vmul.f32 %v13434_v38, %v6580_v17  ;;  %v4675_v17 = vadd.f32 %v13226_v35, %v9382_v21  ;;  %v4676_v32 = vadd.f32 %v13230_v55, %v9382_v21 }
0x23f7   : > { %v6579_v41 = vmax.f32 %v6575_v42, 0.0  ;;  %v6582_v2 = vmul.f32 %v13427_v19, %v6578_v5  ;;  %11308 = vtanh.f32 %v4673_v50  ;;  %v4677_v5 = vadd.f32 %v9382_v21, %v13236_v49 }
0x23f8   : > { %v6585_v46 = vmul.f32 %v13432_v51, %v6581_v7  ;;  %11310 = vtanh.f32 %v4674_v33  ;;  %v4678_v7 = vadd.f32 %v9382_v21, %v13240_v6  ;;  %v4680_v55 = vadd.f32 %v13238_v37, %v9382_v21 }
0x23f9   : > { %v6583_v60 = vmul.f32 %v13425_v22, %v6579_v41  ;;  %11312 = vtanh.f32 %v4675_v17  ;;  %v4681_v49 = vadd.f32 %v9382_v21, %v13244_v26  ;;  %v4682_v6 = vadd.f32 %v9382_v21, %v13248_v29 }
0x23fa   : > { %v6591_v40 = vpack.c.bf16 %v6585_v46, %v6584_v45  ;;  %11314 = vtanh.f32 %v4676_v32  ;;  %v4684_v37 = vadd.f32 %v13246_v56, %v9382_v21  ;;  %v4685_v26 = vadd.f32 %v9382_v21, %v13252_v1 }
0x23fb   : > { %v6590_v14 = vpack.c.bf16 %v6583_v60, %v6582_v2  ;;  %11316 = vtanh.f32 %v4677_v5  ;;  %v4686_v29 = vadd.f32 %v9382_v21, %v13256_v61  ;;  %v4687_v34 = vadd.f32 %v13250_v52, %v9382_v21 }
0x23fc   : > { %11318 = vtanh.f32 %v4678_v7  ;;  %v4688_v56 = vadd.f32 %v13254_v59, %v9382_v21 }
0x23fd   : > { %10587 = vmatprep.mubr.msk.bf16.mxu1 %vm542_vm6, %v6590_v14  ;;  %11320 = vtanh.f32 %v4679_v0 }
0x23fe   : > { %10588 = vmatmul.mubr.msk.bf16.vlgmr.msra.gmra.mrb[80].mxu1 %vm542_vm6, %v6591_v40  ;;  %11322 = vtanh.f32 %v4680_v55 }
0x23ff   : > { %10592 = vmatpush3.bf16.msra.mxu1 %v11244_v31  ;;  %11324 = vtanh.f32 %v4681_v49 }
0x2400   : > { %10593 = vmatprep.subr.bf16.mxu1 %v11245_v10  ;;  %11326 = vtanh.f32 %v4682_v6 }
0x2401   : > { %v11309_v54 = vpop.eup %11308  ;;  %11328 = vtanh.f32 %v4683_v12 }
0x2402   : > { %v11311_v42 = vpop.eup %11310  ;;  %11330 = vtanh.f32 %v4684_v37  ;;  %v11250_v37 = vld [vmem:[%s14852_s3] sm:$0xff]  }
0x2403   : > { %10594 = vmatpush3.bf16.msra.mxu1 %v11245_v10  ;;  %v11313_v13 = vpop.eup %11312  ;;  %11332 = vtanh.f32 %v4685_v26  ;;  %10619 = vmatprep.mubr.msk.bf16.mxu0 %vm542_vm6, %v11250_v37 }
0x2404   : > { %10599 = vmatprep.subr.bf16.mxu1 %v13650_v47  ;;  %v11315_v35 = vpop.eup %11314  ;;  %11334 = vtanh.f32 %v4686_v29 }
0x2405   : > { %v11317_v41 = vpop.eup %11316  ;;  %11336 = vtanh.f32 %v4687_v34 }
0x2406   : > { %v11319_v45 = vpop.eup %11318  ;;  %11338 = vtanh.f32 %v4688_v56 }
0x2407   : > { %v11321_v46 = vpop.eup %11320 }
0x2408   : > { %v11323_v2 = vpop.eup %11322 }
0x2409   : > { %v11325_v60 = vpop.eup %11324 }
0x240a   : > { %v11327_v40 = vpop.eup %11326 }
0x240b   : > { %v11329_v14 = vpop.eup %11328 }
0x24d1   : > { %v10589_v11 = vpop.f32.mrb[80].mxu1 }
0x24d2   : > { %v6649_v18 = vpop.f32.mrb[81].mxu1  ;;  %v6658_v30 = vadd.f32 %v10589_v11, %v9492_v9 }
0x24d3   : > { %v6650_v57 = vadd.f32 %v9492_v9, %v6649_v18  ;;  %v10590_v58 = vpop.f32.mrb[82].mxu1 }
0x24d4   : > { %v6661_v3 = vadd.f32 %v10590_v58, %v9492_v9  ;;  %v6652_v39 = vpop.f32.mrb[83].mxu1  ;;  %v6666_v8 = vmul.f32 %v13434_v38, %v6658_v30 }
0x24d5   : > { %v6664_v44 = vmul.f32 %v13427_v19, %v6650_v57  ;;  %v6653_v48 = vadd.f32 %v9492_v9, %v6652_v39  ;;  %v11331_v9 = vpop.eup %11330 }
0x24d6   : > { %v6667_v62 = vmul.f32 %v13432_v51, %v6661_v3  ;;  %v11333_v11 = vpop.eup %11332 }
0x24d7   : > { %6672 = vrot.lane.b32.xlu0 %v6664_v44, %s11456_s21  ;;  %v6665_v15 = vmul.f32 %v13425_v22, %v6653_v48  ;;  %v11335_v18 = vpop.eup %11334 }
0x24d8   : > { %6678 = vrot.lane.b32.xlu1 %v6667_v62, %s11456_s21  ;;  %v11337_v1 = vpop.eup %11336 }
0x24d9   : > { %v11339_v57 = vpop.eup %11338 }
0x24db   : > { %6674 = vrot.lane.b32.xlu0 %v6665_v15, %s11456_s21 }
0x24dc   : > { %6676 = vrot.lane.b32.xlu1 %v6666_v8, %s11456_s21 }
0x24f9   : > { %4705 = vxpose.xlu0.b32.start [1/16] (narrow) %v11309_v54, 8 }
0x24fd   : > { %4706 = vxpose.xlu0.b32.cont [2/16] (narrow) %v11311_v42, 8  ;;  %v11248_v42 = vld [vmem:[%s14853_s4 + $0x134] sm:$0xff]  }
0x2501   : > { %4707 = vxpose.xlu0.b32.cont [3/16] (narrow) %v11313_v13, 8 }
0x2505   : > { %4708 = vxpose.xlu0.b32.cont [4/16] (narrow) %v11315_v35, 8 }
0x2509   : > { %4709 = vxpose.xlu0.b32.cont [5/16] (narrow) %v11317_v41, 8 }
0x250d   : > { %4710 = vxpose.xlu0.b32.cont [6/16] (narrow) %v11319_v45, 8 }
0x2511   : > { %4711 = vxpose.xlu0.b32.cont [7/16] (narrow) %v11321_v46, 8 }
0x2515   : > { %4712 = vxpose.xlu0.b32.cont [8/16] (narrow) %v11323_v2, 8 }
0x2519   : > { %4713 = vxpose.xlu0.b32.cont [9/16] (narrow) %v11325_v60, 8  ;;  %v9509_v60 = vld [vmem:[%s14855_s6 + $0x11] ss:$0 sm:$0xff] }
0x251d   : > { %4714 = vxpose.xlu0.b32.cont [10/16] (narrow) %v11327_v40, 8 }
0x2521   : > { %4715 = vxpose.xlu0.b32.cont [11/16] (narrow) %v11329_v14, 8 }
0x2525   : > { %4716 = vxpose.xlu0.b32.cont [12/16] (narrow) %v11331_v9, 8 }
0x2529   : > { %4717 = vxpose.xlu0.b32.cont [13/16] (narrow) %v11333_v11, 8 }
0x252d   : > { %4718 = vxpose.xlu0.b32.cont [14/16] (narrow) %v11335_v18, 8 }
0x2531   : > { %4719 = vxpose.xlu0.b32.cont [15/16] (narrow) %v11337_v1, 8  ;;  %v11251_v1 = vld [vmem:[%s14852_s3 + $0x8] sm:$0xff]  }
0x2535   : > { %4720 = vxpose.xlu0.b32.end [16/16] (narrow) %v11339_v57, 8  ;;  %v11252_v57 = vld [vmem:[%s14852_s3 + $0x10] sm:$0xff]  }
0x2549   : > { %v6673_v61 = vpop.permute.xlu0 %6672 }
0x254a   : > { %v6684_v58 = vsub.f32 %v13452_v53, %v6673_v61  ;;  %v6679_v3 = vpop.permute.xlu1 %6678  ;;  %v11253_v61 = vld [vmem:[%s14852_s3 + $0x18] sm:$0xff]  }
0x254b   : > { %v6687_v52 = vsub.f32 %v13463_v43, %v6679_v3  ;;  %v11255_v3 = vld [vmem:[%s14852_s3 + $0x28] sm:$0xff]  }
0x254c   : > { %v6688_v39 = vmul.f32 %v13427_v19, %v6684_v58  ;;  %v11254_v58 = vld [vmem:[%s14852_s3 + $0x20] sm:$0xff]  }
0x254d   : > { %v6691_v44 = vmul.f32 %v13432_v51, %v6687_v52  ;;  %v6675_v59 = vpop.permute.xlu0 %6674  ;;  %v11256_v52 = vld [vmem:[%s14852_s3 + $0x30] sm:$0xff]  }
0x254e   : > { %v6692_v48 = vsel %vm1523_vm15, %v13553_v28, %v6688_v39  ;;  %v6685_v30 = vsub.f32 %v13455_v20, %v6675_v59  ;;  %v6677_v62 = vpop.permute.xlu1 %6676  ;;  %v11257_v39 = vld [vmem:[%s14852_s3 + $0x38] sm:$0xff]   ;;  %v11259_v59 = vld [vmem:[%s14853_s4 + $0x14c] sm:$0xff]  }
0x254f   : > { %v6696_v31 = vmul.f32 %v13427_v19, %v6692_v48  ;;  %v6695_v10 = vsel %vm1523_vm15, %v13550_v27, %v6691_v44  ;;  %v6686_v53 = vsub.f32 %v13460_v63, %v6677_v62  ;;  %v11258_v44 = vld [vmem:[%s14853_s4 + $0x144] sm:$0xff]   ;;  %v13771_v48 = vld [vmem:[%s14853_s4 + $0x154] sm:$0xff]  }
0x2550   : > { %v6699_v43 = vmul.f32 %v13432_v51, %v6695_v10  ;;  %v6689_v15 = vmul.f32 %v13425_v22, %v6685_v30 }
0x2551   : > { %v6713_v8 = vrot.slane %v6696_v31, 7  ;;  %v6690_v21 = vmul.f32 %v13434_v38, %v6686_v53  ;;  %v6725_v0 = vrot.slane %v6696_v31, 1 }
0x2552   : > { %v6716_v50 = vrot.slane %v6699_v43, 7  ;;  %v6693_v28 = vsel %vm1523_vm15, %v13556_v23, %v6689_v15  ;;  %v6728_v45 = vrot.slane %v6699_v43, 1 }
0x2553   : > { %v6697_v20 = vmul.f32 %v13425_v22, %v6693_v28  ;;  %v6694_v19 = vsel %vm1523_vm15, %v13559_v24, %v6690_v21 }
0x2554   : > { %v6698_v27 = vmul.f32 %v13434_v38, %v6694_v19  ;;  %v6720_v63 = vsel %vm1600_vm8, %v6716_v50, %v6713_v8  ;;  %v11247_v38 = vld [vmem:[%s14853_s4 + $0x12c] sm:$0xff]   ;;  %v6732_v6 = vsel %vm291_vm7, %v6728_v45, %v6725_v0 }
0x2555   : > { %v6714_v51 = vrot.slane %v6697_v20, 7  ;;  %v6721_v33 = vmul.f32 %v11621_v25, %v6720_v63  ;;  %v6737_v5 = vpack.c.bf16 %v6697_v20, %v6696_v31  ;;  %v6726_v7 = vrot.slane %v6697_v20, 1 }
0x2556   : > { %v6715_v17 = vrot.slane %v6698_v27, 7  ;;  %v6727_v13 = vrot.slane %v6698_v27, 1  ;;  %v6738_v41 = vpack.c.bf16 %v6699_v43, %v6698_v27  ;;  %v6736_v12 = vmul.f32 %v14991_v4, %v6732_v6 }
0x2557   : > { %v6719_v32 = vsel %vm1600_vm8, %v6713_v8, %v6714_v51  ;;  %v6731_v55 = vsel %vm291_vm7, %v6725_v0, %v6726_v7 }
0x2558   : > { %v6739_v54 = vpack.c.bf16 %v6719_v32, %v6721_v33  ;;  %v6717_v23 = vsel %vm1600_vm8, %v6715_v17, %v6716_v50  ;;  %v6718_v22 = vsel %vm1600_vm8, %v6714_v51, %v6715_v17  ;;  %v6730_v35 = vsel %vm291_vm7, %v6726_v7, %v6727_v13 }
0x2559   : > { %v6740_v24 = vpack.c.bf16 %v6717_v23, %v6718_v22  ;;  %v6875_v49 = vpack.c.bf16 %v6730_v35, %v6731_v55  ;;  %v6729_v46 = vsel %vm291_vm7, %v6727_v13, %v6728_v45 }
0x255a   : > { %10595 = vmatprep.mubr.msk.bf16.mxu1 %vm542_vm6, %v6739_v54  ;;  %v6876_v2 = vpack.c.bf16 %v6736_v12, %v6729_v46 }
0x255b   : > { %10596 = vmatmul.mubr.msk.bf16.vlgmr.msra.gmra.mrb[84].mxu1 %vm542_vm6, %v6740_v24 }
0x255c   : > { %10600 = vmatpush3.bf16.msra.mxu1 %v13650_v47  ;;  %10603 = vmatprep.mubr.msk.bf16.mxu1 %vm542_vm6, %v6737_v5  ;;  %v11249_v47 = vld [vmem:[%s14853_s4 + $0x13c] sm:$0xff]  }
0x255d   : > { %10601 = vmatprep.subr.bf16.mxu1 %v11247_v38 }
0x2560   : > { %10602 = vmatpush3.bf16.msra.mxu1 %v11247_v38 }
0x2561   : > { %10607 = vmatprep.subr.bf16.mxu1 %v11248_v42 }
0x2567   : > { %10604 = vmatmul.mubr.msk.bf16.vlgmr.msra.gmra.mrb[84].mxu1 %vm542_vm6, %v6738_v41 }
0x2568   : > { %10608 = vmatpush3.bf16.msra.mxu1 %v11248_v42  ;;  %10611 = vmatprep.mubr.msk.bf16.mxu1 %vm542_vm6, %v6875_v49 }
0x2569   : > { %10609 = vmatprep.subr.bf16.mxu1 %v11249_v47 }
0x256c   : > { %10610 = vmatpush3.bf16.msra.mxu1 %v11249_v47 }
0x256d   : > { %10635 = vmatprep.subr.bf16.mxu1 %v11258_v44 }
0x2573   : > { %10612 = vmatmul.mubr.msk.bf16.vlgmr.msra.gmra.mrb[84].mxu1 %vm542_vm6, %v6876_v2 }
0x2574   : > { %10636 = vmatpush3.bf16.msra.mxu1 %v11258_v44 }
0x2575   : > { %10637 = vmatprep.subr.bf16.mxu1 %v11259_v59 }
0x2578   : > { %10638 = vmatpush3.bf16.msra.mxu1 %v11259_v59 }
0x2579   : > { %10655 = vmatprep.subr.bf16.mxu1 %v13771_v48 }
0x2646   : > { %v10613_v26 = vpop.f32.mrb[84].mxu1 }
0x2647   : > { %v6929_v40 = vpop.f32.mrb[85].mxu1  ;;  %v6954_v14 = vadd.f32 %v10613_v26, %v9509_v60 }
0x2648   : > { %v10614_v29 = vpop.f32.mrb[86].mxu1  ;;  %v6952_v4 = vadd.f32 %v9509_v60, %v6929_v40 }
0x2649   : > { %v6955_v34 = vadd.f32 %v10614_v29, %v9509_v60  ;;  %v6932_v9 = vpop.f32.mrb[87].mxu1 }
0x264a   : > { %v6953_v56 = vadd.f32 %v9509_v60, %v6932_v9 }
0x264b   : > { %v6973_v11 = vpack.c.bf16 %v6955_v34, %v6954_v14 }
0x264c   : > { %v6972_v18 = vpack.c.bf16 %v6953_v56, %v6952_v4 }
0x264e   : > { %10615 = vmatprep.subr.bf16.mxu0 %v6972_v18 }
0x264f   : > { %10616 = vmatpush3.bf16.msra.mxu0 %v6972_v18 }
0x2650   : > { %10617 = vmatprep.subr.bf16.mxu0 %v6973_v11 }
0x2653   : > { %10618 = vmatpush3.bf16.msra.mxu0 %v6973_v11 }
0x2656   : > { %10620 = vmatmul.mubr.msk.bf16.vlgmr.msra.gmra.mrb[152].mxu0 %vm542_vm6, %v11251_v1 }
0x2657   : > { %10623 = vmatprep.mubr.msk.bf16.mxu0 %vm542_vm6, %v11252_v57 }
0x265e   : > { %10624 = vmatmul.mubr.msk.bf16.gmra.mrb[156].mxu0 %vm542_vm6, %v11253_v61 }
0x265f   : > { %10627 = vmatprep.mubr.msk.bf16.mxu0 %vm542_vm6, %v11254_v58 }
0x2666   : > { %10628 = vmatmul.mubr.msk.bf16.gmra.mrb[160].mxu0 %vm542_vm6, %v11255_v3 }
0x2667   : > { %10631 = vmatprep.mubr.msk.bf16.mxu0 %vm542_vm6, %v11256_v52 }
0x266e   : > { %10632 = vmatmul.mubr.msk.bf16.gmra.mrb[164].mxu0 %vm542_vm6, %v11257_v39 }
0x2729   : > { %v13774_v30 = vpop.f32.mrb[152].mxu0 }
0x272a   : > { %vm7137_vm2 = vcmp.gt.f32.partialorder %v13774_v30, 0.0  ;;  %v7153_v62 = vmul.f32 0.1, %v13774_v30  ;;  %v13778_v31 = vpop.f32.mrb[153].mxu0 }
0x272b   : > { %vm7135_vm15 = vcmp.gt.f32.partialorder %v13778_v31, 0.0  ;;  %v7151_v10 = vmul.f32 0.1, %v13778_v31  ;;  %v13782_v53 = vpop.f32.mrb[154].mxu0 }
0x272c   : > { %v13785_v43 = vsel %vm7137_vm2, %v13774_v30, %v7153_v62  ;;  %vm7138_vm12 = vcmp.gt.f32.partialorder %v13782_v53, 0.0  ;;  %v7154_v15 = vmul.f32 0.1, %v13782_v53  ;;  %v13789_v8 = vpop.f32.mrb[155].mxu0 }
0x272d   : > { %v13792_v21 = vsel %vm7135_vm15, %v13778_v31, %v7151_v10  ;;  %vm7136_vm9 = vcmp.gt.f32.partialorder %v13789_v8, 0.0  ;;  %v7198_v50 = vrot.slane %v13785_v43, 7  ;;  %v7152_v20 = vmul.f32 0.1, %v13789_v8 }
0x272e   : > { %v13797_v28 = vsel %vm7138_vm12, %v13782_v53, %v7154_v15  ;;  %v7246_v19 = vrot.slane %v13785_v43, 1  ;;  %v14891_v33 = vrot.slane %v13792_v21, 7  ;;  %v14890_v32 = vrot.slane %v13792_v21, 1 }
0x272f   : > { %v7199_v27 = vrot.slane %v13797_v28, 7  ;;  %v7247_v63 = vrot.slane %v13797_v28, 1  ;;  %v13807_v17 = vsel %vm7136_vm9, %v13789_v8, %v7152_v20 }
0x2730   : > { %v7197_v22 = vrot.slane %v13807_v17, 7  ;;  %v7245_v38 = vrot.slane %v13807_v17, 1 }
0x2731   : > { %v13812_v54 = vsel %vm1600_vm8, %v7198_v50, %v7199_v27  ;;  %v13816_v23 = vsel %vm291_vm7, %v7246_v19, %v7247_v63  ;;  %v13819_v24 = vpop.f32.mrb[156].mxu0 }
0x2732   : > { %14992 = vst [vmem:[#allocation14_spill] sm:$0xff] %v13819_v24  ;;  %vm7141_vm14 = vcmp.gt.f32.partialorder %v13819_v24, 0.0  ;;  %v7157_v5 = vmul.f32 0.1, %v13819_v24  ;;  %v13824_v42 = vpop.f32.mrb[157].mxu0  ;;  %v13830_v13 = vsel %vm1600_vm8, %v7197_v22, %v7198_v50  ;;  %v13840_v55 = vsel %vm1600_vm8, %v14891_v33, %v7197_v22 }
0x2733   : > { %14993 = vst [vmem:[#allocation15_spill] sm:$0xff] %v13824_v42  ;;  %vm7139_vm13 = vcmp.gt.f32.partialorder %v13824_v42, 0.0  ;;  %v7155_v0 = vmul.f32 0.1, %v13824_v42  ;;  %v13834_v35 = vpop.f32.mrb[158].mxu0  ;;  %v13869_v34 = vsel %vm291_vm7, %v7245_v38, %v7246_v19  ;;  %v13886_v11 = vsel %vm291_vm7, %v14890_v32, %v7245_v38 }
0x2734   : > { %14994 = vst [vmem:[#allocation16_spill] sm:$0xff] %v13834_v35  ;;  %v13843_v41 = vsel %vm7141_vm14, %v13819_v24, %v7157_v5  ;;  %vm7142_vm3 = vcmp.gt.f32.partialorder %v13834_v35, 0.0  ;;  %v7158_v47 = vmul.f32 0.1, %v13834_v35  ;;  %v13847_v49 = vpop.f32.mrb[159].mxu0 }
0x2735   : > { %14995 = vst [vmem:[#allocation17_spill] sm:$0xff] %v13847_v49  ;;  %v7202_v6 = vrot.slane %v13843_v41, 7  ;;  %v14892_v46 = vrot.slane %v13843_v41, 1  ;;  %v13854_v12 = vsel %vm7139_vm13, %v13824_v42, %v7155_v0  ;;  %vm7140_vm4 = vcmp.gt.f32.partialorder %v13847_v49, 0.0 }
0x2736   : > { %v7200_v2 = vrot.slane %v13854_v12, 7  ;;  %v7248_v37 = vrot.slane %v13854_v12, 1  ;;  %v13860_v60 = vsel %vm7142_vm3, %v13834_v35, %v7158_v47  ;;  %v7156_v26 = vmul.f32 0.1, %v13847_v49 }
0x2737   : > { %v7203_v40 = vrot.slane %v13860_v60, 7  ;;  %v14893_v29 = vrot.slane %v13860_v60, 1 }
0x2738   : > { %v13873_v9 = vsel %vm291_vm7, %v7247_v63, %v7248_v37  ;;  %v13876_v4 = vsel %vm7140_vm4, %v13847_v49, %v7156_v26  ;;  %v13880_v56 = vsel %vm1600_vm8, %v7199_v27, %v7200_v2 }
0x2739   : > { %v7201_v1 = vrot.slane %v13876_v4, 7  ;;  %v7249_v57 = vrot.slane %v13876_v4, 1  ;;  %v13892_v61 = vpop.f32.mrb[160].mxu0  ;;  %v13896_v58 = vsel %vm1600_vm8, %v7202_v6, %v7203_v40 }
0x273a   : > { %14996 = vst [vmem:[#allocation18_spill] sm:$0xff] %v13892_v61  ;;  %vm7145_vm5 = vcmp.gt.f32.partialorder %v13892_v61, 0.0  ;;  %v7161_v3 = vmul.f32 0.1, %v13892_v61  ;;  %v13900_v52 = vpop.f32.mrb[161].mxu0 }
0x273b   : > { %14997 = vst [vmem:[#allocation19_spill] sm:$0xff] %v13900_v52  ;;  %vm7143_vm0 = vcmp.gt.f32.partialorder %v13900_v52, 0.0  ;;  %v7159_v59 = vmul.f32 0.1, %v13900_v52  ;;  %v13908_v62 = vpop.f32.mrb[162].mxu0  ;;  %v13912_v10 = vsel %vm1600_vm8, %v7200_v2, %v7201_v1  ;;  %v13916_v15 = vsel %vm1600_vm8, %v7201_v1, %v7202_v6 }
0x273c   : > { %14998 = vst [vmem:[#allocation20_spill] sm:$0xff] %v13908_v62  ;;  %v13919_v50 = vsel %vm7145_vm5, %v13892_v61, %v7161_v3  ;;  %vm7146_vm1 = vcmp.gt.f32.partialorder %v13908_v62, 0.0  ;;  %v7162_v20 = vmul.f32 0.1, %v13908_v62  ;;  %v13923_v19 = vpop.f32.mrb[163].mxu0  ;;  %v13960_v44 = vsel %vm291_vm7, %v7248_v37, %v7249_v57 }
0x273d   : > { %14999 = vst [vmem:[#allocation21_spill] sm:$0xff] %v13923_v19  ;;  %v7206_v63 = vrot.slane %v13919_v50, 7  ;;  %v13930_v38 = vsel %vm7143_vm0, %v13900_v52, %v7159_v59  ;;  %vm7144_vm10 = vcmp.gt.f32.partialorder %v13923_v19, 0.0  ;;  %v7160_v6 = vmul.f32 0.1, %v13923_v19 }
0x273e   : > { %v7204_v5 = vrot.slane %v13930_v38, 7  ;;  %v7252_v0 = vrot.slane %v13930_v38, 1  ;;  %v13936_v47 = vsel %vm7146_vm1, %v13908_v62, %v7162_v20  ;;  %v13956_v20 = vsel %vm291_vm7, %v7249_v57, %v14892_v46 }
0x273f   : > { %v7207_v2 = vrot.slane %v13936_v47, 7  ;;  %v7255_v26 = vrot.slane %v13936_v47, 1  ;;  %v13946_v59 = vsel %vm7144_vm10, %v13923_v19, %v7160_v6  ;;  %v15005_v61 = vrot.slane %v13843_v41, 1 }
0x2740   : > { %v13950_v18 = vsel %vm1600_vm8, %v7203_v40, %v7204_v5  ;;  %v7205_v14 = vrot.slane %v13946_v59, 7  ;;  %v7253_v3 = vrot.slane %v13946_v59, 1  ;;  %v13982_v57 = vsel %vm291_vm7, %v14893_v29, %v7252_v0 }
0x2741   : > { %v13964_v6 = vpop.f32.mrb[164].mxu0  ;;  %v13968_v40 = vsel %vm1600_vm8, %v7206_v63, %v7207_v2 }
0x2742   : > { %15000 = vst [vmem:[#allocation22_spill] sm:$0xff] %v13964_v6  ;;  %vm7149_vm11 = vcmp.gt.f32.partialorder %v13964_v6, 0.0  ;;  %v7165_v51 = vmul.f32 0.1, %v13964_v6  ;;  %v13974_v7 = vpop.f32.mrb[165].mxu0  ;;  %v7218_v27 = vsel %vm1600_vm8, %v7204_v5, %v7205_v14  ;;  %v7217_v45 = vsel %vm1600_vm8, %v7205_v14, %v7206_v63 }
0x2743   : > { %15001 = vst [vmem:[#allocation23_spill] sm:$0xff] %v13974_v7  ;;  %vm7147_vm2 = vcmp.gt.f32.partialorder %v13974_v7, 0.0  ;;  %v7163_v1 = vmul.f32 0.1, %v13974_v7  ;;  %v13986_v39 = vpop.f32.mrb[166].mxu0  ;;  %v7304_v22 = vpack.c.bf16 %v7218_v27, %v13950_v18  ;;  %v7305_v18 = vpack.c.bf16 %v13968_v40, %v7217_v45 }
0x2744   : > { %15002 = vst [vmem:[#allocation8_spill] sm:$0xff] %v13986_v39  ;;  %v13993_v37 = vsel %vm7149_vm11, %v13964_v6, %v7165_v51  ;;  %vm7150_vm15 = vcmp.gt.f32.partialorder %v13986_v39, 0.0  ;;  %v7166_v32 = vmul.f32 0.1, %v13986_v39  ;;  %v13997_v33 = vpop.f32.mrb[167].mxu0 }
0x2745   : > { %15003 = vst [vmem:[#allocation11_spill] sm:$0xff] %v13997_v33  ;;  %v7210_v46 = vrot.slane %v13993_v37, 7  ;;  %v7258_v29 = vrot.slane %v13993_v37, 1  ;;  %v14003_v5 = vsel %vm7147_vm2, %v13974_v7, %v7163_v1  ;;  %vm7148_vm12 = vcmp.gt.f32.partialorder %v13997_v33, 0.0 }
0x2746   : > { %v7208_v51 = vrot.slane %v14003_v5, 7  ;;  %v7256_v14 = vrot.slane %v14003_v5, 1  ;;  %v7182_v63 = vsel %vm7150_vm15, %v13986_v39, %v7166_v32  ;;  %v7164_v6 = vmul.f32 0.1, %v13997_v33 }
0x2747   : > { %v7211_v19 = vrot.slane %v7182_v63, 7  ;;  %v7259_v62 = vrot.slane %v7182_v63, 1  ;;  %v7299_v27 = vpack.c.bf16 %v7182_v63, %v13993_v37  ;;  %v15004_v7 = vrot.slane %v13860_v60, 1 }
0x2748   : > { %v7180_v52 = vsel %vm7148_vm12, %v13997_v33, %v7164_v6  ;;  %v7215_v1 = vsel %vm1600_vm8, %v7207_v2, %v7208_v51  ;;  %v15006_v39 = vrot.slane %v13919_v50, 1  ;;  %v15007_v37 = vrot.slane %v13792_v21, 7 }
0x2749   : > { %v7268_v32 = vsel %vm291_vm7, %v15005_v61, %v15004_v7  ;;  %v7209_v45 = vrot.slane %v7180_v52, 7  ;;  %v7257_v40 = vrot.slane %v7180_v52, 1  ;;  %v7212_v2 = vsel %vm1600_vm8, %v7210_v46, %v7211_v19 }
0x274a   : > { %v7265_v49 = vsel %vm291_vm7, %v7253_v3, %v15006_v39  ;;  %v7227_v6 = vsel %vm1600_vm8, %v7211_v19, %v15007_v37  ;;  %v7298_v33 = vpack.c.bf16 %v7180_v52, %v14003_v5  ;;  %v7577_v7 = vpack.c.bf16 %v13982_v57, %v7268_v32 }
0x274b   : > { %v7228_v63 = vmul.f32 %v11621_v25, %v7227_v6  ;;  %v7266_v61 = vsel %vm291_vm7, %v7252_v0, %v7253_v3  ;;  %v7214_v39 = vsel %vm1600_vm8, %v7208_v51, %v7209_v45  ;;  %v7213_v35 = vsel %vm1600_vm8, %v7209_v45, %v7210_v46  ;;  %v11261_v0 = vld [vmem:[%s14853_s4 + $0x15c] sm:$0xff]  }
0x274c   : > { %v7578_v42 = vpack.c.bf16 %v7265_v49, %v7266_v61  ;;  %v7263_v37 = vsel %vm291_vm7, %v7255_v26, %v7256_v14  ;;  %v7306_v6 = vpack.c.bf16 %v7214_v39, %v7215_v1  ;;  %v7307_v24 = vpack.c.bf16 %v7212_v2, %v7213_v35 }
0x274d   : > { %v7300_v19 = vpack.c.bf16 %v13840_v55, %v7228_v63  ;;  %v15008_v52 = vrot.slane %v13919_v50, 1  ;;  %v7261_v49 = vsel %vm291_vm7, %v7257_v40, %v7258_v29  ;;  %v7262_v46 = vsel %vm291_vm7, %v7256_v14, %v7257_v40 }
0x274e   : > { %v7260_v55 = vsel %vm291_vm7, %v7258_v29, %v7259_v62  ;;  %v7580_v35 = vpack.c.bf16 %v7261_v49, %v7262_v46  ;;  %v15009_v5 = vrot.slane %v13792_v21, 1  ;;  %v15010_v51 = vpack.c.bf16 %v13812_v54, %v13830_v13  ;;  %v11262_v29 = vld [vmem:[%s14853_s4 + $0x164] sm:$0xff]   ;;  %v11263_v13 = vld [vmem:[%s14853_s4 + $0x16c] sm:$0xff]  }
0x274f   : > { %v7264_v57 = vsel %vm291_vm7, %v15008_v52, %v7255_v26  ;;  %10639 = vmatprep.mubr.msk.bf16.mxu1 %vm542_vm6, %v7300_v19  ;;  %v15011_v14 = vpack.c.bf16 %v13912_v10, %v13880_v56  ;;  %v15012_v54 = vpack.c.bf16 %v13896_v58, %v13916_v15  ;;  %v15014_v56 = vpack.c.bf16 %v13797_v28, %v13785_v43 }
0x2750   : > { %v7579_v3 = vpack.c.bf16 %v7263_v37, %v7264_v57  ;;  %v7275_v26 = vsel %vm291_vm7, %v7259_v62, %v15009_v5  ;;  %10640 = vmatmul.mubr.msk.bf16.vlgmr.msra.gmra.mrb[88].mxu1 %vm542_vm6, %v15010_v51  ;;  %v15015_v58 = vpack.c.bf16 %v13876_v4, %v13854_v12  ;;  %v15018_v43 = vpack.c.bf16 %v13936_v47, %v13919_v50  ;;  %v14143_v12 = vld [vmem:[%s14855_s6 + $0x12] ss:$0 sm:$0xff] }
0x2751   : > { %v7291_v1 = vmul.f32 %v12208_v36, %v7275_v26  ;;  %10643 = vmatprep.mubr.msk.bf16.mxu1 %vm542_vm6, %v15011_v14  ;;  %10656 = vmatpush3.bf16.msra.mxu1 %v13771_v48  ;;  %v15013_v48 = vpack.c.bf16 %v13807_v17, %v13792_v21  ;;  %v15016_v21 = vpack.c.bf16 %v13860_v60, %v13843_v41 }
0x2752   : > { %10657 = vmatprep.subr.bf16.mxu1 %v11261_v0  ;;  %v15017_v17 = vpack.c.bf16 %v13946_v59, %v13930_v38  ;;  %v15019_v28 = vpack.c.bf16 %v13869_v34, %v13886_v11  ;;  %v15021_v41 = vpack.c.bf16 %v13956_v20, %v13960_v44 }
0x2753   : > { %v7581_v62 = vpack.c.bf16 %v7291_v1, %v7260_v55 }
0x2755   : > { %10658 = vmatpush3.bf16.msra.mxu1 %v11261_v0 }
0x2756   : > { %10675 = vmatprep.subr.bf16.mxu1 %v11262_v29 }
0x2758   : > { %10644 = vmatmul.mubr.msk.bf16.gmra.mrb[92].mxu1 %vm542_vm6, %v15012_v54 }
0x2759   : > { %10647 = vmatprep.mubr.msk.bf16.mxu1 %vm542_vm6, %v7304_v22 }
0x2760   : > { %10648 = vmatmul.mubr.msk.bf16.gmra.mrb[96].mxu1 %vm542_vm6, %v7305_v18 }
0x2761   : > { %10651 = vmatprep.mubr.msk.bf16.mxu1 %vm542_vm6, %v7306_v6 }
0x2768   : > { %10652 = vmatmul.mubr.msk.bf16.gmra.mrb[100].mxu1 %vm542_vm6, %v7307_v24  ;;  %v15020_v24 = vpack.c.bf16 %v13873_v9, %v13816_v23  ;;  %v11265_v23 = vld [vmem:[%s14853_s4 + $0x17c] sm:$0xff]  }
0x2769   : > { %10659 = vmatprep.mubr.msk.bf16.mxu1 %vm542_vm6, %v15013_v48 }
0x2770   : > { %10660 = vmatmul.mubr.msk.bf16.vlgmr.msra.gmra.mrb[88].mxu1 %vm542_vm6, %v15014_v56 }
0x2771   : > { %10663 = vmatprep.mubr.msk.bf16.mxu1 %vm542_vm6, %v15015_v58  ;;  %10676 = vmatpush3.bf16.msra.mxu1 %v11262_v29 }
0x2772   : > { %10677 = vmatprep.subr.bf16.mxu1 %v11263_v13 }
0x2775   : > { %10678 = vmatpush3.bf16.msra.mxu1 %v11263_v13 }
0x2778   : > { %10664 = vmatmul.mubr.msk.bf16.gmra.mrb[92].mxu1 %vm542_vm6, %v15016_v21 }
0x2779   : > { %10667 = vmatprep.mubr.msk.bf16.mxu1 %vm542_vm6, %v15017_v17 }
0x2780   : > { %10668 = vmatmul.mubr.msk.bf16.gmra.mrb[96].mxu1 %vm542_vm6, %v15018_v43 }
0x2781   : > { %10671 = vmatprep.mubr.msk.bf16.mxu1 %vm542_vm6, %v7298_v33  ;;  %v11264_v33 = vld [vmem:[%s14853_s4 + $0x174] sm:$0xff]  }
0x2782   : > { %10695 = vmatprep.subr.bf16.mxu0 %v11264_v33 }
0x2783   : > { %10696 = vmatpush3.bf16.msra.mxu0 %v11264_v33 }
0x2784   : > { %10697 = vmatprep.subr.bf16.mxu0 %v11265_v23 }
0x2787   : > { %10698 = vmatpush3.bf16.msra.mxu0 %v11265_v23 }
0x2788   : > { %10672 = vmatmul.mubr.msk.bf16.gmra.mrb[100].mxu1 %vm542_vm6, %v7299_v27 }
0x2789   : > { %10679 = vmatprep.mubr.msk.bf16.mxu1 %vm542_vm6, %v15019_v28 }
0x2790   : > { %10680 = vmatmul.mubr.msk.bf16.vlgmr.msra.gmra.mrb[88].mxu1 %vm542_vm6, %v15020_v24 }
0x2791   : > { %10683 = vmatprep.mubr.msk.bf16.mxu1 %vm542_vm6, %v15021_v41 }
0x2798   : > { %10684 = vmatmul.mubr.msk.bf16.gmra.mrb[92].mxu1 %vm542_vm6, %v7577_v7 }
0x2799   : > { %10687 = vmatprep.mubr.msk.bf16.mxu1 %vm542_vm6, %v7578_v42  ;;  %v14137_v42 = vld [vmem:[%s14853_s4 + $0x184] sm:$0xff]  }
0x279a   : > { %10715 = vmatprep.subr.bf16.mxu0 %v14137_v42 }
0x27a0   : > { %10688 = vmatmul.mubr.msk.bf16.gmra.mrb[96].mxu1 %vm542_vm6, %v7579_v3 }
0x27a1   : > { %10691 = vmatprep.mubr.msk.bf16.mxu1 %vm542_vm6, %v7580_v35 }
0x27a8   : > { %10692 = vmatmul.mubr.msk.bf16.gmra.mrb[100].mxu1 %vm542_vm6, %v7581_v62 }
0x2863   : > { %v10681_v60 = vpop.f32.mrb[88].mxu1 }
0x2864   : > { %v7737_v34 = vadd.f32 %v10681_v60, %v14143_v12  ;;  %v7652_v9 = vpop.f32.mrb[89].mxu1 }
0x2865   : > { %v7735_v4 = vadd.f32 %v14143_v12, %v7652_v9  ;;  %v10682_v11 = vpop.f32.mrb[90].mxu1 }
0x2866   : > { %vm7753_vm9 = vcmp.gt.f32.partialorder %v7737_v34, 0.0  ;;  %v7769_v44 = vmul.f32 0.1, %v7737_v34  ;;  %v7738_v10 = vadd.f32 %v10682_v11, %v14143_v12  ;;  %v7655_v15 = vpop.f32.mrb[91].mxu1 }
0x2867   : > { %vm7751_vm14 = vcmp.gt.f32.partialorder %v7735_v4, 0.0  ;;  %v7767_v50 = vmul.f32 0.1, %v7735_v4  ;;  %v7736_v22 = vadd.f32 %v14143_v12, %v7655_v15 }
0x2868   : > { %v14149_v38 = vsel %vm7753_vm9, %v7737_v34, %v7769_v44  ;;  %vm7754_vm13 = vcmp.gt.f32.partialorder %v7738_v10, 0.0  ;;  %v7770_v47 = vmul.f32 0.1, %v7738_v10 }
0x2869   : > { %v14151_v59 = vsel %vm7751_vm14, %v7735_v4, %v7767_v50  ;;  %vm7752_vm3 = vcmp.gt.f32.partialorder %v7736_v22, 0.0  ;;  %v7814_v20 = vrot.slane %v14149_v38, 7  ;;  %v7768_v27 = vmul.f32 0.1, %v7736_v22 }
0x286a   : > { %v14154_v18 = vsel %vm7754_vm13, %v7738_v10, %v7770_v47  ;;  %v7862_v32 = vrot.slane %v14149_v38, 1  ;;  %v7812_v7 = vrot.slane %v14151_v59, 7  ;;  %v14906_v61 = vrot.slane %v14151_v59, 1 }
0x286b   : > { %v7815_v45 = vrot.slane %v14154_v18, 7  ;;  %v7863_v40 = vrot.slane %v14154_v18, 1  ;;  %v10685_v63 = vpop.f32.mrb[92].mxu1  ;;  %v14163_v39 = vsel %vm7752_vm3, %v7736_v22, %v7768_v27 }
0x286c   : > { %v7741_v37 = vadd.f32 %v10685_v63, %v14143_v12  ;;  %v7668_v19 = vpop.f32.mrb[93].mxu1  ;;  %v7813_v57 = vrot.slane %v14163_v39, 7  ;;  %v7861_v0 = vrot.slane %v14163_v39, 1 }
0x286d   : > { %v14168_v6 = vsel %vm1600_vm8, %v7814_v20, %v7815_v45  ;;  %v14172_v52 = vsel %vm291_vm7, %v7862_v32, %v7863_v40  ;;  %v10686_v3 = vpop.f32.mrb[94].mxu1  ;;  %v7739_v55 = vadd.f32 %v14143_v12, %v7668_v19 }
0x286e   : > { %vm7757_vm4 = vcmp.gt.f32.partialorder %v7741_v37, 0.0  ;;  %v7773_v46 = vmul.f32 0.1, %v7741_v37  ;;  %v7671_v35 = vpop.f32.mrb[95].mxu1  ;;  %v14181_v5 = vsel %vm1600_vm8, %v7813_v57, %v7814_v20  ;;  %v7742_v26 = vadd.f32 %v10686_v3, %v14143_v12 }
0x286f   : > { %v7740_v51 = vadd.f32 %v14143_v12, %v7671_v35  ;;  %v14189_v1 = vsel %vm1600_vm8, %v7812_v7, %v7813_v57  ;;  %vm7755_vm5 = vcmp.gt.f32.partialorder %v7739_v55, 0.0  ;;  %v7771_v62 = vmul.f32 0.1, %v7739_v55 }
0x2870   : > { %v14193_v29 = vsel %vm7757_vm4, %v7741_v37, %v7773_v46  ;;  %vm7758_vm0 = vcmp.gt.f32.partialorder %v7742_v26, 0.0  ;;  %v7774_v13 = vmul.f32 0.1, %v7742_v26  ;;  %v14201_v21 = vsel %vm291_vm7, %v7861_v0, %v7862_v32 }
0x2871   : > { %v7818_v54 = vrot.slane %v14193_v29, 7  ;;  %v7866_v48 = vrot.slane %v14193_v29, 1  ;;  %v14197_v56 = vsel %vm7755_vm5, %v7739_v55, %v7771_v62  ;;  %vm7756_vm1 = vcmp.gt.f32.partialorder %v7740_v51, 0.0 }
0x2872   : > { %v7772_v58 = vmul.f32 0.1, %v7740_v51  ;;  %v7816_v17 = vrot.slane %v14197_v56, 7  ;;  %v7864_v43 = vrot.slane %v14197_v56, 1  ;;  %v14205_v28 = vsel %vm7758_vm0, %v7742_v26, %v7774_v13 }
0x2873   : > { %v10689_v24 = vpop.f32.mrb[96].mxu1  ;;  %v14211_v41 = vsel %vm291_vm7, %v14906_v61, %v7861_v0  ;;  %v7819_v33 = vrot.slane %v14205_v28, 7  ;;  %v7867_v23 = vrot.slane %v14205_v28, 1 }
0x2874   : > { %v14217_v34 = vsel %vm7756_vm1, %v7740_v51, %v7772_v58  ;;  %v7684_v9 = vpop.f32.mrb[97].mxu1  ;;  %v14223_v4 = vsel %vm291_vm7, %v7863_v40, %v7864_v43  ;;  %v7745_v22 = vadd.f32 %v10689_v24, %v14143_v12  ;;  %v14241_v63 = vsel %vm1600_vm8, %v7815_v45, %v7816_v17 }
0x2875   : > { %v7817_v11 = vrot.slane %v14217_v34, 7  ;;  %v7865_v44 = vrot.slane %v14217_v34, 1  ;;  %v10690_v15 = vpop.f32.mrb[98].mxu1  ;;  %v7743_v47 = vadd.f32 %v14143_v12, %v7684_v9  ;;  %v14245_v37 = vsel %vm1600_vm8, %v7818_v54, %v7819_v33 }
0x2876   : > { %v7746_v20 = vadd.f32 %v10690_v15, %v14143_v12  ;;  %v7687_v27 = vpop.f32.mrb[99].mxu1  ;;  %vm7761_vm10 = vcmp.gt.f32.partialorder %v7745_v22, 0.0  ;;  %v7777_v19 = vmul.f32 0.1, %v7745_v22 }
0x2877   : > { %v7744_v32 = vadd.f32 %v14143_v12, %v7687_v27  ;;  %v14237_v40 = vsel %vm1600_vm8, %v7816_v17, %v7817_v11  ;;  %vm7759_vm11 = vcmp.gt.f32.partialorder %v7743_v47, 0.0  ;;  %v7775_v57 = vmul.f32 0.1, %v7743_v47 }
0x2878   : > { %vm7762_vm2 = vcmp.gt.f32.partialorder %v7746_v20, 0.0  ;;  %v7778_v0 = vmul.f32 0.1, %v7746_v20  ;;  %v14247_v46 = vsel %vm7761_vm10, %v7745_v22, %v7777_v19  ;;  %v14255_v35 = vsel %vm1600_vm8, %v7817_v11, %v7818_v54 }
0x2879   : > { %vm7760_vm15 = vcmp.gt.f32.partialorder %v7744_v32, 0.0  ;;  %v7776_v3 = vmul.f32 0.1, %v7744_v32  ;;  %v14249_v55 = vsel %vm7759_vm11, %v7743_v47, %v7775_v57  ;;  %v7822_v26 = vrot.slane %v14247_v46, 7 }
0x287a   : > { %v7820_v62 = vrot.slane %v14249_v55, 7  ;;  %v7868_v13 = vrot.slane %v14249_v55, 1  ;;  %v14261_v17 = vsel %vm7762_vm2, %v7746_v20, %v7778_v0 }
0x287b   : > { %v10693_v58 = vpop.f32.mrb[100].mxu1  ;;  %v14263_v24 = vsel %vm7760_vm15, %v7744_v32, %v7776_v3  ;;  %v7823_v11 = vrot.slane %v14261_v17, 7  ;;  %v7871_v22 = vrot.slane %v14261_v17, 1 }
0x287c   : > { %v7749_v9 = vadd.f32 %v10693_v58, %v14143_v12  ;;  %v7700_v15 = vpop.f32.mrb[101].mxu1  ;;  %v7821_v27 = vrot.slane %v14263_v24, 7  ;;  %v7869_v20 = vrot.slane %v14263_v24, 1  ;;  %v14287_v10 = vsel %vm1600_vm8, %v7819_v33, %v7820_v62 }
0x287d   : > { %v10694_v19 = vpop.f32.mrb[102].mxu1  ;;  %v7747_v3 = vadd.f32 %v14143_v12, %v7700_v15  ;;  %v14291_v32 = vsel %vm1600_vm8, %v7822_v26, %v7823_v11 }
0x287e   : > { %vm7765_vm12 = vcmp.gt.f32.partialorder %v7749_v9, 0.0  ;;  %v7781_v57 = vmul.f32 0.1, %v7749_v9  ;;  %v7703_v0 = vpop.f32.mrb[103].mxu1  ;;  %v7750_v58 = vadd.f32 %v10694_v19, %v14143_v12  ;;  %v14281_v47 = vsel %vm1600_vm8, %v7820_v62, %v7821_v27 }
0x287f   : > { %v7748_v50 = vadd.f32 %v14143_v12, %v7703_v0  ;;  %v14295_v15 = vsel %vm1600_vm8, %v7821_v27, %v7822_v26  ;;  %vm7763_vm9 = vcmp.gt.f32.partialorder %v7747_v3, 0.0  ;;  %v7779_v0 = vmul.f32 0.1, %v7747_v3 }
0x2880   : > { %v14283_v60 = vsel %vm7765_vm12, %v7749_v9, %v7781_v57  ;;  %vm7766_vm14 = vcmp.gt.f32.partialorder %v7750_v58, 0.0  ;;  %v7782_v9 = vmul.f32 0.1, %v7750_v58  ;;  %v7920_v62 = vpack.c.bf16 %v14281_v47, %v14287_v10 }
0x2881   : > { %v7826_v12 = vrot.slane %v14283_v60, 7  ;;  %v7874_v19 = vrot.slane %v14283_v60, 1  ;;  %vm7764_vm13 = vcmp.gt.f32.partialorder %v7748_v50, 0.0  ;;  %v7780_v57 = vmul.f32 0.1, %v7748_v50 }
0x2882   : > { %v14299_v33 = vsel %vm7763_vm9, %v7747_v3, %v7779_v0  ;;  %v7921_v2 = vpack.c.bf16 %v14291_v32, %v14295_v15  ;;  %v8190_v26 = vpack.c.bf16 %v14201_v21, %v14211_v41  ;;  %v7798_v54 = vsel %vm7766_vm14, %v7750_v58, %v7782_v9  ;;  %v14456_v21 = vld [vmem:[%s14855_s6 + $0x13] ss:$0 sm:$0xff] }
0x2883   : > { %v7824_v27 = vrot.slane %v14299_v33, 7  ;;  %v7872_v49 = vrot.slane %v14299_v33, 1  ;;  %v7796_v45 = vsel %vm7764_vm13, %v7748_v50, %v7780_v57  ;;  %v7827_v14 = vrot.slane %v7798_v54, 7 }
0x2884   : > { %v7875_v61 = vrot.slane %v7798_v54, 1  ;;  %v7915_v3 = vpack.c.bf16 %v7798_v54, %v14283_v60  ;;  %v7825_v0 = vrot.slane %v7796_v45, 7  ;;  %v7873_v51 = vrot.slane %v7796_v45, 1 }
0x2885   : > { %v7914_v10 = vpack.c.bf16 %v7796_v45, %v14299_v33  ;;  %v7831_v47 = vsel %vm1600_vm8, %v7823_v11, %v7824_v27  ;;  %v7885_v32 = vsel %vm291_vm7, %v7865_v44, %v7866_v48  ;;  %v7843_v50 = vsel %vm1600_vm8, %v7827_v14, %v7812_v7 }
0x2886   : > { %v7830_v60 = vsel %vm1600_vm8, %v7824_v27, %v7825_v0  ;;  %v7828_v45 = vsel %vm1600_vm8, %v7826_v12, %v7827_v14  ;;  %v7829_v54 = vsel %vm1600_vm8, %v7825_v0, %v7826_v12  ;;  %v7844_v11 = vmul.f32 %v11621_v25, %v7843_v50 }
0x2887   : > { %v7922_v58 = vpack.c.bf16 %v7830_v60, %v7831_v47  ;;  %v7923_v15 = vpack.c.bf16 %v7828_v45, %v7829_v54  ;;  %v7886_v7 = vsel %vm291_vm7, %v7864_v43, %v7865_v44  ;;  %v7883_v14 = vsel %vm291_vm7, %v7867_v23, %v7868_v13 }
0x2888   : > { %v8192_v9 = vpack.c.bf16 %v7885_v32, %v7886_v7  ;;  %v7884_v12 = vsel %vm291_vm7, %v7866_v48, %v7867_v23  ;;  %v15022_v57 = vrot.slane %v14247_v46, 1  ;;  %v7916_v44 = vpack.c.bf16 %v14189_v1, %v7844_v11  ;;  %v11267_v48 = vld [vmem:[%s14853_s4 + $0x18c] sm:$0xff]  }
0x2889   : > { %v8193_v33 = vpack.c.bf16 %v7883_v14, %v7884_v12  ;;  %v7882_v27 = vsel %vm291_vm7, %v7868_v13, %v7869_v20  ;;  %v7879_v0 = vsel %vm291_vm7, %v7871_v22, %v7872_v49  ;;  %v7877_v1 = vsel %vm291_vm7, %v7873_v51, %v7874_v19 }
0x288a   : > { %v7881_v43 = vsel %vm291_vm7, %v7869_v20, %v15022_v57  ;;  %v15023_v47 = vmov %v15022_v57  ;;  %v7878_v50 = vsel %vm291_vm7, %v7872_v49, %v7873_v51  ;;  %10699 = vmatprep.mubr.msk.bf16.mxu0 %vm542_vm6, %v7916_v44  ;;  %v7876_v60 = vsel %vm291_vm7, %v7874_v19, %v7875_v61  ;;  %v11268_v51 = vld [vmem:[%s14853_s4 + $0x194] sm:$0xff]  }
0x288b   : > { %v8194_v23 = vpack.c.bf16 %v7881_v43, %v7882_v27  ;;  %v7880_v32 = vsel %vm291_vm7, %v15023_v47, %v7871_v22  ;;  %v8196_v20 = vpack.c.bf16 %v7877_v1, %v7878_v50  ;;  %v15024_v45 = vrot.slane %v14151_v59, 1 }
0x288c   : > { %v8195_v13 = vpack.c.bf16 %v7879_v0, %v7880_v32  ;;  %v15025_v22 = vpack.c.bf16 %v14168_v6, %v14181_v5  ;;  %v15026_v49 = vpack.c.bf16 %v14237_v40, %v14241_v63  ;;  %v15027_v6 = vpack.c.bf16 %v14245_v37, %v14255_v35  ;;  %v11269_v5 = vld [vmem:[%s14853_s4 + $0x19c] sm:$0xff]  }
0x288d   : > { %v7891_v54 = vsel %vm291_vm7, %v7875_v61, %v15024_v45  ;;  %v15029_v40 = vpack.c.bf16 %v14154_v18, %v14149_v38  ;;  %v15033_v38 = vpack.c.bf16 %v14261_v17, %v14247_v46  ;;  %v15034_v18 = vpack.c.bf16 %v14223_v4, %v14172_v52  ;;  %v11271_v52 = vld [vmem:[%s14854_s5 + $0x48] sm:$0xff]  }
0x288e   : > { %10700 = vmatmul.mubr.msk.bf16.vlgmr.msra.gmra.mrb[168].mxu0 %vm542_vm6, %v15025_v22  ;;  %v7907_v11 = vmul.f32 %v12208_v36, %v7891_v54  ;;  %v15037_v54 = vld [vmem:[#allocation16_spill] sm:$0xff] }
0x288f   : > { %10703 = vmatprep.mubr.msk.bf16.mxu0 %vm542_vm6, %v15026_v49  ;;  %10716 = vmatpush3.bf16.msra.mxu0 %v14137_v42  ;;  %v15028_v42 = vpack.c.bf16 %v14163_v39, %v14151_v59  ;;  %v15031_v59 = vpack.c.bf16 %v14205_v28, %v14193_v29  ;;  %v15032_v39 = vpack.c.bf16 %v14263_v24, %v14249_v55  ;;  %v11270_v29 = vld [vmem:[%s14854_s5 + $0x40] sm:$0xff]  }
0x2890   : > { %10717 = vmatprep.subr.bf16.mxu0 %v11267_v48  ;;  %v8197_v61 = vpack.c.bf16 %v7907_v11, %v7876_v60  ;;  %10755 = vmatprep.subr.bf16.mxu1 %v11270_v29  ;;  %v15036_v60 = vld [vmem:[#allocation15_spill] sm:$0xff] }
0x2891   : > { %10756 = vmatpush3.bf16.msra.mxu1 %v11270_v29 }
0x2892   : > { %10757 = vmatprep.subr.bf16.mxu1 %v11271_v52 }
0x2893   : > { %10718 = vmatpush3.bf16.msra.mxu0 %v11267_v48 }
0x2894   : > { %10735 = vmatprep.subr.bf16.mxu0 %v11268_v51 }
0x2895   : > { %10758 = vmatpush3.bf16.msra.mxu1 %v11271_v52 }
0x2896   : > { %10704 = vmatmul.mubr.msk.bf16.gmra.mrb[172].mxu0 %vm542_vm6, %v15027_v6 }
0x2897   : > { %10707 = vmatprep.mubr.msk.bf16.mxu0 %vm542_vm6, %v7920_v62 }
0x289e   : > { %10708 = vmatmul.mubr.msk.bf16.gmra.mrb[176].mxu0 %vm542_vm6, %v7921_v2  ;;  %v15030_v2 = vpack.c.bf16 %v14217_v34, %v14197_v56  ;;  %v14450_v56 = vld [vmem:[%s14854_s5 + $0x50] sm:$0xff]  }
0x289f   : > { %10711 = vmatprep.mubr.msk.bf16.mxu0 %vm542_vm6, %v7922_v58  ;;  %10775 = vmatprep.subr.bf16.mxu1 %v14450_v56 }
0x28a6   : > { %10712 = vmatmul.mubr.msk.bf16.gmra.mrb[180].mxu0 %vm542_vm6, %v7923_v15 }
0x28a7   : > { %10719 = vmatprep.mubr.msk.bf16.mxu0 %vm542_vm6, %v15028_v42 }
0x28ae   : > { %10720 = vmatmul.mubr.msk.bf16.vlgmr.msra.gmra.mrb[168].mxu0 %vm542_vm6, %v15029_v40 }
0x28af   : > { %10723 = vmatprep.mubr.msk.bf16.mxu0 %vm542_vm6, %v15030_v2  ;;  %10736 = vmatpush3.bf16.msra.mxu0 %v11268_v51 }
0x28b0   : > { %10737 = vmatprep.subr.bf16.mxu0 %v11269_v5 }
0x28b3   : > { %10738 = vmatpush3.bf16.msra.mxu0 %v11269_v5 }
0x28b6   : > { %10724 = vmatmul.mubr.msk.bf16.gmra.mrb[172].mxu0 %vm542_vm6, %v15031_v59  ;;  %v15038_v59 = vld [vmem:[#allocation17_spill] sm:$0xff] }
0x28b7   : > { %10727 = vmatprep.mubr.msk.bf16.mxu0 %vm542_vm6, %v15032_v39 }
0x28be   : > { %10728 = vmatmul.mubr.msk.bf16.gmra.mrb[176].mxu0 %vm542_vm6, %v15033_v38 }
0x28bf   : > { %10731 = vmatprep.mubr.msk.bf16.mxu0 %vm542_vm6, %v7914_v10 }
0x28c6   : > { %10732 = vmatmul.mubr.msk.bf16.gmra.mrb[180].mxu0 %vm542_vm6, %v7915_v3 }
0x28c7   : > { %10739 = vmatprep.mubr.msk.bf16.mxu0 %vm542_vm6, %v8190_v26 }
0x28ce   : > { %10740 = vmatmul.mubr.msk.bf16.vlgmr.msra.gmra.mrb[168].mxu0 %vm542_vm6, %v15034_v18 }
0x28cf   : > { %10743 = vmatprep.mubr.msk.bf16.mxu0 %vm542_vm6, %v8192_v9 }
0x28d6   : > { %10744 = vmatmul.mubr.msk.bf16.gmra.mrb[172].mxu0 %vm542_vm6, %v8193_v33 }
0x28d7   : > { %10747 = vmatprep.mubr.msk.bf16.mxu0 %vm542_vm6, %v8194_v23 }
0x28de   : > { %10748 = vmatmul.mubr.msk.bf16.gmra.mrb[176].mxu0 %vm542_vm6, %v8195_v13  ;;  %v15035_v13 = vld [vmem:[#allocation14_spill] sm:$0xff] }
0x28df   : > { %10751 = vmatprep.mubr.msk.bf16.mxu0 %vm542_vm6, %v8196_v20 }
0x28e6   : > { %10752 = vmatmul.mubr.msk.bf16.gmra.mrb[180].mxu0 %vm542_vm6, %v8197_v61 }
0x29a1   : > { %v10741_v28 = vpop.f32.mrb[168].mxu0 }
0x29a2   : > { %v8353_v41 = vadd.f32 %v10741_v28, %v14456_v21  ;;  %v8268_v34 = vpop.f32.mrb[169].mxu0 }
0x29a3   : > { %v8351_v4 = vadd.f32 %v14456_v21, %v8268_v34  ;;  %v10742_v63 = vpop.f32.mrb[170].mxu0 }
0x29a4   : > { %v8369_v37 = vadd.f32 %v13774_v30, %v8353_v41  ;;  %v8354_v46 = vadd.f32 %v10742_v63, %v14456_v21  ;;  %v8271_v55 = vpop.f32.mrb[171].mxu0 }
0x29a5   : > { %v8367_v35 = vadd.f32 %v8351_v4, %v13778_v31  ;;  %v8352_v17 = vadd.f32 %v14456_v21, %v8271_v55 }
0x29a6   : > { %vm8385_vm3 = vcmp.gt.f32.partialorder %v8369_v37, 0.0  ;;  %v8401_v24 = vmul.f32 0.1, %v8369_v37  ;;  %v8370_v19 = vadd.f32 %v13782_v53, %v8354_v46 }
0x29a7   : > { %vm8383_vm4 = vcmp.gt.f32.partialorder %v8367_v35, 0.0  ;;  %v8399_v62 = vmul.f32 0.1, %v8367_v35  ;;  %v8368_v26 = vadd.f32 %v8352_v17, %v13789_v8 }
0x29a8   : > { %v14466_v3 = vsel %vm8385_vm3, %v8369_v37, %v8401_v24  ;;  %vm8386_vm5 = vcmp.gt.f32.partialorder %v8370_v19, 0.0  ;;  %v8402_v10 = vmul.f32 0.1, %v8370_v19 }
0x29a9   : > { %v8446_v30 = vrot.slane %v14466_v3, 7  ;;  %v14469_v58 = vsel %vm8383_vm4, %v8367_v35, %v8399_v62  ;;  %vm8384_vm0 = vcmp.gt.f32.partialorder %v8368_v26, 0.0  ;;  %v10745_v31 = vpop.f32.mrb[172].mxu0  ;;  %v8494_v15 = vrot.slane %v14466_v3, 1  ;;  %v15039_v62 = vld [vmem:[#allocation18_spill] sm:$0xff] }
0x29aa   : > { %v8444_v7 = vrot.slane %v14469_v58, 7  ;;  %v14473_v9 = vsel %vm8386_vm5, %v8370_v19, %v8402_v10  ;;  %v8400_v53 = vmul.f32 0.1, %v8368_v26  ;;  %v8284_v14 = vpop.f32.mrb[173].mxu0  ;;  %v8357_v43 = vadd.f32 %v10745_v31, %v14456_v21 }
0x29ab   : > { %v8447_v8 = vrot.slane %v14473_v9, 7  ;;  %v8495_v12 = vrot.slane %v14473_v9, 1  ;;  %v10746_v44 = vpop.f32.mrb[174].mxu0  ;;  %v8492_v33 = vrot.slane %v14469_v58, 1  ;;  %v8355_v0 = vadd.f32 %v14456_v21, %v8284_v14 }
0x29ac   : > { %v14481_v27 = vsel %vm8384_vm0, %v8368_v26, %v8400_v53  ;;  %v8358_v48 = vadd.f32 %v10746_v44, %v14456_v21  ;;  %v8287_v23 = vpop.f32.mrb[175].mxu0  ;;  %v8373_v20 = vadd.f32 %v15035_v13, %v8357_v43 }
0x29ad   : > { %v14487_v47 = vsel %vm1600_vm8, %v8446_v30, %v8447_v8  ;;  %v14491_v32 = vsel %vm291_vm7, %v8494_v15, %v8495_v12  ;;  %v8445_v1 = vrot.slane %v14481_v27, 7  ;;  %v8493_v50 = vrot.slane %v14481_v27, 1 }
0x29ae   : > { %v8371_v45 = vadd.f32 %v8355_v0, %v15036_v60  ;;  %v8374_v22 = vadd.f32 %v15037_v54, %v8358_v48  ;;  %v8356_v11 = vadd.f32 %v14456_v21, %v8287_v23  ;;  %vm8389_vm1 = vcmp.gt.f32.partialorder %v8373_v20, 0.0  ;;  %v15040_v48 = vld [vmem:[#allocation19_spill] sm:$0xff] }
0x29af   : > { %v14501_v49 = vsel %vm1600_vm8, %v8445_v1, %v8446_v30  ;;  %v14507_v51 = vsel %vm1600_vm8, %v8444_v7, %v8445_v1  ;;  %v14513_v6 = vsel %vm291_vm7, %v8493_v50, %v8494_v15  ;;  %v8405_v5 = vmul.f32 0.1, %v8373_v20  ;;  %v15041_v1 = vld [vmem:[#allocation20_spill] sm:$0xff] }
0x29b0   : > { %v8549_v42 = vpack.c.bf16 %v14487_v47, %v14501_v49  ;;  %vm8387_vm10 = vcmp.gt.f32.partialorder %v8371_v45, 0.0  ;;  %v8403_v40 = vmul.f32 0.1, %v8371_v45  ;;  %vm8390_vm11 = vcmp.gt.f32.partialorder %v8374_v22, 0.0  ;;  %v11275_v49 = vld [vmem:[%s14854_s5 + $0x68] sm:$0xff]  }
0x29b1   : > { %v8406_v2 = vmul.f32 0.1, %v8374_v22  ;;  %v8372_v39 = vadd.f32 %v8356_v11, %v15038_v59  ;;  %v10749_v38 = vpop.f32.mrb[176].mxu0  ;;  %v14518_v18 = vsel %vm8389_vm1, %v8373_v20, %v8405_v5  ;;  %v14525_v28 = vsel %vm291_vm7, %v8492_v33, %v8493_v50  ;;  %v15042_v20 = vld [vmem:[#allocation21_spill] sm:$0xff] }
0x29b2   : > { %v8361_v29 = vadd.f32 %v10749_v38, %v14456_v21  ;;  %v8300_v52 = vpop.f32.mrb[177].mxu0  ;;  %v8450_v41 = vrot.slane %v14518_v18, 7  ;;  %v8498_v34 = vrot.slane %v14518_v18, 1  ;;  %v14529_v4 = vsel %vm8387_vm10, %v8371_v45, %v8403_v40 }
0x29b3   : > { %v14531_v63 = vsel %vm8390_vm11, %v8374_v22, %v8406_v2  ;;  %v10750_v37 = vpop.f32.mrb[178].mxu0  ;;  %v8448_v46 = vrot.slane %v14529_v4, 7  ;;  %v8496_v55 = vrot.slane %v14529_v4, 1  ;;  %vm8388_vm2 = vcmp.gt.f32.partialorder %v8372_v39, 0.0 }
0x29b4   : > { %v8451_v35 = vrot.slane %v14531_v63, 7  ;;  %v8499_v17 = vrot.slane %v14531_v63, 1  ;;  %v8303_v24 = vpop.f32.mrb[179].mxu0  ;;  %v8404_v19 = vmul.f32 0.1, %v8372_v39  ;;  %v8377_v26 = vadd.f32 %v15039_v62, %v8361_v29 }
0x29b5   : > { %v8359_v10 = vadd.f32 %v14456_v21, %v8300_v52  ;;  %v14543_v30 = vsel %vm291_vm7, %v8495_v12, %v8496_v55  ;;  %v8362_v31 = vadd.f32 %v10750_v37, %v14456_v21  ;;  %v8360_v15 = vadd.f32 %v14456_v21, %v8303_v24 }
0x29b6   : > { %v14549_v53 = vsel %vm1600_vm8, %v8447_v8, %v8448_v46  ;;  %v14553_v43 = vsel %vm8388_vm2, %v8372_v39, %v8404_v19  ;;  %vm8393_vm15 = vcmp.gt.f32.partialorder %v8377_v26, 0.0  ;;  %v8409_v44 = vmul.f32 0.1, %v8377_v26 }
0x29b7   : > { %v8449_v0 = vrot.slane %v14553_v43, 7  ;;  %v8497_v12 = vrot.slane %v14553_v43, 1  ;;  %v8375_v23 = vadd.f32 %v8359_v10, %v15040_v48  ;;  %v8378_v50 = vadd.f32 %v15041_v1, %v8362_v31  ;;  %v15044_v1 = vld [vmem:[#allocation23_spill] sm:$0xff] }
0x29b8   : > { %v14559_v13 = vsel %vm8393_vm15, %v8377_v26, %v8409_v44  ;;  %v8376_v8 = vadd.f32 %v8360_v15, %v15042_v20  ;;  %v14564_v45 = vsel %vm1600_vm8, %v8450_v41, %v8451_v35  ;;  %v8822_v61 = vpack.c.bf16 %v14513_v6, %v14525_v28 }
0x29b9   : > { %v10753_v60 = vpop.f32.mrb[180].mxu0  ;;  %v8454_v22 = vrot.slane %v14559_v13, 7  ;;  %v8502_v11 = vrot.slane %v14559_v13, 1  ;;  %vm8391_vm12 = vcmp.gt.f32.partialorder %v8375_v23, 0.0  ;;  %v8407_v5 = vmul.f32 0.1, %v8375_v23 }
0x29ba   : > { %v8316_v40 = vpop.f32.mrb[181].mxu0  ;;  %vm8394_vm9 = vcmp.gt.f32.partialorder %v8378_v50, 0.0  ;;  %v8410_v2 = vmul.f32 0.1, %v8378_v50  ;;  %vm8392_vm14 = vcmp.gt.f32.partialorder %v8376_v8, 0.0  ;;  %v8365_v38 = vadd.f32 %v10753_v60, %v14456_v21 }
0x29bb   : > { %v8408_v59 = vmul.f32 0.1, %v8376_v8  ;;  %v14570_v39 = vsel %vm8391_vm12, %v8375_v23, %v8407_v5  ;;  %v8363_v29 = vadd.f32 %v14456_v21, %v8316_v40  ;;  %v10754_v52 = vpop.f32.mrb[182].mxu0  ;;  %v14576_v37 = vsel %vm1600_vm8, %v8448_v46, %v8449_v0  ;;  %v15043_v23 = vld [vmem:[#allocation22_spill] sm:$0xff] }
0x29bc   : > { %v8452_v24 = vrot.slane %v14570_v39, 7  ;;  %v8500_v19 = vrot.slane %v14570_v39, 1  ;;  %v14580_v62 = vsel %vm8394_vm9, %v8378_v50, %v8410_v2  ;;  %v8319_v10 = vpop.f32.mrb[183].mxu0  ;;  %v8381_v46 = vadd.f32 %v15043_v23, %v8365_v38 }
0x29bd   : > { %v14582_v26 = vsel %vm8392_vm14, %v8376_v8, %v8408_v59  ;;  %v8455_v31 = vrot.slane %v14580_v62, 7  ;;  %v8503_v15 = vrot.slane %v14580_v62, 1  ;;  %v8379_v20 = vadd.f32 %v8363_v29, %v15044_v1 }
0x29be   : > { %v8453_v44 = vrot.slane %v14582_v26, 7  ;;  %v8501_v48 = vrot.slane %v14582_v26, 1  ;;  %v8366_v60 = vadd.f32 %v10754_v52, %v14456_v21  ;;  %v8364_v50 = vadd.f32 %v14456_v21, %v8319_v10  ;;  %v15045_v21 = vld [vmem:[#allocation8_spill] sm:$0xff]  ;;  %v15046_v52 = vld [vmem:[#allocation11_spill] sm:$0xff] }
0x29bf   : > { %v8550_v8 = vpack.c.bf16 %v14576_v37, %v14549_v53  ;;  %v14596_v5 = vsel %vm1600_vm8, %v8449_v0, %v8450_v41  ;;  %v14604_v2 = vsel %vm1600_vm8, %v8451_v35, %v8452_v24  ;;  %vm8397_vm13 = vcmp.gt.f32.partialorder %v8381_v46, 0.0 }
0x29c0   : > { %v14600_v40 = vsel %vm1600_vm8, %v8452_v24, %v8453_v44  ;;  %v8413_v59 = vmul.f32 0.1, %v8381_v46  ;;  %vm8395_vm3 = vcmp.gt.f32.partialorder %v8379_v20, 0.0  ;;  %v8411_v38 = vmul.f32 0.1, %v8379_v20 }
0x29c1   : > { %v8382_v29 = vadd.f32 %v15045_v21, %v8366_v60  ;;  %v8380_v10 = vadd.f32 %v8364_v50, %v15046_v52  ;;  %v14618_v35 = vsel %vm1600_vm8, %v8454_v22, %v8455_v31  ;;  %v8465_v24 = vsel %vm1600_vm8, %v8453_v44, %v8454_v22 }
0x29c2   : > { %v14612_v23 = vsel %vm8397_vm13, %v8381_v46, %v8413_v59  ;;  %v14614_v1 = vsel %vm8395_vm3, %v8379_v20, %v8411_v38  ;;  %v8553_v59 = vpack.c.bf16 %v14618_v35, %v8465_v24  ;;  %v8543_v22 = vpack.c.bf16 %v14531_v63, %v14518_v18 }
0x29c3   : > { %v8458_v60 = vrot.slane %v14612_v23, 7  ;;  %v8506_v50 = vrot.slane %v14612_v23, 1  ;;  %v8456_v21 = vrot.slane %v14614_v1, 7  ;;  %v8504_v52 = vrot.slane %v14614_v1, 1 }
0x29c4   : > { %vm8398_vm4 = vcmp.gt.f32.partialorder %v8382_v29, 0.0  ;;  %v8414_v46 = vmul.f32 0.1, %v8382_v29  ;;  %vm8396_vm5 = vcmp.gt.f32.partialorder %v8380_v10, 0.0  ;;  %v8412_v20 = vmul.f32 0.1, %v8380_v10 }
0x29c5   : > { %v8463_v38 = vsel %vm1600_vm8, %v8455_v31, %v8456_v21  ;;  %v8544_v44 = vpack.c.bf16 %v14582_v26, %v14570_v39  ;;  %v8545_v57 = vpack.c.bf16 %v14580_v62, %v14559_v13  ;;  %v8518_v6 = vsel %vm291_vm7, %v8496_v55, %v8497_v12 }
0x29c6   : > { %v14633_v14 = vsel %vm8398_vm4, %v8382_v29, %v8414_v46  ;;  %v8428_v54 = vsel %vm8396_vm5, %v8380_v10, %v8412_v20  ;;  %v8517_v29 = vsel %vm291_vm7, %v8497_v12, %v8498_v34  ;;  %v8516_v55 = vsel %vm291_vm7, %v8498_v34, %v8499_v17  ;;  %v11273_v34 = vld [vmem:[%s14854_s5 + $0x58] sm:$0xff]  }
0x29c7   : > { %v8459_v35 = vrot.slane %v14633_v14, 7  ;;  %v8507_v24 = vrot.slane %v14633_v14, 1  ;;  %v8457_v31 = vrot.slane %v8428_v54, 7  ;;  %v8505_v0 = vrot.slane %v8428_v54, 1 }
0x29c8   : > { %v8546_v41 = vpack.c.bf16 %v8428_v54, %v14614_v1  ;;  %v8547_v26 = vpack.c.bf16 %v14633_v14, %v14612_v23  ;;  %v8824_v20 = vpack.c.bf16 %v8517_v29, %v8518_v6  ;;  %v8514_v12 = vsel %vm291_vm7, %v8500_v19, %v8501_v48 }
0x29c9   : > { %v8475_v28 = vsel %vm1600_vm8, %v8459_v35, %v8444_v7  ;;  %v8462_v14 = vsel %vm1600_vm8, %v8456_v21, %v8457_v31  ;;  %v8460_v54 = vsel %vm1600_vm8, %v8458_v60, %v8459_v35  ;;  %v8461_v10 = vsel %vm1600_vm8, %v8457_v31, %v8458_v60 }
0x29ca   : > { %v8476_v23 = vmul.f32 %v11621_v25, %v8475_v28  ;;  %v8554_v1 = vpack.c.bf16 %v8462_v14, %v8463_v38  ;;  %v8555_v46 = vpack.c.bf16 %v8460_v54, %v8461_v10  ;;  %v8515_v7 = vsel %vm291_vm7, %v8499_v17, %v8500_v19 }
0x29cb   : > { %v8513_v25 = vsel %vm291_vm7, %v8501_v48, %v8502_v11  ;;  %v8825_v21 = vpack.c.bf16 %v8515_v7, %v8516_v55  ;;  %v8511_v18 = vsel %vm291_vm7, %v8503_v15, %v8504_v52  ;;  %v8512_v63 = vsel %vm291_vm7, %v8502_v11, %v8503_v15 }
0x29cc   : > { %v8548_v60 = vpack.c.bf16 %v14507_v51, %v8476_v23  ;;  %v8826_v38 = vpack.c.bf16 %v8513_v25, %v8514_v12  ;;  %v8509_v51 = vsel %vm291_vm7, %v8505_v0, %v8506_v50  ;;  %v8510_v17 = vsel %vm291_vm7, %v8504_v52, %v8505_v0 }
0x29cd   : > { %v8508_v39 = vsel %vm291_vm7, %v8506_v50, %v8507_v24  ;;  %v8827_v19 = vpack.c.bf16 %v8511_v18, %v8512_v63  ;;  %v8828_v48 = vpack.c.bf16 %v8509_v51, %v8510_v17  ;;  %v8523_v13 = vsel %vm291_vm7, %v8507_v24, %v8492_v33 }
0x29ce   : > { %10759 = vmatprep.mubr.msk.bf16.mxu1 %vm542_vm6, %v8548_v60  ;;  %v8539_v11 = vmul.f32 %v12208_v36, %v8523_v13  ;;  %v15047_v47 = vpack.c.bf16 %v14564_v45, %v14596_v5  ;;  %v15048_v36 = vpack.c.bf16 %v14600_v40, %v14604_v2  ;;  %v15051_v53 = vpack.c.bf16 %v14553_v43, %v14529_v4  ;;  %v4721_v2 = vpop.trf.xlu0 }
0x29cf   : > { %10760 = vmatmul.mubr.msk.bf16.vlgmr.msra.gmra.mrb[104].mxu1 %vm542_vm6, %v8549_v42  ;;  %v15050_v42 = vpack.c.bf16 %v14473_v9, %v14466_v3  ;;  %v15052_v3 = vpack.c.bf16 %v14543_v30, %v14491_v32  ;;  %4737 = vst [vmem:[%s14780_s13] sm:$0x1] %v4721_v2 }
0x29d0   : > { %10763 = vmatprep.mubr.msk.bf16.mxu1 %vm542_vm6, %v8550_v8  ;;  %10776 = vmatpush3.bf16.msra.mxu1 %v14450_v56  ;;  %v8829_v33 = vpack.c.bf16 %v8539_v11, %v8508_v39  ;;  %v15049_v56 = vpack.c.bf16 %v14481_v27, %v14469_v58  ;;  %v14770_v58 = vld [vmem:[%s14855_s6 + $0x14] ss:$0 sm:$0xff] }
0x29d1   : > { %10777 = vmatprep.subr.bf16.mxu1 %v11273_v34 }
0x29d4   : > { %10778 = vmatpush3.bf16.msra.mxu1 %v11273_v34 }
0x29d5   : > { %10795 = vmatprep.subr.bf16.mxu1 %v11274_v16 }
0x29d7   : > { %10764 = vmatmul.mubr.msk.bf16.gmra.mrb[108].mxu1 %vm542_vm6, %v15047_v47 }
0x29d8   : > { %10767 = vmatprep.mubr.msk.bf16.mxu1 %vm542_vm6, %v15048_v36 }
0x29df   : > { %10768 = vmatmul.mubr.msk.bf16.gmra.mrb[112].mxu1 %vm542_vm6, %v8553_v59 }
0x29e0   : > { %10771 = vmatprep.mubr.msk.bf16.mxu1 %vm542_vm6, %v8554_v1 }
0x29e7   : > { %10772 = vmatmul.mubr.msk.bf16.gmra.mrb[116].mxu1 %vm542_vm6, %v8555_v46 }
0x29e8   : > { %10779 = vmatprep.mubr.msk.bf16.mxu1 %vm542_vm6, %v15049_v56 }
0x29ef   : > { %10780 = vmatmul.mubr.msk.bf16.vlgmr.msra.gmra.mrb[104].mxu1 %vm542_vm6, %v15050_v42 }
0x29f0   : > { %10783 = vmatprep.mubr.msk.bf16.mxu1 %vm542_vm6, %v15051_v53  ;;  %10796 = vmatpush3.bf16.msra.mxu1 %v11274_v16 }
0x29f1   : > { %10797 = vmatprep.subr.bf16.mxu1 %v11275_v49 }
0x29f4   : > { %10798 = vmatpush3.bf16.msra.mxu1 %v11275_v49 }
0x29f7   : > { %10784 = vmatmul.mubr.msk.bf16.gmra.mrb[108].mxu1 %vm542_vm6, %v8543_v22 }
0x29f8   : > { %10787 = vmatprep.mubr.msk.bf16.mxu1 %vm542_vm6, %v8544_v44 }
0x29ff   : > { %10788 = vmatmul.mubr.msk.bf16.gmra.mrb[112].mxu1 %vm542_vm6, %v8545_v57 }
0x2a00   : > { %10791 = vmatprep.mubr.msk.bf16.mxu1 %vm542_vm6, %v8546_v41 }
0x2a07   : > { %10792 = vmatmul.mubr.msk.bf16.gmra.mrb[116].mxu1 %vm542_vm6, %v8547_v26 }
0x2a08   : > { %10799 = vmatprep.mubr.msk.bf16.mxu1 %vm542_vm6, %v8822_v61 }
0x2a0f   : > { %10800 = vmatmul.mubr.msk.bf16.vlgmr.msra.gmra.mrb[104].mxu1 %vm542_vm6, %v15052_v3 }
0x2a10   : > { %10803 = vmatprep.mubr.msk.bf16.mxu1 %vm542_vm6, %v8824_v20 }
0x2a17   : > { %10804 = vmatmul.mubr.msk.bf16.gmra.mrb[108].mxu1 %vm542_vm6, %v8825_v21 }
0x2a18   : > { %10807 = vmatprep.mubr.msk.bf16.mxu1 %vm542_vm6, %v8826_v38 }
0x2a1f   : > { %10808 = vmatmul.mubr.msk.bf16.gmra.mrb[112].mxu1 %vm542_vm6, %v8827_v19 }
0x2a20   : > { %10811 = vmatprep.mubr.msk.bf16.mxu1 %vm542_vm6, %v8828_v48 }
0x2a27   : > { %10812 = vmatmul.mubr.msk.bf16.gmra.mrb[116].mxu1 %vm542_vm6, %v8829_v33 }
0x2ae2   : > { %v10801_v9 = vpop.f32.mrb[104].mxu1 }
0x2ae3   : > { %v8900_v57 = vpop.f32.mrb[105].mxu1  ;;  %v8985_v30 = vadd.f32 %v10801_v9, %v14770_v58 }
0x2ae4   : > { %v8983_v27 = vadd.f32 %v14770_v58, %v8900_v57  ;;  %v10802_v32 = vpop.f32.mrb[106].mxu1 }
0x2ae5   : > { %v8903_v61 = vpop.f32.mrb[107].mxu1  ;;  %v8986_v15 = vadd.f32 %v10802_v32, %v14770_v58 }
0x2ae6   : > { %11340 = vtanh.f32 %v8983_v27  ;;  %v8984_v4 = vadd.f32 %v14770_v58, %v8903_v61 }
0x2ae8   : > { %11342 = vtanh.f32 %v8984_v4 }
0x2ae9   : > { %11344 = vtanh.f32 %v8985_v30 }
0x2aea   : > { %v10805_v43 = vpop.f32.mrb[108].mxu1  ;;  %11346 = vtanh.f32 %v8986_v15 }
0x2aeb   : > { %v8916_v45 = vpop.f32.mrb[109].mxu1  ;;  %v8989_v44 = vadd.f32 %v10805_v43, %v14770_v58 }
0x2aec   : > { %v10806_v37 = vpop.f32.mrb[110].mxu1  ;;  %v8987_v5 = vadd.f32 %v14770_v58, %v8916_v45 }
0x2aed   : > { %v8919_v62 = vpop.f32.mrb[111].mxu1  ;;  %v8990_v6 = vadd.f32 %v10806_v37, %v14770_v58 }
0x2aee   : > { %11348 = vtanh.f32 %v8987_v5  ;;  %v8988_v59 = vadd.f32 %v14770_v58, %v8919_v62 }
0x2af0   : > { %v11341_v8 = vpop.eup %11340  ;;  %11350 = vtanh.f32 %v8988_v59 }
0x2af1   : > { %9015 = vxpose.xlu1.b32.start [1/16] (narrow) %v11341_v8, 8  ;;  %11352 = vtanh.f32 %v8989_v44 }
0x2af2   : > { %v10809_v40 = vpop.f32.mrb[112].mxu1  ;;  %v11343_v0 = vpop.eup %11342  ;;  %11354 = vtanh.f32 %v8990_v6 }
0x2af3   : > { %v8932_v41 = vpop.f32.mrb[113].mxu1  ;;  %v11345_v22 = vpop.eup %11344  ;;  %v8993_v1 = vadd.f32 %v10809_v40, %v14770_v58 }
0x2af4   : > { %v10810_v50 = vpop.f32.mrb[114].mxu1  ;;  %v11347_v31 = vpop.eup %11346  ;;  %v8991_v14 = vadd.f32 %v14770_v58, %v8932_v41 }
0x2af5   : > { %9016 = vxpose.xlu1.b32.cont [2/16] (narrow) %v11343_v0, 8  ;;  %v8935_v52 = vpop.f32.mrb[115].mxu1  ;;  %v8994_v20 = vadd.f32 %v10810_v50, %v14770_v58 }
0x2af6   : > { %11356 = vtanh.f32 %v8991_v14  ;;  %v8992_v10 = vadd.f32 %v14770_v58, %v8935_v52 }
0x2af8   : > { %v11349_v28 = vpop.eup %11348  ;;  %11358 = vtanh.f32 %v8992_v10 }
0x2af9   : > { %9017 = vxpose.xlu1.b32.cont [3/16] (narrow) %v11345_v22, 8  ;;  %11360 = vtanh.f32 %v8993_v1 }
0x2afa   : > { %v10813_v35 = vpop.f32.mrb[116].mxu1  ;;  %v11351_v54 = vpop.eup %11350  ;;  %11362 = vtanh.f32 %v8994_v20 }
0x2afb   : > { %v8948_v24 = vpop.f32.mrb[117].mxu1  ;;  %v11353_v23 = vpop.eup %11352  ;;  %v8997_v21 = vadd.f32 %v10813_v35, %v14770_v58 }
0x2afc   : > { %v10814_v26 = vpop.f32.mrb[118].mxu1  ;;  %v11355_v46 = vpop.eup %11354  ;;  %v8995_v55 = vadd.f32 %v14770_v58, %v8948_v24 }
0x2afd   : > { %9018 = vxpose.xlu1.b32.cont [4/16] (narrow) %v11347_v31, 8  ;;  %v8951_v29 = vpop.f32.mrb[119].mxu1  ;;  %v8998_v18 = vadd.f32 %v10814_v26, %v14770_v58 }
0x2afe   : > { %11364 = vtanh.f32 %v8995_v55  ;;  %v8996_v12 = vadd.f32 %v14770_v58, %v8951_v29 }
0x2b00   : > { %v11357_v7 = vpop.eup %11356  ;;  %11366 = vtanh.f32 %v8996_v12 }
0x2b01   : > { %9019 = vxpose.xlu1.b32.cont [5/16] (narrow) %v11349_v28, 8  ;;  %11368 = vtanh.f32 %v8997_v21 }
0x2b02   : > { %v11359_v25 = vpop.eup %11358  ;;  %11370 = vtanh.f32 %v8998_v18 }
0x2b03   : > { %v11361_v60 = vpop.eup %11360 }
0x2b04   : > { %v11363_v38 = vpop.eup %11362 }
0x2b05   : > { %9020 = vxpose.xlu1.b32.cont [6/16] (narrow) %v11351_v54, 8 }
0x2b08   : > { %v11365_v34 = vpop.eup %11364 }
0x2b09   : > { %9021 = vxpose.xlu1.b32.cont [7/16] (narrow) %v11353_v23, 8 }
0x2b0a   : > { %v11367_v63 = vpop.eup %11366 }
0x2b0b   : > { %v11369_v51 = vpop.eup %11368 }
0x2b0c   : > { %v11371_v17 = vpop.eup %11370 }
0x2b0d   : > { %9022 = vxpose.xlu1.b32.cont [8/16] (narrow) %v11355_v46, 8 }
0x2b11   : > { %9023 = vxpose.xlu1.b32.cont [9/16] (narrow) %v11357_v7, 8 }
0x2b15   : > { %9024 = vxpose.xlu1.b32.cont [10/16] (narrow) %v11359_v25, 8 }
0x2b19   : > { %9025 = vxpose.xlu1.b32.cont [11/16] (narrow) %v11361_v60, 8 }
0x2b1d   : > { %9026 = vxpose.xlu1.b32.cont [12/16] (narrow) %v11363_v38, 8 }
0x2b21   : > { %9027 = vxpose.xlu1.b32.cont [13/16] (narrow) %v11365_v34, 8 }
0x2b25   : > { %9028 = vxpose.xlu1.b32.cont [14/16] (narrow) %v11367_v63, 8 }
0x2b29   : > { %9029 = vxpose.xlu1.b32.cont [15/16] (narrow) %v11369_v51, 8 }
0x2b2d   : > { %9030 = vxpose.xlu1.b32.end [16/16] (narrow) %v11371_v17, 8 }
0x2b71   : > { %v9031_v39 = vpop.trf.xlu1 }
0x2b72   : > { %9619 = vst [vmem:[%s14780_s13 + $0x1] sm:$0x1] %v9031_v39 }
0x2b73   : > { %11397 = shalt.err (!%p11394_p8)
}
0x2b74   : > { %s11398_s22 = scalar_lea.hbm %s14799_s20, 32  ;;  %s11402_s12 = scalar_lea.hbm %s14856_s7, 64 }
0x2b75   : > { %p11399_p9 = scmp.ne.s32.totalorder %s14799_s20, %s11398_s22  ;;  %p11403_p0 = scmp.lt.u32.totalorder %s14799_s20, %s14856_s7 }
0x2b76   : > { %p11404_p1 = scmp.lt.u32.totalorder %s11402_s12, %s11398_s22  ;;  %p11406_p3 = scmp.lt.u32.totalorder %s11398_s22, %s14799_s20 }
0x2b77   : > { %p11400_p12 = pnand %p11399_p9, %p11540_p10 }
0x2b78   : > { %p11405_p2 = por %p11404_p1, %p11403_p0 }
0x2b79   : > { %p11401_p13 = pneg %p11400_p12 }
0x2b7a   : > { %p11407_p4 = por %p11406_p3, %p11405_p2 }
0x2b7c   : > { %p11408_p5 = pnand %p11407_p4, %p11401_p13 }
0x2b7e   : > { %11411 = shalt.err (!%p11408_p5)
}
0x2b7f   : > { %s11458_s19 = smov 1  }
0x2b80   : > { %11057 = dma.vmem_to_hbm [thread:$0]  (%p11540_p10), %s14801_s25, 32, %s14799_s20, %s14806_s23, %s11456_s21, %s11456_s21, %s11458_s19  }
0x2b81 PF: > { %p11063_p6 = scmp.ge.s32.totalorder %s11448_s8, 2  ;;  %s9078_s24 = sand.u32 1, %s11436_s29  }
0x2b82   : > { %s9079_s17 = scalar_lea.sflag [#allocation5], %s9078_s24 }
0x2b83   : > { %p11060_p7 = pnand %p11063_p6, %p11544_p11 }
0x2b85   : > { %11431 = dma.done.wait (!%p11060_p7), %s9079_s17, 32  }
0x2b86   : > { %11433 = vsyncadd (!%p11060_p7), %s9079_s17, 4294967264  ;;  %p23_p8 = scmp.ge.s32.totalorder %s11527_s11, 4   ;;  %s15053_s29 = smov %s11440_s30 }
0x2b87   : > { %s15054_s30 = smov %s11444_s0  ;;  %s15055_s0 = smov %s11538_s14 }
0x2b88   : > { %s15056_s8 = smov %s11527_s11  ;;  %25 = sbr.rel (!%p23_p8) target bundleno = 18 (0x12), region = 85 }
0x2b8f   :  { %9084 = vsyncpa [#allocation5], 1 }
0x2b90   :  { %9086 = vsyncpa [#allocation5 + $0x1], 1 }

</bundles_post_ra>
